<compile_context>
chip_gen: v5e
topology: v5e:2x2
jax: 0.10.0
libtpu: 0.0.40
codegen_flags: <defaults>
</compile_context>

<pallas_src>
import functools

import jax
import jax.numpy as jnp
from jax import lax
from jax.experimental import pallas as pl
from jax.experimental.pallas import tpu as pltpu

_LANE = 128
_SUBLANE = 8


def _round_up(x, m):
    return ((x + m - 1) // m) * m


# ----------------------------------------------------------------------------
# Pallas kernel: bidirectional LSTM recurrence + fused output projection
# ----------------------------------------------------------------------------
def _bilstm_fc_kernel(
    emb_ref,       # (T*Bp, E)   flattened time-major embeddings (batch padded)
    wih_ref,       # (E, 8H)     [fwd 4H | bwd 4H] input->gates, pre-transposed
    whh_ref,       # (2H, 8H)    block-diag(whh_f, whh_b), pre-transposed
    b_ref,         # (1, 8H)     [fwd | bwd] fused biases (b_ih + b_hh)
    wfc_ref,       # (2H, Cpad)  fc weight ([fwd|bwd] rows), lane-padded
    bfc_ref,       # (1, Cpad)   fc bias, lane-padded
    out_ref,       # (T*Bp, Cpad) logits, time-major, lane-dense
    # scratch:
    xg_ref,        # (T*Bp, 8H)  hoisted input projections, both directions
    hid_ref,       # (T*Bp, 2H)  [h_fwd | h_bwd] hidden slab (contiguous)
    *, T, Bp,
):
    f32 = jnp.float32
    H = whh_ref.shape[0] // 2
    G = 4 * H

    # ---- Phase 1: one fused hoisted input projection (M = T*Bp, N = 8H) -----
    xg_ref[...] = (jnp.dot(emb_ref[...], wih_ref[...],
                           preferred_element_type=f32) + b_ref[...])

    whh_blk = whh_ref[...]                                   # loaded once

    def gates(g):
        # PyTorch gate order: i, f, g, o (lane slices at 128 multiples: free).
        i = jax.nn.sigmoid(g[:, 0 * H:1 * H])
        f = jax.nn.sigmoid(g[:, 1 * H:2 * H])
        gg = jnp.tanh(g[:, 2 * H:3 * H])
        o = jax.nn.sigmoid(g[:, 3 * H:4 * H])
        return i, f, gg, o

    h2 = jnp.zeros((Bp, 2 * H), f32)                         # [h_f | h_b]
    c_f = jnp.zeros((Bp, H), f32)
    c_b = jnp.zeros((Bp, H), f32)

    # ---- Phase 2: fully unrolled recurrence (T static, small). Forward step s
    # and backward step T-1-s share one K=256 block-diag matmul per step. -----
    for s in range(T):
        tb = T - 1 - s
        if s == 0:
            g2 = jnp.zeros((Bp, 2 * G), f32)                 # h==0 at step 0
        else:
            g2 = jnp.dot(h2, whh_blk, preferred_element_type=f32)   # (Bp, 8H)
        gf = g2[:, :G] + xg_ref[s * Bp:(s + 1) * Bp, :G]
        gb = g2[:, G:] + xg_ref[tb * Bp:(tb + 1) * Bp, G:]

        i_f, f_f, g_f, o_f = gates(gf)
        i_b, f_b, g_b, o_b = gates(gb)
        c_f = f_f * c_f + i_f * g_f
        c_b = f_b * c_b + i_b * g_b
        h_f = o_f * jnp.tanh(c_f)
        h_b = o_b * jnp.tanh(c_b)

        # Sublane-aligned (Bp=8) stores into the contiguous hidden slab.
        hid_ref[s * Bp:(s + 1) * Bp, 0:H] = h_f
        hid_ref[tb * Bp:(tb + 1) * Bp, H:2 * H] = h_b

        h2 = jnp.concatenate([h_f, h_b], axis=-1)            # in-vreg, 128-aligned

    # ---- Phase 3: single fused output projection (K = 2H = 256) -------------
    out_ref[...] = (jnp.dot(hid_ref[...], wfc_ref[...],
                            preferred_element_type=f32) + bfc_ref[...])


def bilstm_fc_pallas(emb_flat, params, hidden_dim, T, Bp):
    """emb_flat: (T*Bp, E) f32, time-major -> logits (T*Bp, Cpad) f32."""
    H = hidden_dim
    Cpad = params["wfc_pad"].shape[1]
    f32 = jnp.float32
    vmem = pltpu.MemorySpace.VMEM

    kernel = functools.partial(_bilstm_fc_kernel, T=T, Bp=Bp)
    return pl.pallas_call(
        kernel,
        out_shape=jax.ShapeDtypeStruct((T * Bp, Cpad), f32),
        in_specs=[pl.BlockSpec(memory_space=vmem)] * 6,
        out_specs=pl.BlockSpec(memory_space=vmem),
        scratch_shapes=[
            pltpu.VMEM((T * Bp, 8 * H), f32),   # xg (both directions)
            pltpu.VMEM((T * Bp, 2 * H), f32),   # hidden slab [fwd | bwd]
        ],
        compiler_params=pltpu.CompilerParams(vmem_limit_bytes=32 * 1024 * 1024),
    )(
        emb_flat,
        params["wih_cat"], params["whh_blk"], params["b_cat"],
        params["wfc_pad"], params["bfc_pad"],
    )


# ----------------------------------------------------------------------------
# Parameter construction (PyTorch-shaped, then fused / pre-transposed)
# ----------------------------------------------------------------------------
def make_params(key, vocab_size, embedding_dim, hidden_dim, num_classes):
    E, H, C, V = embedding_dim, hidden_dim, num_classes, vocab_size
    ks = jax.random.split(key, 12)
    s = 1.0 / jnp.sqrt(jnp.float32(H))

    def u(k, shape):
        return jax.random.uniform(k, shape, jnp.float32, -s, s)

    # Embedding (padding_idx=0 -> row 0 zeroed, as in nn.Embedding)
    emb_table = jax.random.normal(ks[0], (V, E), jnp.float32)
    emb_table = emb_table.at[0].set(0.0)

    # PyTorch-native shapes: W_ih (4H, E), W_hh (4H, H), biases (4H,)
    wih_f = u(ks[1], (4 * H, E)); whh_f = u(ks[2], (4 * H, H))
    bih_f = u(ks[3], (4 * H,));   bhh_f = u(ks[4], (4 * H,))
    wih_b = u(ks[5], (4 * H, E)); whh_b = u(ks[6], (4 * H, H))
    bih_b = u(ks[7], (4 * H,));   bhh_b = u(ks[8], (4 * H,))
    # fc: (C, 2H), (C,)
    wfc = u(ks[9], (C, 2 * H)); bfc = u(ks[10], (C,))

    # Fused input projection: (E, 8H) = [fwd 4H | bwd 4H] along N.
    wih_cat = jnp.concatenate([wih_f.T, wih_b.T], axis=1)
    b_cat = jnp.concatenate([bih_f + bhh_f, bih_b + bhh_b])[None, :]

    # Fused recurrent weight: block-diag(whh_f^T, whh_b^T) of shape (2H, 8H).
    whh_blk = jnp.zeros((2 * H, 8 * H), jnp.float32)
    whh_blk = whh_blk.at[:H, :4 * H].set(whh_f.T)
    whh_blk = whh_blk.at[H:, 4 * H:].set(whh_b.T)

    # Lane-padded fc for a dense (T*Bp, Cpad) output store inside the kernel.
    Cpad = max(_LANE, _round_up(C, _LANE))
    wfc_pad = jnp.zeros((2 * H, Cpad), jnp.float32).at[:, :C].set(wfc.T)
    bfc_pad = jnp.zeros((1, Cpad), jnp.float32).at[:, :C].set(bfc)

    return {
        "embedding": emb_table,
        "wih_cat": wih_cat, "whh_blk": whh_blk, "b_cat": b_cat,
        "wfc_pad": wfc_pad, "bfc_pad": bfc_pad,
        # raw forms for the pure-JAX reference
        "_raw": (wih_f, whh_f, bih_f, bhh_f, wih_b, whh_b, bih_b, bhh_b, wfc, bfc),
    }


# ----------------------------------------------------------------------------
# Forward pass (mirrors POSTagger.forward)
# ----------------------------------------------------------------------------
def pos_tagger_forward(x, params, hidden_dim, num_classes):
    B, T = x.shape
    mask = x != 0                                            # (B, T) bool

    # Pad batch to a full sublane tile; padding rows use token 0 (zero emb row)
    # and are dropped after the kernel.
    Bp = _round_up(max(B, _SUBLANE), _SUBLANE)
    ids_tm = jnp.zeros((T, Bp), dtype=x.dtype).at[:, :B].set(x.T)

    # Time-major gather directly: no (B,T,E)->(T,B,E) activation transpose.
    # TODO(synk): for realistic vocab sizes, move this gather into the kernel
    # (scalar-prefetched token ids + row DMA, or in-VMEM one-hot matmul).
    emb_flat = jnp.take(params["embedding"], ids_tm.reshape(-1), axis=0)  # (T*Bp, E)

    out2d = bilstm_fc_pallas(emb_flat, params, hidden_dim, T, Bp)
    Cpad = out2d.shape[-1]
    logits_tm = out2d.reshape(T, Bp, Cpad)[:, :B, :num_classes]  # (T, B, C)
    logits = jnp.transpose(logits_tm, (1, 0, 2))                 # (B, T, C)
    return logits, mask


# ----------------------------------------------------------------------------
# Pure-JAX reference (for correctness check)
# ----------------------------------------------------------------------------
def reference_forward(x, params, hidden_dim):
    H = hidden_dim
    wih_f, whh_f, bih_f, bhh_f, wih_b, whh_b, bih_b, bhh_b, wfc, bfc = params["_raw"]
    embeds = jnp.take(params["embedding"], x, axis=0)    # (B, T, E)
    B, T, E = embeds.shape

    def cell(carry, x_t, wih, whh, bih, bhh):
        h, c = carry
        g = x_t @ wih.T + bih + h @ whh.T + bhh
        i = jax.nn.sigmoid(g[:, :H]); f = jax.nn.sigmoid(g[:, H:2 * H])
        gg = jnp.tanh(g[:, 2 * H:3 * H]); o = jax.nn.sigmoid(g[:, 3 * H:])
        c = f * c + i * gg
        h = o * jnp.tanh(c)
        return (h, c), h

    emb_tm = jnp.transpose(embeds, (1, 0, 2))  # (T, B, E)
    init = (jnp.zeros((B, H)), jnp.zeros((B, H)))
    _, out_f = lax.scan(functools.partial(cell, wih=wih_f, whh=whh_f, bih=bih_f, bhh=bhh_f),
                        init, emb_tm)
    _, out_b = lax.scan(functools.partial(cell, wih=wih_b, whh=whh_b, bih=bih_b, bhh=bhh_b),
                        init, emb_tm[::-1])
    out_b = out_b[::-1]
    lstm_out = jnp.concatenate([out_f, out_b], axis=-1)       # (T, B, 2H)
    logits = lstm_out @ wfc.T + bfc                           # (T, B, C)
    return jnp.transpose(logits, (1, 0, 2)), (x != 0)


if __name__ == "__main__":
    # Small, deterministic configuration consistent with the module.
    B, T = 2, 8
    vocab_size = 50
    embedding_dim = 128
    hidden_dim = 128
    num_classes = 16

    key = jax.random.PRNGKey(0)
    k_par, k_x = jax.random.split(key)
    params = make_params(k_par, vocab_size, embedding_dim, hidden_dim, num_classes)

    # token ids; include some zeros so the padding mask is non-trivial
    x = jax.random.randint(k_x, (B, T), 0, vocab_size, dtype=jnp.int32)
    x = x.at[:, -2:].set(0)

    logits, mask = pos_tagger_forward(x, params, hidden_dim, num_classes)
    logits = jax.block_until_ready(logits)
    mask = jax.block_until_ready(mask)

    ref_logits, ref_mask = reference_forward(x, params, hidden_dim)
    assert logits.shape == (B, T, num_classes)
    assert mask.shape == (B, T) and mask.dtype == jnp.bool_
    assert jnp.allclose(logits, ref_logits, atol=1e-4, rtol=1e-4)
    assert jnp.array_equal(mask, ref_mask)

    print("KERNEL_OK")
</pallas_src>

<mosaic_0001>
module attributes {stable_mosaic.version = 11 : i64} {
  func.func @_bilstm_fc_kernel(%arg0: memref<64x128xf32, #tpu.memory_space<vmem>>, %arg1: memref<128x1024xf32, #tpu.memory_space<vmem>>, %arg2: memref<256x1024xf32, #tpu.memory_space<vmem>>, %arg3: memref<1x1024xf32, #tpu.memory_space<vmem>>, %arg4: memref<256x128xf32, #tpu.memory_space<vmem>>, %arg5: memref<1x128xf32, #tpu.memory_space<vmem>>, %arg6: memref<64x128xf32, #tpu.memory_space<vmem>>, %arg7: memref<64x1024xf32, #tpu.memory_space<vmem>>, %arg8: memref<64x256xf32, #tpu.memory_space<vmem>>) attributes {dimension_semantics = [], scalar_prefetch = 0 : i64, scratch_operands = 2 : i64, tpu.core_type = #tpu.core_type<tc>} {
    %c0 = arith.constant 0 : index
    %c0_0 = arith.constant 0 : index
    %0 = vector.load %arg0[%c0, %c0_0] : memref<64x128xf32, #tpu.memory_space<vmem>>, vector<64x128xf32>
    %c0_1 = arith.constant 0 : index
    %c0_2 = arith.constant 0 : index
    %1 = vector.load %arg1[%c0_1, %c0_2] : memref<128x1024xf32, #tpu.memory_space<vmem>>, vector<128x1024xf32>
    %cst = arith.constant dense<0.000000e+00> : vector<64x1024xf32>
    %2 = tpu.matmul %0, %1, %cst {dimension_numbers = #tpu.dot_dimension_numbers<[1], [0], [0], [1], [0, 0, 1, 1], [], []>} : vector<64x128xf32>, vector<128x1024xf32>, vector<64x1024xf32> -> vector<64x1024xf32>
    %c0_3 = arith.constant 0 : index
    %c0_4 = arith.constant 0 : index
    %3 = vector.load %arg3[%c0_3, %c0_4] : memref<1x1024xf32, #tpu.memory_space<vmem>>, vector<1x1024xf32>
    %4 = vector.broadcast %3 : vector<1x1024xf32> to vector<64x1024xf32>
    %5 = arith.addf %2, %4 : vector<64x1024xf32>
    %c0_5 = arith.constant 0 : index
    %c0_6 = arith.constant 0 : index
    %6 = vector.load %arg7[%c0_5, %c0_6] : memref<64x1024xf32, #tpu.memory_space<vmem>>, vector<64x1024xf32>
    tpu.vector_store %arg7[%c0_5, %c0_6], %5 {strides = array<i32>} : memref<64x1024xf32, #tpu.memory_space<vmem>>, vector<64x1024xf32>,
    %c0_7 = arith.constant 0 : index
    %c0_8 = arith.constant 0 : index
    %7 = vector.load %arg2[%c0_7, %c0_8] : memref<256x1024xf32, #tpu.memory_space<vmem>>, vector<256x1024xf32>
    %cst_9 = arith.constant 0.000000e+00 : f32
    %8 = vector.broadcast %cst_9 : f32 to vector<8x128xf32>
    %cst_10 = arith.constant 0.000000e+00 : f32
    %9 = vector.broadcast %cst_10 : f32 to vector<8x128xf32>
    %cst_11 = arith.constant 0.000000e+00 : f32
    %10 = vector.broadcast %cst_11 : f32 to vector<8x1024xf32>
    %11 = vector.extract_strided_slice %10 {offsets = [0, 0], sizes = [8, 512], strides = [1, 1]} : vector<8x1024xf32> to vector<8x512xf32>
    %c0_12 = arith.constant 0 : index
    %c0_13 = arith.constant 0 : index
    %12 = vector.load %arg7[%c0_12, %c0_13] : memref<64x1024xf32, #tpu.memory_space<vmem>>, vector<8x512xf32>
    %13 = arith.addf %11, %12 : vector<8x512xf32>
    %14 = vector.extract_strided_slice %10 {offsets = [0, 512], sizes = [8, 512], strides = [1, 1]} : vector<8x1024xf32> to vector<8x512xf32>
    %c56 = arith.constant 56 : index
    %c512 = arith.constant 512 : index
    %15 = vector.load %arg7[%c56, %c512] : memref<64x1024xf32, #tpu.memory_space<vmem>>, vector<8x512xf32>
    %16 = arith.addf %14, %15 : vector<8x512xf32>
    %17 = vector.extract_strided_slice %13 {offsets = [0, 0], sizes = [8, 128], strides = [1, 1]} : vector<8x512xf32> to vector<8x128xf32>
    %18 = arith.negf %17 : vector<8x128xf32>
    %19 = math.exp %18 : vector<8x128xf32>
    %cst_14 = arith.constant 1.000000e+00 : f32
    %20 = vector.broadcast %cst_14 : f32 to vector<8x128xf32>
    %21 = arith.addf %20, %19 : vector<8x128xf32>
    %22 = arith.divf %20, %21 : vector<8x128xf32>
    %23 = vector.extract_strided_slice %13 {offsets = [0, 128], sizes = [8, 128], strides = [1, 1]} : vector<8x512xf32> to vector<8x128xf32>
    %24 = arith.negf %23 : vector<8x128xf32>
    %25 = math.exp %24 : vector<8x128xf32>
    %cst_15 = arith.constant 1.000000e+00 : f32
    %26 = vector.broadcast %cst_15 : f32 to vector<8x128xf32>
    %27 = arith.addf %26, %25 : vector<8x128xf32>
    %28 = arith.divf %26, %27 : vector<8x128xf32>
    %29 = vector.extract_strided_slice %13 {offsets = [0, 256], sizes = [8, 128], strides = [1, 1]} : vector<8x512xf32> to vector<8x128xf32>
    %30 = math.tanh %29 : vector<8x128xf32>
    %31 = vector.extract_strided_slice %13 {offsets = [0, 384], sizes = [8, 128], strides = [1, 1]} : vector<8x512xf32> to vector<8x128xf32>
    %32 = arith.negf %31 : vector<8x128xf32>
    %33 = math.exp %32 : vector<8x128xf32>
    %cst_16 = arith.constant 1.000000e+00 : f32
    %34 = vector.broadcast %cst_16 : f32 to vector<8x128xf32>
    %35 = arith.addf %34, %33 : vector<8x128xf32>
    %36 = arith.divf %34, %35 : vector<8x128xf32>
    %37 = vector.extract_strided_slice %16 {offsets = [0, 0], sizes = [8, 128], strides = [1, 1]} : vector<8x512xf32> to vector<8x128xf32>
    %38 = arith.negf %37 : vector<8x128xf32>
    %39 = math.exp %38 : vector<8x128xf32>
    %cst_17 = arith.constant 1.000000e+00 : f32
    %40 = vector.broadcast %cst_17 : f32 to vector<8x128xf32>
    %41 = arith.addf %40, %39 : vector<8x128xf32>
    %42 = arith.divf %40, %41 : vector<8x128xf32>
    %43 = vector.extract_strided_slice %16 {offsets = [0, 128], sizes = [8, 128], strides = [1, 1]} : vector<8x512xf32> to vector<8x128xf32>
    %44 = arith.negf %43 : vector<8x128xf32>
    %45 = math.exp %44 : vector<8x128xf32>
    %cst_18 = arith.constant 1.000000e+00 : f32
    %46 = vector.broadcast %cst_18 : f32 to vector<8x128xf32>
    %47 = arith.addf %46, %45 : vector<8x128xf32>
    %48 = arith.divf %46, %47 : vector<8x128xf32>
    %49 = vector.extract_strided_slice %16 {offsets = [0, 256], sizes = [8, 128], strides = [1, 1]} : vector<8x512xf32> to vector<8x128xf32>
    %50 = math.tanh %49 : vector<8x128xf32>
    %51 = vector.extract_strided_slice %16 {offsets = [0, 384], sizes = [8, 128], strides = [1, 1]} : vector<8x512xf32> to vector<8x128xf32>
    %52 = arith.negf %51 : vector<8x128xf32>
    %53 = math.exp %52 : vector<8x128xf32>
    %cst_19 = arith.constant 1.000000e+00 : f32
    %54 = vector.broadcast %cst_19 : f32 to vector<8x128xf32>
    %55 = arith.addf %54, %53 : vector<8x128xf32>
    %56 = arith.divf %54, %55 : vector<8x128xf32>
    %57 = arith.mulf %28, %8 : vector<8x128xf32>
    %58 = arith.mulf %22, %30 : vector<8x128xf32>
    %59 = arith.addf %57, %58 : vector<8x128xf32>
    %60 = arith.mulf %48, %9 : vector<8x128xf32>
    %61 = arith.mulf %42, %50 : vector<8x128xf32>
    %62 = arith.addf %60, %61 : vector<8x128xf32>
    %63 = math.tanh %59 : vector<8x128xf32>
    %64 = arith.mulf %36, %63 : vector<8x128xf32>
    %65 = math.tanh %62 : vector<8x128xf32>
    %66 = arith.mulf %56, %65 : vector<8x128xf32>
    %c0_20 = arith.constant 0 : index
    %c0_21 = arith.constant 0 : index
    %67 = vector.load %arg8[%c0_20, %c0_21] : memref<64x256xf32, #tpu.memory_space<vmem>>, vector<8x128xf32>
    tpu.vector_store %arg8[%c0_20, %c0_21], %64 {strides = array<i32>} : memref<64x256xf32, #tpu.memory_space<vmem>>, vector<8x128xf32>,
    %c56_22 = arith.constant 56 : index
    %c128 = arith.constant 128 : index
    %68 = vector.load %arg8[%c56_22, %c128] : memref<64x256xf32, #tpu.memory_space<vmem>>, vector<8x128xf32>
    tpu.vector_store %arg8[%c56_22, %c128], %66 {strides = array<i32>} : memref<64x256xf32, #tpu.memory_space<vmem>>, vector<8x128xf32>,
    %69 = tpu.concatenate %64, %66 in 1 : vector<8x128xf32>, vector<8x128xf32> -> vector<8x256xf32>
    %cst_23 = arith.constant dense<0.000000e+00> : vector<8x1024xf32>
    %70 = tpu.matmul %69, %7, %cst_23 {dimension_numbers = #tpu.dot_dimension_numbers<[1], [0], [0], [1], [0, 0, 1, 1], [], []>} : vector<8x256xf32>, vector<256x1024xf32>, vector<8x1024xf32> -> vector<8x1024xf32>
    %71 = vector.extract_strided_slice %70 {offsets = [0, 0], sizes = [8, 512], strides = [1, 1]} : vector<8x1024xf32> to vector<8x512xf32>
    %c8 = arith.constant 8 : index
    %c0_24 = arith.constant 0 : index
    %72 = vector.load %arg7[%c8, %c0_24] : memref<64x1024xf32, #tpu.memory_space<vmem>>, vector<8x512xf32>
    %73 = arith.addf %71, %72 : vector<8x512xf32>
    %74 = vector.extract_strided_slice %70 {offsets = [0, 512], sizes = [8, 512], strides = [1, 1]} : vector<8x1024xf32> to vector<8x512xf32>
    %c48 = arith.constant 48 : index
    %c512_25 = arith.constant 512 : index
    %75 = vector.load %arg7[%c48, %c512_25] : memref<64x1024xf32, #tpu.memory_space<vmem>>, vector<8x512xf32>
    %76 = arith.addf %74, %75 : vector<8x512xf32>
    %77 = vector.extract_strided_slice %73 {offsets = [0, 0], sizes = [8, 128], strides = [1, 1]} : vector<8x512xf32> to vector<8x128xf32>
    %78 = arith.negf %77 : vector<8x128xf32>
    %79 = math.exp %78 : vector<8x128xf32>
    %cst_26 = arith.constant 1.000000e+00 : f32
    %80 = vector.broadcast %cst_26 : f32 to vector<8x128xf32>
    %81 = arith.addf %80, %79 : vector<8x128xf32>
    %82 = arith.divf %80, %81 : vector<8x128xf32>
    %83 = vector.extract_strided_slice %73 {offsets = [0, 128], sizes = [8, 128], strides = [1, 1]} : vector<8x512xf32> to vector<8x128xf32>
    %84 = arith.negf %83 : vector<8x128xf32>
    %85 = math.exp %84 : vector<8x128xf32>
    %cst_27 = arith.constant 1.000000e+00 : f32
    %86 = vector.broadcast %cst_27 : f32 to vector<8x128xf32>
    %87 = arith.addf %86, %85 : vector<8x128xf32>
    %88 = arith.divf %86, %87 : vector<8x128xf32>
    %89 = vector.extract_strided_slice %73 {offsets = [0, 256], sizes = [8, 128], strides = [1, 1]} : vector<8x512xf32> to vector<8x128xf32>
    %90 = math.tanh %89 : vector<8x128xf32>
    %91 = vector.extract_strided_slice %73 {offsets = [0, 384], sizes = [8, 128], strides = [1, 1]} : vector<8x512xf32> to vector<8x128xf32>
    %92 = arith.negf %91 : vector<8x128xf32>
    %93 = math.exp %92 : vector<8x128xf32>
    %cst_28 = arith.constant 1.000000e+00 : f32
    %94 = vector.broadcast %cst_28 : f32 to vector<8x128xf32>
    %95 = arith.addf %94, %93 : vector<8x128xf32>
    %96 = arith.divf %94, %95 : vector<8x128xf32>
    %97 = vector.extract_strided_slice %76 {offsets = [0, 0], sizes = [8, 128], strides = [1, 1]} : vector<8x512xf32> to vector<8x128xf32>
    %98 = arith.negf %97 : vector<8x128xf32>
    %99 = math.exp %98 : vector<8x128xf32>
    %cst_29 = arith.constant 1.000000e+00 : f32
    %100 = vector.broadcast %cst_29 : f32 to vector<8x128xf32>
    %101 = arith.addf %100, %99 : vector<8x128xf32>
    %102 = arith.divf %100, %101 : vector<8x128xf32>
    %103 = vector.extract_strided_slice %76 {offsets = [0, 128], sizes = [8, 128], strides = [1, 1]} : vector<8x512xf32> to vector<8x128xf32>
    %104 = arith.negf %103 : vector<8x128xf32>
    %105 = math.exp %104 : vector<8x128xf32>
    %cst_30 = arith.constant 1.000000e+00 : f32
    %106 = vector.broadcast %cst_30 : f32 to vector<8x128xf32>
    %107 = arith.addf %106, %105 : vector<8x128xf32>
    %108 = arith.divf %106, %107 : vector<8x128xf32>
    %109 = vector.extract_strided_slice %76 {offsets = [0, 256], sizes = [8, 128], strides = [1, 1]} : vector<8x512xf32> to vector<8x128xf32>
    %110 = math.tanh %109 : vector<8x128xf32>
    %111 = vector.extract_strided_slice %76 {offsets = [0, 384], sizes = [8, 128], strides = [1, 1]} : vector<8x512xf32> to vector<8x128xf32>
    %112 = arith.negf %111 : vector<8x128xf32>
    %113 = math.exp %112 : vector<8x128xf32>
    %cst_31 = arith.constant 1.000000e+00 : f32
    %114 = vector.broadcast %cst_31 : f32 to vector<8x128xf32>
    %115 = arith.addf %114, %113 : vector<8x128xf32>
    %116 = arith.divf %114, %115 : vector<8x128xf32>
    %117 = arith.mulf %88, %59 : vector<8x128xf32>
    %118 = arith.mulf %82, %90 : vector<8x128xf32>
    %119 = arith.addf %117, %118 : vector<8x128xf32>
    %120 = arith.mulf %108, %62 : vector<8x128xf32>
    %121 = arith.mulf %102, %110 : vector<8x128xf32>
    %122 = arith.addf %120, %121 : vector<8x128xf32>
    %123 = math.tanh %119 : vector<8x128xf32>
    %124 = arith.mulf %96, %123 : vector<8x128xf32>
    %125 = math.tanh %122 : vector<8x128xf32>
    %126 = arith.mulf %116, %125 : vector<8x128xf32>
    %c8_32 = arith.constant 8 : index
    %c0_33 = arith.constant 0 : index
    %127 = vector.load %arg8[%c8_32, %c0_33] : memref<64x256xf32, #tpu.memory_space<vmem>>, vector<8x128xf32>
    tpu.vector_store %arg8[%c8_32, %c0_33], %124 {strides = array<i32>} : memref<64x256xf32, #tpu.memory_space<vmem>>, vector<8x128xf32>,
    %c48_34 = arith.constant 48 : index
    %c128_35 = arith.constant 128 : index
    %128 = vector.load %arg8[%c48_34, %c128_35] : memref<64x256xf32, #tpu.memory_space<vmem>>, vector<8x128xf32>
    tpu.vector_store %arg8[%c48_34, %c128_35], %126 {strides = array<i32>} : memref<64x256xf32, #tpu.memory_space<vmem>>, vector<8x128xf32>,
    %129 = tpu.concatenate %124, %126 in 1 : vector<8x128xf32>, vector<8x128xf32> -> vector<8x256xf32>
    %cst_36 = arith.constant dense<0.000000e+00> : vector<8x1024xf32>
    %130 = tpu.matmul %129, %7, %cst_36 {dimension_numbers = #tpu.dot_dimension_numbers<[1], [0], [0], [1], [0, 0, 1, 1], [], []>} : vector<8x256xf32>, vector<256x1024xf32>, vector<8x1024xf32> -> vector<8x1024xf32>
    %131 = vector.extract_strided_slice %130 {offsets = [0, 0], sizes = [8, 512], strides = [1, 1]} : vector<8x1024xf32> to vector<8x512xf32>
    %c16 = arith.constant 16 : index
    %c0_37 = arith.constant 0 : index
    %132 = vector.load %arg7[%c16, %c0_37] : memref<64x1024xf32, #tpu.memory_space<vmem>>, vector<8x512xf32>
    %133 = arith.addf %131, %132 : vector<8x512xf32>
    %134 = vector.extract_strided_slice %130 {offsets = [0, 512], sizes = [8, 512], strides = [1, 1]} : vector<8x1024xf32> to vector<8x512xf32>
    %c40 = arith.constant 40 : index
    %c512_38 = arith.constant 512 : index
    %135 = vector.load %arg7[%c40, %c512_38] : memref<64x1024xf32, #tpu.memory_space<vmem>>, vector<8x512xf32>
    %136 = arith.addf %134, %135 : vector<8x512xf32>
    %137 = vector.extract_strided_slice %133 {offsets = [0, 0], sizes = [8, 128], strides = [1, 1]} : vector<8x512xf32> to vector<8x128xf32>
    %138 = arith.negf %137 : vector<8x128xf32>
    %139 = math.exp %138 : vector<8x128xf32>
    %cst_39 = arith.constant 1.000000e+00 : f32
    %140 = vector.broadcast %cst_39 : f32 to vector<8x128xf32>
    %141 = arith.addf %140, %139 : vector<8x128xf32>
    %142 = arith.divf %140, %141 : vector<8x128xf32>
    %143 = vector.extract_strided_slice %133 {offsets = [0, 128], sizes = [8, 128], strides = [1, 1]} : vector<8x512xf32> to vector<8x128xf32>
    %144 = arith.negf %143 : vector<8x128xf32>
    %145 = math.exp %144 : vector<8x128xf32>
    %cst_40 = arith.constant 1.000000e+00 : f32
    %146 = vector.broadcast %cst_40 : f32 to vector<8x128xf32>
    %147 = arith.addf %146, %145 : vector<8x128xf32>
    %148 = arith.divf %146, %147 : vector<8x128xf32>
    %149 = vector.extract_strided_slice %133 {offsets = [0, 256], sizes = [8, 128], strides = [1, 1]} : vector<8x512xf32> to vector<8x128xf32>
    %150 = math.tanh %149 : vector<8x128xf32>
    %151 = vector.extract_strided_slice %133 {offsets = [0, 384], sizes = [8, 128], strides = [1, 1]} : vector<8x512xf32> to vector<8x128xf32>
    %152 = arith.negf %151 : vector<8x128xf32>
    %153 = math.exp %152 : vector<8x128xf32>
    %cst_41 = arith.constant 1.000000e+00 : f32
    %154 = vector.broadcast %cst_41 : f32 to vector<8x128xf32>
    %155 = arith.addf %154, %153 : vector<8x128xf32>
    %156 = arith.divf %154, %155 : vector<8x128xf32>
    %157 = vector.extract_strided_slice %136 {offsets = [0, 0], sizes = [8, 128], strides = [1, 1]} : vector<8x512xf32> to vector<8x128xf32>
    %158 = arith.negf %157 : vector<8x128xf32>
    %159 = math.exp %158 : vector<8x128xf32>
    %cst_42 = arith.constant 1.000000e+00 : f32
    %160 = vector.broadcast %cst_42 : f32 to vector<8x128xf32>
    %161 = arith.addf %160, %159 : vector<8x128xf32>
    %162 = arith.divf %160, %161 : vector<8x128xf32>
    %163 = vector.extract_strided_slice %136 {offsets = [0, 128], sizes = [8, 128], strides = [1, 1]} : vector<8x512xf32> to vector<8x128xf32>
    %164 = arith.negf %163 : vector<8x128xf32>
    %165 = math.exp %164 : vector<8x128xf32>
    %cst_43 = arith.constant 1.000000e+00 : f32
    %166 = vector.broadcast %cst_43 : f32 to vector<8x128xf32>
    %167 = arith.addf %166, %165 : vector<8x128xf32>
    %168 = arith.divf %166, %167 : vector<8x128xf32>
    %169 = vector.extract_strided_slice %136 {offsets = [0, 256], sizes = [8, 128], strides = [1, 1]} : vector<8x512xf32> to vector<8x128xf32>
    %170 = math.tanh %169 : vector<8x128xf32>
    %171 = vector.extract_strided_slice %136 {offsets = [0, 384], sizes = [8, 128], strides = [1, 1]} : vector<8x512xf32> to vector<8x128xf32>
    %172 = arith.negf %171 : vector<8x128xf32>
    %173 = math.exp %172 : vector<8x128xf32>
    %cst_44 = arith.constant 1.000000e+00 : f32
    %174 = vector.broadcast %cst_44 : f32 to vector<8x128xf32>
    %175 = arith.addf %174, %173 : vector<8x128xf32>
    %176 = arith.divf %174, %175 : vector<8x128xf32>
    %177 = arith.mulf %148, %119 : vector<8x128xf32>
    %178 = arith.mulf %142, %150 : vector<8x128xf32>
    %179 = arith.addf %177, %178 : vector<8x128xf32>
    %180 = arith.mulf %168, %122 : vector<8x128xf32>
    %181 = arith.mulf %162, %170 : vector<8x128xf32>
    %182 = arith.addf %180, %181 : vector<8x128xf32>
    %183 = math.tanh %179 : vector<8x128xf32>
    %184 = arith.mulf %156, %183 : vector<8x128xf32>
    %185 = math.tanh %182 : vector<8x128xf32>
    %186 = arith.mulf %176, %185 : vector<8x128xf32>
    %c16_45 = arith.constant 16 : index
    %c0_46 = arith.constant 0 : index
    %187 = vector.load %arg8[%c16_45, %c0_46] : memref<64x256xf32, #tpu.memory_space<vmem>>, vector<8x128xf32>
    tpu.vector_store %arg8[%c16_45, %c0_46], %184 {strides = array<i32>} : memref<64x256xf32, #tpu.memory_space<vmem>>, vector<8x128xf32>,
    %c40_47 = arith.constant 40 : index
    %c128_48 = arith.constant 128 : index
    %188 = vector.load %arg8[%c40_47, %c128_48] : memref<64x256xf32, #tpu.memory_space<vmem>>, vector<8x128xf32>
    tpu.vector_store %arg8[%c40_47, %c128_48], %186 {strides = array<i32>} : memref<64x256xf32, #tpu.memory_space<vmem>>, vector<8x128xf32>,
    %189 = tpu.concatenate %184, %186 in 1 : vector<8x128xf32>, vector<8x128xf32> -> vector<8x256xf32>
    %cst_49 = arith.constant dense<0.000000e+00> : vector<8x1024xf32>
    %190 = tpu.matmul %189, %7, %cst_49 {dimension_numbers = #tpu.dot_dimension_numbers<[1], [0], [0], [1], [0, 0, 1, 1], [], []>} : vector<8x256xf32>, vector<256x1024xf32>, vector<8x1024xf32> -> vector<8x1024xf32>
    %191 = vector.extract_strided_slice %190 {offsets = [0, 0], sizes = [8, 512], strides = [1, 1]} : vector<8x1024xf32> to vector<8x512xf32>
    %c24 = arith.constant 24 : index
    %c0_50 = arith.constant 0 : index
    %192 = vector.load %arg7[%c24, %c0_50] : memref<64x1024xf32, #tpu.memory_space<vmem>>, vector<8x512xf32>
    %193 = arith.addf %191, %192 : vector<8x512xf32>
    %194 = vector.extract_strided_slice %190 {offsets = [0, 512], sizes = [8, 512], strides = [1, 1]} : vector<8x1024xf32> to vector<8x512xf32>
    %c32 = arith.constant 32 : index
    %c512_51 = arith.constant 512 : index
    %195 = vector.load %arg7[%c32, %c512_51] : memref<64x1024xf32, #tpu.memory_space<vmem>>, vector<8x512xf32>
    %196 = arith.addf %194, %195 : vector<8x512xf32>
    %197 = vector.extract_strided_slice %193 {offsets = [0, 0], sizes = [8, 128], strides = [1, 1]} : vector<8x512xf32> to vector<8x128xf32>
    %198 = arith.negf %197 : vector<8x128xf32>
    %199 = math.exp %198 : vector<8x128xf32>
    %cst_52 = arith.constant 1.000000e+00 : f32
    %200 = vector.broadcast %cst_52 : f32 to vector<8x128xf32>
    %201 = arith.addf %200, %199 : vector<8x128xf32>
    %202 = arith.divf %200, %201 : vector<8x128xf32>
    %203 = vector.extract_strided_slice %193 {offsets = [0, 128], sizes = [8, 128], strides = [1, 1]} : vector<8x512xf32> to vector<8x128xf32>
    %204 = arith.negf %203 : vector<8x128xf32>
    %205 = math.exp %204 : vector<8x128xf32>
    %cst_53 = arith.constant 1.000000e+00 : f32
    %206 = vector.broadcast %cst_53 : f32 to vector<8x128xf32>
    %207 = arith.addf %206, %205 : vector<8x128xf32>
    %208 = arith.divf %206, %207 : vector<8x128xf32>
    %209 = vector.extract_strided_slice %193 {offsets = [0, 256], sizes = [8, 128], strides = [1, 1]} : vector<8x512xf32> to vector<8x128xf32>
    %210 = math.tanh %209 : vector<8x128xf32>
    %211 = vector.extract_strided_slice %193 {offsets = [0, 384], sizes = [8, 128], strides = [1, 1]} : vector<8x512xf32> to vector<8x128xf32>
    %212 = arith.negf %211 : vector<8x128xf32>
    %213 = math.exp %212 : vector<8x128xf32>
    %cst_54 = arith.constant 1.000000e+00 : f32
    %214 = vector.broadcast %cst_54 : f32 to vector<8x128xf32>
    %215 = arith.addf %214, %213 : vector<8x128xf32>
    %216 = arith.divf %214, %215 : vector<8x128xf32>
    %217 = vector.extract_strided_slice %196 {offsets = [0, 0], sizes = [8, 128], strides = [1, 1]} : vector<8x512xf32> to vector<8x128xf32>
    %218 = arith.negf %217 : vector<8x128xf32>
    %219 = math.exp %218 : vector<8x128xf32>
    %cst_55 = arith.constant 1.000000e+00 : f32
    %220 = vector.broadcast %cst_55 : f32 to vector<8x128xf32>
    %221 = arith.addf %220, %219 : vector<8x128xf32>
    %222 = arith.divf %220, %221 : vector<8x128xf32>
    %223 = vector.extract_strided_slice %196 {offsets = [0, 128], sizes = [8, 128], strides = [1, 1]} : vector<8x512xf32> to vector<8x128xf32>
    %224 = arith.negf %223 : vector<8x128xf32>
    %225 = math.exp %224 : vector<8x128xf32>
    %cst_56 = arith.constant 1.000000e+00 : f32
    %226 = vector.broadcast %cst_56 : f32 to vector<8x128xf32>
    %227 = arith.addf %226, %225 : vector<8x128xf32>
    %228 = arith.divf %226, %227 : vector<8x128xf32>
    %229 = vector.extract_strided_slice %196 {offsets = [0, 256], sizes = [8, 128], strides = [1, 1]} : vector<8x512xf32> to vector<8x128xf32>
    %230 = math.tanh %229 : vector<8x128xf32>
    %231 = vector.extract_strided_slice %196 {offsets = [0, 384], sizes = [8, 128], strides = [1, 1]} : vector<8x512xf32> to vector<8x128xf32>
    %232 = arith.negf %231 : vector<8x128xf32>
    %233 = math.exp %232 : vector<8x128xf32>
    %cst_57 = arith.constant 1.000000e+00 : f32
    %234 = vector.broadcast %cst_57 : f32 to vector<8x128xf32>
    %235 = arith.addf %234, %233 : vector<8x128xf32>
    %236 = arith.divf %234, %235 : vector<8x128xf32>
    %237 = arith.mulf %208, %179 : vector<8x128xf32>
    %238 = arith.mulf %202, %210 : vector<8x128xf32>
    %239 = arith.addf %237, %238 : vector<8x128xf32>
    %240 = arith.mulf %228, %182 : vector<8x128xf32>
    %241 = arith.mulf %222, %230 : vector<8x128xf32>
    %242 = arith.addf %240, %241 : vector<8x128xf32>
    %243 = math.tanh %239 : vector<8x128xf32>
    %244 = arith.mulf %216, %243 : vector<8x128xf32>
    %245 = math.tanh %242 : vector<8x128xf32>
    %246 = arith.mulf %236, %245 : vector<8x128xf32>
    %c24_58 = arith.constant 24 : index
    %c0_59 = arith.constant 0 : index
    %247 = vector.load %arg8[%c24_58, %c0_59] : memref<64x256xf32, #tpu.memory_space<vmem>>, vector<8x128xf32>
    tpu.vector_store %arg8[%c24_58, %c0_59], %244 {strides = array<i32>} : memref<64x256xf32, #tpu.memory_space<vmem>>, vector<8x128xf32>,
    %c32_60 = arith.constant 32 : index
    %c128_61 = arith.constant 128 : index
    %248 = vector.load %arg8[%c32_60, %c128_61] : memref<64x256xf32, #tpu.memory_space<vmem>>, vector<8x128xf32>
    tpu.vector_store %arg8[%c32_60, %c128_61], %246 {strides = array<i32>} : memref<64x256xf32, #tpu.memory_space<vmem>>, vector<8x128xf32>,
    %249 = tpu.concatenate %244, %246 in 1 : vector<8x128xf32>, vector<8x128xf32> -> vector<8x256xf32>
    %cst_62 = arith.constant dense<0.000000e+00> : vector<8x1024xf32>
    %250 = tpu.matmul %249, %7, %cst_62 {dimension_numbers = #tpu.dot_dimension_numbers<[1], [0], [0], [1], [0, 0, 1, 1], [], []>} : vector<8x256xf32>, vector<256x1024xf32>, vector<8x1024xf32> -> vector<8x1024xf32>
    %251 = vector.extract_strided_slice %250 {offsets = [0, 0], sizes = [8, 512], strides = [1, 1]} : vector<8x1024xf32> to vector<8x512xf32>
    %c32_63 = arith.constant 32 : index
    %c0_64 = arith.constant 0 : index
    %252 = vector.load %arg7[%c32_63, %c0_64] : memref<64x1024xf32, #tpu.memory_space<vmem>>, vector<8x512xf32>
    %253 = arith.addf %251, %252 : vector<8x512xf32>
    %254 = vector.extract_strided_slice %250 {offsets = [0, 512], sizes = [8, 512], strides = [1, 1]} : vector<8x1024xf32> to vector<8x512xf32>
    %c24_65 = arith.constant 24 : index
    %c512_66 = arith.constant 512 : index
    %255 = vector.load %arg7[%c24_65, %c512_66] : memref<64x1024xf32, #tpu.memory_space<vmem>>, vector<8x512xf32>
    %256 = arith.addf %254, %255 : vector<8x512xf32>
    %257 = vector.extract_strided_slice %253 {offsets = [0, 0], sizes = [8, 128], strides = [1, 1]} : vector<8x512xf32> to vector<8x128xf32>
    %258 = arith.negf %257 : vector<8x128xf32>
    %259 = math.exp %258 : vector<8x128xf32>
    %cst_67 = arith.constant 1.000000e+00 : f32
    %260 = vector.broadcast %cst_67 : f32 to vector<8x128xf32>
    %261 = arith.addf %260, %259 : vector<8x128xf32>
    %262 = arith.divf %260, %261 : vector<8x128xf32>
    %263 = vector.extract_strided_slice %253 {offsets = [0, 128], sizes = [8, 128], strides = [1, 1]} : vector<8x512xf32> to vector<8x128xf32>
    %264 = arith.negf %263 : vector<8x128xf32>
    %265 = math.exp %264 : vector<8x128xf32>
    %cst_68 = arith.constant 1.000000e+00 : f32
    %266 = vector.broadcast %cst_68 : f32 to vector<8x128xf32>
    %267 = arith.addf %266, %265 : vector<8x128xf32>
    %268 = arith.divf %266, %267 : vector<8x128xf32>
    %269 = vector.extract_strided_slice %253 {offsets = [0, 256], sizes = [8, 128], strides = [1, 1]} : vector<8x512xf32> to vector<8x128xf32>
    %270 = math.tanh %269 : vector<8x128xf32>
    %271 = vector.extract_strided_slice %253 {offsets = [0, 384], sizes = [8, 128], strides = [1, 1]} : vector<8x512xf32> to vector<8x128xf32>
    %272 = arith.negf %271 : vector<8x128xf32>
    %273 = math.exp %272 : vector<8x128xf32>
    %cst_69 = arith.constant 1.000000e+00 : f32
    %274 = vector.broadcast %cst_69 : f32 to vector<8x128xf32>
    %275 = arith.addf %274, %273 : vector<8x128xf32>
    %276 = arith.divf %274, %275 : vector<8x128xf32>
    %277 = vector.extract_strided_slice %256 {offsets = [0, 0], sizes = [8, 128], strides = [1, 1]} : vector<8x512xf32> to vector<8x128xf32>
    %278 = arith.negf %277 : vector<8x128xf32>
    %279 = math.exp %278 : vector<8x128xf32>
    %cst_70 = arith.constant 1.000000e+00 : f32
    %280 = vector.broadcast %cst_70 : f32 to vector<8x128xf32>
    %281 = arith.addf %280, %279 : vector<8x128xf32>
    %282 = arith.divf %280, %281 : vector<8x128xf32>
    %283 = vector.extract_strided_slice %256 {offsets = [0, 128], sizes = [8, 128], strides = [1, 1]} : vector<8x512xf32> to vector<8x128xf32>
    %284 = arith.negf %283 : vector<8x128xf32>
    %285 = math.exp %284 : vector<8x128xf32>
    %cst_71 = arith.constant 1.000000e+00 : f32
    %286 = vector.broadcast %cst_71 : f32 to vector<8x128xf32>
    %287 = arith.addf %286, %285 : vector<8x128xf32>
    %288 = arith.divf %286, %287 : vector<8x128xf32>
    %289 = vector.extract_strided_slice %256 {offsets = [0, 256], sizes = [8, 128], strides = [1, 1]} : vector<8x512xf32> to vector<8x128xf32>
    %290 = math.tanh %289 : vector<8x128xf32>
    %291 = vector.extract_strided_slice %256 {offsets = [0, 384], sizes = [8, 128], strides = [1, 1]} : vector<8x512xf32> to vector<8x128xf32>
    %292 = arith.negf %291 : vector<8x128xf32>
    %293 = math.exp %292 : vector<8x128xf32>
    %cst_72 = arith.constant 1.000000e+00 : f32
    %294 = vector.broadcast %cst_72 : f32 to vector<8x128xf32>
    %295 = arith.addf %294, %293 : vector<8x128xf32>
    %296 = arith.divf %294, %295 : vector<8x128xf32>
    %297 = arith.mulf %268, %239 : vector<8x128xf32>
    %298 = arith.mulf %262, %270 : vector<8x128xf32>
    %299 = arith.addf %297, %298 : vector<8x128xf32>
    %300 = arith.mulf %288, %242 : vector<8x128xf32>
    %301 = arith.mulf %282, %290 : vector<8x128xf32>
    %302 = arith.addf %300, %301 : vector<8x128xf32>
    %303 = math.tanh %299 : vector<8x128xf32>
    %304 = arith.mulf %276, %303 : vector<8x128xf32>
    %305 = math.tanh %302 : vector<8x128xf32>
    %306 = arith.mulf %296, %305 : vector<8x128xf32>
    %c32_73 = arith.constant 32 : index
    %c0_74 = arith.constant 0 : index
    %307 = vector.load %arg8[%c32_73, %c0_74] : memref<64x256xf32, #tpu.memory_space<vmem>>, vector<8x128xf32>
    tpu.vector_store %arg8[%c32_73, %c0_74], %304 {strides = array<i32>} : memref<64x256xf32, #tpu.memory_space<vmem>>, vector<8x128xf32>,
    %c24_75 = arith.constant 24 : index
    %c128_76 = arith.constant 128 : index
    %308 = vector.load %arg8[%c24_75, %c128_76] : memref<64x256xf32, #tpu.memory_space<vmem>>, vector<8x128xf32>
    tpu.vector_store %arg8[%c24_75, %c128_76], %306 {strides = array<i32>} : memref<64x256xf32, #tpu.memory_space<vmem>>, vector<8x128xf32>,
    %309 = tpu.concatenate %304, %306 in 1 : vector<8x128xf32>, vector<8x128xf32> -> vector<8x256xf32>
    %cst_77 = arith.constant dense<0.000000e+00> : vector<8x1024xf32>
    %310 = tpu.matmul %309, %7, %cst_77 {dimension_numbers = #tpu.dot_dimension_numbers<[1], [0], [0], [1], [0, 0, 1, 1], [], []>} : vector<8x256xf32>, vector<256x1024xf32>, vector<8x1024xf32> -> vector<8x1024xf32>
    %311 = vector.extract_strided_slice %310 {offsets = [0, 0], sizes = [8, 512], strides = [1, 1]} : vector<8x1024xf32> to vector<8x512xf32>
    %c40_78 = arith.constant 40 : index
    %c0_79 = arith.constant 0 : index
    %312 = vector.load %arg7[%c40_78, %c0_79] : memref<64x1024xf32, #tpu.memory_space<vmem>>, vector<8x512xf32>
    %313 = arith.addf %311, %312 : vector<8x512xf32>
    %314 = vector.extract_strided_slice %310 {offsets = [0, 512], sizes = [8, 512], strides = [1, 1]} : vector<8x1024xf32> to vector<8x512xf32>
    %c16_80 = arith.constant 16 : index
    %c512_81 = arith.constant 512 : index
    %315 = vector.load %arg7[%c16_80, %c512_81] : memref<64x1024xf32, #tpu.memory_space<vmem>>, vector<8x512xf32>
    %316 = arith.addf %314, %315 : vector<8x512xf32>
    %317 = vector.extract_strided_slice %313 {offsets = [0, 0], sizes = [8, 128], strides = [1, 1]} : vector<8x512xf32> to vector<8x128xf32>
    %318 = arith.negf %317 : vector<8x128xf32>
    %319 = math.exp %318 : vector<8x128xf32>
    %cst_82 = arith.constant 1.000000e+00 : f32
    %320 = vector.broadcast %cst_82 : f32 to vector<8x128xf32>
    %321 = arith.addf %320, %319 : vector<8x128xf32>
    %322 = arith.divf %320, %321 : vector<8x128xf32>
    %323 = vector.extract_strided_slice %313 {offsets = [0, 128], sizes = [8, 128], strides = [1, 1]} : vector<8x512xf32> to vector<8x128xf32>
    %324 = arith.negf %323 : vector<8x128xf32>
    %325 = math.exp %324 : vector<8x128xf32>
    %cst_83 = arith.constant 1.000000e+00 : f32
    %326 = vector.broadcast %cst_83 : f32 to vector<8x128xf32>
    %327 = arith.addf %326, %325 : vector<8x128xf32>
    %328 = arith.divf %326, %327 : vector<8x128xf32>
    %329 = vector.extract_strided_slice %313 {offsets = [0, 256], sizes = [8, 128], strides = [1, 1]} : vector<8x512xf32> to vector<8x128xf32>
    %330 = math.tanh %329 : vector<8x128xf32>
    %331 = vector.extract_strided_slice %313 {offsets = [0, 384], sizes = [8, 128], strides = [1, 1]} : vector<8x512xf32> to vector<8x128xf32>
    %332 = arith.negf %331 : vector<8x128xf32>
    %333 = math.exp %332 : vector<8x128xf32>
    %cst_84 = arith.constant 1.000000e+00 : f32
    %334 = vector.broadcast %cst_84 : f32 to vector<8x128xf32>
    %335 = arith.addf %334, %333 : vector<8x128xf32>
    %336 = arith.divf %334, %335 : vector<8x128xf32>
    %337 = vector.extract_strided_slice %316 {offsets = [0, 0], sizes = [8, 128], strides = [1, 1]} : vector<8x512xf32> to vector<8x128xf32>
    %338 = arith.negf %337 : vector<8x128xf32>
    %339 = math.exp %338 : vector<8x128xf32>
    %cst_85 = arith.constant 1.000000e+00 : f32
    %340 = vector.broadcast %cst_85 : f32 to vector<8x128xf32>
    %341 = arith.addf %340, %339 : vector<8x128xf32>
    %342 = arith.divf %340, %341 : vector<8x128xf32>
    %343 = vector.extract_strided_slice %316 {offsets = [0, 128], sizes = [8, 128], strides = [1, 1]} : vector<8x512xf32> to vector<8x128xf32>
    %344 = arith.negf %343 : vector<8x128xf32>
    %345 = math.exp %344 : vector<8x128xf32>
    %cst_86 = arith.constant 1.000000e+00 : f32
    %346 = vector.broadcast %cst_86 : f32 to vector<8x128xf32>
    %347 = arith.addf %346, %345 : vector<8x128xf32>
    %348 = arith.divf %346, %347 : vector<8x128xf32>
    %349 = vector.extract_strided_slice %316 {offsets = [0, 256], sizes = [8, 128], strides = [1, 1]} : vector<8x512xf32> to vector<8x128xf32>
    %350 = math.tanh %349 : vector<8x128xf32>
    %351 = vector.extract_strided_slice %316 {offsets = [0, 384], sizes = [8, 128], strides = [1, 1]} : vector<8x512xf32> to vector<8x128xf32>
    %352 = arith.negf %351 : vector<8x128xf32>
    %353 = math.exp %352 : vector<8x128xf32>
    %cst_87 = arith.constant 1.000000e+00 : f32
    %354 = vector.broadcast %cst_87 : f32 to vector<8x128xf32>
    %355 = arith.addf %354, %353 : vector<8x128xf32>
    %356 = arith.divf %354, %355 : vector<8x128xf32>
    %357 = arith.mulf %328, %299 : vector<8x128xf32>
    %358 = arith.mulf %322, %330 : vector<8x128xf32>
    %359 = arith.addf %357, %358 : vector<8x128xf32>
    %360 = arith.mulf %348, %302 : vector<8x128xf32>
    %361 = arith.mulf %342, %350 : vector<8x128xf32>
    %362 = arith.addf %360, %361 : vector<8x128xf32>
    %363 = math.tanh %359 : vector<8x128xf32>
    %364 = arith.mulf %336, %363 : vector<8x128xf32>
    %365 = math.tanh %362 : vector<8x128xf32>
    %366 = arith.mulf %356, %365 : vector<8x128xf32>
    %c40_88 = arith.constant 40 : index
    %c0_89 = arith.constant 0 : index
    %367 = vector.load %arg8[%c40_88, %c0_89] : memref<64x256xf32, #tpu.memory_space<vmem>>, vector<8x128xf32>
    tpu.vector_store %arg8[%c40_88, %c0_89], %364 {strides = array<i32>} : memref<64x256xf32, #tpu.memory_space<vmem>>, vector<8x128xf32>,
    %c16_90 = arith.constant 16 : index
    %c128_91 = arith.constant 128 : index
    %368 = vector.load %arg8[%c16_90, %c128_91] : memref<64x256xf32, #tpu.memory_space<vmem>>, vector<8x128xf32>
    tpu.vector_store %arg8[%c16_90, %c128_91], %366 {strides = array<i32>} : memref<64x256xf32, #tpu.memory_space<vmem>>, vector<8x128xf32>,
    %369 = tpu.concatenate %364, %366 in 1 : vector<8x128xf32>, vector<8x128xf32> -> vector<8x256xf32>
    %cst_92 = arith.constant dense<0.000000e+00> : vector<8x1024xf32>
    %370 = tpu.matmul %369, %7, %cst_92 {dimension_numbers = #tpu.dot_dimension_numbers<[1], [0], [0], [1], [0, 0, 1, 1], [], []>} : vector<8x256xf32>, vector<256x1024xf32>, vector<8x1024xf32> -> vector<8x1024xf32>
    %371 = vector.extract_strided_slice %370 {offsets = [0, 0], sizes = [8, 512], strides = [1, 1]} : vector<8x1024xf32> to vector<8x512xf32>
    %c48_93 = arith.constant 48 : index
    %c0_94 = arith.constant 0 : index
    %372 = vector.load %arg7[%c48_93, %c0_94] : memref<64x1024xf32, #tpu.memory_space<vmem>>, vector<8x512xf32>
    %373 = arith.addf %371, %372 : vector<8x512xf32>
    %374 = vector.extract_strided_slice %370 {offsets = [0, 512], sizes = [8, 512], strides = [1, 1]} : vector<8x1024xf32> to vector<8x512xf32>
    %c8_95 = arith.constant 8 : index
    %c512_96 = arith.constant 512 : index
    %375 = vector.load %arg7[%c8_95, %c512_96] : memref<64x1024xf32, #tpu.memory_space<vmem>>, vector<8x512xf32>
    %376 = arith.addf %374, %375 : vector<8x512xf32>
    %377 = vector.extract_strided_slice %373 {offsets = [0, 0], sizes = [8, 128], strides = [1, 1]} : vector<8x512xf32> to vector<8x128xf32>
    %378 = arith.negf %377 : vector<8x128xf32>
    %379 = math.exp %378 : vector<8x128xf32>
    %cst_97 = arith.constant 1.000000e+00 : f32
    %380 = vector.broadcast %cst_97 : f32 to vector<8x128xf32>
    %381 = arith.addf %380, %379 : vector<8x128xf32>
    %382 = arith.divf %380, %381 : vector<8x128xf32>
    %383 = vector.extract_strided_slice %373 {offsets = [0, 128], sizes = [8, 128], strides = [1, 1]} : vector<8x512xf32> to vector<8x128xf32>
    %384 = arith.negf %383 : vector<8x128xf32>
    %385 = math.exp %384 : vector<8x128xf32>
    %cst_98 = arith.constant 1.000000e+00 : f32
    %386 = vector.broadcast %cst_98 : f32 to vector<8x128xf32>
    %387 = arith.addf %386, %385 : vector<8x128xf32>
    %388 = arith.divf %386, %387 : vector<8x128xf32>
    %389 = vector.extract_strided_slice %373 {offsets = [0, 256], sizes = [8, 128], strides = [1, 1]} : vector<8x512xf32> to vector<8x128xf32>
    %390 = math.tanh %389 : vector<8x128xf32>
    %391 = vector.extract_strided_slice %373 {offsets = [0, 384], sizes = [8, 128], strides = [1, 1]} : vector<8x512xf32> to vector<8x128xf32>
    %392 = arith.negf %391 : vector<8x128xf32>
    %393 = math.exp %392 : vector<8x128xf32>
    %cst_99 = arith.constant 1.000000e+00 : f32
    %394 = vector.broadcast %cst_99 : f32 to vector<8x128xf32>
    %395 = arith.addf %394, %393 : vector<8x128xf32>
    %396 = arith.divf %394, %395 : vector<8x128xf32>
    %397 = vector.extract_strided_slice %376 {offsets = [0, 0], sizes = [8, 128], strides = [1, 1]} : vector<8x512xf32> to vector<8x128xf32>
    %398 = arith.negf %397 : vector<8x128xf32>
    %399 = math.exp %398 : vector<8x128xf32>
    %cst_100 = arith.constant 1.000000e+00 : f32
    %400 = vector.broadcast %cst_100 : f32 to vector<8x128xf32>
    %401 = arith.addf %400, %399 : vector<8x128xf32>
    %402 = arith.divf %400, %401 : vector<8x128xf32>
    %403 = vector.extract_strided_slice %376 {offsets = [0, 128], sizes = [8, 128], strides = [1, 1]} : vector<8x512xf32> to vector<8x128xf32>
    %404 = arith.negf %403 : vector<8x128xf32>
    %405 = math.exp %404 : vector<8x128xf32>
    %cst_101 = arith.constant 1.000000e+00 : f32
    %406 = vector.broadcast %cst_101 : f32 to vector<8x128xf32>
    %407 = arith.addf %406, %405 : vector<8x128xf32>
    %408 = arith.divf %406, %407 : vector<8x128xf32>
    %409 = vector.extract_strided_slice %376 {offsets = [0, 256], sizes = [8, 128], strides = [1, 1]} : vector<8x512xf32> to vector<8x128xf32>
    %410 = math.tanh %409 : vector<8x128xf32>
    %411 = vector.extract_strided_slice %376 {offsets = [0, 384], sizes = [8, 128], strides = [1, 1]} : vector<8x512xf32> to vector<8x128xf32>
    %412 = arith.negf %411 : vector<8x128xf32>
    %413 = math.exp %412 : vector<8x128xf32>
    %cst_102 = arith.constant 1.000000e+00 : f32
    %414 = vector.broadcast %cst_102 : f32 to vector<8x128xf32>
    %415 = arith.addf %414, %413 : vector<8x128xf32>
    %416 = arith.divf %414, %415 : vector<8x128xf32>
    %417 = arith.mulf %388, %359 : vector<8x128xf32>
    %418 = arith.mulf %382, %390 : vector<8x128xf32>
    %419 = arith.addf %417, %418 : vector<8x128xf32>
    %420 = arith.mulf %408, %362 : vector<8x128xf32>
    %421 = arith.mulf %402, %410 : vector<8x128xf32>
    %422 = arith.addf %420, %421 : vector<8x128xf32>
    %423 = math.tanh %419 : vector<8x128xf32>
    %424 = arith.mulf %396, %423 : vector<8x128xf32>
    %425 = math.tanh %422 : vector<8x128xf32>
    %426 = arith.mulf %416, %425 : vector<8x128xf32>
    %c48_103 = arith.constant 48 : index
    %c0_104 = arith.constant 0 : index
    %427 = vector.load %arg8[%c48_103, %c0_104] : memref<64x256xf32, #tpu.memory_space<vmem>>, vector<8x128xf32>
    tpu.vector_store %arg8[%c48_103, %c0_104], %424 {strides = array<i32>} : memref<64x256xf32, #tpu.memory_space<vmem>>, vector<8x128xf32>,
    %c8_105 = arith.constant 8 : index
    %c128_106 = arith.constant 128 : index
    %428 = vector.load %arg8[%c8_105, %c128_106] : memref<64x256xf32, #tpu.memory_space<vmem>>, vector<8x128xf32>
    tpu.vector_store %arg8[%c8_105, %c128_106], %426 {strides = array<i32>} : memref<64x256xf32, #tpu.memory_space<vmem>>, vector<8x128xf32>,
    %429 = tpu.concatenate %424, %426 in 1 : vector<8x128xf32>, vector<8x128xf32> -> vector<8x256xf32>
    %cst_107 = arith.constant dense<0.000000e+00> : vector<8x1024xf32>
    %430 = tpu.matmul %429, %7, %cst_107 {dimension_numbers = #tpu.dot_dimension_numbers<[1], [0], [0], [1], [0, 0, 1, 1], [], []>} : vector<8x256xf32>, vector<256x1024xf32>, vector<8x1024xf32> -> vector<8x1024xf32>
    %431 = vector.extract_strided_slice %430 {offsets = [0, 0], sizes = [8, 512], strides = [1, 1]} : vector<8x1024xf32> to vector<8x512xf32>
    %c56_108 = arith.constant 56 : index
    %c0_109 = arith.constant 0 : index
    %432 = vector.load %arg7[%c56_108, %c0_109] : memref<64x1024xf32, #tpu.memory_space<vmem>>, vector<8x512xf32>
    %433 = arith.addf %431, %432 : vector<8x512xf32>
    %434 = vector.extract_strided_slice %430 {offsets = [0, 512], sizes = [8, 512], strides = [1, 1]} : vector<8x1024xf32> to vector<8x512xf32>
    %c0_110 = arith.constant 0 : index
    %c512_111 = arith.constant 512 : index
    %435 = vector.load %arg7[%c0_110, %c512_111] : memref<64x1024xf32, #tpu.memory_space<vmem>>, vector<8x512xf32>
    %436 = arith.addf %434, %435 : vector<8x512xf32>
    %437 = vector.extract_strided_slice %433 {offsets = [0, 0], sizes = [8, 128], strides = [1, 1]} : vector<8x512xf32> to vector<8x128xf32>
    %438 = arith.negf %437 : vector<8x128xf32>
    %439 = math.exp %438 : vector<8x128xf32>
    %cst_112 = arith.constant 1.000000e+00 : f32
    %440 = vector.broadcast %cst_112 : f32 to vector<8x128xf32>
    %441 = arith.addf %440, %439 : vector<8x128xf32>
    %442 = arith.divf %440, %441 : vector<8x128xf32>
    %443 = vector.extract_strided_slice %433 {offsets = [0, 128], sizes = [8, 128], strides = [1, 1]} : vector<8x512xf32> to vector<8x128xf32>
    %444 = arith.negf %443 : vector<8x128xf32>
    %445 = math.exp %444 : vector<8x128xf32>
    %cst_113 = arith.constant 1.000000e+00 : f32
    %446 = vector.broadcast %cst_113 : f32 to vector<8x128xf32>
    %447 = arith.addf %446, %445 : vector<8x128xf32>
    %448 = arith.divf %446, %447 : vector<8x128xf32>
    %449 = vector.extract_strided_slice %433 {offsets = [0, 256], sizes = [8, 128], strides = [1, 1]} : vector<8x512xf32> to vector<8x128xf32>
    %450 = math.tanh %449 : vector<8x128xf32>
    %451 = vector.extract_strided_slice %433 {offsets = [0, 384], sizes = [8, 128], strides = [1, 1]} : vector<8x512xf32> to vector<8x128xf32>
    %452 = arith.negf %451 : vector<8x128xf32>
    %453 = math.exp %452 : vector<8x128xf32>
    %cst_114 = arith.constant 1.000000e+00 : f32
    %454 = vector.broadcast %cst_114 : f32 to vector<8x128xf32>
    %455 = arith.addf %454, %453 : vector<8x128xf32>
    %456 = arith.divf %454, %455 : vector<8x128xf32>
    %457 = vector.extract_strided_slice %436 {offsets = [0, 0], sizes = [8, 128], strides = [1, 1]} : vector<8x512xf32> to vector<8x128xf32>
    %458 = arith.negf %457 : vector<8x128xf32>
    %459 = math.exp %458 : vector<8x128xf32>
    %cst_115 = arith.constant 1.000000e+00 : f32
    %460 = vector.broadcast %cst_115 : f32 to vector<8x128xf32>
    %461 = arith.addf %460, %459 : vector<8x128xf32>
    %462 = arith.divf %460, %461 : vector<8x128xf32>
    %463 = vector.extract_strided_slice %436 {offsets = [0, 128], sizes = [8, 128], strides = [1, 1]} : vector<8x512xf32> to vector<8x128xf32>
    %464 = arith.negf %463 : vector<8x128xf32>
    %465 = math.exp %464 : vector<8x128xf32>
    %cst_116 = arith.constant 1.000000e+00 : f32
    %466 = vector.broadcast %cst_116 : f32 to vector<8x128xf32>
    %467 = arith.addf %466, %465 : vector<8x128xf32>
    %468 = arith.divf %466, %467 : vector<8x128xf32>
    %469 = vector.extract_strided_slice %436 {offsets = [0, 256], sizes = [8, 128], strides = [1, 1]} : vector<8x512xf32> to vector<8x128xf32>
    %470 = math.tanh %469 : vector<8x128xf32>
    %471 = vector.extract_strided_slice %436 {offsets = [0, 384], sizes = [8, 128], strides = [1, 1]} : vector<8x512xf32> to vector<8x128xf32>
    %472 = arith.negf %471 : vector<8x128xf32>
    %473 = math.exp %472 : vector<8x128xf32>
    %cst_117 = arith.constant 1.000000e+00 : f32
    %474 = vector.broadcast %cst_117 : f32 to vector<8x128xf32>
    %475 = arith.addf %474, %473 : vector<8x128xf32>
    %476 = arith.divf %474, %475 : vector<8x128xf32>
    %477 = arith.mulf %448, %419 : vector<8x128xf32>
    %478 = arith.mulf %442, %450 : vector<8x128xf32>
    %479 = arith.addf %477, %478 : vector<8x128xf32>
    %480 = arith.mulf %468, %422 : vector<8x128xf32>
    %481 = arith.mulf %462, %470 : vector<8x128xf32>
    %482 = arith.addf %480, %481 : vector<8x128xf32>
    %483 = math.tanh %479 : vector<8x128xf32>
    %484 = arith.mulf %456, %483 : vector<8x128xf32>
    %485 = math.tanh %482 : vector<8x128xf32>
    %486 = arith.mulf %476, %485 : vector<8x128xf32>
    %c56_118 = arith.constant 56 : index
    %c0_119 = arith.constant 0 : index
    %487 = vector.load %arg8[%c56_118, %c0_119] : memref<64x256xf32, #tpu.memory_space<vmem>>, vector<8x128xf32>
    tpu.vector_store %arg8[%c56_118, %c0_119], %484 {strides = array<i32>} : memref<64x256xf32, #tpu.memory_space<vmem>>, vector<8x128xf32>,
    %c0_120 = arith.constant 0 : index
    %c128_121 = arith.constant 128 : index
    %488 = vector.load %arg8[%c0_120, %c128_121] : memref<64x256xf32, #tpu.memory_space<vmem>>, vector<8x128xf32>
    tpu.vector_store %arg8[%c0_120, %c128_121], %486 {strides = array<i32>} : memref<64x256xf32, #tpu.memory_space<vmem>>, vector<8x128xf32>,
    %c0_122 = arith.constant 0 : index
    %c0_123 = arith.constant 0 : index
    %489 = vector.load %arg8[%c0_122, %c0_123] : memref<64x256xf32, #tpu.memory_space<vmem>>, vector<64x256xf32>
    %c0_124 = arith.constant 0 : index
    %c0_125 = arith.constant 0 : index
    %490 = vector.load %arg4[%c0_124, %c0_125] : memref<256x128xf32, #tpu.memory_space<vmem>>, vector<256x128xf32>
    %cst_126 = arith.constant dense<0.000000e+00> : vector<64x128xf32>
    %491 = tpu.matmul %489, %490, %cst_126 {dimension_numbers = #tpu.dot_dimension_numbers<[1], [0], [0], [1], [0, 0, 1, 1], [], []>} : vector<64x256xf32>, vector<256x128xf32>, vector<64x128xf32> -> vector<64x128xf32>
    %c0_127 = arith.constant 0 : index
    %c0_128 = arith.constant 0 : index
    %492 = vector.load %arg5[%c0_127, %c0_128] : memref<1x128xf32, #tpu.memory_space<vmem>>, vector<1x128xf32>
    %493 = vector.broadcast %492 : vector<1x128xf32> to vector<64x128xf32>
    %494 = arith.addf %491, %493 : vector<64x128xf32>
    %c0_129 = arith.constant 0 : index
    %c0_130 = arith.constant 0 : index
    %495 = vector.load %arg6[%c0_129, %c0_130] : memref<64x128xf32, #tpu.memory_space<vmem>>, vector<64x128xf32>
    tpu.vector_store %arg6[%c0_129, %c0_130], %494 {strides = array<i32>} : memref<64x128xf32, #tpu.memory_space<vmem>>, vector<64x128xf32>,
    return
  }
}

</mosaic_0001>

<bundles_post_ra>
// kernel: tpu_custom_call.1
= control target key start
LH: loop header
LB: loop body
LE: loop exit
PB: predicated region body
PF: predicated region fallthrough
CT: control target
= control target key end

     0   :  { %11 = vsyncpa [#allocation5], 0  ;;  %s9539_s0 = inlined_call_operand.hbm [shape: f32[64,128], index: 0, kind: input, shape index: {}]   ;;  %s9540_s1 = inlined_call_operand.hbm [shape: f32[128,1024], index: 1, kind: input, shape index: {}]   ;;  %s9541_s2 = inlined_call_operand.hbm [shape: f32[256,1024], index: 2, kind: input, shape index: {}]   ;;  %s9542_s3 = inlined_call_operand.hbm [shape: f32[1,1024], index: 3, kind: input, shape index: {}]   ;;  %s9543_s4 = inlined_call_operand.hbm [shape: f32[256,128], index: 4, kind: input, shape index: {}]   ;;  %s9544_s5 = inlined_call_operand.vmem [shape: f32[1,128], index: 5, kind: input, shape index: {}]   ;;  %s9545_s6 = inlined_call_operand.hbm [shape: f32[64,128], index: 6, kind: output, shape index: {}]  }
   0x1   :  { %12 = vsyncpa [#allocation8], 0 }
   0x2   :  { %13 = vsyncpa [#allocation11], 0  ;;  %s32_s23 = sshll.u32 %s9540_s1, 4  ;;  %s33_s23 = int_to_ptr.hbm [resolvable:$true] %s32_s23 }
   0x3   :  { %14 = vsyncpa [#allocation6], 0  ;;  %s5779_s24 = smov [#allocation7]   ;;  %s59_s28 = sshll.u32 %s9542_s3, 4  ;;  %s60_s28 = int_to_ptr.hbm [resolvable:$true] %s59_s28 }
   0x4   :  { %s34_s25 = sshll.u32 %s5779_s24, 4  ;;  %s5780_s29 = smov 1024   ;;  %s35_s25 = int_to_ptr.vmem [resolvable:$true] %s34_s25 }
   0x5   :  { %s5781_s30 = smov 64   ;;  %s5782_s7 = smov [#allocation10]  }
   0x6   :  { %40 = dma.hbm_to_vmem [thread:$0]  %s33_s23, 16384, %s35_s25, [#allocation8], %s5780_s29, %s5780_s29, %s5781_s30  }
   0x7   :  { %s61_s8 = sshll.u32 %s5782_s7, 4  ;;  %s19_s11 = sshll.u32 %s9539_s0, 4  ;;  %s62_s8 = int_to_ptr.vmem [resolvable:$true] %s61_s8  ;;  %s20_s11 = int_to_ptr.hbm [resolvable:$true] %s19_s11 }
   0x8   :  { %64 = dma.hbm_to_vmem [thread:$0]  %s60_s28, 128, %s62_s8, [#allocation11]  }
   0x9   :  { %s5783_s1 = smov [#allocation4]   ;;  %s45_s3 = sshll.u32 %s9541_s2, 4  ;;  %s46_s3 = int_to_ptr.hbm [resolvable:$true] %s45_s3 }
   0xa   :  { %s21_s12 = sshll.u32 %s5783_s1, 4  ;;  %s5784_s15 = smov 128   ;;  %s22_s12 = int_to_ptr.vmem [resolvable:$true] %s21_s12 }
   0xb   :  { %s5785_s16 = smov 8   ;;  %s5786_s17 = smov [#allocation9]  }
   0xc   :  { %27 = dma.hbm_to_vmem [thread:$0]  %s20_s11, 1024, %s22_s12, [#allocation5], %s5784_s15, %s5784_s15, %s5785_s16  }
   0xd   :  { %s47_s18 = sshll.u32 %s5786_s17, 4  ;;  %s69_s20 = sshll.u32 %s9543_s4, 4  ;;  %s48_s18 = int_to_ptr.vmem [resolvable:$true] %s47_s18  ;;  %s70_s20 = int_to_ptr.hbm [resolvable:$true] %s69_s20 }
   0xe   :  { %53 = dma.hbm_to_vmem [thread:$0]  %s46_s3, 32768, %s48_s18, [#allocation8], %s5780_s29, %s5780_s29, %s5781_s30  }
   0xf   :  { %s5787_s21 = smov [#allocation12]  }
  0x10   :  { %s71_s22 = sshll.u32 %s5787_s21, 4  ;;  %s72_s22 = int_to_ptr.vmem [resolvable:$true] %s71_s22 }
  0x11   :  { %77 = dma.hbm_to_vmem [thread:$0]  %s70_s20, 4096, %s72_s22, [#allocation11], %s5784_s15, %s5784_s15, %s5785_s16  }
  0x12   :  { %5771 = dma.done.wait [#allocation5], 1024  }
  0x13   :  { %5772 = vsyncadd [#allocation5], 4294966272 }
  0x14   :  { %5773 = dma.done.wait [#allocation8], 49152  }
  0x15   :  { %5774 = vsyncadd [#allocation8], 4294918144 }
  0x16   :  { %5775 = dma.done.wait [#allocation11], 4224  }
  0x17   :  { %5776 = vsyncadd [#allocation11], 4294963072  ;;  %v228_v0 = vld [vmem:[#allocation7 + $0x3c0] sm:$0xff]  ;;  %v229_v1 = vld [vmem:[#allocation7 + $0x3c8] sm:$0xff]  ;;  %s4442_s26 = sshll.u32 %s9545_s6, 4  ;;  %s4443_s26 = int_to_ptr.hbm [resolvable:$true] %s4442_s26 }
  0x18   :  { %v220_v2 = vld [vmem:[#allocation7 + $0x380] sm:$0xff]  ;;  %4505 = vmatpush.msra.mxu2 %v228_v0  ;;  %4521 = vmatpush.msra.mxu3 %v229_v1  ;;  %v221_v3 = vld [vmem:[#allocation7 + $0x388] sm:$0xff]  ;;  %v230_v33 = vld [vmem:[#allocation7 + $0x3d0] sm:$0xff] }
  0x19   :  { %v212_v4 = vld [vmem:[#allocation7 + $0x340] sm:$0xff]  ;;  %v213_v5 = vld [vmem:[#allocation7 + $0x348] sm:$0xff]  ;;  %254 = vmatpush.msra.mxu0 %v228_v0  ;;  %295 = vmatpush.msra.mxu1 %v229_v1  ;;  %v231_v34 = vld [vmem:[#allocation7 + $0x3d8] sm:$0xff] }
  0x1a   :  { %4506 = vmatpush.msra.mxu2 %v220_v2  ;;  %4522 = vmatpush.msra.mxu3 %v221_v3  ;;  %v204_v6 = vld [vmem:[#allocation7 + $0x300] sm:$0xff]  ;;  %v205_v7 = vld [vmem:[#allocation7 + $0x308] sm:$0xff]  ;;  %v222_v35 = vld [vmem:[#allocation7 + $0x390] sm:$0xff] }
  0x1b   :  { %255 = vmatpush.msra.mxu0 %v220_v2  ;;  %296 = vmatpush.msra.mxu1 %v221_v3  ;;  %v196_v8 = vld [vmem:[#allocation7 + $0x2c0] sm:$0xff]  ;;  %v197_v9 = vld [vmem:[#allocation7 + $0x2c8] sm:$0xff]  ;;  %v223_v36 = vld [vmem:[#allocation7 + $0x398] sm:$0xff] }
  0x1c   :  { %4507 = vmatpush.msra.mxu2 %v212_v4  ;;  %4523 = vmatpush.msra.mxu3 %v213_v5  ;;  %v188_v10 = vld [vmem:[#allocation7 + $0x280] sm:$0xff]  ;;  %v189_v11 = vld [vmem:[#allocation7 + $0x288] sm:$0xff]  ;;  %v214_v38 = vld [vmem:[#allocation7 + $0x350] sm:$0xff] }
  0x1d   :  { %256 = vmatpush.msra.mxu0 %v212_v4  ;;  %297 = vmatpush.msra.mxu1 %v213_v5  ;;  %v180_v12 = vld [vmem:[#allocation7 + $0x240] sm:$0xff]  ;;  %v181_v13 = vld [vmem:[#allocation7 + $0x248] sm:$0xff]  ;;  %v215_v39 = vld [vmem:[#allocation7 + $0x358] sm:$0xff] }
  0x1e   :  { %4508 = vmatpush.msra.mxu2 %v204_v6  ;;  %4524 = vmatpush.msra.mxu3 %v205_v7  ;;  %v172_v14 = vld [vmem:[#allocation7 + $0x200] sm:$0xff]  ;;  %v173_v15 = vld [vmem:[#allocation7 + $0x208] sm:$0xff]  ;;  %v206_v40 = vld [vmem:[#allocation7 + $0x310] sm:$0xff] }
  0x1f   :  { %257 = vmatpush.msra.mxu0 %v204_v6  ;;  %298 = vmatpush.msra.mxu1 %v205_v7  ;;  %v164_v16 = vld [vmem:[#allocation7 + $0x1c0] sm:$0xff]  ;;  %v165_v17 = vld [vmem:[#allocation7 + $0x1c8] sm:$0xff]  ;;  %v207_v41 = vld [vmem:[#allocation7 + $0x318] sm:$0xff] }
  0x20   :  { %4509 = vmatpush.msra.mxu2 %v196_v8  ;;  %4525 = vmatpush.msra.mxu3 %v197_v9  ;;  %v156_v18 = vld [vmem:[#allocation7 + $0x180] sm:$0xff]  ;;  %v157_v19 = vld [vmem:[#allocation7 + $0x188] sm:$0xff]  ;;  %v198_v43 = vld [vmem:[#allocation7 + $0x2d0] sm:$0xff] }
  0x21   :  { %258 = vmatpush.msra.mxu0 %v196_v8  ;;  %299 = vmatpush.msra.mxu1 %v197_v9  ;;  %v148_v20 = vld [vmem:[#allocation7 + $0x140] sm:$0xff]  ;;  %v149_v21 = vld [vmem:[#allocation7 + $0x148] sm:$0xff]  ;;  %v199_v44 = vld [vmem:[#allocation7 + $0x2d8] sm:$0xff] }
  0x22   :  { %4510 = vmatpush.msra.mxu2 %v188_v10  ;;  %4526 = vmatpush.msra.mxu3 %v189_v11  ;;  %v140_v22 = vld [vmem:[#allocation7 + $0x100] sm:$0xff]  ;;  %v141_v23 = vld [vmem:[#allocation7 + $0x108] sm:$0xff]  ;;  %v190_v45 = vld [vmem:[#allocation7 + $0x290] sm:$0xff] }
  0x23   :  { %259 = vmatpush.msra.mxu0 %v188_v10  ;;  %300 = vmatpush.msra.mxu1 %v189_v11  ;;  %v132_v24 = vld [vmem:[#allocation7 + $0xc0] sm:$0xff]  ;;  %v133_v25 = vld [vmem:[#allocation7 + $0xc8] sm:$0xff]  ;;  %v191_v46 = vld [vmem:[#allocation7 + $0x298] sm:$0xff] }
  0x24   :  { %4511 = vmatpush.msra.mxu2 %v180_v12  ;;  %4527 = vmatpush.msra.mxu3 %v181_v13  ;;  %v124_v26 = vld [vmem:[#allocation7 + $0x80] sm:$0xff]  ;;  %v125_v27 = vld [vmem:[#allocation7 + $0x88] sm:$0xff]  ;;  %v182_v49 = vld [vmem:[#allocation7 + $0x250] sm:$0xff] }
  0x25   :  { %260 = vmatpush.msra.mxu0 %v180_v12  ;;  %301 = vmatpush.msra.mxu1 %v181_v13  ;;  %v116_v28 = vld [vmem:[#allocation7 + $0x40] sm:$0xff]  ;;  %v117_v29 = vld [vmem:[#allocation7 + $0x48] sm:$0xff]  ;;  %v183_v50 = vld [vmem:[#allocation7 + $0x258] sm:$0xff] }
  0x26   :  { %4512 = vmatpush.msra.mxu2 %v172_v14  ;;  %4528 = vmatpush.msra.mxu3 %v173_v15  ;;  %v108_v30 = vld [vmem:[#allocation7] sm:$0xff]  ;;  %v109_v31 = vld [vmem:[#allocation7 + $0x8] sm:$0xff]  ;;  %v174_v52 = vld [vmem:[#allocation7 + $0x210] sm:$0xff] }
  0x27   :  { %261 = vmatpush.msra.mxu0 %v172_v14  ;;  %302 = vmatpush.msra.mxu1 %v173_v15  ;;  %v5845_v32 = vld [vmem:[#allocation4 + $0x20] sm:$0xff]  ;;  %v5853_v42 = vld [vmem:[#allocation4 + $0x28] sm:$0xff]  ;;  %v175_v53 = vld [vmem:[#allocation7 + $0x218] sm:$0xff] }
  0x28   :  { %4513 = vmatpush.msra.mxu2 %v164_v16  ;;  %4529 = vmatpush.msra.mxu3 %v165_v17  ;;  %v5849_v37 = vld [vmem:[#allocation4] sm:$0xff]  ;;  %v233_v48 = vld [vmem:[#allocation7 + $0x3e8] sm:$0xff]  ;;  %v5861_v54 = vld [vmem:[#allocation4 + $0x30] sm:$0xff] }
  0x29   :  { %262 = vmatpush.msra.mxu0 %v164_v16  ;;  %303 = vmatpush.msra.mxu1 %v165_v17  ;;  %v232_v47 = vld [vmem:[#allocation7 + $0x3e0] sm:$0xff]  ;;  %v5857_v51 = vld [vmem:[#allocation4 + $0x8] sm:$0xff]  ;;  %v166_v55 = vld [vmem:[#allocation7 + $0x1d0] sm:$0xff] }
  0x2a   :  { %4514 = vmatpush.msra.mxu2 %v156_v18  ;;  %4530 = vmatpush.msra.mxu3 %v157_v19  ;;  %v167_v56 = vld [vmem:[#allocation7 + $0x1d8] sm:$0xff]  ;;  %v158_v57 = vld [vmem:[#allocation7 + $0x190] sm:$0xff]  ;;  %v224_v59 = vld [vmem:[#allocation7 + $0x3a0] sm:$0xff] }
  0x2b   :  { %263 = vmatpush.msra.mxu0 %v156_v18  ;;  %304 = vmatpush.msra.mxu1 %v157_v19  ;;  %v159_v58 = vld [vmem:[#allocation7 + $0x198] sm:$0xff]  ;;  %v225_v60 = vld [vmem:[#allocation7 + $0x3a8] sm:$0xff]  ;;  %v216_v61 = vld [vmem:[#allocation7 + $0x360] sm:$0xff] }
  0x2c   :  { %4515 = vmatpush.msra.mxu2 %v148_v20  ;;  %4531 = vmatpush.msra.mxu3 %v149_v21  ;;  %v217_v62 = vld [vmem:[#allocation7 + $0x368] sm:$0xff]  ;;  %v150_v63 = vld [vmem:[#allocation7 + $0x150] sm:$0xff]  ;;  %v151_v0 = vld [vmem:[#allocation7 + $0x158] sm:$0xff] }
  0x2d   :  { %264 = vmatpush.msra.mxu0 %v148_v20  ;;  %305 = vmatpush.msra.mxu1 %v149_v21  ;;  %v208_v1 = vld [vmem:[#allocation7 + $0x320] sm:$0xff]  ;;  %v209_v2 = vld [vmem:[#allocation7 + $0x328] sm:$0xff]  ;;  %v142_v3 = vld [vmem:[#allocation7 + $0x110] sm:$0xff] }
  0x2e   :  { %4516 = vmatpush.msra.mxu2 %v140_v22  ;;  %4532 = vmatpush.msra.mxu3 %v141_v23  ;;  %v143_v4 = vld [vmem:[#allocation7 + $0x118] sm:$0xff]  ;;  %v134_v6 = vld [vmem:[#allocation7 + $0xd0] sm:$0xff]  ;;  %v200_v8 = vld [vmem:[#allocation7 + $0x2e0] sm:$0xff] }
  0x2f   :  { %265 = vmatpush.msra.mxu0 %v140_v22  ;;  %306 = vmatpush.msra.mxu1 %v141_v23  ;;  %v5865_v5 = vld [vmem:[#allocation4 + $0x38] sm:$0xff]  ;;  %v201_v9 = vld [vmem:[#allocation7 + $0x2e8] sm:$0xff]  ;;  %v126_v10 = vld [vmem:[#allocation7 + $0x90] sm:$0xff] }
  0x30   :  { %4517 = vmatpush.msra.mxu2 %v132_v24  ;;  %4533 = vmatpush.msra.mxu3 %v133_v25  ;;  %v135_v7 = vld [vmem:[#allocation7 + $0xd8] sm:$0xff]  ;;  %v192_v12 = vld [vmem:[#allocation7 + $0x2a0] sm:$0xff]  ;;  %v193_v13 = vld [vmem:[#allocation7 + $0x2a8] sm:$0xff] }
  0x31   :  { %266 = vmatpush.msra.mxu0 %v132_v24  ;;  %307 = vmatpush.msra.mxu1 %v133_v25  ;;  %v127_v11 = vld [vmem:[#allocation7 + $0x98] sm:$0xff]  ;;  %v118_v14 = vld [vmem:[#allocation7 + $0x50] sm:$0xff]  ;;  %v184_v16 = vld [vmem:[#allocation7 + $0x260] sm:$0xff] }
  0x32   :  { %4518 = vmatpush.msra.mxu2 %v124_v26  ;;  %4534 = vmatpush.msra.mxu3 %v125_v27  ;;  %v119_v15 = vld [vmem:[#allocation7 + $0x58] sm:$0xff]  ;;  %v185_v17 = vld [vmem:[#allocation7 + $0x268] sm:$0xff]  ;;  %v110_v18 = vld [vmem:[#allocation7 + $0x10] sm:$0xff] }
  0x33   :  { %267 = vmatpush.msra.mxu0 %v124_v26  ;;  %308 = vmatpush.msra.mxu1 %v125_v27  ;;  %v111_v19 = vld [vmem:[#allocation7 + $0x18] sm:$0xff]  ;;  %v176_v20 = vld [vmem:[#allocation7 + $0x220] sm:$0xff]  ;;  %v177_v21 = vld [vmem:[#allocation7 + $0x228] sm:$0xff] }
  0x34   :  { %4519 = vmatpush.msra.mxu2 %v116_v28  ;;  %4535 = vmatpush.msra.mxu3 %v117_v29  ;;  %v168_v22 = vld [vmem:[#allocation7 + $0x1e0] sm:$0xff]  ;;  %v169_v23 = vld [vmem:[#allocation7 + $0x1e8] sm:$0xff]  ;;  %v5871_v24 = vld [vmem:[#allocation4 + $0x10] sm:$0xff] }
  0x35   :  { %268 = vmatpush.msra.mxu0 %v116_v28  ;;  %309 = vmatpush.msra.mxu1 %v117_v29  ;;  %v234_v25 = vld [vmem:[#allocation7 + $0x3f0] sm:$0xff]  ;;  %v235_v26 = vld [vmem:[#allocation7 + $0x3f8] sm:$0xff]  ;;  %v160_v27 = vld [vmem:[#allocation7 + $0x1a0] sm:$0xff] }
  0x36   :  { %4520 = vmatpush.msra.mxu2 %v108_v30  ;;  %4536 = vmatpush.msra.mxu3 %v109_v31  ;;  %v161_v28 = vld [vmem:[#allocation7 + $0x1a8] sm:$0xff]  ;;  %v226_v29 = vld [vmem:[#allocation7 + $0x3b0] sm:$0xff] }
  0x37   :  { %282 = vmatmul.f32.vlgmr.msra.gmra.mxu2 %v5845_v32  ;;  %323 = vmatmul.f32.vlgmr.msra.gmra.mxu3 %v5845_v32 }
  0x38   :  { %336 = vmatpush.msrb.mxu2 %v230_v33  ;;  %377 = vmatpush.msrb.mxu3 %v231_v34  ;;  %v153_v33 = vld [vmem:[#allocation7 + $0x168] sm:$0xff]  ;;  %v144_v34 = vld [vmem:[#allocation7 + $0x120] sm:$0xff] }
  0x39   :  { %269 = vmatpush.msra.mxu0 %v108_v30  ;;  %310 = vmatpush.msra.mxu1 %v109_v31  ;;  %v227_v30 = vld [vmem:[#allocation7 + $0x3b8] sm:$0xff]  ;;  %v152_v31 = vld [vmem:[#allocation7 + $0x160] sm:$0xff] }
  0x3a   :  { %337 = vmatpush.msrb.mxu2 %v222_v35  ;;  %378 = vmatpush.msrb.mxu3 %v223_v36  ;;  %v145_v35 = vld [vmem:[#allocation7 + $0x128] sm:$0xff]  ;;  %v218_v36 = vld [vmem:[#allocation7 + $0x370] sm:$0xff] }
  0x3b   :  { %270 = vmatmul.f32.vlgmr.msra.gmra.mxu0 %v5849_v37  ;;  %311 = vmatmul.f32.vlgmr.msra.gmra.mxu1 %v5849_v37 }
  0x3c   :  { %338 = vmatpush.msrb.mxu2 %v214_v38  ;;  %379 = vmatpush.msrb.mxu3 %v215_v39  ;;  %v219_v38 = vld [vmem:[#allocation7 + $0x378] sm:$0xff]  ;;  %v136_v39 = vld [vmem:[#allocation7 + $0xe0] sm:$0xff] }
  0x3d   :  { %418 = vmatpush.msrb.mxu0 %v232_v47  ;;  %459 = vmatpush.msrb.mxu1 %v233_v48  ;;  %v202_v47 = vld [vmem:[#allocation7 + $0x2f0] sm:$0xff]  ;;  %v203_v48 = vld [vmem:[#allocation7 + $0x2f8] sm:$0xff] }
  0x3e   :  { %339 = vmatpush.msrb.mxu2 %v206_v40  ;;  %380 = vmatpush.msrb.mxu3 %v207_v41  ;;  %v137_v40 = vld [vmem:[#allocation7 + $0xe8] sm:$0xff]  ;;  %v5877_v41 = vld [vmem:[#allocation4 + $0x18] sm:$0xff] }
  0x3f   :  { %285 = vmatmul.f32.gmra.mxu2 %v5853_v42  ;;  %326 = vmatmul.f32.gmra.mxu3 %v5853_v42 }
  0x40   :  { %340 = vmatpush.msrb.mxu2 %v198_v43  ;;  %381 = vmatpush.msrb.mxu3 %v199_v44  ;;  %v210_v43 = vld [vmem:[#allocation7 + $0x330] sm:$0xff]  ;;  %v211_v44 = vld [vmem:[#allocation7 + $0x338] sm:$0xff] }
  0x41   :  { %419 = vmatpush.msrb.mxu0 %v224_v59  ;;  %460 = vmatpush.msrb.mxu1 %v225_v60  ;;  %v178_v59 = vld [vmem:[#allocation7 + $0x230] sm:$0xff]  ;;  %v179_v60 = vld [vmem:[#allocation7 + $0x238] sm:$0xff] }
  0x42   :  { %341 = vmatpush.msrb.mxu2 %v190_v45  ;;  %382 = vmatpush.msrb.mxu3 %v191_v46  ;;  %v128_v45 = vld [vmem:[#allocation7 + $0xa0] sm:$0xff]  ;;  %v129_v46 = vld [vmem:[#allocation7 + $0xa8] sm:$0xff] }
  0x43   :  { %273 = vmatmul.f32.gmra.mxu0 %v5857_v51  ;;  %314 = vmatmul.f32.gmra.mxu1 %v5857_v51 }
  0x44   :  { %342 = vmatpush.msrb.mxu2 %v182_v49  ;;  %383 = vmatpush.msrb.mxu3 %v183_v50  ;;  %v120_v49 = vld [vmem:[#allocation7 + $0x60] sm:$0xff]  ;;  %v121_v50 = vld [vmem:[#allocation7 + $0x68] sm:$0xff] }
  0x45   :  { %420 = vmatpush.msrb.mxu0 %v216_v61  ;;  %461 = vmatpush.msrb.mxu1 %v217_v62  ;;  %v170_v61 = vld [vmem:[#allocation7 + $0x1f0] sm:$0xff]  ;;  %v171_v62 = vld [vmem:[#allocation7 + $0x1f8] sm:$0xff] }
  0x46   :  { %343 = vmatpush.msrb.mxu2 %v174_v52  ;;  %384 = vmatpush.msrb.mxu3 %v175_v53  ;;  %v194_v52 = vld [vmem:[#allocation7 + $0x2b0] sm:$0xff]  ;;  %v195_v53 = vld [vmem:[#allocation7 + $0x2b8] sm:$0xff] }
  0x47   :  { %288 = vmatmul.f32.gmra.mxu2 %v5861_v54  ;;  %329 = vmatmul.f32.gmra.mxu3 %v5861_v54 }
  0x48   :  { %344 = vmatpush.msrb.mxu2 %v166_v55  ;;  %385 = vmatpush.msrb.mxu3 %v167_v56  ;;  %v112_v55 = vld [vmem:[#allocation7 + $0x20] sm:$0xff]  ;;  %v113_v56 = vld [vmem:[#allocation7 + $0x28] sm:$0xff] }
  0x49   :  { %421 = vmatpush.msrb.mxu0 %v208_v1  ;;  %462 = vmatpush.msrb.mxu1 %v209_v2  ;;  %v154_v1 = vld [vmem:[#allocation7 + $0x170] sm:$0xff]  ;;  %v155_v2 = vld [vmem:[#allocation7 + $0x178] sm:$0xff] }
  0x4a   :  { %345 = vmatpush.msrb.mxu2 %v158_v57  ;;  %386 = vmatpush.msrb.mxu3 %v159_v58  ;;  %v186_v57 = vld [vmem:[#allocation7 + $0x270] sm:$0xff]  ;;  %v187_v58 = vld [vmem:[#allocation7 + $0x278] sm:$0xff] }
  0x4b   :  { %422 = vmatpush.msrb.mxu0 %v200_v8  ;;  %463 = vmatpush.msrb.mxu1 %v201_v9  ;;  %v130_v8 = vld [vmem:[#allocation7 + $0xb0] sm:$0xff]  ;;  %v131_v9 = vld [vmem:[#allocation7 + $0xb8] sm:$0xff] }
  0x4c   :  { %346 = vmatpush.msrb.mxu2 %v150_v63  ;;  %387 = vmatpush.msrb.mxu3 %v151_v0  ;;  %v162_v63 = vld [vmem:[#allocation7 + $0x1b0] sm:$0xff]  ;;  %v163_v0 = vld [vmem:[#allocation7 + $0x1b8] sm:$0xff] }
  0x4d   :  { %423 = vmatpush.msrb.mxu0 %v192_v12  ;;  %464 = vmatpush.msrb.mxu1 %v193_v13  ;;  %v114_v12 = vld [vmem:[#allocation7 + $0x30] sm:$0xff]  ;;  %v115_v13 = vld [vmem:[#allocation7 + $0x38] sm:$0xff] }
  0x4e   :  { %347 = vmatpush.msrb.mxu2 %v142_v3  ;;  %388 = vmatpush.msrb.mxu3 %v143_v4  ;;  %v146_v3 = vld [vmem:[#allocation7 + $0x130] sm:$0xff]  ;;  %v147_v4 = vld [vmem:[#allocation7 + $0x138] sm:$0xff] }
  0x4f   :  { %291 = vmatmul.f32.gmra.mxu2 %v5865_v5  ;;  %332 = vmatmul.f32.gmra.mxu3 %v5865_v5 }
  0x50   :  { %348 = vmatpush.msrb.mxu2 %v134_v6  ;;  %389 = vmatpush.msrb.mxu3 %v135_v7  ;;  %v138_v6 = vld [vmem:[#allocation7 + $0xf0] sm:$0xff]  ;;  %v139_v7 = vld [vmem:[#allocation7 + $0xf8] sm:$0xff] }
  0x51   :  { %424 = vmatpush.msrb.mxu0 %v184_v16  ;;  %465 = vmatpush.msrb.mxu1 %v185_v17  ;;  %v5915_v16 = vld [vmem:[#allocation9 + $0x380] sm:$0xff]  ;;  %v5917_v17 = vld [vmem:[#allocation9 + $0x388] sm:$0xff] }
  0x52   :  { %349 = vmatpush.msrb.mxu2 %v126_v10  ;;  %390 = vmatpush.msrb.mxu3 %v127_v11  ;;  %v122_v10 = vld [vmem:[#allocation7 + $0x70] sm:$0xff]  ;;  %v123_v11 = vld [vmem:[#allocation7 + $0x78] sm:$0xff] }
  0x53   :  { %425 = vmatpush.msrb.mxu0 %v176_v20  ;;  %466 = vmatpush.msrb.mxu1 %v177_v21  ;;  %v5931_v20 = vld [vmem:[#allocation9 + $0x308] sm:$0xff]  ;;  %v734_v21 = vld [vmem:[#allocation9 + $0x2c0] sm:$0xff] }
  0x54   :  { %350 = vmatpush.msrb.mxu2 %v118_v14  ;;  %391 = vmatpush.msrb.mxu3 %v119_v15  ;;  %v5907_v14 = vld [vmem:[#allocation9 + $0x3c0] sm:$0xff]  ;;  %v5909_v15 = vld [vmem:[#allocation9 + $0x3c8] sm:$0xff] }
  0x55   :  { %276 = vmatmul.f32.gmra.mxu0 %v5871_v24  ;;  %317 = vmatmul.f32.gmra.mxu1 %v5871_v24 }
  0x56   :  { %351 = vmatpush.msrb.mxu2 %v110_v18  ;;  %392 = vmatpush.msrb.mxu3 %v111_v19  ;;  %v5923_v18 = vld [vmem:[#allocation9 + $0x348] sm:$0xff]  ;;  %v5929_v19 = vld [vmem:[#allocation9 + $0x300] sm:$0xff] }
  0x57   :  { %352 = vmatmul.f32.vlgmr.msrb.gmra.mxu2 %v5849_v37  ;;  %393 = vmatmul.f32.vlgmr.msrb.gmra.mxu3 %v5849_v37 }
  0x58   :  { %426 = vmatpush.msrb.mxu0 %v168_v22  ;;  %467 = vmatpush.msrb.mxu1 %v169_v23  ;;  %v735_v22 = vld [vmem:[#allocation9 + $0x2c8] sm:$0xff] }
  0x59   :  { %500 = vmatpush.msra.mxu2 %v234_v25  ;;  %541 = vmatpush.msra.mxu3 %v235_v26  ;;  %v5939_v23 = vld [vmem:[#allocation9 + $0x288] sm:$0xff]  ;;  %v718_v25 = vld [vmem:[#allocation9 + $0x240] sm:$0xff] }
  0x5a   :  { %427 = vmatpush.msrb.mxu0 %v160_v27  ;;  %468 = vmatpush.msrb.mxu1 %v161_v28  ;;  %v719_v26 = vld [vmem:[#allocation9 + $0x248] sm:$0xff]  ;;  %v710_v27 = vld [vmem:[#allocation9 + $0x200] sm:$0xff] }
  0x5b   :  { %501 = vmatpush.msra.mxu2 %v226_v29  ;;  %542 = vmatpush.msra.mxu3 %v227_v30  ;;  %v711_v28 = vld [vmem:[#allocation9 + $0x208] sm:$0xff]  ;;  %v702_v29 = vld [vmem:[#allocation9 + $0x1c0] sm:$0xff] }
  0x5c   :  { %428 = vmatpush.msrb.mxu0 %v152_v31  ;;  %469 = vmatpush.msrb.mxu1 %v153_v33  ;;  %v703_v30 = vld [vmem:[#allocation9 + $0x1c8] sm:$0xff]  ;;  %v694_v31 = vld [vmem:[#allocation9 + $0x180] sm:$0xff] }
  0x5d   :  { %502 = vmatpush.msra.mxu2 %v218_v36  ;;  %543 = vmatpush.msra.mxu3 %v219_v38  ;;  %v695_v33 = vld [vmem:[#allocation9 + $0x188] sm:$0xff]  ;;  %v670_v38 = vld [vmem:[#allocation9 + $0xc0] sm:$0xff] }
  0x5e   :  { %429 = vmatpush.msrb.mxu0 %v144_v34  ;;  %470 = vmatpush.msrb.mxu1 %v145_v35  ;;  %v687_v34 = vld [vmem:[#allocation9 + $0x148] sm:$0xff]  ;;  %v678_v35 = vld [vmem:[#allocation9 + $0x100] sm:$0xff] }
  0x5f   :  { %355 = vmatmul.f32.gmra.mxu2 %v5857_v51  ;;  %396 = vmatmul.f32.gmra.mxu3 %v5857_v51  ;;  %v679_v36 = vld [vmem:[#allocation9 + $0x108] sm:$0xff] }
  0x60   :  { %279 = vmatmul.f32.gmra.mxu0 %v5877_v41  ;;  %320 = vmatmul.f32.gmra.mxu1 %v5877_v41 }
  0x61   :  { %430 = vmatpush.msrb.mxu0 %v136_v39  ;;  %471 = vmatpush.msrb.mxu1 %v137_v40  ;;  %v671_v39 = vld [vmem:[#allocation9 + $0xc8] sm:$0xff]  ;;  %v5947_v40 = vld [vmem:[#allocation10] sm:$0xff] }
  0x62   :  { %503 = vmatpush.msra.mxu2 %v210_v43  ;;  %544 = vmatpush.msra.mxu3 %v211_v44  ;;  %v662_v43 = vld [vmem:[#allocation9 + $0x80] sm:$0xff]  ;;  %v663_v44 = vld [vmem:[#allocation9 + $0x88] sm:$0xff] }
  0x63   :  { %431 = vmatpush.msrb.mxu0 %v128_v45  ;;  %472 = vmatpush.msrb.mxu1 %v129_v46  ;;  %v5955_v45 = vperm.slane %v5947_v40, 1  ;;  %v654_v46 = vld [vmem:[#allocation9 + $0x40] sm:$0xff] }
  0x64   :  { %504 = vmatpush.msra.mxu2 %v202_v47  ;;  %545 = vmatpush.msra.mxu3 %v203_v48  ;;  %v655_v47 = vld [vmem:[#allocation9 + $0x48] sm:$0xff] }
  0x65   :  { %432 = vmatpush.msrb.mxu0 %v120_v49  ;;  %473 = vmatpush.msrb.mxu1 %v121_v50  ;;  %10061 = vst [vmem:[#allocation19_spill] sm:$0xff] %v5955_v45 }
  0x66   :  { %505 = vmatpush.msra.mxu2 %v194_v52  ;;  %546 = vmatpush.msra.mxu3 %v195_v53 }
  0x67   :  { %358 = vmatmul.f32.gmra.mxu2 %v5871_v24  ;;  %399 = vmatmul.f32.gmra.mxu3 %v5871_v24 }
  0x68   :  { %433 = vmatpush.msrb.mxu0 %v112_v55  ;;  %474 = vmatpush.msrb.mxu1 %v113_v56 }
  0x69   :  { %506 = vmatpush.msra.mxu2 %v186_v57  ;;  %547 = vmatpush.msra.mxu3 %v187_v58  ;;  %v646_v57 = vld [vmem:[#allocation9] sm:$0xff]  ;;  %v647_v58 = vld [vmem:[#allocation9 + $0x8] sm:$0xff] }
  0x6a   :  { %434 = vmatmul.f32.vlgmr.msrb.gmra.mxu0 %v5849_v37  ;;  %475 = vmatmul.f32.vlgmr.msrb.gmra.mxu1 %v5849_v37 }
  0x6b   :  { %507 = vmatpush.msra.mxu2 %v178_v59  ;;  %548 = vmatpush.msra.mxu3 %v179_v60  ;;  %v768_v59 = vld [vmem:[#allocation9 + $0x3d0] sm:$0xff]  ;;  %v769_v60 = vld [vmem:[#allocation9 + $0x3d8] sm:$0xff] }
  0x6c   :  { %1046 = vmatpush.msra.mxu0 %v5907_v14 }
  0x6d   :  { %508 = vmatpush.msra.mxu2 %v170_v61  ;;  %549 = vmatpush.msra.mxu3 %v171_v62  ;;  %v760_v61 = vld [vmem:[#allocation9 + $0x390] sm:$0xff]  ;;  %v761_v62 = vld [vmem:[#allocation9 + $0x398] sm:$0xff] }
  0x6e   :  { %1047 = vmatpush.msra.mxu0 %v5915_v16 }
  0x6f   :  { %361 = vmatmul.f32.gmra.mxu2 %v5877_v41  ;;  %402 = vmatmul.f32.gmra.mxu3 %v5877_v41 }
  0x70   :  { %509 = vmatpush.msra.mxu2 %v162_v63  ;;  %550 = vmatpush.msra.mxu3 %v163_v0  ;;  %v752_v63 = vld [vmem:[#allocation9 + $0x350] sm:$0xff]  ;;  %v753_v0 = vld [vmem:[#allocation9 + $0x358] sm:$0xff] }
  0x72   :  { %510 = vmatpush.msra.mxu2 %v154_v1  ;;  %551 = vmatpush.msra.mxu3 %v155_v2 }
  0x73   :  { %437 = vmatmul.f32.gmra.mxu0 %v5857_v51  ;;  %478 = vmatmul.f32.gmra.mxu1 %v5857_v51 }
  0x74   :  { %511 = vmatpush.msra.mxu2 %v146_v3  ;;  %552 = vmatpush.msra.mxu3 %v147_v4  ;;  %v744_v3 = vld [vmem:[#allocation9 + $0x310] sm:$0xff]  ;;  %v745_v4 = vld [vmem:[#allocation9 + $0x318] sm:$0xff] }
  0x76   :  { %512 = vmatpush.msra.mxu2 %v138_v6  ;;  %553 = vmatpush.msra.mxu3 %v139_v7 }
  0x77   :  { %364 = vmatmul.f32.gmra.mxu2 %v5845_v32  ;;  %405 = vmatmul.f32.gmra.mxu3 %v5845_v32 }
  0x78   :  { %513 = vmatpush.msra.mxu2 %v130_v8  ;;  %554 = vmatpush.msra.mxu3 %v131_v9  ;;  %v736_v8 = vld [vmem:[#allocation9 + $0x2d0] sm:$0xff]  ;;  %v737_v9 = vld [vmem:[#allocation9 + $0x2d8] sm:$0xff] }
  0x7a   :  { %514 = vmatpush.msra.mxu2 %v122_v10  ;;  %555 = vmatpush.msra.mxu3 %v123_v11  ;;  %v728_v11 = vld [vmem:[#allocation9 + $0x290] sm:$0xff] }
  0x7b   :  { %440 = vmatmul.f32.gmra.mxu0 %v5871_v24  ;;  %481 = vmatmul.f32.gmra.mxu1 %v5871_v24 }
  0x7c   :  { %515 = vmatpush.msra.mxu2 %v114_v12  ;;  %556 = vmatpush.msra.mxu3 %v115_v13  ;;  %v729_v12 = vld [vmem:[#allocation9 + $0x298] sm:$0xff]  ;;  %v720_v13 = vld [vmem:[#allocation9 + $0x250] sm:$0xff] }
  0x7e   :  { %1086 = vmatpush.msrb.mxu2 %v5909_v15 }
  0x7f   :  { %367 = vmatmul.f32.gmra.mxu2 %v5853_v42  ;;  %408 = vmatmul.f32.gmra.mxu3 %v5853_v42 }
  0x80   :  { %1087 = vmatpush.msrb.mxu2 %v5917_v17 }
  0x82   :  { %1088 = vmatpush.msrb.mxu2 %v5923_v18 }
  0x83   :  { %443 = vmatmul.f32.gmra.mxu0 %v5877_v41  ;;  %484 = vmatmul.f32.gmra.mxu1 %v5877_v41 }
  0x84   :  { %1089 = vmatpush.msrb.mxu2 %v5931_v20 }
  0x86   :  { %1090 = vmatpush.msrb.mxu2 %v735_v22 }
  0x87   :  { %370 = vmatmul.f32.gmra.mxu2 %v5861_v54  ;;  %411 = vmatmul.f32.gmra.mxu3 %v5861_v54 }
  0x88   :  { %1091 = vmatpush.msrb.mxu2 %v5939_v23 }
  0x8a   :  { %1092 = vmatpush.msrb.mxu2 %v719_v26  ;;  %v712_v26 = vld [vmem:[#allocation9 + $0x210] sm:$0xff] }
  0x8b   :  { %446 = vmatmul.f32.gmra.mxu0 %v5845_v32  ;;  %487 = vmatmul.f32.gmra.mxu1 %v5845_v32 }
  0x8c   :  { %1093 = vmatpush.msrb.mxu2 %v711_v28 }
  0x8e   :  { %1094 = vmatpush.msrb.mxu2 %v703_v30  ;;  %v705_v30 = vld [vmem:[#allocation9 + $0x1d8] sm:$0xff] }
  0x8f   :  { %373 = vmatmul.f32.gmra.mxu2 %v5865_v5  ;;  %414 = vmatmul.f32.gmra.mxu3 %v5865_v5 }
  0x90   :  { %1095 = vmatpush.msrb.mxu2 %v695_v33  ;;  %v697_v33 = vld [vmem:[#allocation9 + $0x198] sm:$0xff] }
  0x92   :  { %1096 = vmatpush.msrb.mxu2 %v687_v34 }
  0x93   :  { %449 = vmatmul.f32.gmra.mxu0 %v5853_v42  ;;  %490 = vmatmul.f32.gmra.mxu1 %v5853_v42 }
  0x94   :  { %1097 = vmatpush.msrb.mxu2 %v679_v36  ;;  %v689_v36 = vld [vmem:[#allocation9 + $0x158] sm:$0xff] }
  0x96   :  { %1098 = vmatpush.msrb.mxu2 %v671_v39 }
  0x97   :  { %516 = vmatmul.f32.vlgmr.msra.gmra.mxu2 %v5849_v37  ;;  %557 = vmatmul.f32.vlgmr.msra.gmra.mxu3 %v5849_v37  ;;  %v5921_v37 = vld [vmem:[#allocation9 + $0x340] sm:$0xff] }
  0x98   :  { %1048 = vmatpush.msra.mxu0 %v5921_v37  ;;  %1099 = vmatpush.msrb.mxu2 %v663_v44  ;;  %v681_v44 = vld [vmem:[#allocation9 + $0x118] sm:$0xff] }
  0x9a   :  { %1049 = vmatpush.msra.mxu0 %v5929_v19  ;;  %1100 = vmatpush.msrb.mxu2 %v655_v47  ;;  %v672_v47 = vld [vmem:[#allocation9 + $0xd0] sm:$0xff] }
  0x9b   :  { %452 = vmatmul.f32.gmra.mxu0 %v5861_v54  ;;  %493 = vmatmul.f32.gmra.mxu1 %v5861_v54 }
  0x9c   :  { %1050 = vmatpush.msra.mxu0 %v734_v21  ;;  %1101 = vmatpush.msrb.mxu2 %v647_v58  ;;  %v721_v21 = vld [vmem:[#allocation9 + $0x258] sm:$0xff]  ;;  %v6004_v58 = vperm.slane %v5947_v40, 3 }
  0x9e   :  { %1166 = vmatpush.msra.mxu2 %v769_v60  ;;  %10074 = vst [vmem:[#allocation32_spill] sm:$0xff] %v6004_v58  ;;  %v656_v60 = vld [vmem:[#allocation9 + $0x50] sm:$0xff] }
  0x9f   :  { %519 = vmatmul.f32.gmra.mxu2 %v5857_v51  ;;  %560 = vmatmul.f32.gmra.mxu3 %v5857_v51  ;;  %v5937_v51 = vld [vmem:[#allocation9 + $0x280] sm:$0xff] }
  0xa0   :  { %1051 = vmatpush.msra.mxu0 %v5937_v51  ;;  %1167 = vmatpush.msra.mxu2 %v761_v62 }
  0xa2   :  { %1052 = vmatpush.msra.mxu0 %v718_v25  ;;  %1168 = vmatpush.msra.mxu2 %v753_v0  ;;  %v648_v0 = vld [vmem:[#allocation9 + $0x10] sm:$0xff] }
  0xa3   :  { %455 = vmatmul.f32.gmra.mxu0 %v5865_v5  ;;  %496 = vmatmul.f32.gmra.mxu1 %v5865_v5 }
  0xa4   :  { %1053 = vmatpush.msra.mxu0 %v710_v27  ;;  %1169 = vmatpush.msra.mxu2 %v745_v4  ;;  %v713_v27 = vld [vmem:[#allocation9 + $0x218] sm:$0xff] }
  0xa6   :  { %1054 = vmatpush.msra.mxu0 %v702_v29  ;;  %1170 = vmatpush.msra.mxu2 %v737_v9 }
  0xa7   :  { %522 = vmatmul.f32.gmra.mxu2 %v5871_v24  ;;  %563 = vmatmul.f32.gmra.mxu3 %v5871_v24  ;;  %v686_v24 = vld [vmem:[#allocation9 + $0x140] sm:$0xff] }
  0xa8   :  { %1055 = vmatpush.msra.mxu0 %v694_v31  ;;  %1171 = vmatpush.msra.mxu2 %v729_v12  ;;  %v696_v31 = vld [vmem:[#allocation9 + $0x190] sm:$0xff] }
  0xaa   :  { %1056 = vmatpush.msra.mxu0 %v686_v24  ;;  %1172 = vmatpush.msra.mxu2 %v721_v21 }
  0xac   :  { %1057 = vmatpush.msra.mxu0 %v678_v35  ;;  %1173 = vmatpush.msra.mxu2 %v713_v27  ;;  %v688_v35 = vld [vmem:[#allocation9 + $0x150] sm:$0xff] }
  0xae   :  { %1058 = vmatpush.msra.mxu0 %v670_v38  ;;  %1174 = vmatpush.msra.mxu2 %v705_v30 }
  0xaf   :  { %525 = vmatmul.f32.gmra.mxu2 %v5877_v41  ;;  %566 = vmatmul.f32.gmra.mxu3 %v5877_v41  ;;  %v5952_v41 = vperm.slane %v5947_v40, 0 }
  0xb0   :  { %1059 = vmatpush.msra.mxu0 %v662_v43  ;;  %1175 = vmatpush.msra.mxu2 %v697_v33  ;;  %v680_v43 = vld [vmem:[#allocation9 + $0x110] sm:$0xff] }
  0xb1   :  { %10060 = vst [vmem:[#allocation18_spill] sm:$0xff] %v5952_v41 }
  0xb2   :  { %1060 = vmatpush.msra.mxu0 %v654_v46  ;;  %1176 = vmatpush.msra.mxu2 %v689_v36 }
  0xb4   :  { %1061 = vmatpush.msra.mxu0 %v646_v57  ;;  %1177 = vmatpush.msra.mxu2 %v681_v44 }
  0xb6   :  { %1126 = vmatpush.msrb.mxu0 %v768_v59  ;;  %v6007_v59 = vperm.slane %v5947_v40, 2 }
  0xb7   :  { %528 = vmatmul.f32.gmra.mxu2 %v5845_v32  ;;  %569 = vmatmul.f32.gmra.mxu3 %v5845_v32 }
  0xb8   :  { %v271_v48 = vpop.f32.mrf.mxu0  ;;  %v312_v49 = vpop.f32.mrf.mxu1  ;;  %1127 = vmatpush.msrb.mxu0 %v760_v61  ;;  %10075 = vst [vmem:[#allocation33_spill] sm:$0xff] %v6007_v59  ;;  %v657_v61 = vld [vmem:[#allocation9 + $0x58] sm:$0xff] }
  0xb9   :  { %v272_v50 = vadd.f32 %v271_v48, %v5952_v41  ;;  %v313_v52 = vadd.f32 %v312_v49, %v5955_v45  ;;  %v673_v48 = vld [vmem:[#allocation9 + $0xd8] sm:$0xff]  ;;  %v4810_v41 = vld [vmem:[#allocation9 + $0x1c0] sm:$0xff] }
  0xba   :  { %v5959_v53 = vpop.f32.mrf.mxu2  ;;  %v5961_v55 = vpop.f32.mrf.mxu3  ;;  %1128 = vmatpush.msrb.mxu0 %v752_v63  ;;  %1178 = vmatpush.msra.mxu2 %v673_v48 }
  0xbb   :  { %10062 = vst [vmem:[#allocation20_spill] sm:$0xff] %v5959_v53  ;;  %v4457_v32 = vmul.f32 -1.442695, %v272_v50  ;;  %v4458_v56 = vmul.f32 -1.442695, %v313_v52  ;;  %v664_v52 = vld [vmem:[#allocation9 + $0x90] sm:$0xff] }
  0xbc   :  { %10063 = vst [vmem:[#allocation21_spill] sm:$0xff] %v5961_v55  ;;  %1129 = vmatpush.msrb.mxu0 %v744_v3  ;;  %v649_v3 = vld [vmem:[#allocation9 + $0x18] sm:$0xff]  ;;  %v6172_v53 = vld [vmem:[#allocation9 + $0x540] sm:$0xff] }
  0xbd   :  { %4548 = vpow2.f32 %v4457_v32  ;;  %v665_v32 = vld [vmem:[#allocation9 + $0x98] sm:$0xff] }
  0xbe   :  { %4550 = vpow2.f32 %v4458_v56  ;;  %1130 = vmatpush.msrb.mxu0 %v736_v8  ;;  %1179 = vmatpush.msra.mxu2 %v665_v32  ;;  %v709_v55 = vld [vmem:[#allocation9 + $0x1f8] sm:$0xff] }
  0xbf   :  { %531 = vmatmul.f32.gmra.mxu2 %v5853_v42  ;;  %572 = vmatmul.f32.gmra.mxu3 %v5853_v42 }
  0xc0   :  { %1131 = vmatpush.msrb.mxu0 %v728_v11  ;;  %v5981_v28 = vpop.f32.mrf.mxu0  ;;  %v5983_v29 = vpop.f32.mrf.mxu1  ;;  %1180 = vmatpush.msra.mxu2 %v657_v61 }
  0xc1   :  { %10068 = vst [vmem:[#allocation26_spill] sm:$0xff] %v5981_v28  ;;  %v4809_v28 = vld [vmem:[#allocation9 + $0x208] sm:$0xff] }
  0xc2   :  { %v5965_v1 = vpop.f32.mrf.mxu2  ;;  %v5967_v2 = vpop.f32.mrf.mxu3  ;;  %1132 = vmatpush.msrb.mxu0 %v720_v13  ;;  %10069 = vst [vmem:[#allocation27_spill] sm:$0xff] %v5983_v29  ;;  %1181 = vmatpush.msra.mxu2 %v649_v3  ;;  %v4807_v29 = vld [vmem:[#allocation9 + $0x248] sm:$0xff] }
  0xc3   :  { %10064 = vst [vmem:[#allocation22_spill] sm:$0xff] %v5965_v1  ;;  %v4549_v6 = vpop.eup %4548  ;;  %v6156_v1 = vld [vmem:[#allocation9 + $0x5c0] sm:$0xff] }
  0xc4   :  { %10065 = vst [vmem:[#allocation23_spill] sm:$0xff] %v5967_v2  ;;  %v4551_v7 = vpop.eup %4550  ;;  %v5969_v10 = vadd.f32 1.0, %v4549_v6  ;;  %1133 = vmatpush.msrb.mxu0 %v712_v26 }
  0xc5   :  { %v5971_v42 = vadd.f32 1.0, %v4551_v7 }
  0xc6   :  { %4552 = vrcp.f32 %v5969_v10  ;;  %vm927_vm0 = vweird.f32 %v5969_v10  ;;  %v931_v12 = vand.u32 2147483647, %v5969_v10  ;;  %v933_v13 = vand.u32 2147483648, %v5969_v10 }
  0xc7   :  { %534 = vmatmul.f32.gmra.mxu2 %v5861_v54  ;;  %575 = vmatmul.f32.gmra.mxu3 %v5861_v54  ;;  %4554 = vrcp.f32 %v5971_v42  ;;  %v704_v54 = vld [vmem:[#allocation9 + $0x1d0] sm:$0xff]  ;;  %vm946_vm2 = vweird.f32 %v5971_v42  ;;  %v952_v11 = vand.u32 2147483648, %v5971_v42 }
  0xc8   :  { %1134 = vmatpush.msrb.mxu0 %v704_v54  ;;  %v950_v54 = vand.u32 2147483647, %v5971_v42  ;;  %vm932_vm6 = vcmp.eq.f32.partialorder %v931_v12, 8.507059e+37 }
  0xc9   :  { %v953_v33 = vor.u32 1.1754944e-38, %v952_v11 }
  0xca   :  { %v5976_v22 = vpop.f32.mrf.mxu2  ;;  %v5978_v25 = vpop.f32.mrf.mxu3  ;;  %1135 = vmatpush.msrb.mxu0 %v696_v31  ;;  %vm951_vm7 = vcmp.eq.f32.partialorder %v950_v54, 8.507059e+37 }
  0xcb   :  { %10066 = vst [vmem:[#allocation24_spill] sm:$0xff] %v5976_v22 }
  0xcc   :  { %10067 = vst [vmem:[#allocation25_spill] sm:$0xff] %v5978_v25  ;;  %v5985_v24 = vpop.eup %4552  ;;  %1136 = vmatpush.msrb.mxu0 %v688_v35  ;;  %v934_v35 = vor.u32 1.1754944e-38, %v933_v13  ;;  %v749_v25 = vld [vmem:[#allocation9 + $0x338] sm:$0xff] }
  0xcd   :  { %v5989_v34 = vpop.eup %4554  ;;  %v923_v46 = vmul.f32 %v5985_v24, %v5969_v10  ;;  %vm928_vm1 = vweird.f32 %v5985_v24 }
  0xce   :  { %1137 = vmatpush.msrb.mxu0 %v680_v43  ;;  %vm947_vm3 = vweird.f32 %v5989_v34  ;;  %vm6021_vm4 = vmor %vm927_vm0, %vm928_vm1 }
  0xcf   :  { %537 = vmatmul.f32.gmra.mxu2 %v5865_v5  ;;  %578 = vmatmul.f32.gmra.mxu3 %v5865_v5  ;;  %v942_v5 = vmul.f32 %v5989_v34, %v5971_v42  ;;  %v924_v56 = vsub.f32 1.0, %v923_v46  ;;  %vm948_vm5 = vmor %vm946_vm2, %vm947_vm3 }
  0xd0   :  { %1138 = vmatpush.msrb.mxu0 %v672_v47 }
  0xd1   :  { %v943_v57 = vsub.f32 1.0, %v942_v5  ;;  %v925_v6 = vmul.f32 %v5985_v24, %v924_v56 }
  0xd2   :  { %v5991_v38 = vpop.f32.mrf.mxu2  ;;  %v5993_v39 = vpop.f32.mrf.mxu3  ;;  %1139 = vmatpush.msrb.mxu0 %v664_v52 }
  0xd3   :  { %10070 = vst [vmem:[#allocation28_spill] sm:$0xff] %v5991_v38  ;;  %v5999_v49 = vpop.f32.mrf.mxu0  ;;  %v6001_v50 = vpop.f32.mrf.mxu1  ;;  %v944_v4 = vmul.f32 %v5989_v34, %v943_v57  ;;  %v926_v21 = vadd.f32 %v5985_v24, %v925_v6  ;;  %v764_v38 = vld [vmem:[#allocation9 + $0x3b0] sm:$0xff] }
  0xd4   :  { %10071 = vst [vmem:[#allocation29_spill] sm:$0xff] %v5993_v39  ;;  %1140 = vmatpush.msrb.mxu0 %v656_v60  ;;  %v773_v39 = vld [vmem:[#allocation9 + $0x3f8] sm:$0xff] }
  0xd5   :  { %10072 = vst [vmem:[#allocation30_spill] sm:$0xff] %v5999_v49  ;;  %v945_v27 = vadd.f32 %v5989_v34, %v944_v4  ;;  %v930_v43 = vsel %vm6021_vm4, %v5985_v24, %v926_v21  ;;  %v676_v49 = vld [vmem:[#allocation9 + $0xf0] sm:$0xff] }
  0xd6   :  { %10073 = vst [vmem:[#allocation31_spill] sm:$0xff] %v6001_v50  ;;  %1141 = vmatpush.msrb.mxu0 %v648_v0  ;;  %v935_v5 = vsel %vm932_vm6, %v934_v35, %v930_v43  ;;  %v770_v35 = vld [vmem:[#allocation9 + $0x3e0] sm:$0xff]  ;;  %v771_v43 = vld [vmem:[#allocation9 + $0x3e8] sm:$0xff] }
  0xd7   :  { %v949_v42 = vsel %vm948_vm5, %v5989_v34, %v945_v27 }
  0xd8   :  { %v954_v47 = vsel %vm951_vm7, %v953_v33, %v949_v42 }
  0xd9   :  { %v1034_v52 = vmul.f32 0.0, %v954_v47  ;;  %v754_v47 = vld [vmem:[#allocation9 + $0x360] sm:$0xff] }
  0xda   :  { %v353_v62 = vpop.f32.mrf.mxu2  ;;  %v394_v63 = vpop.f32.mrf.mxu3 }
  0xdb   :  { %v395_v7 = vadd.f32 %v394_v63, %v6004_v58  ;;  %v354_v8 = vadd.f32 %v353_v62, %v6007_v59  ;;  %v6268_v59 = vld [vmem:[#allocation9 + $0x690] sm:$0xff]  ;;  %v4806_v58 = vld [vmem:[#allocation9 + $0x240] sm:$0xff] }
  0xdc   :  { %10125 = vst [vmem:[#allocation81_spill] sm:$0xff] %v6268_v59 }
  0xdd   :  { %v4459_v9 = vmul.f32 -1.442695, %v395_v7  ;;  %v6027_v30 = vpop.f32.mrf.mxu0  ;;  %v6029_v31 = vpop.f32.mrf.mxu1 }
  0xde   :  { %10078 = vst [vmem:[#allocation34_spill] sm:$0xff] %v6027_v30  ;;  %v684_v30 = vld [vmem:[#allocation9 + $0x130] sm:$0xff] }
  0xdf   :  { %4556 = vpow2.f32 %v4459_v9  ;;  %10079 = vst [vmem:[#allocation35_spill] sm:$0xff] %v6029_v31  ;;  %v6188_v31 = vperm.slane %v5947_v40, 5 }
  0xe0   :  { %4558 = vtanh.f32 %v354_v8 }
  0xe1   :  { %10117 = vst [vmem:[#allocation73_spill] sm:$0xff] %v6188_v31 }
  0xe2   :  { %v6031_v10 = vpop.f32.mrf.mxu2  ;;  %v6033_v36 = vpop.f32.mrf.mxu3 }
  0xe3   :  { %10080 = vst [vmem:[#allocation36_spill] sm:$0xff] %v6031_v10 }
  0xe4   :  { %10081 = vst [vmem:[#allocation37_spill] sm:$0xff] %v6033_v36  ;;  %v6270_v36 = vld [vmem:[#allocation9 + $0x698] sm:$0xff] }
  0xe5   :  { %v4557_v44 = vpop.eup %4556  ;;  %10126 = vst [vmem:[#allocation82_spill] sm:$0xff] %v6270_v36 }
  0xe6   :  { %v4559_v46 = vpop.eup %4558  ;;  %v960_v48 = vadd.f32 1.0, %v4557_v44 }
  0xe7   :  { %v1035_v32 = vmul.f32 %v4559_v46, %v935_v5  ;;  %v6039_v56 = vpop.f32.mrf.mxu0  ;;  %v6041_v57 = vpop.f32.mrf.mxu1  ;;  %v762_v46 = vld [vmem:[#allocation9 + $0x3a0] sm:$0xff]  ;;  %v763_v5 = vld [vmem:[#allocation9 + $0x3a8] sm:$0xff] }
  0xe8   :  { %4560 = vrcp.f32 %v960_v48  ;;  %10082 = vst [vmem:[#allocation38_spill] sm:$0xff] %v6039_v56  ;;  %v972_v4 = vand.u32 2147483648, %v960_v48  ;;  %v970_v9 = vand.u32 2147483647, %v960_v48  ;;  %vm966_vm9 = vweird.f32 %v960_v48  ;;  %v6092_v56 = vld [vmem:[#allocation9 + $0x7c0] sm:$0xff] }
  0xe9   :  { %10083 = vst [vmem:[#allocation39_spill] sm:$0xff] %v6041_v57  ;;  %v6047_v24 = vadd.f32 %v1035_v32, %v1034_v52  ;;  %v746_v52 = vld [vmem:[#allocation9 + $0x320] sm:$0xff]  ;;  %v747_v32 = vld [vmem:[#allocation9 + $0x328] sm:$0xff]  ;;  %1066 = vmatpush.msra.mxu1 %v6092_v56 }
  0xea   :  { %v6043_v60 = vpop.f32.mrf.mxu2  ;;  %v6045_v61 = vpop.f32.mrf.mxu3  ;;  %v973_v13 = vor.u32 1.1754944e-38, %v972_v4  ;;  %vm971_vm11 = vcmp.eq.f32.partialorder %v970_v9, 8.507059e+37  ;;  %v739_v4 = vld [vmem:[#allocation9 + $0x2e8] sm:$0xff] }
  0xeb   :  { %10084 = vst [vmem:[#allocation40_spill] sm:$0xff] %v6043_v60  ;;  %4562 = vtanh.f32 %v6047_v24  ;;  %v731_v9 = vld [vmem:[#allocation9 + $0x2a8] sm:$0xff] }
  0xec   :  { %10085 = vst [vmem:[#allocation41_spill] sm:$0xff] %v6045_v61  ;;  %v675_v57 = vld [vmem:[#allocation9 + $0xe8] sm:$0xff]  ;;  %v6198_v61 = vld [vmem:[#allocation9 + $0x480] sm:$0xff] }
  0xed   :  { %10086 = vst [vmem:[#allocation42_spill] sm:$0xff] %v6047_v24  ;;  %v677_v24 = vld [vmem:[#allocation9 + $0xf8] sm:$0xff] }
  0xee   :  { %v4561_v34 = vpop.eup %4560 }
  0xef   :  { %v962_v62 = vmul.f32 %v4561_v34, %v960_v48  ;;  %vm967_vm8 = vweird.f32 %v4561_v34  ;;  %v755_v48 = vld [vmem:[#allocation9 + $0x368] sm:$0xff] }
  0xf0   :  { %v6054_v6 = vpop.f32.mrf.mxu0  ;;  %v6056_v7 = vpop.f32.mrf.mxu1  ;;  %vm968_vm10 = vmor %vm966_vm9, %vm967_vm8 }
  0xf1   :  { %v963_v63 = vsub.f32 1.0, %v962_v62  ;;  %10089 = vst [vmem:[#allocation45_spill] sm:$0xff] %v6054_v6  ;;  %v4563_v12 = vpop.eup %4562  ;;  %v756_v6 = vld [vmem:[#allocation9 + $0x370] sm:$0xff] }
  0xf2   :  { %v6050_v0 = vpop.f32.mrf.mxu2  ;;  %v6052_v3 = vpop.f32.mrf.mxu3  ;;  %10090 = vst [vmem:[#allocation46_spill] sm:$0xff] %v6056_v7  ;;  %v6120_v7 = vld [vmem:[#allocation9 + $0x708] sm:$0xff] }
  0xf3   :  { %10087 = vst [vmem:[#allocation43_spill] sm:$0xff] %v6050_v0  ;;  %v964_v8 = vmul.f32 %v4561_v34, %v963_v63  ;;  %v738_v63 = vld [vmem:[#allocation9 + $0x2e0] sm:$0xff]  ;;  %v693_v0 = vld [vmem:[#allocation9 + $0x178] sm:$0xff] }
  0xf4   :  { %10088 = vst [vmem:[#allocation44_spill] sm:$0xff] %v6052_v3 }
  0xf5   :  { %v965_v11 = vadd.f32 %v4561_v34, %v964_v8  ;;  %v730_v8 = vld [vmem:[#allocation9 + $0x2a0] sm:$0xff] }
  0xf7   :  { %v969_v21 = vsel %vm968_vm10, %v4561_v34, %v965_v11 }
  0xf8   :  { %v974_v26 = vsel %vm971_vm11, %v973_v13, %v969_v21  ;;  %v6064_v42 = vpop.f32.mrf.mxu0  ;;  %v6066_v44 = vpop.f32.mrf.mxu1  ;;  %v722_v13 = vld [vmem:[#allocation9 + $0x260] sm:$0xff]  ;;  %v723_v21 = vld [vmem:[#allocation9 + $0x268] sm:$0xff] }
  0xf9   :  { %v6058_v27 = vmul.f32 %v4563_v12, %v974_v26  ;;  %10094 = vst [vmem:[#allocation50_spill] sm:$0xff] %v6064_v42  ;;  %v714_v26 = vld [vmem:[#allocation9 + $0x220] sm:$0xff] }
  0xfa   :  { %v6060_v54 = vpop.f32.mrf.mxu2  ;;  %v6062_v33 = vpop.f32.mrf.mxu3  ;;  %10095 = vst [vmem:[#allocation51_spill] sm:$0xff] %v6066_v44  ;;  %v741_v44 = vld [vmem:[#allocation9 + $0x2f8] sm:$0xff] }
  0xfb   :  { %10091 = vst [vmem:[#allocation47_spill] sm:$0xff] %v6058_v27  ;;  %1062 = vmatmul.f32.vlgmr.msra.gmra.mxu0 %v6058_v27  ;;  %1102 = vmatmul.f32.vlgmr.msrb.gmra.mxu2 %v6058_v27 }
  0xfc   :  { %10092 = vst [vmem:[#allocation48_spill] sm:$0xff] %v6060_v54  ;;  %1206 = vmatpush.msra.mxu0 %v770_v35  ;;  %1246 = vmatpush.msrb.mxu2 %v771_v43  ;;  %v715_v35 = vld [vmem:[#allocation9 + $0x228] sm:$0xff]  ;;  %v717_v54 = vld [vmem:[#allocation9 + $0x238] sm:$0xff] }
  0xfd   :  { %10093 = vst [vmem:[#allocation49_spill] sm:$0xff] %v6062_v33 }
  0xfe   :  { %1207 = vmatpush.msra.mxu0 %v762_v46  ;;  %1247 = vmatpush.msrb.mxu2 %v763_v5  ;;  %v706_v5 = vld [vmem:[#allocation9 + $0x1e0] sm:$0xff] }
 0x100   :  { %1208 = vmatpush.msra.mxu0 %v754_v47  ;;  %1248 = vmatpush.msrb.mxu2 %v755_v48  ;;  %v6076_v11 = vpop.f32.mrf.mxu0  ;;  %v6078_v12 = vpop.f32.mrf.mxu1  ;;  %v707_v47 = vld [vmem:[#allocation9 + $0x1e8] sm:$0xff]  ;;  %v698_v48 = vld [vmem:[#allocation9 + $0x1a0] sm:$0xff] }
 0x101   :  { %10098 = vst [vmem:[#allocation54_spill] sm:$0xff] %v6076_v11  ;;  %v716_v11 = vld [vmem:[#allocation9 + $0x230] sm:$0xff] }
 0x102   :  { %v6070_v34 = vpop.f32.mrf.mxu2  ;;  %v6072_v62 = vpop.f32.mrf.mxu3  ;;  %1209 = vmatpush.msra.mxu0 %v746_v52  ;;  %1249 = vmatpush.msrb.mxu2 %v747_v32  ;;  %10099 = vst [vmem:[#allocation55_spill] sm:$0xff] %v6078_v12  ;;  %v699_v52 = vld [vmem:[#allocation9 + $0x1a8] sm:$0xff]  ;;  %v690_v32 = vld [vmem:[#allocation9 + $0x160] sm:$0xff] }
 0x103   :  { %10096 = vst [vmem:[#allocation52_spill] sm:$0xff] %v6070_v34  ;;  %1142 = vmatmul.f32.vlgmr.msrb.gmra.mxu0 %v6058_v27  ;;  %1182 = vmatmul.f32.vlgmr.msra.gmra.mxu2 %v6058_v27  ;;  %v732_v34 = vld [vmem:[#allocation9 + $0x2b0] sm:$0xff]  ;;  %v6158_v12 = vld [vmem:[#allocation9 + $0x5c8] sm:$0xff] }
 0x104   :  { %10097 = vst [vmem:[#allocation53_spill] sm:$0xff] %v6072_v62  ;;  %1210 = vmatpush.msra.mxu0 %v738_v63  ;;  %1250 = vmatpush.msrb.mxu2 %v739_v4  ;;  %v691_v63 = vld [vmem:[#allocation9 + $0x168] sm:$0xff]  ;;  %v733_v62 = vld [vmem:[#allocation9 + $0x2b8] sm:$0xff] }
 0x106   :  { %1211 = vmatpush.msra.mxu0 %v730_v8  ;;  %1251 = vmatpush.msrb.mxu2 %v731_v9  ;;  %v682_v9 = vld [vmem:[#allocation9 + $0x120] sm:$0xff] }
 0x108   :  { %1212 = vmatpush.msra.mxu0 %v722_v13  ;;  %1252 = vmatpush.msrb.mxu2 %v723_v21  ;;  %v6084_v4 = vpop.f32.mrf.mxu0  ;;  %v6086_v8 = vpop.f32.mrf.mxu1  ;;  %v683_v13 = vld [vmem:[#allocation9 + $0x128] sm:$0xff] }
 0x109   :  { %10102 = vst [vmem:[#allocation58_spill] sm:$0xff] %v6084_v4  ;;  %v6180_v4 = vld [vmem:[#allocation9 + $0x508] sm:$0xff] }
 0x10a   :  { %v6080_v43 = vpop.f32.mrf.mxu2  ;;  %v6082_v46 = vpop.f32.mrf.mxu3  ;;  %1213 = vmatpush.msra.mxu0 %v714_v26  ;;  %1253 = vmatpush.msrb.mxu2 %v715_v35  ;;  %10103 = vst [vmem:[#allocation59_spill] sm:$0xff] %v6086_v8  ;;  %v674_v35 = vld [vmem:[#allocation9 + $0xe0] sm:$0xff]  ;;  %v701_v8 = vld [vmem:[#allocation9 + $0x1b8] sm:$0xff] }
 0x10b   :  { %10100 = vst [vmem:[#allocation56_spill] sm:$0xff] %v6080_v43  ;;  %v757_v43 = vld [vmem:[#allocation9 + $0x378] sm:$0xff] }
 0x10c   :  { %10101 = vst [vmem:[#allocation57_spill] sm:$0xff] %v6082_v46  ;;  %1214 = vmatpush.msra.mxu0 %v706_v5  ;;  %1254 = vmatpush.msrb.mxu2 %v707_v47  ;;  %v666_v5 = vld [vmem:[#allocation9 + $0xa0] sm:$0xff]  ;;  %v667_v47 = vld [vmem:[#allocation9 + $0xa8] sm:$0xff]  ;;  %v748_v46 = vld [vmem:[#allocation9 + $0x330] sm:$0xff] }
 0x10e   :  { %1215 = vmatpush.msra.mxu0 %v698_v48  ;;  %1255 = vmatpush.msrb.mxu2 %v699_v52  ;;  %v658_v48 = vld [vmem:[#allocation9 + $0x60] sm:$0xff]  ;;  %v659_v52 = vld [vmem:[#allocation9 + $0x68] sm:$0xff] }
 0x110   :  { %1216 = vmatpush.msra.mxu0 %v690_v32  ;;  %1256 = vmatpush.msrb.mxu2 %v691_v63  ;;  %v6094_v32 = vld [vmem:[#allocation9 + $0x7c8] sm:$0xff]  ;;  %v650_v63 = vld [vmem:[#allocation9 + $0x20] sm:$0xff] }
 0x111   :  { %1106 = vmatpush.msrb.mxu3 %v6094_v32 }
 0x112   :  { %v6088_v21 = vpop.f32.mrf.mxu2  ;;  %v6090_v26 = vpop.f32.mrf.mxu3  ;;  %1217 = vmatpush.msra.mxu0 %v682_v9  ;;  %1257 = vmatpush.msrb.mxu2 %v683_v13 }
 0x113   :  { %10104 = vst [vmem:[#allocation60_spill] sm:$0xff] %v6088_v21  ;;  %v651_v21 = vld [vmem:[#allocation9 + $0x28] sm:$0xff]  ;;  %v6098_v9 = vpop.f32.mrf.mxu0  ;;  %v6100_v13 = vpop.f32.mrf.mxu1 }
 0x114   :  { %10105 = vst [vmem:[#allocation61_spill] sm:$0xff] %v6090_v26  ;;  %1218 = vmatpush.msra.mxu0 %v674_v35  ;;  %1258 = vmatpush.msrb.mxu2 %v675_v57  ;;  %v6102_v57 = vld [vmem:[#allocation9 + $0x780] sm:$0xff]  ;;  %v6104_v35 = vld [vmem:[#allocation9 + $0x788] sm:$0xff]  ;;  %v772_v26 = vld [vmem:[#allocation9 + $0x3f0] sm:$0xff] }
 0x115   :  { %10106 = vst [vmem:[#allocation62_spill] sm:$0xff] %v6098_v9  ;;  %1067 = vmatpush.msra.mxu1 %v6102_v57  ;;  %1107 = vmatpush.msrb.mxu3 %v6104_v35 }
 0x116   :  { %1219 = vmatpush.msra.mxu0 %v666_v5  ;;  %1259 = vmatpush.msrb.mxu2 %v667_v47  ;;  %10107 = vst [vmem:[#allocation63_spill] sm:$0xff] %v6100_v13  ;;  %v685_v13 = vld [vmem:[#allocation9 + $0x138] sm:$0xff] }
 0x118   :  { %1220 = vmatpush.msra.mxu0 %v658_v48  ;;  %1260 = vmatpush.msrb.mxu2 %v659_v52  ;;  %v6112_v48 = vld [vmem:[#allocation9 + $0x740] sm:$0xff]  ;;  %v6114_v52 = vld [vmem:[#allocation9 + $0x748] sm:$0xff] }
 0x119   :  { %1068 = vmatpush.msra.mxu1 %v6112_v48  ;;  %1108 = vmatpush.msrb.mxu3 %v6114_v52 }
 0x11a   :  { %v6106_v5 = vpop.f32.mrf.mxu2  ;;  %v6108_v47 = vpop.f32.mrf.mxu3  ;;  %1221 = vmatpush.msra.mxu0 %v650_v63  ;;  %1261 = vmatpush.msrb.mxu2 %v651_v21  ;;  %v6124_v21 = vld [vmem:[#allocation9 + $0x6c0] sm:$0xff]  ;;  %v6126_v63 = vld [vmem:[#allocation9 + $0x6c8] sm:$0xff] }
 0x11b   :  { %10108 = vst [vmem:[#allocation64_spill] sm:$0xff] %v6106_v5  ;;  %1222 = vmatmul.f32.vlgmr.msra.gmra.mxu0 %v6058_v27  ;;  %1262 = vmatmul.f32.vlgmr.msrb.gmra.mxu2 %v6058_v27  ;;  %v765_v5 = vld [vmem:[#allocation9 + $0x3b8] sm:$0xff]  ;;  %v6140_v42 = vpop.f32.mrf.mxu0  ;;  %v6146_v2 = vpop.f32.mrf.mxu1 }
 0x11c   :  { %10109 = vst [vmem:[#allocation65_spill] sm:$0xff] %v6108_v47  ;;  %1286 = vmatpush.msrb.mxu0 %v772_v26  ;;  %1326 = vmatpush.msra.mxu2 %v773_v39  ;;  %v6118_v47 = vld [vmem:[#allocation9 + $0x700] sm:$0xff]  ;;  %v6132_v26 = vld [vmem:[#allocation9 + $0x688] sm:$0xff] }
 0x11d   :  { %1069 = vmatpush.msra.mxu1 %v6118_v47  ;;  %1109 = vmatpush.msrb.mxu3 %v6120_v7  ;;  %v6130_v39 = vld [vmem:[#allocation9 + $0x680] sm:$0xff]  ;;  %10112 = vst [vmem:[#allocation68_spill] sm:$0xff] %v6140_v42  ;;  %v6222_v42 = vld [vmem:[#allocation9 + $0x7d8] sm:$0xff] }
 0x11e   :  { %1287 = vmatpush.msrb.mxu0 %v764_v38  ;;  %1327 = vmatpush.msra.mxu2 %v765_v5  ;;  %v740_v5 = vld [vmem:[#allocation9 + $0x2f0] sm:$0xff]  ;;  %10113 = vst [vmem:[#allocation69_spill] sm:$0xff] %v6146_v2 }
 0x11f   :  { %1070 = vmatpush.msra.mxu1 %v6124_v21  ;;  %1110 = vmatpush.msrb.mxu3 %v6126_v63 }
 0x120   :  { %1288 = vmatpush.msrb.mxu0 %v756_v6  ;;  %1328 = vmatpush.msra.mxu2 %v757_v43  ;;  %v6142_v6 = vld [vmem:[#allocation9 + $0x640] sm:$0xff]  ;;  %v6144_v43 = vld [vmem:[#allocation9 + $0x648] sm:$0xff] }
 0x121   :  { %1071 = vmatpush.msra.mxu1 %v6130_v39  ;;  %1111 = vmatpush.msrb.mxu3 %v6132_v26 }
 0x122   :  { %v6134_v22 = vpop.f32.mrf.mxu2  ;;  %v6136_v38 = vpop.f32.mrf.mxu3  ;;  %1289 = vmatpush.msrb.mxu0 %v748_v46  ;;  %1329 = vmatpush.msra.mxu2 %v749_v25  ;;  %v6152_v46 = vld [vmem:[#allocation9 + $0x608] sm:$0xff]  ;;  %v724_v25 = vld [vmem:[#allocation9 + $0x270] sm:$0xff] }
 0x123   :  { %10110 = vst [vmem:[#allocation66_spill] sm:$0xff] %v6134_v22  ;;  %v725_v22 = vld [vmem:[#allocation9 + $0x278] sm:$0xff]  ;;  %1072 = vmatpush.msra.mxu1 %v6142_v6  ;;  %1112 = vmatpush.msrb.mxu3 %v6144_v43  ;;  %v497_v3 = vpop.f32.mrf.mxu1 }
 0x124   :  { %10111 = vst [vmem:[#allocation67_spill] sm:$0xff] %v6136_v38  ;;  %1290 = vmatpush.msrb.mxu0 %v740_v5  ;;  %1330 = vmatpush.msra.mxu2 %v741_v44  ;;  %v6150_v38 = vld [vmem:[#allocation9 + $0x600] sm:$0xff]  ;;  %v6164_v5 = vld [vmem:[#allocation9 + $0x588] sm:$0xff]  ;;  %v498_v60 = vadd.f32 %v497_v3, %v6188_v31  ;;  %v668_v3 = vld [vmem:[#allocation9 + $0xb0] sm:$0xff] }
 0x125   :  { %1073 = vmatpush.msra.mxu1 %v6150_v38  ;;  %1113 = vmatpush.msrb.mxu3 %v6152_v46  ;;  %v6162_v44 = vld [vmem:[#allocation9 + $0x580] sm:$0xff]  ;;  %v6216_v31 = vld [vmem:[#allocation9 + $0x408] sm:$0xff] }
 0x126   :  { %1291 = vmatpush.msrb.mxu0 %v732_v34  ;;  %1331 = vmatpush.msra.mxu2 %v733_v62  ;;  %v708_v62 = vld [vmem:[#allocation9 + $0x1f0] sm:$0xff] }
 0x127   :  { %1074 = vmatpush.msra.mxu1 %v6156_v1  ;;  %1114 = vmatpush.msrb.mxu3 %v6158_v12 }
 0x128   :  { %1292 = vmatpush.msrb.mxu0 %v724_v25  ;;  %1332 = vmatpush.msra.mxu2 %v725_v22  ;;  %v6174_v25 = vld [vmem:[#allocation9 + $0x548] sm:$0xff]  ;;  %v700_v22 = vld [vmem:[#allocation9 + $0x1b0] sm:$0xff] }
 0x129   :  { %1075 = vmatpush.msra.mxu1 %v6162_v44  ;;  %1115 = vmatpush.msrb.mxu3 %v6164_v5 }
 0x12a   :  { %v6166_v33 = vpop.f32.mrf.mxu2  ;;  %v6168_v34 = vpop.f32.mrf.mxu3  ;;  %1293 = vmatpush.msrb.mxu0 %v716_v11  ;;  %1333 = vmatpush.msra.mxu2 %v717_v54  ;;  %v6183_v11 = vperm.slane %v5947_v40, 4  ;;  %v692_v54 = vld [vmem:[#allocation9 + $0x170] sm:$0xff] }
 0x12b   :  { %10114 = vst [vmem:[#allocation70_spill] sm:$0xff] %v6166_v33  ;;  %v6178_v33 = vld [vmem:[#allocation9 + $0x500] sm:$0xff]  ;;  %1076 = vmatpush.msra.mxu1 %v6172_v53  ;;  %1116 = vmatpush.msrb.mxu3 %v6174_v25 }
 0x12c   :  { %10115 = vst [vmem:[#allocation71_spill] sm:$0xff] %v6168_v34  ;;  %1294 = vmatpush.msrb.mxu0 %v708_v62  ;;  %1334 = vmatpush.msra.mxu2 %v709_v55  ;;  %v456_v34 = vpop.f32.mrf.mxu0  ;;  %v6190_v55 = vld [vmem:[#allocation9 + $0x4c0] sm:$0xff]  ;;  %v6192_v62 = vld [vmem:[#allocation9 + $0x4c8] sm:$0xff] }
 0x12d   :  { %10116 = vst [vmem:[#allocation72_spill] sm:$0xff] %v6183_v11  ;;  %v457_v9 = vadd.f32 %v456_v34, %v6183_v11  ;;  %1077 = vmatpush.msra.mxu1 %v6178_v33  ;;  %1117 = vmatpush.msrb.mxu3 %v6180_v4  ;;  %v6208_v34 = vld [vmem:[#allocation9 + $0x440] sm:$0xff]  ;;  %v652_v11 = vld [vmem:[#allocation9 + $0x30] sm:$0xff] }
 0x12e   :  { %1295 = vmatpush.msrb.mxu0 %v700_v22  ;;  %1335 = vmatpush.msra.mxu2 %v701_v8  ;;  %v6200_v22 = vld [vmem:[#allocation9 + $0x488] sm:$0xff] }
 0x12f   :  { %1078 = vmatpush.msra.mxu1 %v6190_v55  ;;  %1118 = vmatpush.msrb.mxu3 %v6192_v62  ;;  %v4460_v2 = vmul.f32 -1.442695, %v457_v9  ;;  %v6220_v9 = vld [vmem:[#allocation9 + $0x7d0] sm:$0xff] }
 0x130   :  { %1296 = vmatpush.msrb.mxu0 %v692_v54  ;;  %1336 = vmatpush.msra.mxu2 %v693_v0  ;;  %v6210_v0 = vld [vmem:[#allocation9 + $0x448] sm:$0xff]  ;;  %v669_v54 = vld [vmem:[#allocation9 + $0xb8] sm:$0xff] }
 0x131   :  { %1079 = vmatpush.msra.mxu1 %v6198_v61  ;;  %1119 = vmatpush.msrb.mxu3 %v6200_v22  ;;  %4564 = vpow2.f32 %v4460_v2  ;;  %v6238_v2 = vld [vmem:[#allocation9 + $0x750] sm:$0xff] }
 0x132   :  { %v6202_v8 = vpop.f32.mrf.mxu2  ;;  %v6204_v50 = vpop.f32.mrf.mxu3  ;;  %1297 = vmatpush.msrb.mxu0 %v684_v30  ;;  %1337 = vmatpush.msra.mxu2 %v685_v13  ;;  %v660_v30 = vld [vmem:[#allocation9 + $0x70] sm:$0xff]  ;;  %v661_v13 = vld [vmem:[#allocation9 + $0x78] sm:$0xff] }
 0x133   :  { %10118 = vst [vmem:[#allocation74_spill] sm:$0xff] %v6202_v8  ;;  %v6214_v8 = vld [vmem:[#allocation9 + $0x400] sm:$0xff]  ;;  %1080 = vmatpush.msra.mxu1 %v6208_v34  ;;  %1120 = vmatpush.msrb.mxu3 %v6210_v0 }
 0x134   :  { %10119 = vst [vmem:[#allocation75_spill] sm:$0xff] %v6204_v50  ;;  %1298 = vmatpush.msrb.mxu0 %v676_v49  ;;  %1338 = vmatpush.msra.mxu2 %v677_v24  ;;  %v4461_v50 = vmul.f32 -1.442695, %v498_v60  ;;  %v653_v49 = vld [vmem:[#allocation9 + $0x38] sm:$0xff] }
 0x135   :  { %1081 = vmatpush.msra.mxu1 %v6214_v8  ;;  %1121 = vmatpush.msrb.mxu3 %v6216_v31 }
 0x136   :  { %1299 = vmatpush.msrb.mxu0 %v668_v3  ;;  %1339 = vmatpush.msra.mxu2 %v669_v54  ;;  %4566 = vpow2.f32 %v4461_v50  ;;  %v6232_v3 = vld [vmem:[#allocation9 + $0x790] sm:$0xff]  ;;  %v6234_v54 = vld [vmem:[#allocation9 + $0x798] sm:$0xff] }
 0x137   :  { %1146 = vmatpush.msrb.mxu1 %v6220_v9  ;;  %1186 = vmatpush.msra.mxu3 %v6222_v42  ;;  %v6240_v50 = vld [vmem:[#allocation9 + $0x758] sm:$0xff] }
 0x138   :  { %1300 = vmatpush.msrb.mxu0 %v660_v30  ;;  %1340 = vmatpush.msra.mxu2 %v661_v13  ;;  %v4565_v30 = vpop.eup %4564  ;;  %v6244_v13 = vld [vmem:[#allocation9 + $0x710] sm:$0xff] }
 0x139   :  { %1147 = vmatpush.msrb.mxu1 %v6232_v3  ;;  %1187 = vmatpush.msra.mxu3 %v6234_v54 }
 0x13a   :  { %v6226_v60 = vpop.f32.mrf.mxu2  ;;  %v6228_v24 = vpop.f32.mrf.mxu3  ;;  %1301 = vmatpush.msrb.mxu0 %v652_v11  ;;  %1341 = vmatpush.msra.mxu2 %v653_v49  ;;  %v6252_v49 = vld [vmem:[#allocation9 + $0x6d0] sm:$0xff] }
 0x13b   :  { %10120 = vst [vmem:[#allocation76_spill] sm:$0xff] %v6226_v60  ;;  %1302 = vmatmul.f32.vlgmr.msrb.gmra.mxu0 %v6058_v27  ;;  %1342 = vmatmul.f32.vlgmr.msra.gmra.mxu2 %v6058_v27  ;;  %v6254_v27 = vld [vmem:[#allocation9 + $0x6d8] sm:$0xff]  ;;  %v6258_v60 = vadd.f32 1.0, %v4565_v30  ;;  %v4804_v30 = vld [vmem:[#allocation9 + $0x2c0] sm:$0xff] }
 0x13c   :  { %10121 = vst [vmem:[#allocation77_spill] sm:$0xff] %v6228_v24  ;;  %v6246_v24 = vld [vmem:[#allocation9 + $0x718] sm:$0xff]  ;;  %1510 = vmatpush.msra.mxu0 %v5907_v14  ;;  %1550 = vmatpush.msrb.mxu2 %v5909_v15  ;;  %v4567_v11 = vpop.eup %4566 }
 0x13d   :  { %1148 = vmatpush.msrb.mxu1 %v6238_v2  ;;  %1188 = vmatpush.msra.mxu3 %v6240_v50  ;;  %10122 = vst [vmem:[#allocation78_spill] sm:$0xff] %v6254_v27  ;;  %v6262_v14 = vadd.f32 1.0, %v4567_v11  ;;  %4568 = vrcp.f32 %v6258_v60  ;;  %v4805_v11 = vld [vmem:[#allocation9 + $0x2c8] sm:$0xff]  ;;  %vm985_vm12 = vweird.f32 %v6258_v60 }
 0x13e   :  { %1511 = vmatpush.msra.mxu0 %v5915_v16  ;;  %1551 = vmatpush.msrb.mxu2 %v5917_v17  ;;  %v6276_v16 = vld [vmem:[#allocation9 + $0x650] sm:$0xff]  ;;  %v6278_v17 = vld [vmem:[#allocation9 + $0x658] sm:$0xff] }
 0x13f   :  { %1149 = vmatpush.msrb.mxu1 %v6244_v13  ;;  %1189 = vmatpush.msra.mxu3 %v6246_v24  ;;  %10127 = vst [vmem:[#allocation83_spill] sm:$0xff] %v6276_v16  ;;  %4570 = vrcp.f32 %v6262_v14  ;;  %vm1004_vm14 = vweird.f32 %v6262_v14 }
 0x140   :  { %1512 = vmatpush.msra.mxu0 %v5921_v37  ;;  %1552 = vmatpush.msrb.mxu2 %v5923_v18  ;;  %10128 = vst [vmem:[#allocation84_spill] sm:$0xff] %v6278_v17  ;;  %v6286_v37 = vld [vmem:[#allocation9 + $0x610] sm:$0xff]  ;;  %v6288_v18 = vld [vmem:[#allocation9 + $0x618] sm:$0xff] }
 0x141   :  { %1150 = vmatpush.msrb.mxu1 %v6252_v49  ;;  %1190 = vmatpush.msra.mxu3 %v6254_v27  ;;  %10129 = vst [vmem:[#allocation85_spill] sm:$0xff] %v6286_v37  ;;  %v4817_v27 = vld [vmem:[#allocation9 + $0x100] sm:$0xff] }
 0x142   :  { %v6264_v15 = vpop.f32.mrf.mxu2  ;;  %v6266_v10 = vpop.f32.mrf.mxu3  ;;  %1513 = vmatpush.msra.mxu0 %v5929_v19  ;;  %1553 = vmatpush.msrb.mxu2 %v5931_v20  ;;  %10130 = vst [vmem:[#allocation86_spill] sm:$0xff] %v6288_v18  ;;  %v6292_v19 = vld [vmem:[#allocation9 + $0x5d0] sm:$0xff]  ;;  %v6294_v20 = vld [vmem:[#allocation9 + $0x5d8] sm:$0xff] }
 0x143   :  { %10123 = vst [vmem:[#allocation79_spill] sm:$0xff] %v6264_v15  ;;  %1151 = vmatpush.msrb.mxu1 %v6268_v59  ;;  %1191 = vmatpush.msra.mxu3 %v6270_v36  ;;  %v6306_v15 = vld [vmem:[#allocation9 + $0x598] sm:$0xff]  ;;  %v6308_v45 = vpop.eup %4568 }
 0x144   :  { %10124 = vst [vmem:[#allocation80_spill] sm:$0xff] %v6266_v10  ;;  %1514 = vmatpush.msra.mxu0 %v4804_v30  ;;  %1554 = vmatpush.msrb.mxu2 %v4805_v11  ;;  %v6304_v11 = vld [vmem:[#allocation9 + $0x590] sm:$0xff]  ;;  %v6350_v59 = vld [vmem:[#allocation9 + $0x458] sm:$0xff]  ;;  %vm986_vm13 = vweird.f32 %v6308_v45 }
 0x145   :  { %1152 = vmatpush.msrb.mxu1 %v6276_v16  ;;  %1192 = vmatpush.msra.mxu3 %v6278_v17  ;;  %10131 = vst [vmem:[#allocation87_spill] sm:$0xff] %v6292_v19  ;;  %v4815_v17 = vld [vmem:[#allocation9 + $0x148] sm:$0xff]  ;;  %vm6376_vm0 = vmor %vm985_vm12, %vm986_vm13 }
 0x146   :  { %10132 = vst [vmem:[#allocation88_spill] sm:$0xff] %v6294_v20  ;;  %1515 = vmatpush.msra.mxu0 %v5937_v51  ;;  %1555 = vmatpush.msrb.mxu2 %v5939_v23  ;;  %v6312_v51 = vpop.eup %4570  ;;  %v6314_v23 = vld [vmem:[#allocation9 + $0x550] sm:$0xff] }
 0x147   :  { %1153 = vmatpush.msrb.mxu1 %v6286_v37  ;;  %1193 = vmatpush.msra.mxu3 %v6288_v18  ;;  %10135 = vst [vmem:[#allocation91_spill] sm:$0xff] %v6304_v11  ;;  %v4813_v18 = vld [vmem:[#allocation9 + $0x188] sm:$0xff]  ;;  %v6339_v37 = vld [vmem:[#allocation9 + $0x490] sm:$0xff]  ;;  %vm1005_vm15 = vweird.f32 %v6312_v51 }
 0x148   :  { %10136 = vst [vmem:[#allocation92_spill] sm:$0xff] %v6306_v15  ;;  %1516 = vmatpush.msra.mxu0 %v4806_v58  ;;  %1556 = vmatpush.msrb.mxu2 %v4807_v29  ;;  %v6320_v29 = vld [vmem:[#allocation9 + $0x510] sm:$0xff]  ;;  %v6322_v58 = vld [vmem:[#allocation9 + $0x518] sm:$0xff]  ;;  %vm6387_vm1 = vmor %vm1004_vm14, %vm1005_vm15 }
 0x149   :  { %1154 = vmatpush.msrb.mxu1 %v6292_v19  ;;  %1194 = vmatpush.msra.mxu3 %v6294_v20  ;;  %10137 = vst [vmem:[#allocation93_spill] sm:$0xff] %v6314_v23  ;;  %v4811_v20 = vld [vmem:[#allocation9 + $0x1c8] sm:$0xff]  ;;  %v981_v19 = vmul.f32 %v6308_v45, %v6258_v60 }
 0x14a   :  { %v6300_v10 = vpop.f32.mrf.mxu2  ;;  %v6302_v30 = vpop.f32.mrf.mxu3  ;;  %1557 = vmatpush.msrb.mxu2 %v4809_v28  ;;  %10139 = vst [vmem:[#allocation95_spill] sm:$0xff] %v6320_v29  ;;  %v6330_v28 = vld [vmem:[#allocation9 + $0x4d0] sm:$0xff] }
 0x14b   :  { %10133 = vst [vmem:[#allocation89_spill] sm:$0xff] %v6300_v10  ;;  %v6316_v10 = vld [vmem:[#allocation9 + $0x558] sm:$0xff]  ;;  %1155 = vmatpush.msrb.mxu1 %v6304_v11  ;;  %1195 = vmatpush.msra.mxu3 %v6306_v15  ;;  %v4812_v11 = vld [vmem:[#allocation9 + $0x180] sm:$0xff]  ;;  %v982_v16 = vsub.f32 1.0, %v981_v19 }
 0x14c   :  { %10134 = vst [vmem:[#allocation90_spill] sm:$0xff] %v6302_v30  ;;  %v4808_v30 = vld [vmem:[#allocation9 + $0x200] sm:$0xff]  ;;  %1558 = vmatpush.msrb.mxu2 %v4811_v20  ;;  %v6332_v15 = vld [vmem:[#allocation9 + $0x4d8] sm:$0xff] }
 0x14d   :  { %10138 = vst [vmem:[#allocation94_spill] sm:$0xff] %v6316_v10  ;;  %1517 = vmatpush.msra.mxu0 %v4808_v30  ;;  %v1000_v30 = vmul.f32 %v6312_v51, %v6262_v14  ;;  %1156 = vmatpush.msrb.mxu1 %v6314_v23  ;;  %v6341_v23 = vld [vmem:[#allocation9 + $0x498] sm:$0xff] }
 0x14e   :  { %10140 = vst [vmem:[#allocation96_spill] sm:$0xff] %v6322_v58  ;;  %1196 = vmatpush.msra.mxu3 %v6316_v10  ;;  %1559 = vmatpush.msrb.mxu2 %v4813_v18  ;;  %v4814_v10 = vld [vmem:[#allocation9 + $0x140] sm:$0xff] }
 0x14f   :  { %1518 = vmatpush.msra.mxu0 %v4810_v41  ;;  %10141 = vst [vmem:[#allocation97_spill] sm:$0xff] %v6332_v15  ;;  %v6335_v41 = vperm.slane %v5947_v40, 7  ;;  %1157 = vmatpush.msrb.mxu1 %v6320_v29  ;;  %v4816_v40 = vld [vmem:[#allocation10] sm:$0xff]  ;;  %v6348_v29 = vld [vmem:[#allocation9 + $0x450] sm:$0xff] }
 0x150   :  { %1197 = vmatpush.msra.mxu3 %v6322_v58  ;;  %1560 = vmatpush.msrb.mxu2 %v4815_v17  ;;  %v6346_v58 = vperm.slane %v4816_v40, 6  ;;  %10144 = vst [vmem:[#allocation100_spill] sm:$0xff] %v6348_v29  ;;  %v4819_v40 = vld [vmem:[#allocation9 + $0xc0] sm:$0xff] }
 0x151   :  { %1519 = vmatpush.msra.mxu0 %v4812_v11  ;;  %10142 = vst [vmem:[#allocation98_spill] sm:$0xff] %v6335_v41  ;;  %v1001_v11 = vsub.f32 1.0, %v1000_v30  ;;  %1158 = vmatpush.msrb.mxu1 %v6330_v28  ;;  %v6355_v30 = vld [vmem:[#allocation9 + $0x410] sm:$0xff] }
 0x152   :  { %v579_v20 = vpop.f32.mrf.mxu3  ;;  %v538_v36 = vpop.f32.mrf.mxu2  ;;  %1198 = vmatpush.msra.mxu3 %v6332_v15  ;;  %10143 = vst [vmem:[#allocation99_spill] sm:$0xff] %v6346_v58 }
 0x153   :  { %1520 = vmatpush.msra.mxu0 %v4814_v10  ;;  %v580_v18 = vadd.f32 %v579_v20, %v6335_v41  ;;  %10145 = vst [vmem:[#allocation101_spill] sm:$0xff] %v6350_v59  ;;  %v4818_v10 = vld [vmem:[#allocation9 + $0x108] sm:$0xff]  ;;  %1159 = vmatpush.msrb.mxu1 %v6339_v37  ;;  %v539_v19 = vadd.f32 %v538_v36, %v6346_v58  ;;  %v6357_v20 = vld [vmem:[#allocation9 + $0x418] sm:$0xff]  ;;  %v4821_v36 = vld [vmem:[#allocation9 + $0x80] sm:$0xff] }
 0x154   :  { %1561 = vmatpush.msrb.mxu2 %v4818_v10  ;;  %1199 = vmatpush.msra.mxu3 %v6341_v23  ;;  %10146 = vst [vmem:[#allocation102_spill] sm:$0xff] %v6355_v30  ;;  %v4820_v41 = vld [vmem:[#allocation9 + $0xc8] sm:$0xff]  ;;  %v1002_v15 = vmul.f32 %v6312_v51, %v1001_v11  ;;  %v4823_v11 = vld [vmem:[#allocation9 + $0x40] sm:$0xff] }
 0x155   :  { %1521 = vmatpush.msra.mxu0 %v4817_v27  ;;  %v4462_v17 = vmul.f32 -1.442695, %v580_v18  ;;  %10147 = vst [vmem:[#allocation103_spill] sm:$0xff] %v6357_v20  ;;  %v983_v27 = vmul.f32 %v6308_v45, %v982_v16  ;;  %1160 = vmatpush.msrb.mxu1 %v6348_v29  ;;  %v4822_v18 = vld [vmem:[#allocation9 + $0x88] sm:$0xff]  ;;  %v1010_v16 = vand.u32 2147483648, %v6262_v14 }
 0x156   :  { %1562 = vmatpush.msrb.mxu2 %v4820_v41  ;;  %1200 = vmatpush.msra.mxu3 %v6350_v59  ;;  %v991_v41 = vand.u32 2147483648, %v6258_v60  ;;  %v4824_v10 = vld [vmem:[#allocation9 + $0x48] sm:$0xff] }
 0x157   :  { %1522 = vmatpush.msra.mxu0 %v4819_v40  ;;  %4572 = vpow2.f32 %v4462_v17  ;;  %1161 = vmatpush.msrb.mxu1 %v6355_v30  ;;  %v984_v17 = vadd.f32 %v6308_v45, %v983_v27 }
 0x158   :  { %1563 = vmatpush.msrb.mxu2 %v4822_v18  ;;  %1201 = vmatpush.msra.mxu3 %v6357_v20  ;;  %4574 = vtanh.f32 %v539_v19  ;;  %v1003_v18 = vadd.f32 %v6312_v51, %v1002_v15  ;;  %v1008_v19 = vand.u32 2147483647, %v6262_v14  ;;  %v4827_v20 = vld [vmem:[#allocation9 + $0x3d0] sm:$0xff]  ;;  %v1011_v15 = vor.u32 1.1754944e-38, %v1010_v16  ;;  %v4832_v16 = vld [vmem:[#allocation9 + $0x358] sm:$0xff] }
 0x159   :  { %1523 = vmatpush.msra.mxu0 %v4821_v36  ;;  %v989_v36 = vand.u32 2147483647, %v6258_v60  ;;  %v4828_v60 = vld [vmem:[#allocation9 + $0x3d8] sm:$0xff]  ;;  %v992_v30 = vor.u32 1.1754944e-38, %v991_v41  ;;  %v988_v14 = vsel %vm6376_vm0, %v6308_v45, %v984_v17  ;;  %v4833_v45 = vld [vmem:[#allocation9 + $0x310] sm:$0xff] }
 0x15a   :  { %1564 = vmatpush.msrb.mxu2 %v4824_v10  ;;  %v4826_v10 = vld [vmem:[#allocation9 + $0x8] sm:$0xff]  ;;  %v1007_v29 = vsel %vm6387_vm1, %v6312_v51, %v1003_v18  ;;  %vm1009_vm3 = vcmp.eq.f32.partialorder %v1008_v19, 8.507059e+37  ;;  %v4834_v17 = vld [vmem:[#allocation9 + $0x318] sm:$0xff]  ;;  %v4835_v51 = vld [vmem:[#allocation9 + $0x2d0] sm:$0xff] }
 0x15b   :  { %1524 = vmatpush.msra.mxu0 %v4823_v11  ;;  %v4825_v11 = vld [vmem:[#allocation9] sm:$0xff]  ;;  %vm990_vm2 = vcmp.eq.f32.partialorder %v989_v36, 8.507059e+37  ;;  %v1012_v41 = vsel %vm1009_vm3, %v1011_v15, %v1007_v29  ;;  %v4836_v18 = vld [vmem:[#allocation9 + $0x2d8] sm:$0xff] }
 0x15c   :  { %1565 = vmatpush.msrb.mxu2 %v4826_v10  ;;  %v4830_v10 = vld [vmem:[#allocation9 + $0x398] sm:$0xff]  ;;  %v1037_v36 = vmul.f32 0.0, %v1012_v41 }
 0x15d   :  { %1525 = vmatpush.msra.mxu0 %v4825_v11  ;;  %v4573_v58 = vpop.eup %4572  ;;  %v4829_v11 = vld [vmem:[#allocation9 + $0x390] sm:$0xff]  ;;  %v4840_v29 = vld [vmem:[#allocation9 + $0x258] sm:$0xff] }
 0x15e   :  { %1630 = vmatpush.msra.mxu2 %v4828_v60  ;;  %v1018_v59 = vadd.f32 1.0, %v4573_v58  ;;  %v4831_v60 = vld [vmem:[#allocation9 + $0x350] sm:$0xff]  ;;  %v993_v58 = vsel %vm990_vm2, %v992_v30, %v988_v14 }
 0x15f   :  { %1590 = vmatpush.msrb.mxu0 %v4827_v20  ;;  %v4575_v20 = vpop.eup %4574  ;;  %v4839_v30 = vld [vmem:[#allocation9 + $0x250] sm:$0xff] }
 0x160   :  { %1631 = vmatpush.msra.mxu2 %v4830_v10  ;;  %4576 = vrcp.f32 %v1018_v59  ;;  %v1038_v40 = vmul.f32 %v4575_v20, %v993_v58  ;;  %v4838_v10 = vld [vmem:[#allocation9 + $0x298] sm:$0xff]  ;;  %v1030_v14 = vand.u32 2147483648, %v1018_v59  ;;  %v4841_v20 = vld [vmem:[#allocation9 + $0x210] sm:$0xff]  ;;  %v1028_v41 = vand.u32 2147483647, %v1018_v59 }
 0x161   :  { %1591 = vmatpush.msrb.mxu0 %v4829_v11  ;;  %v4837_v11 = vld [vmem:[#allocation9 + $0x290] sm:$0xff]  ;;  %vm1024_vm5 = vweird.f32 %v1018_v59 }
 0x162   :  { %1632 = vmatpush.msra.mxu2 %v4832_v16  ;;  %v6397_v27 = vadd.f32 %v1038_v40, %v1037_v36  ;;  %v4842_v16 = vld [vmem:[#allocation9 + $0x218] sm:$0xff]  ;;  %v4843_v40 = vld [vmem:[#allocation9 + $0x1d0] sm:$0xff]  ;;  %v1031_v36 = vor.u32 1.1754944e-38, %v1030_v14  ;;  %vm1029_vm7 = vcmp.eq.f32.partialorder %v1028_v41, 8.507059e+37  ;;  %v6414_v41 = vld [vmem:[#allocation9 + $0x760] sm:$0xff] }
 0x163   :  { %1592 = vmatpush.msrb.mxu0 %v4831_v60  ;;  %v4850_v14 = vld [vmem:[#allocation9 + $0x118] sm:$0xff] }
 0x164   :  { %1633 = vmatpush.msra.mxu2 %v4834_v17  ;;  %4578 = vtanh.f32 %v6397_v27 }
 0x165   :  { %1593 = vmatpush.msrb.mxu0 %v4833_v45  ;;  %v4844_v45 = vld [vmem:[#allocation9 + $0x1d8] sm:$0xff] }
 0x166   :  { %1634 = vmatpush.msra.mxu2 %v4836_v18  ;;  %v4577_v19 = vpop.eup %4576  ;;  %v4846_v18 = vld [vmem:[#allocation9 + $0x198] sm:$0xff] }
 0x167   :  { %1594 = vmatpush.msrb.mxu0 %v4835_v51  ;;  %v1020_v60 = vmul.f32 %v4577_v19, %v1018_v59  ;;  %vm1025_vm4 = vweird.f32 %v4577_v19  ;;  %v4845_v51 = vld [vmem:[#allocation9 + $0x190] sm:$0xff] }
 0x168   :  { %1635 = vmatpush.msra.mxu2 %v4838_v10  ;;  %vm1026_vm6 = vmor %vm1024_vm5, %vm1025_vm4  ;;  %v4849_v59 = vld [vmem:[#allocation9 + $0x110] sm:$0xff] }
 0x169   :  { %1595 = vmatpush.msrb.mxu0 %v4837_v11  ;;  %v1021_v15 = vsub.f32 1.0, %v1020_v60 }
 0x16a   :  { %1636 = vmatpush.msra.mxu2 %v4840_v29  ;;  %v4579_v10 = vpop.eup %4578  ;;  %v4848_v29 = vld [vmem:[#allocation9 + $0x158] sm:$0xff] }
 0x16b   :  { %1596 = vmatpush.msrb.mxu0 %v4839_v30  ;;  %v1022_v58 = vmul.f32 %v4577_v19, %v1021_v15  ;;  %v4847_v30 = vld [vmem:[#allocation9 + $0x150] sm:$0xff] }
 0x16c   :  { %1637 = vmatpush.msra.mxu2 %v4842_v16  ;;  %v6404_v16 = vld [vmem:[#allocation9 + $0x7e8] sm:$0xff] }
 0x16d   :  { %1597 = vmatpush.msrb.mxu0 %v4841_v20  ;;  %v1023_v17 = vadd.f32 %v4577_v19, %v1022_v58  ;;  %v6402_v20 = vld [vmem:[#allocation9 + $0x7e0] sm:$0xff]  ;;  %v6410_v58 = vld [vmem:[#allocation9 + $0x7a8] sm:$0xff] }
 0x16e   :  { %1638 = vmatpush.msra.mxu2 %v4844_v45  ;;  %v4851_v45 = vld [vmem:[#allocation9 + $0xd0] sm:$0xff] }
 0x16f   :  { %1598 = vmatpush.msrb.mxu0 %v4843_v40  ;;  %v1027_v11 = vsel %vm1026_vm6, %v4577_v19, %v1023_v17  ;;  %v6408_v19 = vld [vmem:[#allocation9 + $0x7a0] sm:$0xff]  ;;  %v6416_v40 = vld [vmem:[#allocation9 + $0x768] sm:$0xff]  ;;  %v4852_v17 = vld [vmem:[#allocation9 + $0xd8] sm:$0xff] }
 0x170   :  { %1639 = vmatpush.msra.mxu2 %v4846_v18  ;;  %v1032_v60 = vsel %vm1029_vm7, %v1031_v36, %v1027_v11  ;;  %v6420_v36 = vld [vmem:[#allocation9 + $0x720] sm:$0xff]  ;;  %v4853_v18 = vld [vmem:[#allocation9 + $0x90] sm:$0xff]  ;;  %v4854_v11 = vld [vmem:[#allocation9 + $0x98] sm:$0xff] }
 0x171   :  { %1599 = vmatpush.msrb.mxu0 %v4845_v51  ;;  %v6400_v15 = vmul.f32 %v4579_v10, %v1032_v60  ;;  %v6422_v51 = vld [vmem:[#allocation9 + $0x728] sm:$0xff]  ;;  %v6426_v10 = vld [vmem:[#allocation9 + $0x6e0] sm:$0xff] }
 0x172   :  { %1640 = vmatpush.msra.mxu2 %v4848_v29  ;;  %10153 = vst [vmem:[#allocation105_spill] sm:$0xff] %v6426_v10  ;;  %v6428_v60 = vld [vmem:[#allocation9 + $0x6e8] sm:$0xff]  ;;  %v4856_v29 = vld [vmem:[#allocation9 + $0x58] sm:$0xff] }
 0x173   :  { %1600 = vmatpush.msrb.mxu0 %v4847_v30  ;;  %10152 = vst [vmem:[#allocation104_spill] sm:$0xff] %v6400_v15  ;;  %1082 = vmatmul.f32.vlgmr.msra.gmra.mxu1 %v6400_v15  ;;  %v4855_v30 = vld [vmem:[#allocation9 + $0x50] sm:$0xff] }
 0x174   :  { %1641 = vmatpush.msra.mxu2 %v4850_v14  ;;  %1122 = vmatmul.f32.vlgmr.msrb.gmra.mxu3 %v6400_v15  ;;  %10154 = vst [vmem:[#allocation106_spill] sm:$0xff] %v6428_v60  ;;  %v6436_v14 = vld [vmem:[#allocation9 + $0x6a8] sm:$0xff] }
 0x175   :  { %1601 = vmatpush.msrb.mxu0 %v4849_v59  ;;  %1226 = vmatpush.msra.mxu1 %v6402_v20  ;;  %v6434_v59 = vld [vmem:[#allocation9 + $0x6a0] sm:$0xff]  ;;  %10155 = vst [vmem:[#allocation107_spill] sm:$0xff] %v6436_v14 }
 0x176   :  { %1266 = vmatpush.msrb.mxu3 %v6404_v16  ;;  %1642 = vmatpush.msra.mxu2 %v4852_v17  ;;  %v6442_v17 = vld [vmem:[#allocation9 + $0x668] sm:$0xff] }
 0x177   :  { %1602 = vmatpush.msrb.mxu0 %v4851_v45  ;;  %1227 = vmatpush.msra.mxu1 %v6408_v19  ;;  %v6440_v45 = vld [vmem:[#allocation9 + $0x660] sm:$0xff]  ;;  %10157 = vst [vmem:[#allocation109_spill] sm:$0xff] %v6442_v17 }
 0x178   :  { %1267 = vmatpush.msrb.mxu3 %v6410_v58  ;;  %1643 = vmatpush.msra.mxu2 %v4854_v11  ;;  %10156 = vst [vmem:[#allocation108_spill] sm:$0xff] %v6440_v45  ;;  %v4858_v11 = vld [vmem:[#allocation9 + $0x18] sm:$0xff] }
 0x179   :  { %1603 = vmatpush.msrb.mxu0 %v4853_v18  ;;  %1228 = vmatpush.msra.mxu1 %v6414_v41  ;;  %v4857_v18 = vld [vmem:[#allocation9 + $0x10] sm:$0xff] }
 0x17a   :  { %1268 = vmatpush.msrb.mxu3 %v6416_v40  ;;  %1644 = vmatpush.msra.mxu2 %v4856_v29  ;;  %v6448_v29 = vld [vmem:[#allocation9 + $0x628] sm:$0xff] }
 0x17b   :  { %1604 = vmatpush.msrb.mxu0 %v4855_v30  ;;  %1229 = vmatpush.msra.mxu1 %v6420_v36  ;;  %v6446_v30 = vld [vmem:[#allocation9 + $0x620] sm:$0xff]  ;;  %10159 = vst [vmem:[#allocation111_spill] sm:$0xff] %v6448_v29 }
 0x17c   :  { %1269 = vmatpush.msrb.mxu3 %v6422_v51  ;;  %1162 = vmatmul.f32.vlgmr.msrb.gmra.mxu1 %v6400_v15  ;;  %10158 = vst [vmem:[#allocation110_spill] sm:$0xff] %v6446_v30 }
 0x17d   :  { %1202 = vmatmul.f32.vlgmr.msra.gmra.mxu3 %v6400_v15  ;;  %1230 = vmatpush.msra.mxu1 %v6426_v10  ;;  %v6454_v10 = vld [vmem:[#allocation9 + $0x5e8] sm:$0xff] }
 0x17e   :  { %1270 = vmatpush.msrb.mxu3 %v6428_v60  ;;  %1605 = vmatpush.msrb.mxu0 %v4857_v18  ;;  %v6452_v60 = vld [vmem:[#allocation9 + $0x5e0] sm:$0xff]  ;;  %10161 = vst [vmem:[#allocation113_spill] sm:$0xff] %v6454_v10 }
 0x17f   :  { %1645 = vmatpush.msra.mxu2 %v4858_v11  ;;  %1231 = vmatpush.msra.mxu1 %v6434_v59  ;;  %10160 = vst [vmem:[#allocation112_spill] sm:$0xff] %v6452_v60  ;;  %v6458_v18 = vld [vmem:[#allocation9 + $0x5a0] sm:$0xff]  ;;  %v6460_v11 = vld [vmem:[#allocation9 + $0x5a8] sm:$0xff] }
 0x180   :  { %1271 = vmatpush.msrb.mxu3 %v6436_v14  ;;  %10162 = vst [vmem:[#allocation114_spill] sm:$0xff] %v6458_v18  ;;  %v6464_v14 = vld [vmem:[#allocation9 + $0x560] sm:$0xff] }
 0x181   :  { %1232 = vmatpush.msra.mxu1 %v6440_v45  ;;  %10163 = vst [vmem:[#allocation115_spill] sm:$0xff] %v6460_v11  ;;  %v6466_v45 = vld [vmem:[#allocation9 + $0x568] sm:$0xff] }
 0x182   :  { %1272 = vmatpush.msrb.mxu3 %v6442_v17  ;;  %10164 = vst [vmem:[#allocation116_spill] sm:$0xff] %v6464_v14  ;;  %v6470_v17 = vld [vmem:[#allocation9 + $0x520] sm:$0xff] }
 0x183   :  { %1233 = vmatpush.msra.mxu1 %v6446_v30  ;;  %10165 = vst [vmem:[#allocation117_spill] sm:$0xff] %v6466_v45  ;;  %v6472_v30 = vld [vmem:[#allocation9 + $0x528] sm:$0xff] }
 0x184   :  { %1273 = vmatpush.msrb.mxu3 %v6448_v29  ;;  %10166 = vst [vmem:[#allocation118_spill] sm:$0xff] %v6470_v17  ;;  %v6476_v29 = vld [vmem:[#allocation9 + $0x4e0] sm:$0xff] }
 0x185   :  { %1234 = vmatpush.msra.mxu1 %v6452_v60  ;;  %10167 = vst [vmem:[#allocation119_spill] sm:$0xff] %v6472_v30  ;;  %v6478_v60 = vld [vmem:[#allocation9 + $0x4e8] sm:$0xff] }
 0x186   :  { %1274 = vmatpush.msrb.mxu3 %v6454_v10  ;;  %10168 = vst [vmem:[#allocation120_spill] sm:$0xff] %v6476_v29  ;;  %v6482_v10 = vld [vmem:[#allocation9 + $0x4a0] sm:$0xff] }
 0x187   :  { %1235 = vmatpush.msra.mxu1 %v6458_v18  ;;  %10169 = vst [vmem:[#allocation121_spill] sm:$0xff] %v6478_v60  ;;  %v6484_v18 = vld [vmem:[#allocation9 + $0x4a8] sm:$0xff] }
 0x188   :  { %1275 = vmatpush.msrb.mxu3 %v6460_v11  ;;  %10170 = vst [vmem:[#allocation122_spill] sm:$0xff] %v6482_v10  ;;  %v6488_v11 = vld [vmem:[#allocation9 + $0x460] sm:$0xff] }
 0x189   :  { %1236 = vmatpush.msra.mxu1 %v6464_v14  ;;  %10171 = vst [vmem:[#allocation123_spill] sm:$0xff] %v6484_v18  ;;  %v6490_v14 = vld [vmem:[#allocation9 + $0x468] sm:$0xff] }
 0x18a   :  { %1276 = vmatpush.msrb.mxu3 %v6466_v45  ;;  %10172 = vst [vmem:[#allocation124_spill] sm:$0xff] %v6488_v11  ;;  %v6494_v45 = vld [vmem:[#allocation9 + $0x420] sm:$0xff] }
 0x18b   :  { %1237 = vmatpush.msra.mxu1 %v6470_v17  ;;  %10173 = vst [vmem:[#allocation125_spill] sm:$0xff] %v6490_v14  ;;  %v6496_v17 = vld [vmem:[#allocation9 + $0x428] sm:$0xff] }
 0x18c   :  { %1277 = vmatpush.msrb.mxu3 %v6472_v30  ;;  %10174 = vst [vmem:[#allocation126_spill] sm:$0xff] %v6494_v45  ;;  %v6500_v30 = vld [vmem:[#allocation9 + $0x7f0] sm:$0xff] }
 0x18d   :  { %1238 = vmatpush.msra.mxu1 %v6476_v29  ;;  %10175 = vst [vmem:[#allocation127_spill] sm:$0xff] %v6496_v17  ;;  %v6502_v29 = vld [vmem:[#allocation9 + $0x7f8] sm:$0xff] }
 0x18e   :  { %1278 = vmatpush.msrb.mxu3 %v6478_v60  ;;  %10176 = vst [vmem:[#allocation128_spill] sm:$0xff] %v6500_v30  ;;  %v6526_v60 = vld [vmem:[#allocation9 + $0x6f0] sm:$0xff] }
 0x18f   :  { %1239 = vmatpush.msra.mxu1 %v6482_v10  ;;  %10177 = vst [vmem:[#allocation129_spill] sm:$0xff] %v6502_v29  ;;  %v6510_v10 = vld [vmem:[#allocation9 + $0x7b8] sm:$0xff] }
 0x190   :  { %1279 = vmatpush.msrb.mxu3 %v6484_v18  ;;  %v6508_v18 = vld [vmem:[#allocation9 + $0x7b0] sm:$0xff]  ;;  %10179 = vst [vmem:[#allocation131_spill] sm:$0xff] %v6510_v10 }
 0x191   :  { %1240 = vmatpush.msra.mxu1 %v6488_v11  ;;  %10178 = vst [vmem:[#allocation130_spill] sm:$0xff] %v6508_v18  ;;  %v6516_v11 = vld [vmem:[#allocation9 + $0x778] sm:$0xff] }
 0x192   :  { %1280 = vmatpush.msrb.mxu3 %v6490_v14  ;;  %v6514_v14 = vld [vmem:[#allocation9 + $0x770] sm:$0xff]  ;;  %10181 = vst [vmem:[#allocation133_spill] sm:$0xff] %v6516_v11 }
 0x193   :  { %1241 = vmatpush.msra.mxu1 %v6494_v45  ;;  %10180 = vst [vmem:[#allocation132_spill] sm:$0xff] %v6514_v14  ;;  %v6522_v45 = vld [vmem:[#allocation9 + $0x738] sm:$0xff] }
 0x194   :  { %1281 = vmatpush.msrb.mxu3 %v6496_v17  ;;  %1242 = vmatmul.f32.vlgmr.msra.gmra.mxu1 %v6400_v15  ;;  %v6520_v17 = vld [vmem:[#allocation9 + $0x730] sm:$0xff]  ;;  %10183 = vst [vmem:[#allocation135_spill] sm:$0xff] %v6522_v45 }
 0x195   :  { %1282 = vmatmul.f32.vlgmr.msrb.gmra.mxu3 %v6400_v15  ;;  %1306 = vmatpush.msrb.mxu1 %v6500_v30  ;;  %10182 = vst [vmem:[#allocation134_spill] sm:$0xff] %v6520_v17  ;;  %v6528_v30 = vld [vmem:[#allocation9 + $0x6f8] sm:$0xff] }
 0x196   :  { %1346 = vmatpush.msra.mxu3 %v6502_v29  ;;  %10184 = vst [vmem:[#allocation136_spill] sm:$0xff] %v6526_v60  ;;  %v6532_v29 = vld [vmem:[#allocation9 + $0x6b0] sm:$0xff] }
 0x197   :  { %1307 = vmatpush.msrb.mxu1 %v6508_v18  ;;  %10185 = vst [vmem:[#allocation137_spill] sm:$0xff] %v6528_v30  ;;  %v6534_v18 = vld [vmem:[#allocation9 + $0x6b8] sm:$0xff] }
 0x198   :  { %1347 = vmatpush.msra.mxu3 %v6510_v10  ;;  %10186 = vst [vmem:[#allocation138_spill] sm:$0xff] %v6532_v29  ;;  %v6538_v10 = vld [vmem:[#allocation9 + $0x670] sm:$0xff] }
 0x199   :  { %1308 = vmatpush.msrb.mxu1 %v6514_v14  ;;  %10187 = vst [vmem:[#allocation139_spill] sm:$0xff] %v6534_v18  ;;  %v6540_v14 = vld [vmem:[#allocation9 + $0x678] sm:$0xff] }
 0x19a   :  { %1348 = vmatpush.msra.mxu3 %v6516_v11  ;;  %10188 = vst [vmem:[#allocation140_spill] sm:$0xff] %v6538_v10  ;;  %v6544_v11 = vld [vmem:[#allocation9 + $0x630] sm:$0xff] }
 0x19b   :  { %1309 = vmatpush.msrb.mxu1 %v6520_v17  ;;  %10189 = vst [vmem:[#allocation141_spill] sm:$0xff] %v6540_v14  ;;  %v6546_v17 = vld [vmem:[#allocation9 + $0x638] sm:$0xff] }
 0x19c   :  { %1349 = vmatpush.msra.mxu3 %v6522_v45  ;;  %10190 = vst [vmem:[#allocation142_spill] sm:$0xff] %v6544_v11  ;;  %v6550_v45 = vld [vmem:[#allocation9 + $0x5f0] sm:$0xff] }
 0x19d   :  { %1310 = vmatpush.msrb.mxu1 %v6526_v60  ;;  %10191 = vst [vmem:[#allocation143_spill] sm:$0xff] %v6546_v17  ;;  %v6552_v60 = vld [vmem:[#allocation9 + $0x5f8] sm:$0xff] }
 0x19e   :  { %1350 = vmatpush.msra.mxu3 %v6528_v30  ;;  %10192 = vst [vmem:[#allocation144_spill] sm:$0xff] %v6550_v45  ;;  %v6556_v30 = vld [vmem:[#allocation9 + $0x5b0] sm:$0xff] }
 0x19f   :  { %1311 = vmatpush.msrb.mxu1 %v6532_v29  ;;  %10193 = vst [vmem:[#allocation145_spill] sm:$0xff] %v6552_v60  ;;  %v6558_v29 = vld [vmem:[#allocation9 + $0x5b8] sm:$0xff] }
 0x1a0   :  { %1351 = vmatpush.msra.mxu3 %v6534_v18  ;;  %10194 = vst [vmem:[#allocation146_spill] sm:$0xff] %v6556_v30  ;;  %v6562_v18 = vld [vmem:[#allocation9 + $0x570] sm:$0xff] }
 0x1a1   :  { %1312 = vmatpush.msrb.mxu1 %v6538_v10  ;;  %10195 = vst [vmem:[#allocation147_spill] sm:$0xff] %v6558_v29  ;;  %v6564_v10 = vld [vmem:[#allocation9 + $0x578] sm:$0xff] }
 0x1a2   :  { %1352 = vmatpush.msra.mxu3 %v6540_v14  ;;  %10196 = vst [vmem:[#allocation148_spill] sm:$0xff] %v6562_v18  ;;  %v6568_v14 = vld [vmem:[#allocation9 + $0x530] sm:$0xff] }
 0x1a3   :  { %1313 = vmatpush.msrb.mxu1 %v6544_v11  ;;  %10197 = vst [vmem:[#allocation149_spill] sm:$0xff] %v6564_v10  ;;  %v6570_v11 = vld [vmem:[#allocation9 + $0x538] sm:$0xff] }
 0x1a4   :  { %1353 = vmatpush.msra.mxu3 %v6546_v17  ;;  %10198 = vst [vmem:[#allocation150_spill] sm:$0xff] %v6568_v14  ;;  %v6574_v17 = vld [vmem:[#allocation9 + $0x4f0] sm:$0xff] }
 0x1a5   :  { %1314 = vmatpush.msrb.mxu1 %v6550_v45  ;;  %v6576_v45 = vld [vmem:[#allocation9 + $0x4f8] sm:$0xff] }
 0x1a6   :  { %1354 = vmatpush.msra.mxu3 %v6552_v60  ;;  %v6580_v60 = vld [vmem:[#allocation9 + $0x4b0] sm:$0xff] }
 0x1a7   :  { %1315 = vmatpush.msrb.mxu1 %v6556_v30  ;;  %v6582_v30 = vld [vmem:[#allocation9 + $0x4b8] sm:$0xff] }
 0x1a8   :  { %1355 = vmatpush.msra.mxu3 %v6558_v29  ;;  %v6586_v29 = vld [vmem:[#allocation9 + $0x470] sm:$0xff] }
 0x1a9   :  { %1316 = vmatpush.msrb.mxu1 %v6562_v18  ;;  %v6588_v18 = vld [vmem:[#allocation9 + $0x478] sm:$0xff] }
 0x1aa   :  { %1356 = vmatpush.msra.mxu3 %v6564_v10  ;;  %v6592_v10 = vld [vmem:[#allocation9 + $0x430] sm:$0xff] }
 0x1ab   :  { %1317 = vmatpush.msrb.mxu1 %v6568_v14  ;;  %v6594_v14 = vld [vmem:[#allocation9 + $0x438] sm:$0xff] }
 0x1ac   :  { %1357 = vmatpush.msra.mxu3 %v6570_v11 }
 0x1ad   :  { %1318 = vmatpush.msrb.mxu1 %v6574_v17 }
 0x1ae   :  { %1358 = vmatpush.msra.mxu3 %v6576_v45 }
 0x1af   :  { %1319 = vmatpush.msrb.mxu1 %v6580_v60 }
 0x1b0   :  { %1359 = vmatpush.msra.mxu3 %v6582_v30 }
 0x1b1   :  { %1320 = vmatpush.msrb.mxu1 %v6586_v29 }
 0x1b2   :  { %1360 = vmatpush.msra.mxu3 %v6588_v18 }
 0x1b3   :  { %1321 = vmatpush.msrb.mxu1 %v6592_v10 }
 0x1b4   :  { %1361 = vmatpush.msra.mxu3 %v6594_v14  ;;  %1322 = vmatmul.f32.vlgmr.msrb.gmra.mxu1 %v6400_v15 }
 0x1b5   :  { %1362 = vmatmul.f32.vlgmr.msra.gmra.mxu3 %v6400_v15  ;;  %1530 = vmatpush.msra.mxu1 %v6092_v56  ;;  %v10202_v56 = vld [vmem:[#allocation83_spill] sm:$0xff]  ;;  %v6796_v15 = vld [vmem:[#allocation9 + $0x128] sm:$0xff] }
 0x1b6   :  { %1570 = vmatpush.msrb.mxu3 %v6094_v32  ;;  %v10209_v32 = vld [vmem:[#allocation92_spill] sm:$0xff] }
 0x1b7   :  { %1531 = vmatpush.msra.mxu1 %v6102_v57  ;;  %v10210_v57 = vld [vmem:[#allocation93_spill] sm:$0xff] }
 0x1b8   :  { %1571 = vmatpush.msrb.mxu3 %v6104_v35  ;;  %v10211_v35 = vld [vmem:[#allocation94_spill] sm:$0xff] }
 0x1b9   :  { %1532 = vmatpush.msra.mxu1 %v6112_v48  ;;  %v10213_v48 = vld [vmem:[#allocation96_spill] sm:$0xff] }
 0x1ba   :  { %1572 = vmatpush.msrb.mxu3 %v6114_v52  ;;  %v10214_v52 = vld [vmem:[#allocation97_spill] sm:$0xff] }
 0x1bb   :  { %1533 = vmatpush.msra.mxu1 %v6118_v47  ;;  %v10212_v47 = vld [vmem:[#allocation95_spill] sm:$0xff] }
 0x1bc   :  { %1573 = vmatpush.msrb.mxu3 %v6120_v7  ;;  %v10204_v7 = vld [vmem:[#allocation85_spill] sm:$0xff] }
 0x1bd   :  { %1534 = vmatpush.msra.mxu1 %v6124_v21  ;;  %v10215_v21 = vld [vmem:[#allocation100_spill] sm:$0xff] }
 0x1be   :  { %1574 = vmatpush.msrb.mxu3 %v6126_v63  ;;  %v10216_v63 = vld [vmem:[#allocation101_spill] sm:$0xff] }
 0x1bf   :  { %1535 = vmatpush.msra.mxu1 %v6130_v39  ;;  %v1063_v39 = vpop.f32.mrf.mxu0 }
 0x1c0   :  { %1575 = vmatpush.msrb.mxu3 %v6132_v26 }
 0x1c1   :  { %1536 = vmatpush.msra.mxu1 %v6142_v6  ;;  %v10218_v6 = vld [vmem:[#allocation26_spill] sm:$0xff] }
 0x1c2   :  { %1576 = vmatpush.msrb.mxu3 %v6144_v43 }
 0x1c3   :  { %1537 = vmatpush.msra.mxu1 %v6150_v38  ;;  %v10217_v38 = vld [vmem:[#allocation18_spill] sm:$0xff] }
 0x1c4   :  { %1577 = vmatpush.msrb.mxu3 %v6152_v46  ;;  %v275_v43 = vadd.f32 %v10218_v6, %v10217_v38 }
 0x1c5   :  { %1538 = vmatpush.msra.mxu1 %v6156_v1  ;;  %v10200_v1 = vld [vmem:[#allocation81_spill] sm:$0xff] }
 0x1c6   :  { %1578 = vmatpush.msrb.mxu3 %v6158_v12  ;;  %v10207_v12 = vld [vmem:[#allocation88_spill] sm:$0xff] }
 0x1c7   :  { %1539 = vmatpush.msra.mxu1 %v6162_v44  ;;  %v10219_v44 = vld [vmem:[#allocation102_spill] sm:$0xff] }
 0x1c8   :  { %1579 = vmatpush.msrb.mxu3 %v6164_v5  ;;  %v10220_v5 = vld [vmem:[#allocation103_spill] sm:$0xff] }
 0x1c9   :  { %1540 = vmatpush.msra.mxu1 %v6172_v53  ;;  %v10199_v53 = vld [vmem:[#allocation78_spill] sm:$0xff] }
 0x1ca   :  { %1580 = vmatpush.msrb.mxu3 %v6174_v25 }
 0x1cb   :  { %1541 = vmatpush.msra.mxu1 %v6178_v33  ;;  %v10205_v33 = vld [vmem:[#allocation86_spill] sm:$0xff] }
 0x1cc   :  { %1581 = vmatpush.msrb.mxu3 %v6180_v4  ;;  %v10208_v4 = vld [vmem:[#allocation91_spill] sm:$0xff] }
 0x1cd   :  { %1542 = vmatpush.msra.mxu1 %v6190_v55  ;;  %v1103_v55 = vpop.f32.mrf.mxu2 }
 0x1ce   :  { %1582 = vmatpush.msrb.mxu3 %v6192_v62 }
 0x1cf   :  { %1543 = vmatpush.msra.mxu1 %v6198_v61  ;;  %v10203_v61 = vld [vmem:[#allocation84_spill] sm:$0xff] }
 0x1d0   :  { %1583 = vmatpush.msrb.mxu3 %v6200_v22 }
 0x1d1   :  { %1544 = vmatpush.msra.mxu1 %v6208_v34  ;;  %v10222_v34 = vld [vmem:[#allocation27_spill] sm:$0xff] }
 0x1d2   :  { %1584 = vmatpush.msrb.mxu3 %v6210_v0 }
 0x1d3   :  { %1545 = vmatpush.msra.mxu1 %v6214_v8  ;;  %v10221_v8 = vld [vmem:[#allocation19_spill] sm:$0xff] }
 0x1d4   :  { %1585 = vmatpush.msrb.mxu3 %v6216_v31  ;;  %v10201_v31 = vld [vmem:[#allocation82_spill] sm:$0xff]  ;;  %v316_v0 = vadd.f32 %v10222_v34, %v10221_v8 }
 0x1d5   :  { %1610 = vmatpush.msrb.mxu1 %v6220_v9 }
 0x1d6   :  { %1650 = vmatpush.msra.mxu3 %v6222_v42  ;;  %v10206_v42 = vld [vmem:[#allocation87_spill] sm:$0xff] }
 0x1d7   :  { %1611 = vmatpush.msrb.mxu1 %v6232_v3 }
 0x1d8   :  { %1651 = vmatpush.msra.mxu3 %v6234_v54 }
 0x1d9   :  { %1612 = vmatpush.msrb.mxu1 %v6238_v2  ;;  %v1183_v2 = vpop.f32.mrf.mxu2 }
 0x1da   :  { %1652 = vmatpush.msra.mxu3 %v6240_v50 }
 0x1db   :  { %1613 = vmatpush.msrb.mxu1 %v6244_v13 }
 0x1dc   :  { %1653 = vmatpush.msra.mxu3 %v6246_v24 }
 0x1dd   :  { %1614 = vmatpush.msrb.mxu1 %v6252_v49  ;;  %v10223_v49 = vld [vmem:[#allocation32_spill] sm:$0xff] }
 0x1de   :  { %1654 = vmatpush.msra.mxu3 %v10199_v53 }
 0x1df   :  { %1615 = vmatpush.msrb.mxu1 %v10200_v1  ;;  %v1143_v1 = vpop.f32.mrf.mxu0 }
 0x1e0   :  { %1655 = vmatpush.msra.mxu3 %v10201_v31 }
 0x1e1   :  { %1616 = vmatpush.msrb.mxu1 %v10202_v56 }
 0x1e2   :  { %1656 = vmatpush.msra.mxu3 %v10203_v61 }
 0x1e3   :  { %1617 = vmatpush.msrb.mxu1 %v10204_v7 }
 0x1e4   :  { %1657 = vmatpush.msra.mxu3 %v10205_v33  ;;  %v10225_v33 = vld [vmem:[#allocation33_spill] sm:$0xff] }
 0x1e5   :  { %1618 = vmatpush.msrb.mxu1 %v10206_v42  ;;  %v10226_v42 = vld [vmem:[#allocation36_spill] sm:$0xff] }
 0x1e6   :  { %1658 = vmatpush.msra.mxu3 %v10207_v12  ;;  %v357_v12 = vadd.f32 %v10226_v42, %v10225_v33  ;;  %v1263_v42 = vpop.f32.mrf.mxu2 }
 0x1e7   :  { %1619 = vmatpush.msrb.mxu1 %v10208_v4  ;;  %v1223_v34 = vpop.f32.mrf.mxu0 }
 0x1e8   :  { %1659 = vmatpush.msra.mxu3 %v10209_v32 }
 0x1e9   :  { %1620 = vmatpush.msrb.mxu1 %v10210_v57 }
 0x1ea   :  { %1660 = vmatpush.msra.mxu3 %v10211_v35 }
 0x1eb   :  { %1621 = vmatpush.msrb.mxu1 %v10212_v47 }
 0x1ec   :  { %1661 = vmatpush.msra.mxu3 %v10213_v48 }
 0x1ed   :  { %1622 = vmatpush.msrb.mxu1 %v6330_v28 }
 0x1ee   :  { %1662 = vmatpush.msra.mxu3 %v10214_v52 }
 0x1ef   :  { %1623 = vmatpush.msrb.mxu1 %v6339_v37  ;;  %v10224_v37 = vld [vmem:[#allocation37_spill] sm:$0xff] }
 0x1f0   :  { %1663 = vmatpush.msra.mxu3 %v6341_v23  ;;  %v1083_v26 = vpop.f32.mrf.mxu1  ;;  %v398_v23 = vadd.f32 %v10224_v37, %v10223_v49 }
 0x1f1   :  { %1624 = vmatpush.msrb.mxu1 %v10215_v21  ;;  %v1084_v46 = vadd.f32 %v1083_v26, %v1063_v39 }
 0x1f2   :  { %1664 = vmatpush.msra.mxu3 %v10216_v63 }
 0x1f3   :  { %1625 = vmatpush.msrb.mxu1 %v10219_v44  ;;  %v1370_v25 = vadd.f32 %v1084_v46, %v275_v43 }
 0x1f4   :  { %1665 = vmatpush.msra.mxu3 %v10220_v5 }
 0x1f5   :  { %v4463_v62 = vmul.f32 -1.442695, %v1370_v25 }
 0x1f7   :  { %v1123_v22 = vpop.f32.mrf.mxu3  ;;  %4580 = vpow2.f32 %v4463_v62  ;;  %v10228_v62 = vld [vmem:[#allocation68_spill] sm:$0xff] }
 0x1f8   :  { %v1124_v9 = vadd.f32 %v1123_v22, %v1103_v55  ;;  %v10227_v55 = vld [vmem:[#allocation72_spill] sm:$0xff] }
 0x1f9   :  { %v1163_v28 = vpop.f32.mrf.mxu1  ;;  %v454_v22 = vadd.f32 %v10228_v62, %v10227_v55 }
 0x1fa   :  { %v1371_v24 = vadd.f32 %v1124_v9, %v316_v0  ;;  %v1164_v56 = vadd.f32 %v1163_v28, %v1143_v1 }
 0x1fc   :  { %v4464_v3 = vmul.f32 -1.442695, %v1371_v24  ;;  %v1372_v57 = vadd.f32 %v1164_v56, %v357_v12  ;;  %v10229_v56 = vld [vmem:[#allocation73_spill] sm:$0xff] }
 0x1fd   :  { %v4581_v54 = vpop.eup %4580 }
 0x1fe   :  { %4582 = vpow2.f32 %v4464_v3  ;;  %v1385_v50 = vadd.f32 1.0, %v4581_v54 }
 0x200   :  { %v1203_v13 = vpop.f32.mrf.mxu3  ;;  %4584 = vrcp.f32 %v1385_v50  ;;  %v1397_v48 = vand.u32 2147483648, %v1385_v50  ;;  %v1395_v63 = vand.u32 2147483647, %v1385_v50  ;;  %vm1391_vm9 = vweird.f32 %v1385_v50 }
 0x201   :  { %v1204_v53 = vadd.f32 %v1203_v13, %v1183_v2 }
 0x202   :  { %v1398_v46 = vor.u32 1.1754944e-38, %v1397_v48  ;;  %vm1396_vm11 = vcmp.eq.f32.partialorder %v1395_v63, 8.507059e+37 }
 0x203   :  { %v1373_v31 = vadd.f32 %v1204_v53, %v398_v23 }
 0x204   :  { %v4583_v61 = vpop.eup %4582 }
 0x205   :  { %v4465_v7 = vmul.f32 -1.442695, %v1373_v31  ;;  %v1404_v4 = vadd.f32 1.0, %v4583_v61  ;;  %v10230_v61 = vld [vmem:[#allocation69_spill] sm:$0xff] }
 0x206   :  { %v4585_v32 = vpop.eup %4584 }
 0x207   :  { %4586 = vpow2.f32 %v4465_v7  ;;  %v1387_v35 = vmul.f32 %v4585_v32, %v1385_v50  ;;  %vm1392_vm8 = vweird.f32 %v4585_v32  ;;  %v1416_v0 = vand.u32 2147483648, %v1404_v4 }
 0x208   :  { %4588 = vrcp.f32 %v1404_v4  ;;  %vm1393_vm10 = vmor %vm1391_vm9, %vm1392_vm8  ;;  %v1414_v24 = vand.u32 2147483647, %v1404_v4  ;;  %vm1410_vm13 = vweird.f32 %v1404_v4  ;;  %v495_v7 = vadd.f32 %v10230_v61, %v10229_v56  ;;  %v6723_v61 = vld [vmem:[#allocation9 + $0x2e0] sm:$0xff] }
 0x209   :  { %v1388_v47 = vsub.f32 1.0, %v1387_v35  ;;  %4590 = vtanh.f32 %v1372_v57  ;;  %v1417_v28 = vor.u32 1.1754944e-38, %v1416_v0  ;;  %v10231_v57 = vld [vmem:[#allocation42_spill] sm:$0xff] }
 0x20a   :  { %vm1415_vm15 = vcmp.eq.f32.partialorder %v1414_v24, 8.507059e+37  ;;  %v6694_v24 = vld [vmem:[#allocation9 + $0x3e8] sm:$0xff] }
 0x20b   :  { %v1389_v21 = vmul.f32 %v4585_v32, %v1388_v47 }
 0x20d   :  { %v4587_v52 = vpop.eup %4586  ;;  %v1390_v43 = vadd.f32 %v4585_v32, %v1389_v21 }
 0x20e   :  { %v4589_v39 = vpop.eup %4588  ;;  %v1424_v26 = vadd.f32 1.0, %v4587_v52 }
 0x20f   :  { %v1406_v6 = vmul.f32 %v4589_v39, %v1404_v4  ;;  %v1394_v5 = vsel %vm1393_vm10, %v4585_v32, %v1390_v43  ;;  %v4591_v25 = vpop.eup %4590  ;;  %vm1411_vm12 = vweird.f32 %v4589_v39 }
 0x210   :  { %4592 = vrcp.f32 %v1424_v26  ;;  %v1399_v9 = vsel %vm1396_vm11, %v1398_v46, %v1394_v5  ;;  %vm1412_vm14 = vmor %vm1410_vm13, %vm1411_vm12  ;;  %vm1430_vm1 = vweird.f32 %v1424_v26  ;;  %v1434_v43 = vand.u32 2147483647, %v1424_v26 }
 0x211   :  { %v1407_v44 = vsub.f32 1.0, %v1406_v6  ;;  %v1243_v3 = vpop.f32.mrf.mxu1  ;;  %v1499_v2 = vmul.f32 %v4591_v25, %v1399_v9 }
 0x212   :  { %v1244_v13 = vadd.f32 %v1243_v3, %v1223_v34  ;;  %vm1435_vm3 = vcmp.eq.f32.partialorder %v1434_v43, 8.507059e+37  ;;  %v6741_v43 = vld [vmem:[#allocation9 + $0x268] sm:$0xff] }
 0x213   :  { %v1408_v54 = vmul.f32 %v4589_v39, %v1407_v44 }
 0x214   :  { %v1378_v37 = vadd.f32 %v1244_v13, %v454_v22 }
 0x215   :  { %v1409_v50 = vadd.f32 %v4589_v39, %v1408_v54  ;;  %v6700_v54 = vld [vmem:[#allocation9 + $0x3a0] sm:$0xff] }
 0x216   :  { %v4593_v23 = vpop.eup %4592  ;;  %v4466_v31 = vmul.f32 -1.442695, %v1378_v37  ;;  %v6711_v37 = vld [vmem:[#allocation9 + $0x368] sm:$0xff] }
 0x217   :  { %v1413_v53 = vsel %vm1412_vm14, %v4589_v39, %v1409_v50  ;;  %v1426_v1 = vmul.f32 %v4593_v23, %v1424_v26  ;;  %vm1431_vm0 = vweird.f32 %v4593_v23  ;;  %v1436_v39 = vand.u32 2147483648, %v1424_v26  ;;  %v6691_v26 = vld [vmem:[#allocation9 + $0x3e0] sm:$0xff] }
 0x218   :  { %v1418_v12 = vsel %vm1415_vm15, %v1417_v28, %v1413_v53  ;;  %v1283_v32 = vpop.f32.mrf.mxu3  ;;  %4594 = vpow2.f32 %v4466_v31  ;;  %vm1432_vm2 = vmor %vm1430_vm1, %vm1431_vm0  ;;  %v6708_v50 = vld [vmem:[#allocation9 + $0x360] sm:$0xff]  ;;  %v6717_v28 = vld [vmem:[#allocation9 + $0x328] sm:$0xff] }
 0x219   :  { %v1498_v35 = vmul.f32 %v1418_v12, %v10231_v57  ;;  %v1427_v47 = vsub.f32 1.0, %v1426_v1  ;;  %v1284_v4 = vadd.f32 %v1283_v32, %v1263_v42  ;;  %v1437_v25 = vor.u32 1.1754944e-38, %v1436_v39  ;;  %v6729_v12 = vld [vmem:[#allocation9 + $0x2a0] sm:$0xff]  ;;  %v6732_v32 = vld [vmem:[#allocation9 + $0x2a8] sm:$0xff]  ;;  %v1303_v57 = vpop.f32.mrf.mxu0 }
 0x21b   :  { %v6679_v48 = vadd.f32 %v1499_v2, %v1498_v35  ;;  %v1428_v52 = vmul.f32 %v4593_v23, %v1427_v47  ;;  %v1379_v21 = vadd.f32 %v1284_v4, %v495_v7  ;;  %v6703_v2 = vld [vmem:[#allocation9 + $0x3a8] sm:$0xff]  ;;  %v10233_v4 = vld [vmem:[#allocation99_spill] sm:$0xff] }
 0x21c   :  { %v6726_v7 = vld [vmem:[#allocation9 + $0x2e8] sm:$0xff] }
 0x21d   :  { %4596 = vtanh.f32 %v6679_v48  ;;  %v1429_v63 = vadd.f32 %v4593_v23, %v1428_v52  ;;  %v4467_v6 = vmul.f32 -1.442695, %v1379_v21  ;;  %v10234_v52 = vld [vmem:[#allocation89_spill] sm:$0xff] }
 0x21e   :  { %v4595_v46 = vpop.eup %4594  ;;  %v536_v21 = vadd.f32 %v10234_v52, %v10233_v4 }
 0x21f   :  { %4598 = vpow2.f32 %v4467_v6  ;;  %v1433_v44 = vsel %vm1432_vm2, %v4593_v23, %v1429_v63  ;;  %v6682_v5 = vadd.f32 1.0, %v4595_v46  ;;  %v6714_v23 = vld [vmem:[#allocation9 + $0x320] sm:$0xff] }
 0x220   :  { %v1438_v22 = vsel %vm1435_vm3, %v1437_v25, %v1433_v44  ;;  %v6738_v6 = vld [vmem:[#allocation9 + $0x260] sm:$0xff] }
 0x221   :  { %4600 = vrcp.f32 %v6682_v5  ;;  %vm1449_vm8 = vweird.f32 %v6682_v5 }
 0x223   :  { %v4597_v62 = vpop.eup %4596 }
 0x224   :  { %v6685_v34 = vmul.f32 %v4597_v62, %v1438_v22  ;;  %v6745_v62 = vld [vmem:[#allocation9 + $0x220] sm:$0xff]  ;;  %v6748_v22 = vld [vmem:[#allocation9 + $0x228] sm:$0xff] }
 0x225   :  { %v4599_v0 = vpop.eup %4598 }
 0x226   :  { %10232 = vst [vmem:[#allocation78_spill] sm:$0xff] %v6685_v34  ;;  %v6687_v9 = vadd.f32 1.0, %v4599_v0  ;;  %1526 = vmatmul.f32.vlgmr.msra.gmra.mxu0 %v6685_v34  ;;  %1566 = vmatmul.f32.vlgmr.msrb.gmra.mxu2 %v6685_v34 }
 0x227   :  { %1670 = vmatpush.msra.mxu0 %v6691_v26  ;;  %1710 = vmatpush.msrb.mxu2 %v6694_v24  ;;  %v6697_v3 = vpop.eup %4600 }
 0x228   :  { %4602 = vrcp.f32 %v6687_v9  ;;  %v1445_v13 = vmul.f32 %v6697_v3, %v6682_v5  ;;  %v1474_v46 = vand.u32 2147483648, %v6687_v9  ;;  %vm1468_vm5 = vweird.f32 %v6687_v9 }
 0x229   :  { %1671 = vmatpush.msra.mxu0 %v6700_v54  ;;  %1711 = vmatpush.msrb.mxu2 %v6703_v2  ;;  %vm1450_vm6 = vweird.f32 %v6697_v3 }
 0x22a   :  { %v1446_v1 = vsub.f32 1.0, %v1445_v13  ;;  %v1472_v13 = vand.u32 2147483647, %v6687_v9  ;;  %vm6774_vm9 = vmor %vm1449_vm8, %vm1450_vm6 }
 0x22b   :  { %1672 = vmatpush.msra.mxu0 %v6708_v50  ;;  %1712 = vmatpush.msrb.mxu2 %v6711_v37 }
 0x22c   :  { %v1447_v47 = vmul.f32 %v6697_v3, %v1446_v1  ;;  %vm1473_vm10 = vcmp.eq.f32.partialorder %v1472_v13, 8.507059e+37  ;;  %v6800_v13 = vld [vmem:[#allocation9 + $0xe0] sm:$0xff] }
 0x22d   :  { %1673 = vmatpush.msra.mxu0 %v6714_v23  ;;  %1713 = vmatpush.msrb.mxu2 %v6717_v28 }
 0x22e   :  { %v4603_v53 = vpop.eup %4602  ;;  %1606 = vmatmul.f32.vlgmr.msrb.gmra.mxu0 %v6685_v34  ;;  %1646 = vmatmul.f32.vlgmr.msra.gmra.mxu2 %v6685_v34  ;;  %v1448_v0 = vadd.f32 %v6697_v3, %v1447_v47 }
 0x22f   :  { %v1464_v31 = vmul.f32 %v4603_v53, %v6687_v9  ;;  %1674 = vmatpush.msra.mxu0 %v6723_v61  ;;  %1714 = vmatpush.msrb.mxu2 %v6726_v7  ;;  %vm1469_vm4 = vweird.f32 %v4603_v53  ;;  %v1453_v9 = vand.u32 2147483647, %v6682_v5 }
 0x230   :  { %vm6755_vm7 = vmor %vm1468_vm5, %vm1469_vm4 }
 0x231   :  { %v1465_v42 = vsub.f32 1.0, %v1464_v31  ;;  %1675 = vmatpush.msra.mxu0 %v6729_v12  ;;  %1715 = vmatpush.msrb.mxu2 %v6732_v32  ;;  %v1323_v35 = vpop.f32.mrf.mxu1  ;;  %v1455_v31 = vand.u32 2147483648, %v6682_v5  ;;  %v6781_v5 = vld [vmem:[#allocation9 + $0x1a8] sm:$0xff]  ;;  %vm1454_vm11 = vcmp.eq.f32.partialorder %v1453_v9, 8.507059e+37  ;;  %v6808_v9 = vld [vmem:[#allocation9 + $0xa0] sm:$0xff] }
 0x232   :  { %v1324_v39 = vadd.f32 %v1323_v35, %v1303_v57  ;;  %v6763_v57 = vld [vmem:[#allocation9 + $0x1e8] sm:$0xff]  ;;  %v1343_v35 = vpop.f32.mrf.mxu2  ;;  %10244 = vst [vmem:[#allocation84_spill] sm:$0xff] %v6781_v5 }
 0x233   :  { %v1466_v63 = vmul.f32 %v4603_v53, %v1465_v42  ;;  %1676 = vmatpush.msra.mxu0 %v6738_v6  ;;  %1716 = vmatpush.msrb.mxu2 %v6741_v43  ;;  %v6760_v42 = vld [vmem:[#allocation9 + $0x1e0] sm:$0xff]  ;;  %10238 = vst [vmem:[#allocation82_spill] sm:$0xff] %v6763_v57 }
 0x234   :  { %v1380_v44 = vadd.f32 %v1324_v39, %v536_v21  ;;  %10237 = vst [vmem:[#allocation81_spill] sm:$0xff] %v6760_v42  ;;  %v10239_v21 = vld [vmem:[#allocation98_spill] sm:$0xff] }
 0x235   :  { %v1467_v25 = vadd.f32 %v4603_v53, %v1466_v63  ;;  %1677 = vmatpush.msra.mxu0 %v6745_v62  ;;  %1717 = vmatpush.msrb.mxu2 %v6748_v22  ;;  %v10240_v63 = vld [vmem:[#allocation90_spill] sm:$0xff] }
 0x236   :  { %4604 = vtanh.f32 %v1380_v44  ;;  %v577_v39 = vadd.f32 %v10240_v63, %v10239_v21  ;;  %v1475_v44 = vor.u32 1.1754944e-38, %v1474_v46  ;;  %v1456_v46 = vor.u32 1.1754944e-38, %v1455_v31  ;;  %v6787_v63 = vld [vmem:[#allocation9 + $0x160] sm:$0xff]  ;;  %v6803_v31 = vld [vmem:[#allocation9 + $0xe8] sm:$0xff] }
 0x237   :  { %1678 = vmatpush.msra.mxu0 %v6760_v42  ;;  %1718 = vmatpush.msrb.mxu2 %v6763_v57  ;;  %v1471_v47 = vsel %vm6755_vm7, %v4603_v53, %v1467_v25  ;;  %v6778_v42 = vld [vmem:[#allocation9 + $0x1a0] sm:$0xff]  ;;  %v1452_v53 = vsel %vm6774_vm9, %v6697_v3, %v1448_v0 }
 0x238   :  { %v1363_v52 = vpop.f32.mrf.mxu3  ;;  %10243 = vst [vmem:[#allocation83_spill] sm:$0xff] %v6778_v42  ;;  %v1476_v25 = vsel %vm1473_vm10, %v1475_v44, %v1471_v47  ;;  %v1457_v21 = vsel %vm1454_vm11, %v1456_v46, %v1452_v53  ;;  %v6811_v47 = vld [vmem:[#allocation9 + $0xa8] sm:$0xff]  ;;  %v6820_v44 = vld [vmem:[#allocation9 + $0x20] sm:$0xff]  ;;  %v6828_v46 = vld [vmem:[#allocation9 + $0x3f0] sm:$0xff] }
 0x239   :  { %v1364_v57 = vadd.f32 %v1363_v52, %v1343_v35  ;;  %1679 = vmatpush.msra.mxu0 %v6778_v42  ;;  %1719 = vmatpush.msrb.mxu2 %v6781_v5  ;;  %v6790_v35 = vld [vmem:[#allocation9 + $0x168] sm:$0xff]  ;;  %v6793_v42 = vld [vmem:[#allocation9 + $0x120] sm:$0xff]  ;;  %v1501_v3 = vmul.f32 %v1476_v25, %v6397_v27  ;;  %10245 = vst [vmem:[#allocation85_spill] sm:$0xff] %v6811_v47  ;;  %v6831_v25 = vld [vmem:[#allocation9 + $0x3f8] sm:$0xff] }
 0x23a   :  { %v6814_v27 = vld [vmem:[#allocation9 + $0x60] sm:$0xff]  ;;  %10248 = vst [vmem:[#allocation88_spill] sm:$0xff] %v6820_v44 }
 0x23b   :  { %v1381_v1 = vadd.f32 %v1364_v57, %v577_v39  ;;  %1680 = vmatpush.msra.mxu0 %v6787_v63  ;;  %1720 = vmatpush.msrb.mxu2 %v6790_v35  ;;  %10246 = vst [vmem:[#allocation86_spill] sm:$0xff] %v6814_v27 }
 0x23c   :  { %v4605_v52 = vpop.eup %4604  ;;  %10250 = vst [vmem:[#allocation92_spill] sm:$0xff] %v6828_v46 }
 0x23d   :  { %v4468_v5 = vmul.f32 -1.442695, %v1381_v1  ;;  %1681 = vmatpush.msra.mxu0 %v6793_v42  ;;  %1721 = vmatpush.msrb.mxu2 %v6796_v15  ;;  %v1502_v0 = vmul.f32 %v4605_v52, %v1457_v21  ;;  %v6817_v21 = vld [vmem:[#allocation9 + $0x68] sm:$0xff]  ;;  %10251 = vst [vmem:[#allocation93_spill] sm:$0xff] %v6831_v25  ;;  %v6834_v1 = vld [vmem:[#allocation9 + $0x3b0] sm:$0xff]  ;;  %v6837_v52 = vld [vmem:[#allocation9 + $0x3b8] sm:$0xff] }
 0x23e   :  { %10247 = vst [vmem:[#allocation87_spill] sm:$0xff] %v6817_v21 }
 0x23f   :  { %4606 = vpow2.f32 %v4468_v5  ;;  %1682 = vmatpush.msra.mxu0 %v6800_v13  ;;  %1722 = vmatpush.msrb.mxu2 %v6803_v31  ;;  %v6806_v57 = vadd.f32 %v1502_v0, %v1501_v3  ;;  %v6823_v5 = vld [vmem:[#allocation9 + $0x28] sm:$0xff]  ;;  %10252 = vst [vmem:[#allocation94_spill] sm:$0xff] %v6834_v1  ;;  %v6840_v3 = vld [vmem:[#allocation9 + $0x370] sm:$0xff]  ;;  %v6843_v0 = vld [vmem:[#allocation9 + $0x378] sm:$0xff] }
 0x240   :  { %10249 = vst [vmem:[#allocation91_spill] sm:$0xff] %v6823_v5 }
 0x241   :  { %1683 = vmatpush.msra.mxu0 %v6808_v9  ;;  %1723 = vmatpush.msrb.mxu2 %v6811_v47  ;;  %10253 = vst [vmem:[#allocation95_spill] sm:$0xff] %v6837_v52  ;;  %v6877_v47 = vld [vmem:[#allocation9 + $0x1f0] sm:$0xff] }
 0x242   :  { %10254 = vst [vmem:[#allocation96_spill] sm:$0xff] %v6840_v3 }
 0x243   :  { %1684 = vmatpush.msra.mxu0 %v6814_v27  ;;  %1724 = vmatpush.msrb.mxu2 %v6817_v21  ;;  %10255 = vst [vmem:[#allocation97_spill] sm:$0xff] %v6843_v0 }
 0x245   :  { %v4607_v39 = vpop.eup %4606  ;;  %1685 = vmatpush.msra.mxu0 %v6820_v44  ;;  %1725 = vmatpush.msrb.mxu2 %v6823_v5  ;;  %v6852_v5 = vld [vmem:[#allocation9 + $0x2f0] sm:$0xff] }
 0x246   :  { %v1482_v53 = vadd.f32 1.0, %v4607_v39  ;;  %1686 = vmatmul.f32.vlgmr.msra.gmra.mxu0 %v6685_v34  ;;  %1726 = vmatmul.f32.vlgmr.msrb.gmra.mxu2 %v6685_v34  ;;  %v6846_v39 = vld [vmem:[#allocation9 + $0x330] sm:$0xff]  ;;  %10258 = vst [vmem:[#allocation26_spill] sm:$0xff] %v6852_v5 }
 0x247   :  { %1750 = vmatpush.msrb.mxu0 %v6828_v46  ;;  %1790 = vmatpush.msra.mxu2 %v6831_v25  ;;  %10256 = vst [vmem:[#allocation100_spill] sm:$0xff] %v6846_v39  ;;  %v6849_v25 = vld [vmem:[#allocation9 + $0x338] sm:$0xff] }
 0x248   :  { %4608 = vrcp.f32 %v1482_v53  ;;  %10257 = vst [vmem:[#allocation101_spill] sm:$0xff] %v6849_v25  ;;  %v1492_v21 = vand.u32 2147483647, %v1482_v53  ;;  %vm1488_vm13 = vweird.f32 %v1482_v53 }
 0x249   :  { %1751 = vmatpush.msrb.mxu0 %v6834_v1  ;;  %1791 = vmatpush.msra.mxu2 %v6837_v52  ;;  %v6855_v52 = vld [vmem:[#allocation9 + $0x2f8] sm:$0xff]  ;;  %4610 = vtanh.f32 %v6806_v57 }
 0x24a   :  { %10259 = vst [vmem:[#allocation102_spill] sm:$0xff] %v6855_v52  ;;  %vm1493_vm15 = vcmp.eq.f32.partialorder %v1492_v21, 8.507059e+37  ;;  %v6895_v21 = vld [vmem:[#allocation9 + $0x170] sm:$0xff] }
 0x24b   :  { %1752 = vmatpush.msrb.mxu0 %v6840_v3  ;;  %1792 = vmatpush.msra.mxu2 %v6843_v0  ;;  %v6858_v0 = vld [vmem:[#allocation9 + $0x2b0] sm:$0xff] }
 0x24c   :  { %10260 = vst [vmem:[#allocation103_spill] sm:$0xff] %v6858_v0 }
 0x24d   :  { %1753 = vmatpush.msrb.mxu0 %v6846_v39  ;;  %1793 = vmatpush.msra.mxu2 %v6849_v25  ;;  %v6861_v39 = vld [vmem:[#allocation9 + $0x2b8] sm:$0xff]  ;;  %v1494_v25 = vand.u32 2147483648, %v1482_v53 }
 0x24e   :  { %v4609_v1 = vpop.eup %4608  ;;  %10261 = vst [vmem:[#allocation27_spill] sm:$0xff] %v6861_v39 }
 0x24f   :  { %v1484_v46 = vmul.f32 %v4609_v1, %v1482_v53  ;;  %1754 = vmatpush.msrb.mxu0 %v6852_v5  ;;  %1794 = vmatpush.msra.mxu2 %v6855_v52  ;;  %vm1489_vm12 = vweird.f32 %v4609_v1  ;;  %v6865_v5 = vld [vmem:[#allocation9 + $0x270] sm:$0xff]  ;;  %v6868_v52 = vld [vmem:[#allocation9 + $0x278] sm:$0xff] }
 0x250   :  { %10262 = vst [vmem:[#allocation37_spill] sm:$0xff] %v6865_v5  ;;  %vm1490_vm14 = vmor %vm1488_vm13, %vm1489_vm12 }
 0x251   :  { %v1485_v3 = vsub.f32 1.0, %v1484_v46  ;;  %1755 = vmatpush.msrb.mxu0 %v6858_v0  ;;  %1795 = vmatpush.msra.mxu2 %v6861_v39  ;;  %10263 = vst [vmem:[#allocation36_spill] sm:$0xff] %v6868_v52  ;;  %v6871_v0 = vld [vmem:[#allocation9 + $0x230] sm:$0xff]  ;;  %v6874_v39 = vld [vmem:[#allocation9 + $0x238] sm:$0xff] }
 0x252   :  { %10264 = vst [vmem:[#allocation72_spill] sm:$0xff] %v6871_v0 }
 0x253   :  { %v1486_v44 = vmul.f32 %v4609_v1, %v1485_v3  ;;  %1756 = vmatpush.msrb.mxu0 %v6865_v5  ;;  %1796 = vmatpush.msra.mxu2 %v6868_v52  ;;  %10265 = vst [vmem:[#allocation68_spill] sm:$0xff] %v6874_v39  ;;  %v1495_v3 = vor.u32 1.1754944e-38, %v1494_v25  ;;  %v6880_v5 = vld [vmem:[#allocation9 + $0x1f8] sm:$0xff]  ;;  %v6903_v25 = vld [vmem:[#allocation9 + $0x130] sm:$0xff] }
 0x255   :  { %v1487_v46 = vadd.f32 %v4609_v1, %v1486_v44  ;;  %1757 = vmatpush.msrb.mxu0 %v6871_v0  ;;  %1797 = vmatpush.msra.mxu2 %v6874_v39  ;;  %v4611_v44 = vpop.eup %4610  ;;  %v6885_v0 = vld [vmem:[#allocation9 + $0x1b0] sm:$0xff]  ;;  %v6888_v39 = vld [vmem:[#allocation9 + $0x1b8] sm:$0xff] }
 0x257   :  { %v1491_v27 = vsel %vm1490_vm14, %v4609_v1, %v1487_v46  ;;  %1758 = vmatpush.msrb.mxu0 %v6877_v47  ;;  %1798 = vmatpush.msra.mxu2 %v6880_v5  ;;  %v6906_v1 = vld [vmem:[#allocation9 + $0x138] sm:$0xff]  ;;  %v6929_v46 = vld [vmem:[#allocation9 + $0x70] sm:$0xff] }
 0x258   :  { %v1496_v53 = vsel %vm1493_vm15, %v1495_v3, %v1491_v27  ;;  %v6898_v27 = vld [vmem:[#allocation9 + $0x178] sm:$0xff]  ;;  %10270 = vst [vmem:[#allocation42_spill] sm:$0xff] %v6929_v46  ;;  %v6937_v3 = vld [vmem:[#allocation9 + $0x30] sm:$0xff] }
 0x259   :  { %v6883_v52 = vmul.f32 %v4611_v44, %v1496_v53  ;;  %1759 = vmatpush.msrb.mxu0 %v6885_v0  ;;  %1799 = vmatpush.msra.mxu2 %v6888_v39  ;;  %10273 = vst [vmem:[#allocation90_spill] sm:$0xff] %v6937_v3  ;;  %v6940_v44 = vld [vmem:[#allocation9 + $0x38] sm:$0xff] }
 0x25a   :  { %v10275_v53 = vld [vmem:[#allocation108_spill] sm:$0xff] }
 0x25b   :  { %10266 = vst [vmem:[#allocation73_spill] sm:$0xff] %v6883_v52  ;;  %1546 = vmatmul.f32.vlgmr.msra.gmra.mxu1 %v6883_v52  ;;  %1586 = vmatmul.f32.vlgmr.msrb.gmra.mxu3 %v6883_v52 }
 0x25c   :  { %1690 = vmatpush.msra.mxu1 %v6402_v20  ;;  %1730 = vmatpush.msrb.mxu3 %v6404_v16  ;;  %v6911_v20 = vld [vmem:[#allocation9 + $0xf0] sm:$0xff]  ;;  %v6914_v16 = vld [vmem:[#allocation9 + $0xf8] sm:$0xff] }
 0x25d   :  { %1760 = vmatpush.msrb.mxu0 %v6895_v21  ;;  %1800 = vmatpush.msra.mxu2 %v6898_v27 }
 0x25e   :  { %1691 = vmatpush.msra.mxu1 %v6408_v19  ;;  %1731 = vmatpush.msrb.mxu3 %v6410_v58  ;;  %v6919_v19 = vld [vmem:[#allocation9 + $0xb0] sm:$0xff]  ;;  %v6922_v58 = vld [vmem:[#allocation9 + $0xb8] sm:$0xff] }
 0x25f   :  { %1761 = vmatpush.msrb.mxu0 %v6903_v25  ;;  %1801 = vmatpush.msra.mxu2 %v6906_v1  ;;  %10267 = vst [vmem:[#allocation69_spill] sm:$0xff] %v6922_v58 }
 0x260   :  { %1692 = vmatpush.msra.mxu1 %v6414_v41  ;;  %1732 = vmatpush.msrb.mxu3 %v6416_v40  ;;  %v10268_v41 = vld [vmem:[#allocation105_spill] sm:$0xff]  ;;  %v10269_v40 = vld [vmem:[#allocation106_spill] sm:$0xff] }
 0x261   :  { %1762 = vmatpush.msrb.mxu0 %v6911_v20  ;;  %1802 = vmatpush.msra.mxu2 %v6914_v16  ;;  %10274 = vst [vmem:[#allocation105_spill] sm:$0xff] %v6940_v44 }
 0x262   :  { %1693 = vmatpush.msra.mxu1 %v6420_v36  ;;  %1733 = vmatpush.msrb.mxu3 %v6422_v51  ;;  %v6932_v36 = vld [vmem:[#allocation9 + $0x78] sm:$0xff]  ;;  %v10272_v51 = vld [vmem:[#allocation107_spill] sm:$0xff] }
 0x263   :  { %1763 = vmatpush.msrb.mxu0 %v6919_v19  ;;  %1803 = vmatpush.msra.mxu2 %v6922_v58  ;;  %10271 = vst [vmem:[#allocation89_spill] sm:$0xff] %v6932_v36 }
 0x264   :  { %1626 = vmatmul.f32.vlgmr.msrb.gmra.mxu1 %v6883_v52  ;;  %1666 = vmatmul.f32.vlgmr.msra.gmra.mxu3 %v6883_v52 }
 0x265   :  { %1694 = vmatpush.msra.mxu1 %v10268_v41  ;;  %1734 = vmatpush.msrb.mxu3 %v10269_v40  ;;  %v10276_v41 = vld [vmem:[#allocation109_spill] sm:$0xff] }
 0x266   :  { %1764 = vmatpush.msrb.mxu0 %v6929_v46  ;;  %1804 = vmatpush.msra.mxu2 %v6932_v36  ;;  %v6947_v40 = vld [vmem:[#allocation9 + $0x3c0] sm:$0xff] }
 0x267   :  { %1695 = vmatpush.msra.mxu1 %v6434_v59  ;;  %1735 = vmatpush.msrb.mxu3 %v10272_v51  ;;  %10277 = vst [vmem:[#allocation106_spill] sm:$0xff] %v6947_v40  ;;  %v6950_v59 = vld [vmem:[#allocation9 + $0x3c8] sm:$0xff] }
 0x268   :  { %1765 = vmatpush.msrb.mxu0 %v6937_v3  ;;  %1805 = vmatpush.msra.mxu2 %v6940_v44  ;;  %10278 = vst [vmem:[#allocation107_spill] sm:$0xff] %v6950_v59  ;;  %v10279_v51 = vld [vmem:[#allocation110_spill] sm:$0xff]  ;;  %v10280_v3 = vld [vmem:[#allocation111_spill] sm:$0xff]  ;;  %v6955_v44 = vld [vmem:[#allocation9 + $0x380] sm:$0xff] }
 0x269   :  { %1766 = vmatmul.f32.vlgmr.msrb.gmra.mxu0 %v6685_v34  ;;  %1806 = vmatmul.f32.vlgmr.msra.gmra.mxu2 %v6685_v34  ;;  %10281 = vst [vmem:[#allocation108_spill] sm:$0xff] %v6955_v44  ;;  %v6958_v34 = vld [vmem:[#allocation9 + $0x388] sm:$0xff] }
 0x26a   :  { %1696 = vmatpush.msra.mxu1 %v10275_v53  ;;  %1736 = vmatpush.msrb.mxu3 %v10276_v41  ;;  %10282 = vst [vmem:[#allocation109_spill] sm:$0xff] %v6958_v34  ;;  %v10283_v53 = vld [vmem:[#allocation112_spill] sm:$0xff]  ;;  %v10284_v41 = vld [vmem:[#allocation113_spill] sm:$0xff] }
 0x26b   :  { %1974 = vmatpush.msra.mxu0 %v6947_v40  ;;  %2014 = vmatpush.msrb.mxu2 %v6950_v59  ;;  %v6963_v40 = vld [vmem:[#allocation9 + $0x340] sm:$0xff]  ;;  %v6966_v59 = vld [vmem:[#allocation9 + $0x348] sm:$0xff] }
 0x26c   :  { %1697 = vmatpush.msra.mxu1 %v10279_v51  ;;  %1737 = vmatpush.msrb.mxu3 %v10280_v3  ;;  %10285 = vst [vmem:[#allocation110_spill] sm:$0xff] %v6963_v40  ;;  %v10287_v3 = vld [vmem:[#allocation114_spill] sm:$0xff]  ;;  %v10288_v51 = vld [vmem:[#allocation115_spill] sm:$0xff] }
 0x26d   :  { %1975 = vmatpush.msra.mxu0 %v6955_v44  ;;  %2015 = vmatpush.msrb.mxu2 %v6958_v34  ;;  %10286 = vst [vmem:[#allocation111_spill] sm:$0xff] %v6966_v59  ;;  %v6971_v44 = vld [vmem:[#allocation9 + $0x300] sm:$0xff]  ;;  %v6974_v34 = vld [vmem:[#allocation9 + $0x308] sm:$0xff] }
 0x26e   :  { %1698 = vmatpush.msra.mxu1 %v10283_v53  ;;  %1738 = vmatpush.msrb.mxu3 %v10284_v41  ;;  %10289 = vst [vmem:[#allocation112_spill] sm:$0xff] %v6971_v44  ;;  %v10291_v53 = vld [vmem:[#allocation116_spill] sm:$0xff]  ;;  %v10292_v41 = vld [vmem:[#allocation117_spill] sm:$0xff] }
 0x26f   :  { %1976 = vmatpush.msra.mxu0 %v6963_v40  ;;  %2016 = vmatpush.msrb.mxu2 %v6966_v59  ;;  %10290 = vst [vmem:[#allocation113_spill] sm:$0xff] %v6974_v34  ;;  %v6979_v40 = vld [vmem:[#allocation9 + $0x2c0] sm:$0xff]  ;;  %v6982_v59 = vld [vmem:[#allocation9 + $0x2c8] sm:$0xff] }
 0x270   :  { %1699 = vmatpush.msra.mxu1 %v10287_v3  ;;  %1739 = vmatpush.msrb.mxu3 %v10288_v51  ;;  %10293 = vst [vmem:[#allocation114_spill] sm:$0xff] %v6979_v40  ;;  %v10295_v3 = vld [vmem:[#allocation118_spill] sm:$0xff]  ;;  %v10296_v51 = vld [vmem:[#allocation119_spill] sm:$0xff] }
 0x271   :  { %1977 = vmatpush.msra.mxu0 %v6971_v44  ;;  %2017 = vmatpush.msrb.mxu2 %v6974_v34  ;;  %10294 = vst [vmem:[#allocation115_spill] sm:$0xff] %v6982_v59  ;;  %v6987_v44 = vld [vmem:[#allocation9 + $0x280] sm:$0xff]  ;;  %v6990_v34 = vld [vmem:[#allocation9 + $0x288] sm:$0xff] }
 0x272   :  { %1700 = vmatpush.msra.mxu1 %v10291_v53  ;;  %1740 = vmatpush.msrb.mxu3 %v10292_v41  ;;  %10297 = vst [vmem:[#allocation116_spill] sm:$0xff] %v6987_v44  ;;  %v10299_v53 = vld [vmem:[#allocation120_spill] sm:$0xff]  ;;  %v10300_v41 = vld [vmem:[#allocation121_spill] sm:$0xff] }
 0x273   :  { %1978 = vmatpush.msra.mxu0 %v6979_v40  ;;  %2018 = vmatpush.msrb.mxu2 %v6982_v59  ;;  %10298 = vst [vmem:[#allocation117_spill] sm:$0xff] %v6990_v34  ;;  %v6995_v40 = vld [vmem:[#allocation9 + $0x240] sm:$0xff]  ;;  %v6998_v59 = vld [vmem:[#allocation9 + $0x248] sm:$0xff] }
 0x274   :  { %1701 = vmatpush.msra.mxu1 %v10295_v3  ;;  %1741 = vmatpush.msrb.mxu3 %v10296_v51  ;;  %10301 = vst [vmem:[#allocation118_spill] sm:$0xff] %v6995_v40  ;;  %v10303_v3 = vld [vmem:[#allocation122_spill] sm:$0xff]  ;;  %v10304_v51 = vld [vmem:[#allocation123_spill] sm:$0xff] }
 0x275   :  { %1979 = vmatpush.msra.mxu0 %v6987_v44  ;;  %2019 = vmatpush.msrb.mxu2 %v6990_v34  ;;  %10302 = vst [vmem:[#allocation119_spill] sm:$0xff] %v6998_v59  ;;  %v7003_v44 = vld [vmem:[#allocation9 + $0x200] sm:$0xff]  ;;  %v7006_v34 = vld [vmem:[#allocation9 + $0x208] sm:$0xff] }
 0x276   :  { %1702 = vmatpush.msra.mxu1 %v10299_v53  ;;  %1742 = vmatpush.msrb.mxu3 %v10300_v41  ;;  %10305 = vst [vmem:[#allocation120_spill] sm:$0xff] %v7003_v44  ;;  %v10307_v53 = vld [vmem:[#allocation124_spill] sm:$0xff]  ;;  %v10308_v41 = vld [vmem:[#allocation125_spill] sm:$0xff] }
 0x277   :  { %1980 = vmatpush.msra.mxu0 %v6995_v40  ;;  %2020 = vmatpush.msrb.mxu2 %v6998_v59  ;;  %10306 = vst [vmem:[#allocation121_spill] sm:$0xff] %v7006_v34  ;;  %v7011_v40 = vld [vmem:[#allocation9 + $0x1c0] sm:$0xff]  ;;  %v7014_v59 = vld [vmem:[#allocation9 + $0x1c8] sm:$0xff] }
 0x278   :  { %1703 = vmatpush.msra.mxu1 %v10303_v3  ;;  %1743 = vmatpush.msrb.mxu3 %v10304_v51  ;;  %10309 = vst [vmem:[#allocation122_spill] sm:$0xff] %v7011_v40  ;;  %v10311_v3 = vld [vmem:[#allocation126_spill] sm:$0xff]  ;;  %v10312_v51 = vld [vmem:[#allocation127_spill] sm:$0xff] }
 0x279   :  { %1981 = vmatpush.msra.mxu0 %v7003_v44  ;;  %2021 = vmatpush.msrb.mxu2 %v7006_v34  ;;  %10310 = vst [vmem:[#allocation123_spill] sm:$0xff] %v7014_v59  ;;  %v10313_v34 = vld [vmem:[#allocation128_spill] sm:$0xff]  ;;  %v7034_v44 = vld [vmem:[#allocation9 + $0x148] sm:$0xff] }
 0x27a   :  { %1704 = vmatpush.msra.mxu1 %v10307_v53  ;;  %1744 = vmatpush.msrb.mxu3 %v10308_v41  ;;  %v10314_v53 = vld [vmem:[#allocation129_spill] sm:$0xff]  ;;  %10320 = vst [vmem:[#allocation127_spill] sm:$0xff] %v7034_v44 }
 0x27b   :  { %1982 = vmatpush.msra.mxu0 %v7011_v40  ;;  %2022 = vmatpush.msrb.mxu2 %v7014_v59  ;;  %v7023_v41 = vld [vmem:[#allocation9 + $0x180] sm:$0xff]  ;;  %v7026_v40 = vld [vmem:[#allocation9 + $0x188] sm:$0xff] }
 0x27c   :  { %1705 = vmatpush.msra.mxu1 %v10311_v3  ;;  %1745 = vmatpush.msrb.mxu3 %v10312_v51  ;;  %10315 = vst [vmem:[#allocation124_spill] sm:$0xff] %v7023_v41  ;;  %v10317_v59 = vld [vmem:[#allocation130_spill] sm:$0xff]  ;;  %v10318_v3 = vld [vmem:[#allocation131_spill] sm:$0xff]  ;;  %v7031_v51 = vld [vmem:[#allocation9 + $0x140] sm:$0xff] }
 0x27d   :  { %1706 = vmatmul.f32.vlgmr.msra.gmra.mxu1 %v6883_v52  ;;  %1746 = vmatmul.f32.vlgmr.msrb.gmra.mxu3 %v6883_v52  ;;  %10316 = vst [vmem:[#allocation125_spill] sm:$0xff] %v7026_v40 }
 0x27e   :  { %1770 = vmatpush.msrb.mxu1 %v10313_v34  ;;  %1810 = vmatpush.msra.mxu3 %v10314_v53  ;;  %10319 = vst [vmem:[#allocation126_spill] sm:$0xff] %v7031_v51  ;;  %v10321_v34 = vld [vmem:[#allocation132_spill] sm:$0xff]  ;;  %v10322_v53 = vld [vmem:[#allocation133_spill] sm:$0xff] }
 0x27f   :  { %1983 = vmatpush.msra.mxu0 %v7023_v41  ;;  %2023 = vmatpush.msrb.mxu2 %v7026_v40  ;;  %v7039_v41 = vld [vmem:[#allocation9 + $0x100] sm:$0xff]  ;;  %v7042_v40 = vld [vmem:[#allocation9 + $0x108] sm:$0xff] }
 0x280   :  { %1771 = vmatpush.msrb.mxu1 %v10317_v59  ;;  %1811 = vmatpush.msra.mxu3 %v10318_v3  ;;  %10323 = vst [vmem:[#allocation128_spill] sm:$0xff] %v7039_v41  ;;  %v10325_v59 = vld [vmem:[#allocation134_spill] sm:$0xff]  ;;  %v10326_v3 = vld [vmem:[#allocation135_spill] sm:$0xff] }
 0x281   :  { %1984 = vmatpush.msra.mxu0 %v7031_v51  ;;  %2024 = vmatpush.msrb.mxu2 %v7034_v44  ;;  %10324 = vst [vmem:[#allocation129_spill] sm:$0xff] %v7042_v40  ;;  %v7047_v51 = vld [vmem:[#allocation9 + $0xc0] sm:$0xff]  ;;  %v7050_v44 = vld [vmem:[#allocation9 + $0xc8] sm:$0xff] }
 0x282   :  { %1772 = vmatpush.msrb.mxu1 %v10321_v34  ;;  %1812 = vmatpush.msra.mxu3 %v10322_v53  ;;  %10327 = vst [vmem:[#allocation130_spill] sm:$0xff] %v7047_v51  ;;  %v10329_v34 = vld [vmem:[#allocation136_spill] sm:$0xff]  ;;  %v10330_v53 = vld [vmem:[#allocation137_spill] sm:$0xff] }
 0x283   :  { %1985 = vmatpush.msra.mxu0 %v7039_v41  ;;  %2025 = vmatpush.msrb.mxu2 %v7042_v40  ;;  %10328 = vst [vmem:[#allocation131_spill] sm:$0xff] %v7050_v44  ;;  %v7055_v41 = vld [vmem:[#allocation9 + $0x80] sm:$0xff]  ;;  %v7058_v40 = vld [vmem:[#allocation9 + $0x88] sm:$0xff] }
 0x284   :  { %1773 = vmatpush.msrb.mxu1 %v10325_v59  ;;  %1813 = vmatpush.msra.mxu3 %v10326_v3  ;;  %10331 = vst [vmem:[#allocation132_spill] sm:$0xff] %v7055_v41  ;;  %v10333_v59 = vld [vmem:[#allocation138_spill] sm:$0xff]  ;;  %v10334_v3 = vld [vmem:[#allocation139_spill] sm:$0xff] }
 0x285   :  { %1986 = vmatpush.msra.mxu0 %v7047_v51  ;;  %2026 = vmatpush.msrb.mxu2 %v7050_v44  ;;  %10332 = vst [vmem:[#allocation133_spill] sm:$0xff] %v7058_v40  ;;  %v7063_v51 = vld [vmem:[#allocation9 + $0x40] sm:$0xff]  ;;  %v7066_v44 = vld [vmem:[#allocation9 + $0x48] sm:$0xff] }
 0x286   :  { %1774 = vmatpush.msrb.mxu1 %v10329_v34  ;;  %1814 = vmatpush.msra.mxu3 %v10330_v53  ;;  %10335 = vst [vmem:[#allocation134_spill] sm:$0xff] %v7063_v51  ;;  %v10337_v34 = vld [vmem:[#allocation140_spill] sm:$0xff]  ;;  %v10338_v53 = vld [vmem:[#allocation141_spill] sm:$0xff] }
 0x287   :  { %1987 = vmatpush.msra.mxu0 %v7055_v41  ;;  %2027 = vmatpush.msrb.mxu2 %v7058_v40  ;;  %10336 = vst [vmem:[#allocation135_spill] sm:$0xff] %v7066_v44  ;;  %v7071_v41 = vld [vmem:[#allocation9] sm:$0xff]  ;;  %v7074_v40 = vld [vmem:[#allocation9 + $0x8] sm:$0xff] }
 0x288   :  { %1775 = vmatpush.msrb.mxu1 %v10333_v59  ;;  %1815 = vmatpush.msra.mxu3 %v10334_v3  ;;  %10339 = vst [vmem:[#allocation136_spill] sm:$0xff] %v7071_v41  ;;  %v10341_v59 = vld [vmem:[#allocation142_spill] sm:$0xff]  ;;  %v10342_v3 = vld [vmem:[#allocation143_spill] sm:$0xff] }
 0x289   :  { %1988 = vmatpush.msra.mxu0 %v7063_v51  ;;  %2028 = vmatpush.msrb.mxu2 %v7066_v44  ;;  %10340 = vst [vmem:[#allocation137_spill] sm:$0xff] %v7074_v40  ;;  %v7079_v51 = vld [vmem:[#allocation9 + $0x3d0] sm:$0xff]  ;;  %v7082_v44 = vld [vmem:[#allocation9 + $0x3d8] sm:$0xff] }
 0x28a   :  { %1776 = vmatpush.msrb.mxu1 %v10337_v34  ;;  %1816 = vmatpush.msra.mxu3 %v10338_v53  ;;  %10343 = vst [vmem:[#allocation138_spill] sm:$0xff] %v7079_v51  ;;  %v10345_v34 = vld [vmem:[#allocation144_spill] sm:$0xff]  ;;  %v10346_v53 = vld [vmem:[#allocation145_spill] sm:$0xff] }
 0x28b   :  { %1989 = vmatpush.msra.mxu0 %v7071_v41  ;;  %2029 = vmatpush.msrb.mxu2 %v7074_v40  ;;  %10344 = vst [vmem:[#allocation139_spill] sm:$0xff] %v7082_v44  ;;  %v7087_v41 = vld [vmem:[#allocation9 + $0x390] sm:$0xff]  ;;  %v7090_v40 = vld [vmem:[#allocation9 + $0x398] sm:$0xff] }
 0x28c   :  { %1777 = vmatpush.msrb.mxu1 %v10341_v59  ;;  %1817 = vmatpush.msra.mxu3 %v10342_v3  ;;  %10347 = vst [vmem:[#allocation140_spill] sm:$0xff] %v7087_v41  ;;  %v10349_v59 = vld [vmem:[#allocation146_spill] sm:$0xff]  ;;  %v10350_v3 = vld [vmem:[#allocation147_spill] sm:$0xff] }
 0x28d   :  { %2054 = vmatpush.msrb.mxu0 %v7079_v51  ;;  %2094 = vmatpush.msra.mxu2 %v7082_v44  ;;  %10348 = vst [vmem:[#allocation141_spill] sm:$0xff] %v7090_v40  ;;  %v7095_v51 = vld [vmem:[#allocation9 + $0x350] sm:$0xff]  ;;  %v7098_v44 = vld [vmem:[#allocation9 + $0x358] sm:$0xff] }
 0x28e   :  { %1778 = vmatpush.msrb.mxu1 %v10345_v34  ;;  %1818 = vmatpush.msra.mxu3 %v10346_v53  ;;  %10351 = vst [vmem:[#allocation142_spill] sm:$0xff] %v7095_v51  ;;  %v10353_v34 = vld [vmem:[#allocation148_spill] sm:$0xff]  ;;  %v10354_v53 = vld [vmem:[#allocation149_spill] sm:$0xff] }
 0x28f   :  { %2055 = vmatpush.msrb.mxu0 %v7087_v41  ;;  %2095 = vmatpush.msra.mxu2 %v7090_v40  ;;  %10352 = vst [vmem:[#allocation143_spill] sm:$0xff] %v7098_v44  ;;  %v7103_v41 = vld [vmem:[#allocation9 + $0x310] sm:$0xff]  ;;  %v7106_v40 = vld [vmem:[#allocation9 + $0x318] sm:$0xff] }
 0x290   :  { %1779 = vmatpush.msrb.mxu1 %v10349_v59  ;;  %1819 = vmatpush.msra.mxu3 %v10350_v3  ;;  %10355 = vst [vmem:[#allocation144_spill] sm:$0xff] %v7103_v41  ;;  %v10357_v59 = vld [vmem:[#allocation150_spill] sm:$0xff]  ;;  %v7111_v3 = vld [vmem:[#allocation9 + $0x2d0] sm:$0xff] }
 0x291   :  { %2056 = vmatpush.msrb.mxu0 %v7095_v51  ;;  %2096 = vmatpush.msra.mxu2 %v7098_v44  ;;  %10356 = vst [vmem:[#allocation145_spill] sm:$0xff] %v7106_v40  ;;  %v7114_v44 = vld [vmem:[#allocation9 + $0x2d8] sm:$0xff] }
 0x292   :  { %1780 = vmatpush.msrb.mxu1 %v10353_v34  ;;  %1820 = vmatpush.msra.mxu3 %v10354_v53  ;;  %10358 = vst [vmem:[#allocation146_spill] sm:$0xff] %v7111_v3  ;;  %v7119_v34 = vld [vmem:[#allocation9 + $0x290] sm:$0xff]  ;;  %v7122_v53 = vld [vmem:[#allocation9 + $0x298] sm:$0xff] }
 0x293   :  { %2057 = vmatpush.msrb.mxu0 %v7103_v41  ;;  %2097 = vmatpush.msra.mxu2 %v7106_v40  ;;  %10359 = vst [vmem:[#allocation147_spill] sm:$0xff] %v7114_v44 }
 0x294   :  { %1781 = vmatpush.msrb.mxu1 %v10357_v59  ;;  %1821 = vmatpush.msra.mxu3 %v6570_v11  ;;  %10360 = vst [vmem:[#allocation148_spill] sm:$0xff] %v7119_v34  ;;  %v7127_v11 = vld [vmem:[#allocation9 + $0x250] sm:$0xff]  ;;  %v7130_v59 = vld [vmem:[#allocation9 + $0x258] sm:$0xff] }
 0x295   :  { %2058 = vmatpush.msrb.mxu0 %v7111_v3  ;;  %2098 = vmatpush.msra.mxu2 %v7114_v44  ;;  %10361 = vst [vmem:[#allocation149_spill] sm:$0xff] %v7122_v53  ;;  %v10448_v3 = vld [vmem:[#allocation41_spill] sm:$0xff] }
 0x296   :  { %1782 = vmatpush.msrb.mxu1 %v6574_v17  ;;  %1822 = vmatpush.msra.mxu3 %v6576_v45  ;;  %10362 = vst [vmem:[#allocation150_spill] sm:$0xff] %v7127_v11  ;;  %v7135_v45 = vld [vmem:[#allocation9 + $0x210] sm:$0xff]  ;;  %v7138_v17 = vld [vmem:[#allocation9 + $0x218] sm:$0xff] }
 0x297   :  { %2059 = vmatpush.msrb.mxu0 %v7119_v34  ;;  %2099 = vmatpush.msra.mxu2 %v7122_v53  ;;  %10363 = vst [vmem:[#allocation151_spill] sm:$0xff] %v7130_v59 }
 0x298   :  { %1783 = vmatpush.msrb.mxu1 %v6580_v60  ;;  %1823 = vmatpush.msra.mxu3 %v6582_v30  ;;  %10364 = vst [vmem:[#allocation152_spill] sm:$0xff] %v7135_v45  ;;  %v7145_v60 = vld [vmem:[#allocation9 + $0x1d0] sm:$0xff]  ;;  %v7148_v30 = vld [vmem:[#allocation9 + $0x1d8] sm:$0xff] }
 0x299   :  { %2060 = vmatpush.msrb.mxu0 %v7127_v11  ;;  %2100 = vmatpush.msra.mxu2 %v7130_v59  ;;  %10365 = vst [vmem:[#allocation153_spill] sm:$0xff] %v7138_v17  ;;  %v7375_v59 = vld [vmem:[#allocation9 + $0x450] sm:$0xff] }
 0x29a   :  { %1784 = vmatpush.msrb.mxu1 %v6586_v29  ;;  %1824 = vmatpush.msra.mxu3 %v6588_v18  ;;  %10366 = vst [vmem:[#allocation154_spill] sm:$0xff] %v7145_v60  ;;  %v7151_v29 = vld [vmem:[#allocation9 + $0x7c0] sm:$0xff]  ;;  %v7154_v18 = vld [vmem:[#allocation9 + $0x7c8] sm:$0xff]  ;;  %v7381_v11 = vld [vmem:[#allocation9 + $0x410] sm:$0xff] }
 0x29b   :  { %2061 = vmatpush.msrb.mxu0 %v7135_v45  ;;  %2101 = vmatpush.msra.mxu2 %v7138_v17  ;;  %10367 = vst [vmem:[#allocation155_spill] sm:$0xff] %v7148_v30  ;;  %v7367_v17 = vld [vmem:[#allocation9 + $0x490] sm:$0xff] }
 0x29c   :  { %1785 = vmatpush.msrb.mxu1 %v6592_v10  ;;  %1825 = vmatpush.msra.mxu3 %v6594_v14  ;;  %10368 = vst [vmem:[#allocation156_spill] sm:$0xff] %v7151_v29  ;;  %v7157_v10 = vld [vmem:[#allocation9 + $0x190] sm:$0xff]  ;;  %v7160_v14 = vld [vmem:[#allocation9 + $0x198] sm:$0xff] }
 0x29d   :  { %1786 = vmatmul.f32.vlgmr.msrb.gmra.mxu1 %v6883_v52  ;;  %1826 = vmatmul.f32.vlgmr.msra.gmra.mxu3 %v6883_v52  ;;  %10369 = vst [vmem:[#allocation157_spill] sm:$0xff] %v7154_v18  ;;  %v7163_v52 = vld [vmem:[#allocation9 + $0x780] sm:$0xff] }
 0x29e   :  { %2062 = vmatpush.msrb.mxu0 %v7145_v60  ;;  %2102 = vmatpush.msra.mxu2 %v7148_v30  ;;  %10370 = vst [vmem:[#allocation158_spill] sm:$0xff] %v7157_v10  ;;  %v7166_v30 = vld [vmem:[#allocation9 + $0x788] sm:$0xff] }
 0x29f   :  { %1994 = vmatpush.msra.mxu1 %v7151_v29  ;;  %2034 = vmatpush.msrb.mxu3 %v7154_v18  ;;  %10371 = vst [vmem:[#allocation159_spill] sm:$0xff] %v7160_v14  ;;  %v7169_v29 = vld [vmem:[#allocation9 + $0x150] sm:$0xff]  ;;  %v7172_v18 = vld [vmem:[#allocation9 + $0x158] sm:$0xff] }
 0x2a0   :  { %2063 = vmatpush.msrb.mxu0 %v7157_v10  ;;  %2103 = vmatpush.msra.mxu2 %v7160_v14  ;;  %10372 = vst [vmem:[#allocation160_spill] sm:$0xff] %v7163_v52  ;;  %v7175_v10 = vld [vmem:[#allocation9 + $0x740] sm:$0xff]  ;;  %v7178_v14 = vld [vmem:[#allocation9 + $0x748] sm:$0xff] }
 0x2a1   :  { %1995 = vmatpush.msra.mxu1 %v7163_v52  ;;  %10373 = vst [vmem:[#allocation161_spill] sm:$0xff] %v7166_v30  ;;  %2035 = vmatpush.msrb.mxu3 %v7166_v30  ;;  %v7181_v52 = vld [vmem:[#allocation9 + $0x110] sm:$0xff]  ;;  %v7184_v30 = vld [vmem:[#allocation9 + $0x118] sm:$0xff] }
 0x2a2   :  { %10374 = vst [vmem:[#allocation162_spill] sm:$0xff] %v7169_v29  ;;  %2064 = vmatpush.msrb.mxu0 %v7169_v29  ;;  %2104 = vmatpush.msra.mxu2 %v7172_v18  ;;  %v7187_v29 = vld [vmem:[#allocation9 + $0x700] sm:$0xff] }
 0x2a3   :  { %10375 = vst [vmem:[#allocation163_spill] sm:$0xff] %v7172_v18  ;;  %1996 = vmatpush.msra.mxu1 %v7175_v10  ;;  %2036 = vmatpush.msrb.mxu3 %v7178_v14  ;;  %v7190_v18 = vld [vmem:[#allocation9 + $0x708] sm:$0xff] }
 0x2a4   :  { %10376 = vst [vmem:[#allocation164_spill] sm:$0xff] %v7175_v10  ;;  %2065 = vmatpush.msrb.mxu0 %v7181_v52  ;;  %2105 = vmatpush.msra.mxu2 %v7184_v30  ;;  %v7193_v10 = vld [vmem:[#allocation9 + $0xd0] sm:$0xff] }
 0x2a5   :  { %10377 = vst [vmem:[#allocation165_spill] sm:$0xff] %v7178_v14  ;;  %1997 = vmatpush.msra.mxu1 %v7187_v29  ;;  %2037 = vmatpush.msrb.mxu3 %v7190_v18  ;;  %v7196_v14 = vld [vmem:[#allocation9 + $0xd8] sm:$0xff] }
 0x2a6   :  { %10378 = vst [vmem:[#allocation166_spill] sm:$0xff] %v7181_v52  ;;  %2066 = vmatpush.msrb.mxu0 %v7193_v10  ;;  %2106 = vmatpush.msra.mxu2 %v7196_v14  ;;  %v7199_v52 = vld [vmem:[#allocation9 + $0x6c0] sm:$0xff] }
 0x2a7   :  { %10379 = vst [vmem:[#allocation167_spill] sm:$0xff] %v7184_v30  ;;  %1998 = vmatpush.msra.mxu1 %v7199_v52  ;;  %v7202_v30 = vld [vmem:[#allocation9 + $0x6c8] sm:$0xff] }
 0x2a8   :  { %10380 = vst [vmem:[#allocation168_spill] sm:$0xff] %v7187_v29  ;;  %2038 = vmatpush.msrb.mxu3 %v7202_v30  ;;  %v7205_v29 = vld [vmem:[#allocation9 + $0x90] sm:$0xff] }
 0x2a9   :  { %10381 = vst [vmem:[#allocation169_spill] sm:$0xff] %v7190_v18  ;;  %2067 = vmatpush.msrb.mxu0 %v7205_v29  ;;  %v7208_v18 = vld [vmem:[#allocation9 + $0x98] sm:$0xff] }
 0x2aa   :  { %10382 = vst [vmem:[#allocation170_spill] sm:$0xff] %v7193_v10  ;;  %2107 = vmatpush.msra.mxu2 %v7208_v18  ;;  %v7211_v10 = vld [vmem:[#allocation9 + $0x680] sm:$0xff] }
 0x2ab   :  { %10383 = vst [vmem:[#allocation171_spill] sm:$0xff] %v7196_v14  ;;  %1999 = vmatpush.msra.mxu1 %v7211_v10  ;;  %v7214_v14 = vld [vmem:[#allocation9 + $0x688] sm:$0xff] }
 0x2ac   :  { %10384 = vst [vmem:[#allocation172_spill] sm:$0xff] %v7199_v52  ;;  %2039 = vmatpush.msrb.mxu3 %v7214_v14  ;;  %v7217_v52 = vld [vmem:[#allocation9 + $0x50] sm:$0xff] }
 0x2ad   :  { %10385 = vst [vmem:[#allocation173_spill] sm:$0xff] %v7202_v30  ;;  %2068 = vmatpush.msrb.mxu0 %v7217_v52  ;;  %v7220_v30 = vld [vmem:[#allocation9 + $0x58] sm:$0xff] }
 0x2ae   :  { %10386 = vst [vmem:[#allocation174_spill] sm:$0xff] %v7205_v29  ;;  %2108 = vmatpush.msra.mxu2 %v7220_v30  ;;  %v7223_v29 = vld [vmem:[#allocation9 + $0x640] sm:$0xff] }
 0x2af   :  { %10387 = vst [vmem:[#allocation175_spill] sm:$0xff] %v7208_v18  ;;  %2000 = vmatpush.msra.mxu1 %v7223_v29  ;;  %v7226_v18 = vld [vmem:[#allocation9 + $0x648] sm:$0xff] }
 0x2b0   :  { %10388 = vst [vmem:[#allocation176_spill] sm:$0xff] %v7211_v10  ;;  %2040 = vmatpush.msrb.mxu3 %v7226_v18  ;;  %v7229_v10 = vld [vmem:[#allocation9 + $0x10] sm:$0xff] }
 0x2b1   :  { %10389 = vst [vmem:[#allocation177_spill] sm:$0xff] %v7214_v14  ;;  %2069 = vmatpush.msrb.mxu0 %v7229_v10  ;;  %v7232_v14 = vld [vmem:[#allocation9 + $0x18] sm:$0xff] }
 0x2b2   :  { %10390 = vst [vmem:[#allocation178_spill] sm:$0xff] %v7217_v52  ;;  %2109 = vmatpush.msra.mxu2 %v7232_v14  ;;  %v7235_v52 = vld [vmem:[#allocation9 + $0x600] sm:$0xff] }
 0x2b3   :  { %10391 = vst [vmem:[#allocation179_spill] sm:$0xff] %v7220_v30  ;;  %2001 = vmatpush.msra.mxu1 %v7235_v52  ;;  %v7238_v30 = vld [vmem:[#allocation9 + $0x608] sm:$0xff] }
 0x2b4   :  { %10392 = vst [vmem:[#allocation180_spill] sm:$0xff] %v7223_v29  ;;  %2041 = vmatpush.msrb.mxu3 %v7238_v30  ;;  %v7241_v29 = vld [vmem:[#allocation9 + $0x5c0] sm:$0xff] }
 0x2b5   :  { %10393 = vst [vmem:[#allocation181_spill] sm:$0xff] %v7226_v18  ;;  %2002 = vmatpush.msra.mxu1 %v7241_v29  ;;  %v7244_v18 = vld [vmem:[#allocation9 + $0x5c8] sm:$0xff] }
 0x2b6   :  { %10394 = vst [vmem:[#allocation182_spill] sm:$0xff] %v7229_v10  ;;  %2042 = vmatpush.msrb.mxu3 %v7244_v18  ;;  %v7247_v10 = vld [vmem:[#allocation9 + $0x580] sm:$0xff] }
 0x2b7   :  { %10395 = vst [vmem:[#allocation183_spill] sm:$0xff] %v7232_v14  ;;  %2003 = vmatpush.msra.mxu1 %v7247_v10  ;;  %v7250_v14 = vld [vmem:[#allocation9 + $0x588] sm:$0xff] }
 0x2b8   :  { %10396 = vst [vmem:[#allocation184_spill] sm:$0xff] %v7235_v52  ;;  %2043 = vmatpush.msrb.mxu3 %v7250_v14  ;;  %v7253_v52 = vld [vmem:[#allocation9 + $0x540] sm:$0xff] }
 0x2b9   :  { %10397 = vst [vmem:[#allocation185_spill] sm:$0xff] %v7238_v30  ;;  %2004 = vmatpush.msra.mxu1 %v7253_v52  ;;  %v7256_v30 = vld [vmem:[#allocation9 + $0x548] sm:$0xff] }
 0x2ba   :  { %10398 = vst [vmem:[#allocation186_spill] sm:$0xff] %v7241_v29  ;;  %2044 = vmatpush.msrb.mxu3 %v7256_v30  ;;  %v7259_v29 = vld [vmem:[#allocation9 + $0x500] sm:$0xff] }
 0x2bb   :  { %10399 = vst [vmem:[#allocation187_spill] sm:$0xff] %v7244_v18  ;;  %2005 = vmatpush.msra.mxu1 %v7259_v29  ;;  %v7262_v18 = vld [vmem:[#allocation9 + $0x508] sm:$0xff] }
 0x2bc   :  { %10400 = vst [vmem:[#allocation188_spill] sm:$0xff] %v7247_v10  ;;  %2045 = vmatpush.msrb.mxu3 %v7262_v18  ;;  %v7265_v10 = vld [vmem:[#allocation9 + $0x4c0] sm:$0xff] }
 0x2bd   :  { %10401 = vst [vmem:[#allocation189_spill] sm:$0xff] %v7250_v14  ;;  %2006 = vmatpush.msra.mxu1 %v7265_v10  ;;  %v7268_v14 = vld [vmem:[#allocation9 + $0x4c8] sm:$0xff] }
 0x2be   :  { %10402 = vst [vmem:[#allocation190_spill] sm:$0xff] %v7253_v52  ;;  %2046 = vmatpush.msrb.mxu3 %v7268_v14  ;;  %v7271_v52 = vld [vmem:[#allocation9 + $0x480] sm:$0xff] }
 0x2bf   :  { %10403 = vst [vmem:[#allocation191_spill] sm:$0xff] %v7256_v30  ;;  %2007 = vmatpush.msra.mxu1 %v7271_v52  ;;  %v7274_v30 = vld [vmem:[#allocation9 + $0x488] sm:$0xff] }
 0x2c0   :  { %10404 = vst [vmem:[#allocation192_spill] sm:$0xff] %v7259_v29  ;;  %2047 = vmatpush.msrb.mxu3 %v7274_v30  ;;  %v7277_v29 = vld [vmem:[#allocation9 + $0x440] sm:$0xff] }
 0x2c1   :  { %10405 = vst [vmem:[#allocation193_spill] sm:$0xff] %v7262_v18  ;;  %2008 = vmatpush.msra.mxu1 %v7277_v29  ;;  %v7280_v18 = vld [vmem:[#allocation9 + $0x448] sm:$0xff] }
 0x2c2   :  { %10406 = vst [vmem:[#allocation194_spill] sm:$0xff] %v7265_v10  ;;  %2048 = vmatpush.msrb.mxu3 %v7280_v18  ;;  %v7283_v10 = vld [vmem:[#allocation9 + $0x400] sm:$0xff] }
 0x2c3   :  { %10407 = vst [vmem:[#allocation195_spill] sm:$0xff] %v7268_v14  ;;  %2009 = vmatpush.msra.mxu1 %v7283_v10  ;;  %v7286_v14 = vld [vmem:[#allocation9 + $0x408] sm:$0xff] }
 0x2c4   :  { %10408 = vst [vmem:[#allocation196_spill] sm:$0xff] %v7271_v52  ;;  %2049 = vmatpush.msrb.mxu3 %v7286_v14  ;;  %v7289_v52 = vld [vmem:[#allocation9 + $0x7d0] sm:$0xff] }
 0x2c5   :  { %10409 = vst [vmem:[#allocation197_spill] sm:$0xff] %v7274_v30  ;;  %2074 = vmatpush.msrb.mxu1 %v7289_v52  ;;  %v7292_v30 = vld [vmem:[#allocation9 + $0x7d8] sm:$0xff] }
 0x2c6   :  { %10410 = vst [vmem:[#allocation198_spill] sm:$0xff] %v7277_v29  ;;  %2114 = vmatpush.msra.mxu3 %v7292_v30  ;;  %v7295_v29 = vld [vmem:[#allocation9 + $0x790] sm:$0xff] }
 0x2c7   :  { %10411 = vst [vmem:[#allocation199_spill] sm:$0xff] %v7280_v18  ;;  %2075 = vmatpush.msrb.mxu1 %v7295_v29  ;;  %v7298_v18 = vld [vmem:[#allocation9 + $0x798] sm:$0xff] }
 0x2c8   :  { %10412 = vst [vmem:[#allocation200_spill] sm:$0xff] %v7283_v10  ;;  %2115 = vmatpush.msra.mxu3 %v7298_v18  ;;  %v7301_v10 = vld [vmem:[#allocation9 + $0x750] sm:$0xff] }
 0x2c9   :  { %10413 = vst [vmem:[#allocation201_spill] sm:$0xff] %v7286_v14  ;;  %2076 = vmatpush.msrb.mxu1 %v7301_v10  ;;  %v7304_v14 = vld [vmem:[#allocation9 + $0x758] sm:$0xff] }
 0x2ca   :  { %10414 = vst [vmem:[#allocation202_spill] sm:$0xff] %v7289_v52  ;;  %2116 = vmatpush.msra.mxu3 %v7304_v14  ;;  %v7307_v52 = vld [vmem:[#allocation9 + $0x710] sm:$0xff] }
 0x2cb   :  { %10415 = vst [vmem:[#allocation203_spill] sm:$0xff] %v7292_v30  ;;  %2077 = vmatpush.msrb.mxu1 %v7307_v52  ;;  %v7310_v30 = vld [vmem:[#allocation9 + $0x718] sm:$0xff] }
 0x2cc   :  { %10416 = vst [vmem:[#allocation204_spill] sm:$0xff] %v7295_v29  ;;  %2117 = vmatpush.msra.mxu3 %v7310_v30  ;;  %v7313_v29 = vld [vmem:[#allocation9 + $0x6d0] sm:$0xff] }
 0x2cd   :  { %10417 = vst [vmem:[#allocation205_spill] sm:$0xff] %v7298_v18  ;;  %2078 = vmatpush.msrb.mxu1 %v7313_v29  ;;  %v7316_v18 = vld [vmem:[#allocation9 + $0x6d8] sm:$0xff] }
 0x2ce   :  { %10418 = vst [vmem:[#allocation206_spill] sm:$0xff] %v7301_v10  ;;  %2118 = vmatpush.msra.mxu3 %v7316_v18  ;;  %v7319_v10 = vld [vmem:[#allocation9 + $0x690] sm:$0xff] }
 0x2cf   :  { %10419 = vst [vmem:[#allocation207_spill] sm:$0xff] %v7304_v14  ;;  %2079 = vmatpush.msrb.mxu1 %v7319_v10  ;;  %v7322_v14 = vld [vmem:[#allocation9 + $0x698] sm:$0xff] }
 0x2d0   :  { %10420 = vst [vmem:[#allocation208_spill] sm:$0xff] %v7307_v52  ;;  %2119 = vmatpush.msra.mxu3 %v7322_v14  ;;  %v7325_v52 = vld [vmem:[#allocation9 + $0x650] sm:$0xff] }
 0x2d1   :  { %10421 = vst [vmem:[#allocation209_spill] sm:$0xff] %v7310_v30  ;;  %2080 = vmatpush.msrb.mxu1 %v7325_v52  ;;  %v7328_v30 = vld [vmem:[#allocation9 + $0x658] sm:$0xff] }
 0x2d2   :  { %10422 = vst [vmem:[#allocation210_spill] sm:$0xff] %v7313_v29  ;;  %2120 = vmatpush.msra.mxu3 %v7328_v30  ;;  %v7331_v29 = vld [vmem:[#allocation9 + $0x610] sm:$0xff] }
 0x2d3   :  { %10423 = vst [vmem:[#allocation211_spill] sm:$0xff] %v7316_v18  ;;  %2081 = vmatpush.msrb.mxu1 %v7331_v29  ;;  %v7334_v18 = vld [vmem:[#allocation9 + $0x618] sm:$0xff] }
 0x2d4   :  { %10424 = vst [vmem:[#allocation212_spill] sm:$0xff] %v7319_v10  ;;  %2121 = vmatpush.msra.mxu3 %v7334_v18  ;;  %v7337_v10 = vld [vmem:[#allocation9 + $0x5d0] sm:$0xff] }
 0x2d5   :  { %10425 = vst [vmem:[#allocation213_spill] sm:$0xff] %v7322_v14  ;;  %2082 = vmatpush.msrb.mxu1 %v7337_v10  ;;  %v7340_v14 = vld [vmem:[#allocation9 + $0x5d8] sm:$0xff] }
 0x2d6   :  { %10426 = vst [vmem:[#allocation214_spill] sm:$0xff] %v7325_v52  ;;  %2122 = vmatpush.msra.mxu3 %v7340_v14  ;;  %v7343_v52 = vld [vmem:[#allocation9 + $0x590] sm:$0xff] }
 0x2d7   :  { %10427 = vst [vmem:[#allocation215_spill] sm:$0xff] %v7328_v30  ;;  %2083 = vmatpush.msrb.mxu1 %v7343_v52  ;;  %v7346_v30 = vld [vmem:[#allocation9 + $0x598] sm:$0xff] }
 0x2d8   :  { %10428 = vst [vmem:[#allocation216_spill] sm:$0xff] %v7331_v29  ;;  %2123 = vmatpush.msra.mxu3 %v7346_v30  ;;  %v7349_v29 = vld [vmem:[#allocation9 + $0x550] sm:$0xff]  ;;  %v1547_v60 = vpop.f32.mrf.mxu1 }
 0x2d9   :  { %10429 = vst [vmem:[#allocation217_spill] sm:$0xff] %v7334_v18  ;;  %2084 = vmatpush.msrb.mxu1 %v7349_v29  ;;  %v7352_v18 = vld [vmem:[#allocation9 + $0x558] sm:$0xff] }
 0x2da   :  { %10430 = vst [vmem:[#allocation218_spill] sm:$0xff] %v7337_v10  ;;  %2124 = vmatpush.msra.mxu3 %v7352_v18  ;;  %v7355_v10 = vld [vmem:[#allocation9 + $0x510] sm:$0xff] }
 0x2db   :  { %10431 = vst [vmem:[#allocation219_spill] sm:$0xff] %v7340_v14  ;;  %2085 = vmatpush.msrb.mxu1 %v7355_v10  ;;  %v7358_v14 = vld [vmem:[#allocation9 + $0x518] sm:$0xff] }
 0x2dc   :  { %10432 = vst [vmem:[#allocation220_spill] sm:$0xff] %v7343_v52  ;;  %2125 = vmatpush.msra.mxu3 %v7358_v14  ;;  %v7361_v52 = vld [vmem:[#allocation9 + $0x4d0] sm:$0xff] }
 0x2dd   :  { %10433 = vst [vmem:[#allocation221_spill] sm:$0xff] %v7346_v30  ;;  %2086 = vmatpush.msrb.mxu1 %v7361_v52  ;;  %v7364_v30 = vld [vmem:[#allocation9 + $0x4d8] sm:$0xff] }
 0x2de   :  { %10434 = vst [vmem:[#allocation222_spill] sm:$0xff] %v7349_v29  ;;  %2126 = vmatpush.msra.mxu3 %v7364_v30  ;;  %v1527_v29 = vpop.f32.mrf.mxu0 }
 0x2df   :  { %10435 = vst [vmem:[#allocation223_spill] sm:$0xff] %v7352_v18  ;;  %2087 = vmatpush.msrb.mxu1 %v7367_v17  ;;  %v7370_v18 = vld [vmem:[#allocation9 + $0x498] sm:$0xff]  ;;  %v1548_v45 = vadd.f32 %v1547_v60, %v1527_v29  ;;  %v1587_v60 = vpop.f32.mrf.mxu3  ;;  %v10447_v29 = vld [vmem:[#allocation31_spill] sm:$0xff] }
 0x2e0   :  { %10436 = vst [vmem:[#allocation224_spill] sm:$0xff] %v7355_v10  ;;  %2127 = vmatpush.msra.mxu3 %v7370_v18 }
 0x2e1   :  { %10437 = vst [vmem:[#allocation225_spill] sm:$0xff] %v7358_v14  ;;  %v10442_v14 = vld [vmem:[#allocation30_spill] sm:$0xff]  ;;  %2088 = vmatpush.msrb.mxu1 %v7375_v59 }
 0x2e2   :  { %10438 = vst [vmem:[#allocation226_spill] sm:$0xff] %v7361_v52  ;;  %v278_v10 = vadd.f32 %v10442_v14, %v10217_v38  ;;  %v7378_v52 = vld [vmem:[#allocation9 + $0x458] sm:$0xff]  ;;  %v1567_v14 = vpop.f32.mrf.mxu2  ;;  %v319_v38 = vadd.f32 %v10447_v29, %v10221_v8 }
 0x2e3   :  { %10439 = vst [vmem:[#allocation227_spill] sm:$0xff] %v7364_v30  ;;  %2128 = vmatpush.msra.mxu3 %v7378_v52  ;;  %2089 = vmatpush.msrb.mxu1 %v7381_v11 }
 0x2e4   :  { %10440 = vst [vmem:[#allocation228_spill] sm:$0xff] %v7367_v17  ;;  %v1834_v30 = vadd.f32 %v1548_v45, %v278_v10  ;;  %v7384_v17 = vld [vmem:[#allocation9 + $0x418] sm:$0xff]  ;;  %v1627_v10 = vpop.f32.mrf.mxu1 }
 0x2e5   :  { %10441 = vst [vmem:[#allocation229_spill] sm:$0xff] %v7370_v18  ;;  %2129 = vmatpush.msra.mxu3 %v7384_v17 }
 0x2e6   :  { %10443 = vst [vmem:[#allocation30_spill] sm:$0xff] %v7375_v59  ;;  %v4469_v18 = vmul.f32 -1.442695, %v1834_v30  ;;  %v1588_v59 = vadd.f32 %v1587_v60, %v1567_v14  ;;  %v1607_v30 = vpop.f32.mrf.mxu0 }
 0x2e7   :  { %10444 = vst [vmem:[#allocation230_spill] sm:$0xff] %v7378_v52  ;;  %v1667_v44 = vpop.f32.mrf.mxu3  ;;  %v1628_v41 = vadd.f32 %v1627_v10, %v1607_v30 }
 0x2e8   :  { %10445 = vst [vmem:[#allocation231_spill] sm:$0xff] %v7381_v11  ;;  %4612 = vpow2.f32 %v4469_v18  ;;  %v1835_v53 = vadd.f32 %v1588_v59, %v319_v38  ;;  %v10449_v18 = vld [vmem:[#allocation40_spill] sm:$0xff] }
 0x2e9   :  { %10446 = vst [vmem:[#allocation232_spill] sm:$0xff] %v7384_v17  ;;  %v401_v17 = vadd.f32 %v10448_v3, %v10223_v49  ;;  %v360_v14 = vadd.f32 %v10449_v18, %v10225_v33  ;;  %v10450_v49 = vld [vmem:[#allocation62_spill] sm:$0xff] }
 0x2ea   :  { %v4470_v34 = vmul.f32 -1.442695, %v1835_v53  ;;  %v1647_v11 = vpop.f32.mrf.mxu2 }
 0x2eb   :  { %v1668_v40 = vadd.f32 %v1667_v44, %v1647_v11 }
 0x2ec   :  { %4614 = vpow2.f32 %v4470_v34 }
 0x2ed   :  { %v1837_v36 = vadd.f32 %v1668_v40, %v401_v17 }
 0x2ee   :  { %v4613_v52 = vpop.eup %4612 }
 0x2ef   :  { %v1849_v45 = vadd.f32 1.0, %v4613_v52  ;;  %v4471_v53 = vmul.f32 -1.442695, %v1837_v36  ;;  %v1836_v52 = vadd.f32 %v1628_v41, %v360_v14 }
 0x2f1   :  { %4616 = vrcp.f32 %v1849_v45  ;;  %v1861_v29 = vand.u32 2147483648, %v1849_v45  ;;  %v1859_v3 = vand.u32 2147483647, %v1849_v45  ;;  %vm1855_vm1 = vweird.f32 %v1849_v45 }
 0x2f2   :  { %v4615_v51 = vpop.eup %4614  ;;  %v1727_v46 = vpop.f32.mrf.mxu2 }
 0x2f3   :  { %v1868_v38 = vadd.f32 1.0, %v4615_v51  ;;  %v1862_v17 = vor.u32 1.1754944e-38, %v1861_v29  ;;  %vm1860_vm3 = vcmp.eq.f32.partialorder %v1859_v3, 8.507059e+37 }
 0x2f5   :  { %4618 = vrcp.f32 %v1868_v38  ;;  %v1880_v18 = vand.u32 2147483648, %v1868_v38  ;;  %vm1874_vm5 = vweird.f32 %v1868_v38 }
 0x2f6   :  { %4620 = vpow2.f32 %v4471_v53 }
 0x2f7   :  { %v4617_v59 = vpop.eup %4616  ;;  %4622 = vtanh.f32 %v1836_v52  ;;  %v1878_v52 = vand.u32 2147483647, %v1868_v38 }
 0x2f8   :  { %v1851_v34 = vmul.f32 %v4617_v59, %v1849_v45  ;;  %vm1856_vm0 = vweird.f32 %v4617_v59 }
 0x2f9   :  { %vm1857_vm2 = vmor %vm1855_vm1, %vm1856_vm0  ;;  %vm1879_vm7 = vcmp.eq.f32.partialorder %v1878_v52, 8.507059e+37 }
 0x2fa   :  { %v1852_v60 = vsub.f32 1.0, %v1851_v34  ;;  %v1707_v33 = vpop.f32.mrf.mxu1 }
 0x2fb   :  { %v4619_v44 = vpop.eup %4618 }
 0x2fc   :  { %v1853_v8 = vmul.f32 %v4617_v59, %v1852_v60  ;;  %v4621_v11 = vpop.eup %4620  ;;  %v1870_v10 = vmul.f32 %v4619_v44, %v1868_v38  ;;  %vm1875_vm4 = vweird.f32 %v4619_v44  ;;  %v1687_v60 = vpop.f32.mrf.mxu0 }
 0x2fd   :  { %v1888_v51 = vadd.f32 1.0, %v4621_v11  ;;  %v4623_v41 = vpop.eup %4622  ;;  %v1708_v29 = vadd.f32 %v1707_v33, %v1687_v60  ;;  %vm1876_vm6 = vmor %vm1874_vm5, %vm1875_vm4  ;;  %v1881_v11 = vor.u32 1.1754944e-38, %v1880_v18 }
 0x2fe   :  { %v1854_v40 = vadd.f32 %v4617_v59, %v1853_v8  ;;  %v1871_v36 = vsub.f32 1.0, %v1870_v10  ;;  %v451_v8 = vadd.f32 %v10450_v49, %v10227_v55 }
 0x2ff   :  { %4624 = vrcp.f32 %v1888_v51  ;;  %v1900_v18 = vand.u32 2147483648, %v1888_v51  ;;  %v1898_v52 = vand.u32 2147483647, %v1888_v51  ;;  %vm1894_vm9 = vweird.f32 %v1888_v51 }
 0x300   :  { %v1858_v30 = vsel %vm1857_vm2, %v4617_v59, %v1854_v40  ;;  %v1872_v53 = vmul.f32 %v4619_v44, %v1871_v36  ;;  %v1842_v3 = vadd.f32 %v1708_v29, %v451_v8  ;;  %v1747_v58 = vpop.f32.mrf.mxu3 }
 0x301   :  { %v1863_v14 = vsel %vm1860_vm3, %v1862_v17, %v1858_v30  ;;  %v1748_v33 = vadd.f32 %v1747_v58, %v1727_v46  ;;  %v1901_v29 = vor.u32 1.1754944e-38, %v1900_v18  ;;  %vm1899_vm11 = vcmp.eq.f32.partialorder %v1898_v52, 8.507059e+37  ;;  %v10461_v52 = vld [vmem:[#allocation80_spill] sm:$0xff] }
 0x302   :  { %v1963_v34 = vmul.f32 %v4623_v41, %v1863_v14  ;;  %v1873_v45 = vadd.f32 %v4619_v44, %v1872_v53  ;;  %v4472_v30 = vmul.f32 -1.442695, %v1842_v3  ;;  %v10451_v41 = vld [vmem:[#allocation63_spill] sm:$0xff] }
 0x303   :  { %v492_v14 = vadd.f32 %v10451_v41, %v10229_v56 }
 0x304   :  { %v1877_v59 = vsel %vm1876_vm6, %v4619_v44, %v1873_v45  ;;  %4626 = vpow2.f32 %v4472_v30 }
 0x305   :  { %v4625_v10 = vpop.eup %4624  ;;  %v1882_v40 = vsel %vm1879_vm7, %v1881_v11, %v1877_v59  ;;  %v1843_v53 = vadd.f32 %v1748_v33, %v492_v14  ;;  %v10459_v14 = vld [vmem:[#allocation84_spill] sm:$0xff] }
 0x306   :  { %v1962_v17 = vmul.f32 %v1882_v40, %v6679_v48  ;;  %v1890_v36 = vmul.f32 %v4625_v10, %v1888_v51  ;;  %vm1895_vm8 = vweird.f32 %v4625_v10 }
 0x307   :  { %v4473_v60 = vmul.f32 -1.442695, %v1843_v53  ;;  %vm1896_vm10 = vmor %vm1894_vm9, %vm1895_vm8  ;;  %v10460_v53 = vld [vmem:[#allocation98_spill] sm:$0xff] }
 0x308   :  { %v7398_v49 = vadd.f32 %v1963_v34, %v1962_v17  ;;  %v1891_v38 = vsub.f32 1.0, %v1890_v36 }
 0x30a   :  { %4628 = vtanh.f32 %v7398_v49  ;;  %v1892_v44 = vmul.f32 %v4625_v10, %v1891_v38  ;;  %v4627_v8 = vpop.eup %4626  ;;  %v1807_v38 = vpop.f32.mrf.mxu2 }
 0x30b   :  { %4630 = vpow2.f32 %v4473_v60  ;;  %v7401_v34 = vadd.f32 1.0, %v4627_v8 }
 0x30c   :  { %v1893_v48 = vadd.f32 %v4625_v10, %v1892_v44 }
 0x30d   :  { %4632 = vrcp.f32 %v7401_v34  ;;  %vm1913_vm0 = vweird.f32 %v7401_v34  ;;  %v1917_v33 = vand.u32 2147483647, %v7401_v34 }
 0x30e   :  { %v1897_v45 = vsel %vm1896_vm10, %v4625_v10, %v1893_v48  ;;  %v574_v48 = vadd.f32 %v10461_v52, %v10460_v53 }
 0x30f   :  { %v1902_v58 = vsel %vm1899_vm11, %v1901_v29, %v1897_v45  ;;  %vm1918_vm3 = vcmp.eq.f32.partialorder %v1917_v33, 8.507059e+37 }
 0x310   :  { %v4629_v11 = vpop.eup %4628 }
 0x311   :  { %v7403_v46 = vmul.f32 %v4629_v11, %v1902_v58  ;;  %v4631_v51 = vpop.eup %4630 }
 0x312   :  { %v1926_v59 = vadd.f32 1.0, %v4631_v51 }
 0x313   :  { %10452 = vst [vmem:[#allocation31_spill] sm:$0xff] %v7403_v46  ;;  %1990 = vmatmul.f32.vlgmr.msra.gmra.mxu0 %v7403_v46  ;;  %2030 = vmatmul.f32.vlgmr.msrb.gmra.mxu2 %v7403_v46  ;;  %v7412_v3 = vpop.eup %4632 }
 0x314   :  { %2134 = vmatpush.msra.mxu0 %v6691_v26  ;;  %2174 = vmatpush.msrb.mxu2 %v6694_v24  ;;  %4634 = vrcp.f32 %v1926_v59  ;;  %v1909_v10 = vmul.f32 %v7412_v3, %v7401_v34  ;;  %vm1932_vm13 = vweird.f32 %v1926_v59  ;;  %v1936_v36 = vand.u32 2147483647, %v1926_v59 }
 0x315   :  { %vm1914_vm14 = vweird.f32 %v7412_v3 }
 0x316   :  { %2135 = vmatpush.msra.mxu0 %v6700_v54  ;;  %2175 = vmatpush.msrb.mxu2 %v6703_v2  ;;  %v1910_v24 = vsub.f32 1.0, %v1909_v10  ;;  %vm1915_vm1 = vmor %vm1913_vm0, %vm1914_vm14  ;;  %vm1937_vm2 = vcmp.eq.f32.partialorder %v1936_v36, 8.507059e+37  ;;  %v10480_v36 = vld [vmem:[#allocation36_spill] sm:$0xff] }
 0x318   :  { %2136 = vmatpush.msra.mxu0 %v6708_v50  ;;  %2176 = vmatpush.msrb.mxu2 %v6711_v37  ;;  %v1767_v50 = vpop.f32.mrf.mxu0 }
 0x31a   :  { %2137 = vmatpush.msra.mxu0 %v6714_v23  ;;  %2177 = vmatpush.msrb.mxu2 %v6717_v28  ;;  %v4635_v26 = vpop.eup %4634  ;;  %v1787_v37 = vpop.f32.mrf.mxu1  ;;  %v1911_v23 = vmul.f32 %v7412_v3, %v1910_v24  ;;  %v10453_v28 = vld [vmem:[#allocation79_spill] sm:$0xff] }
 0x31b   :  { %2070 = vmatmul.f32.vlgmr.msrb.gmra.mxu0 %v7403_v46  ;;  %2110 = vmatmul.f32.vlgmr.msra.gmra.mxu2 %v7403_v46  ;;  %v1928_v54 = vmul.f32 %v4635_v26, %v1926_v59  ;;  %v1788_v40 = vadd.f32 %v1787_v37, %v1767_v50  ;;  %vm1933_vm12 = vweird.f32 %v4635_v26  ;;  %v10466_v24 = vld [vmem:[#allocation91_spill] sm:$0xff]  ;;  %v10471_v50 = vld [vmem:[#allocation96_spill] sm:$0xff]  ;;  %v10472_v37 = vld [vmem:[#allocation97_spill] sm:$0xff] }
 0x31c   :  { %2138 = vmatpush.msra.mxu0 %v6723_v61  ;;  %2178 = vmatpush.msrb.mxu2 %v6726_v7  ;;  %v533_v61 = vadd.f32 %v10453_v28, %v10233_v4  ;;  %v1912_v30 = vadd.f32 %v7412_v3, %v1911_v23  ;;  %vm7437_vm15 = vmor %vm1932_vm13, %vm1933_vm12  ;;  %v10473_v23 = vld [vmem:[#allocation100_spill] sm:$0xff]  ;;  %v10474_v28 = vld [vmem:[#allocation101_spill] sm:$0xff] }
 0x31d   :  { %v1929_v2 = vsub.f32 1.0, %v1928_v54  ;;  %v10469_v54 = vld [vmem:[#allocation94_spill] sm:$0xff] }
 0x31e   :  { %2139 = vmatpush.msra.mxu0 %v6729_v12  ;;  %2179 = vmatpush.msrb.mxu2 %v6732_v32  ;;  %v1938_v32 = vand.u32 2147483648, %v1926_v59  ;;  %v1844_v17 = vadd.f32 %v1788_v40, %v533_v61  ;;  %v1916_v45 = vsel %vm1915_vm1, %v7412_v3, %v1912_v30  ;;  %v10462_v3 = vld [vmem:[#allocation85_spill] sm:$0xff]  ;;  %v10475_v61 = vld [vmem:[#allocation26_spill] sm:$0xff] }
 0x31f   :  { %v1930_v7 = vmul.f32 %v4635_v26, %v1929_v2  ;;  %v10470_v2 = vld [vmem:[#allocation95_spill] sm:$0xff] }
 0x320   :  { %2140 = vmatpush.msra.mxu0 %v6738_v6  ;;  %2180 = vmatpush.msrb.mxu2 %v6741_v43  ;;  %v10454_v6 = vld [vmem:[#allocation81_spill] sm:$0xff]  ;;  %v10455_v43 = vld [vmem:[#allocation82_spill] sm:$0xff]  ;;  %4636 = vtanh.f32 %v1844_v17  ;;  %v1827_v44 = vpop.f32.mrf.mxu3  ;;  %v1939_v60 = vor.u32 1.1754944e-38, %v1938_v32  ;;  %v10477_v32 = vld [vmem:[#allocation103_spill] sm:$0xff] }
 0x321   :  { %v1931_v12 = vadd.f32 %v4635_v26, %v1930_v7  ;;  %v1828_v8 = vadd.f32 %v1827_v44, %v1807_v38  ;;  %v10476_v7 = vld [vmem:[#allocation102_spill] sm:$0xff]  ;;  %v10478_v17 = vld [vmem:[#allocation27_spill] sm:$0xff] }
 0x322   :  { %2141 = vmatpush.msra.mxu0 %v6745_v62  ;;  %2181 = vmatpush.msrb.mxu2 %v6748_v22  ;;  %v1919_v62 = vand.u32 2147483648, %v7401_v34  ;;  %v10458_v22 = vld [vmem:[#allocation83_spill] sm:$0xff] }
 0x323   :  { %v1935_v18 = vsel %vm7437_vm15, %v4635_v26, %v1931_v12  ;;  %v1845_v34 = vadd.f32 %v1828_v8, %v574_v48  ;;  %v10465_v26 = vld [vmem:[#allocation88_spill] sm:$0xff]  ;;  %v10486_v8 = vld [vmem:[#allocation89_spill] sm:$0xff] }
 0x324   :  { %2142 = vmatpush.msra.mxu0 %v10454_v6  ;;  %2182 = vmatpush.msrb.mxu2 %v10455_v43  ;;  %v1920_v29 = vor.u32 1.1754944e-38, %v1919_v62  ;;  %v1940_v11 = vsel %vm1937_vm2, %v1939_v60, %v1935_v18  ;;  %v10479_v43 = vld [vmem:[#allocation37_spill] sm:$0xff]  ;;  %v7522_v60 = vld [vmem:[#allocation9 + $0x728] sm:$0xff] }
 0x325   :  { %v4474_v59 = vmul.f32 -1.442695, %v1845_v34  ;;  %v10488_v34 = vld [vmem:[#allocation105_spill] sm:$0xff] }
 0x326   :  { %2143 = vmatpush.msra.mxu0 %v10458_v22  ;;  %2183 = vmatpush.msrb.mxu2 %v10459_v14  ;;  %v4637_v58 = vpop.eup %4636  ;;  %v1921_v51 = vsel %vm1918_vm3, %v1920_v29, %v1916_v45  ;;  %v10481_v22 = vld [vmem:[#allocation72_spill] sm:$0xff]  ;;  %v7535_v45 = vld [vmem:[#allocation9 + $0x6a0] sm:$0xff]  ;;  %v7538_v29 = vld [vmem:[#allocation9 + $0x6a8] sm:$0xff] }
 0x327   :  { %4638 = vpow2.f32 %v4474_v59  ;;  %v10482_v14 = vld [vmem:[#allocation68_spill] sm:$0xff]  ;;  %v10489_v59 = vld [vmem:[#allocation106_spill] sm:$0xff] }
 0x328   :  { %2144 = vmatpush.msra.mxu0 %v6787_v63  ;;  %2184 = vmatpush.msrb.mxu2 %v6790_v35  ;;  %v1965_v63 = vmul.f32 %v1940_v11, %v6806_v57  ;;  %v1966_v35 = vmul.f32 %v4637_v58, %v1921_v51  ;;  %v10468_v57 = vld [vmem:[#allocation93_spill] sm:$0xff]  ;;  %v10487_v11 = vld [vmem:[#allocation90_spill] sm:$0xff] }
 0x329   :  { %v7545_v58 = vld [vmem:[#allocation9 + $0x660] sm:$0xff]  ;;  %v7548_v51 = vld [vmem:[#allocation9 + $0x668] sm:$0xff] }
 0x32a   :  { %2145 = vmatpush.msra.mxu0 %v6793_v42  ;;  %2185 = vmatpush.msrb.mxu2 %v6796_v15  ;;  %v7460_v10 = vadd.f32 %v1966_v35, %v1965_v63  ;;  %v10463_v42 = vld [vmem:[#allocation86_spill] sm:$0xff]  ;;  %v10464_v15 = vld [vmem:[#allocation87_spill] sm:$0xff]  ;;  %v7553_v35 = vld [vmem:[#allocation9 + $0x620] sm:$0xff] }
 0x32b   :  { %v10490_v63 = vld [vmem:[#allocation107_spill] sm:$0xff] }
 0x32c   :  { %2146 = vmatpush.msra.mxu0 %v6800_v13  ;;  %2186 = vmatpush.msrb.mxu2 %v6803_v31  ;;  %v10467_v31 = vld [vmem:[#allocation92_spill] sm:$0xff] }
 0x32d   :  { %v4639_v13 = vpop.eup %4638 }
 0x32e   :  { %2147 = vmatpush.msra.mxu0 %v6808_v9  ;;  %2187 = vmatpush.msrb.mxu2 %v10462_v3  ;;  %v1946_v9 = vadd.f32 1.0, %v4639_v13  ;;  %v7556_v3 = vld [vmem:[#allocation9 + $0x628] sm:$0xff] }
 0x32f   :  { %v10493_v13 = vld [vmem:[#allocation110_spill] sm:$0xff] }
 0x330   :  { %2148 = vmatpush.msra.mxu0 %v10463_v42  ;;  %2188 = vmatpush.msrb.mxu2 %v10464_v15  ;;  %4640 = vrcp.f32 %v1946_v9  ;;  %v1958_v30 = vand.u32 2147483648, %v1946_v9  ;;  %v1956_v62 = vand.u32 2147483647, %v1946_v9  ;;  %vm1952_vm5 = vweird.f32 %v1946_v9  ;;  %v10491_v42 = vld [vmem:[#allocation108_spill] sm:$0xff]  ;;  %v10492_v15 = vld [vmem:[#allocation109_spill] sm:$0xff] }
 0x331   :  { %4642 = vtanh.f32 %v7460_v10 }
 0x332   :  { %2149 = vmatpush.msra.mxu0 %v10465_v26  ;;  %2189 = vmatpush.msrb.mxu2 %v10466_v24  ;;  %v1959_v33 = vor.u32 1.1754944e-38, %v1958_v30  ;;  %vm1957_vm7 = vcmp.eq.f32.partialorder %v1956_v62, 8.507059e+37  ;;  %v7561_v26 = vld [vmem:[#allocation9 + $0x5e0] sm:$0xff]  ;;  %v7564_v24 = vld [vmem:[#allocation9 + $0x5e8] sm:$0xff] }
 0x333   :  { %2150 = vmatmul.f32.vlgmr.msra.gmra.mxu0 %v7403_v46  ;;  %2190 = vmatmul.f32.vlgmr.msrb.gmra.mxu2 %v7403_v46  ;;  %v7604_v30 = vld [vmem:[#allocation9 + $0x4a8] sm:$0xff]  ;;  %v10504_v62 = vld [vmem:[#allocation121_spill] sm:$0xff] }
 0x334   :  { %2214 = vmatpush.msrb.mxu0 %v10467_v31  ;;  %2254 = vmatpush.msra.mxu2 %v10468_v57  ;;  %v10494_v31 = vld [vmem:[#allocation111_spill] sm:$0xff]  ;;  %v7569_v57 = vld [vmem:[#allocation9 + $0x5a0] sm:$0xff] }
 0x336   :  { %2215 = vmatpush.msrb.mxu0 %v10469_v54  ;;  %2255 = vmatpush.msra.mxu2 %v10470_v2  ;;  %v4641_v40 = vpop.eup %4640  ;;  %v10495_v54 = vld [vmem:[#allocation112_spill] sm:$0xff]  ;;  %v10496_v2 = vld [vmem:[#allocation113_spill] sm:$0xff] }
 0x337   :  { %v1948_v12 = vmul.f32 %v4641_v40, %v1946_v9  ;;  %vm1953_vm4 = vweird.f32 %v4641_v40  ;;  %v4643_v44 = vpop.eup %4642  ;;  %v7572_v9 = vld [vmem:[#allocation9 + $0x5a8] sm:$0xff] }
 0x338   :  { %2216 = vmatpush.msrb.mxu0 %v10471_v50  ;;  %2256 = vmatpush.msra.mxu2 %v10472_v37  ;;  %vm1954_vm6 = vmor %vm1952_vm5, %vm1953_vm4  ;;  %v7577_v50 = vld [vmem:[#allocation9 + $0x560] sm:$0xff]  ;;  %v7580_v37 = vld [vmem:[#allocation9 + $0x568] sm:$0xff] }
 0x339   :  { %v1949_v6 = vsub.f32 1.0, %v1948_v12  ;;  %v10500_v12 = vld [vmem:[#allocation117_spill] sm:$0xff] }
 0x33a   :  { %2217 = vmatpush.msrb.mxu0 %v10473_v23  ;;  %2257 = vmatpush.msra.mxu2 %v10474_v28  ;;  %v10497_v23 = vld [vmem:[#allocation114_spill] sm:$0xff]  ;;  %v10498_v28 = vld [vmem:[#allocation115_spill] sm:$0xff] }
 0x33b   :  { %v1950_v41 = vmul.f32 %v4641_v40, %v1949_v6  ;;  %v10501_v6 = vld [vmem:[#allocation118_spill] sm:$0xff] }
 0x33c   :  { %2218 = vmatpush.msrb.mxu0 %v10475_v61  ;;  %2258 = vmatpush.msra.mxu2 %v10476_v7  ;;  %v7585_v61 = vld [vmem:[#allocation9 + $0x520] sm:$0xff]  ;;  %v7588_v7 = vld [vmem:[#allocation9 + $0x528] sm:$0xff] }
 0x33d   :  { %v1951_v38 = vadd.f32 %v4641_v40, %v1950_v41  ;;  %v10503_v41 = vld [vmem:[#allocation120_spill] sm:$0xff] }
 0x33e   :  { %2219 = vmatpush.msrb.mxu0 %v10477_v32  ;;  %2259 = vmatpush.msra.mxu2 %v10478_v17  ;;  %v7593_v32 = vld [vmem:[#allocation9 + $0x4e0] sm:$0xff]  ;;  %v7596_v17 = vld [vmem:[#allocation9 + $0x4e8] sm:$0xff] }
 0x33f   :  { %v1955_v18 = vsel %vm1954_vm6, %v4641_v40, %v1951_v38  ;;  %v10499_v40 = vld [vmem:[#allocation116_spill] sm:$0xff]  ;;  %v10505_v38 = vld [vmem:[#allocation122_spill] sm:$0xff] }
 0x340   :  { %2220 = vmatpush.msrb.mxu0 %v10479_v43  ;;  %2260 = vmatpush.msra.mxu2 %v10480_v36  ;;  %v1960_v52 = vsel %vm1957_vm7, %v1959_v33, %v1955_v18  ;;  %v10502_v43 = vld [vmem:[#allocation119_spill] sm:$0xff]  ;;  %v7601_v36 = vld [vmem:[#allocation9 + $0x4a0] sm:$0xff] }
 0x341   :  { %v7489_v48 = vmul.f32 %v4643_v44, %v1960_v52  ;;  %v10506_v33 = vld [vmem:[#allocation123_spill] sm:$0xff]  ;;  %v7617_v18 = vld [vmem:[#allocation9 + $0x420] sm:$0xff]  ;;  %v7620_v44 = vld [vmem:[#allocation9 + $0x428] sm:$0xff] }
 0x342   :  { %2221 = vmatpush.msrb.mxu0 %v10481_v22  ;;  %2261 = vmatpush.msra.mxu2 %v10482_v14  ;;  %v7609_v22 = vld [vmem:[#allocation9 + $0x460] sm:$0xff]  ;;  %v7612_v14 = vld [vmem:[#allocation9 + $0x468] sm:$0xff]  ;;  %v7625_v52 = vld [vmem:[#allocation9 + $0x7f0] sm:$0xff] }
 0x343   :  { %10483 = vst [vmem:[#allocation41_spill] sm:$0xff] %v7489_v48  ;;  %2010 = vmatmul.f32.vlgmr.msra.gmra.mxu1 %v7489_v48  ;;  %2050 = vmatmul.f32.vlgmr.msrb.gmra.mxu3 %v7489_v48 }
 0x344   :  { %2222 = vmatpush.msrb.mxu0 %v6877_v47  ;;  %2262 = vmatpush.msra.mxu2 %v6880_v5  ;;  %v7495_v47 = vld [vmem:[#allocation9 + $0x7e0] sm:$0xff]  ;;  %v7498_v5 = vld [vmem:[#allocation9 + $0x7e8] sm:$0xff] }
 0x345   :  { %2154 = vmatpush.msra.mxu1 %v7495_v47  ;;  %2194 = vmatpush.msrb.mxu3 %v7498_v5 }
 0x346   :  { %2223 = vmatpush.msrb.mxu0 %v6885_v0  ;;  %2263 = vmatpush.msra.mxu2 %v6888_v39  ;;  %v7503_v0 = vld [vmem:[#allocation9 + $0x7a0] sm:$0xff]  ;;  %v7506_v39 = vld [vmem:[#allocation9 + $0x7a8] sm:$0xff] }
 0x347   :  { %2155 = vmatpush.msra.mxu1 %v7503_v0  ;;  %2195 = vmatpush.msrb.mxu3 %v7506_v39 }
 0x348   :  { %2224 = vmatpush.msrb.mxu0 %v6895_v21  ;;  %2264 = vmatpush.msra.mxu2 %v6898_v27  ;;  %v7511_v21 = vld [vmem:[#allocation9 + $0x760] sm:$0xff]  ;;  %v7514_v27 = vld [vmem:[#allocation9 + $0x768] sm:$0xff] }
 0x349   :  { %2156 = vmatpush.msra.mxu1 %v7511_v21  ;;  %2196 = vmatpush.msrb.mxu3 %v7514_v27 }
 0x34a   :  { %2225 = vmatpush.msrb.mxu0 %v6903_v25  ;;  %2265 = vmatpush.msra.mxu2 %v6906_v1  ;;  %v10484_v25 = vld [vmem:[#allocation69_spill] sm:$0xff] }
 0x34b   :  { %v7519_v1 = vld [vmem:[#allocation9 + $0x720] sm:$0xff]  ;;  %2197 = vmatpush.msrb.mxu3 %v7522_v60  ;;  %2090 = vmatmul.f32.vlgmr.msrb.gmra.mxu1 %v7489_v48 }
 0x34c   :  { %2226 = vmatpush.msrb.mxu0 %v6911_v20  ;;  %2266 = vmatpush.msra.mxu2 %v6914_v16  ;;  %v7527_v20 = vld [vmem:[#allocation9 + $0x6e0] sm:$0xff]  ;;  %v7530_v16 = vld [vmem:[#allocation9 + $0x6e8] sm:$0xff] }
 0x34d   :  { %2157 = vmatpush.msra.mxu1 %v7519_v1  ;;  %2130 = vmatmul.f32.vlgmr.msra.gmra.mxu3 %v7489_v48 }
 0x34e   :  { %2227 = vmatpush.msrb.mxu0 %v6919_v19  ;;  %2267 = vmatpush.msra.mxu2 %v10484_v25  ;;  %v10485_v19 = vld [vmem:[#allocation42_spill] sm:$0xff]  ;;  %v7628_v25 = vld [vmem:[#allocation9 + $0x7f8] sm:$0xff] }
 0x34f   :  { %2158 = vmatpush.msra.mxu1 %v7527_v20  ;;  %2198 = vmatpush.msrb.mxu3 %v7530_v16  ;;  %10507 = vst [vmem:[#allocation40_spill] sm:$0xff] %v7628_v25 }
 0x350   :  { %2228 = vmatpush.msrb.mxu0 %v10485_v19  ;;  %2268 = vmatpush.msra.mxu2 %v10486_v8  ;;  %v10508_v19 = vld [vmem:[#allocation124_spill] sm:$0xff]  ;;  %v10509_v8 = vld [vmem:[#allocation125_spill] sm:$0xff] }
 0x351   :  { %2159 = vmatpush.msra.mxu1 %v7535_v45  ;;  %2199 = vmatpush.msrb.mxu3 %v7538_v29 }
 0x352   :  { %2229 = vmatpush.msrb.mxu0 %v10487_v11  ;;  %2269 = vmatpush.msra.mxu2 %v10488_v34  ;;  %v7633_v11 = vld [vmem:[#allocation9 + $0x7b0] sm:$0xff]  ;;  %v7636_v34 = vld [vmem:[#allocation9 + $0x7b8] sm:$0xff] }
 0x353   :  { %2230 = vmatmul.f32.vlgmr.msrb.gmra.mxu0 %v7403_v46  ;;  %2270 = vmatmul.f32.vlgmr.msra.gmra.mxu2 %v7403_v46  ;;  %10510 = vst [vmem:[#allocation62_spill] sm:$0xff] %v7633_v11  ;;  %v7705_v46 = vld [vmem:[#allocation9 + $0x570] sm:$0xff] }
 0x354   :  { %2160 = vmatpush.msra.mxu1 %v7545_v58  ;;  %2200 = vmatpush.msrb.mxu3 %v7548_v51  ;;  %10511 = vst [vmem:[#allocation63_spill] sm:$0xff] %v7636_v34 }
 0x355   :  { %2438 = vmatpush.msra.mxu0 %v10489_v59  ;;  %2478 = vmatpush.msrb.mxu2 %v10490_v63  ;;  %v10512_v59 = vld [vmem:[#allocation126_spill] sm:$0xff]  ;;  %v10513_v63 = vld [vmem:[#allocation127_spill] sm:$0xff]  ;;  %10546 = vst [vmem:[#allocation97_spill] sm:$0xff] %v7705_v46 }
 0x356   :  { %2161 = vmatpush.msra.mxu1 %v7553_v35  ;;  %2201 = vmatpush.msrb.mxu3 %v7556_v3 }
 0x357   :  { %2439 = vmatpush.msra.mxu0 %v10491_v42  ;;  %2479 = vmatpush.msrb.mxu2 %v10492_v15  ;;  %v7641_v42 = vld [vmem:[#allocation9 + $0x770] sm:$0xff]  ;;  %v7644_v15 = vld [vmem:[#allocation9 + $0x778] sm:$0xff] }
 0x358   :  { %2162 = vmatpush.msra.mxu1 %v7561_v26  ;;  %2202 = vmatpush.msrb.mxu3 %v7564_v24  ;;  %10514 = vst [vmem:[#allocation79_spill] sm:$0xff] %v7641_v42 }
 0x359   :  { %2440 = vmatpush.msra.mxu0 %v10493_v13  ;;  %2480 = vmatpush.msrb.mxu2 %v10494_v31  ;;  %10515 = vst [vmem:[#allocation81_spill] sm:$0xff] %v7644_v15  ;;  %v10516_v13 = vld [vmem:[#allocation128_spill] sm:$0xff]  ;;  %v10517_v31 = vld [vmem:[#allocation129_spill] sm:$0xff] }
 0x35a   :  { %2163 = vmatpush.msra.mxu1 %v7569_v57  ;;  %2203 = vmatpush.msrb.mxu3 %v7572_v9 }
 0x35b   :  { %2441 = vmatpush.msra.mxu0 %v10495_v54  ;;  %2481 = vmatpush.msrb.mxu2 %v10496_v2  ;;  %v7649_v54 = vld [vmem:[#allocation9 + $0x730] sm:$0xff]  ;;  %v7652_v2 = vld [vmem:[#allocation9 + $0x738] sm:$0xff] }
 0x35c   :  { %2164 = vmatpush.msra.mxu1 %v7577_v50  ;;  %2204 = vmatpush.msrb.mxu3 %v7580_v37  ;;  %10518 = vst [vmem:[#allocation82_spill] sm:$0xff] %v7649_v54 }
 0x35d   :  { %2442 = vmatpush.msra.mxu0 %v10497_v23  ;;  %2482 = vmatpush.msrb.mxu2 %v10498_v28  ;;  %10519 = vst [vmem:[#allocation83_spill] sm:$0xff] %v7652_v2  ;;  %v10520_v23 = vld [vmem:[#allocation130_spill] sm:$0xff]  ;;  %v10521_v28 = vld [vmem:[#allocation131_spill] sm:$0xff] }
 0x35e   :  { %2165 = vmatpush.msra.mxu1 %v7585_v61  ;;  %2205 = vmatpush.msrb.mxu3 %v7588_v7 }
 0x35f   :  { %2443 = vmatpush.msra.mxu0 %v10499_v40  ;;  %2483 = vmatpush.msrb.mxu2 %v10500_v12  ;;  %v7657_v40 = vld [vmem:[#allocation9 + $0x6f0] sm:$0xff]  ;;  %v7660_v12 = vld [vmem:[#allocation9 + $0x6f8] sm:$0xff] }
 0x360   :  { %2166 = vmatpush.msra.mxu1 %v7593_v32  ;;  %2206 = vmatpush.msrb.mxu3 %v7596_v17  ;;  %10522 = vst [vmem:[#allocation84_spill] sm:$0xff] %v7657_v40 }
 0x361   :  { %2444 = vmatpush.msra.mxu0 %v10501_v6  ;;  %2484 = vmatpush.msrb.mxu2 %v10502_v43  ;;  %10523 = vst [vmem:[#allocation80_spill] sm:$0xff] %v7660_v12  ;;  %v10524_v6 = vld [vmem:[#allocation132_spill] sm:$0xff]  ;;  %v10525_v43 = vld [vmem:[#allocation133_spill] sm:$0xff] }
 0x362   :  { %2167 = vmatpush.msra.mxu1 %v7601_v36  ;;  %2207 = vmatpush.msrb.mxu3 %v7604_v30 }
 0x363   :  { %2445 = vmatpush.msra.mxu0 %v10503_v41  ;;  %2485 = vmatpush.msrb.mxu2 %v10504_v62  ;;  %v7665_v41 = vld [vmem:[#allocation9 + $0x6b0] sm:$0xff]  ;;  %v7668_v62 = vld [vmem:[#allocation9 + $0x6b8] sm:$0xff] }
 0x364   :  { %2168 = vmatpush.msra.mxu1 %v7609_v22  ;;  %2208 = vmatpush.msrb.mxu3 %v7612_v14  ;;  %10526 = vst [vmem:[#allocation85_spill] sm:$0xff] %v7665_v41 }
 0x365   :  { %2446 = vmatpush.msra.mxu0 %v10505_v38  ;;  %2486 = vmatpush.msrb.mxu2 %v10506_v33  ;;  %10527 = vst [vmem:[#allocation86_spill] sm:$0xff] %v7668_v62  ;;  %v10528_v38 = vld [vmem:[#allocation134_spill] sm:$0xff]  ;;  %v10529_v33 = vld [vmem:[#allocation135_spill] sm:$0xff] }
 0x366   :  { %2169 = vmatpush.msra.mxu1 %v7617_v18  ;;  %2209 = vmatpush.msrb.mxu3 %v7620_v44 }
 0x367   :  { %2170 = vmatmul.f32.vlgmr.msra.gmra.mxu1 %v7489_v48  ;;  %2210 = vmatmul.f32.vlgmr.msrb.gmra.mxu3 %v7489_v48 }
 0x368   :  { %2234 = vmatpush.msrb.mxu1 %v7625_v52  ;;  %2274 = vmatpush.msra.mxu3 %v7628_v25  ;;  %v10657_v25 = vld [vmem:[#allocation59_spill] sm:$0xff] }
 0x369   :  { %2447 = vmatpush.msra.mxu0 %v10508_v19  ;;  %2487 = vmatpush.msrb.mxu2 %v10509_v8  ;;  %v7673_v19 = vld [vmem:[#allocation9 + $0x670] sm:$0xff]  ;;  %v7676_v8 = vld [vmem:[#allocation9 + $0x678] sm:$0xff] }
 0x36a   :  { %2235 = vmatpush.msrb.mxu1 %v7633_v11  ;;  %2275 = vmatpush.msra.mxu3 %v7636_v34  ;;  %10530 = vst [vmem:[#allocation87_spill] sm:$0xff] %v7673_v19 }
 0x36b   :  { %2448 = vmatpush.msra.mxu0 %v10512_v59  ;;  %2488 = vmatpush.msrb.mxu2 %v10513_v63  ;;  %10531 = vst [vmem:[#allocation88_spill] sm:$0xff] %v7676_v8  ;;  %v10532_v59 = vld [vmem:[#allocation136_spill] sm:$0xff]  ;;  %v10533_v63 = vld [vmem:[#allocation137_spill] sm:$0xff] }
 0x36c   :  { %2236 = vmatpush.msrb.mxu1 %v7641_v42  ;;  %2276 = vmatpush.msra.mxu3 %v7644_v15 }
 0x36d   :  { %2449 = vmatpush.msra.mxu0 %v10516_v13  ;;  %2489 = vmatpush.msrb.mxu2 %v10517_v31  ;;  %v7681_v13 = vld [vmem:[#allocation9 + $0x630] sm:$0xff]  ;;  %v7684_v31 = vld [vmem:[#allocation9 + $0x638] sm:$0xff] }
 0x36e   :  { %2237 = vmatpush.msrb.mxu1 %v7649_v54  ;;  %2277 = vmatpush.msra.mxu3 %v7652_v2  ;;  %10534 = vst [vmem:[#allocation91_spill] sm:$0xff] %v7681_v13 }
 0x36f   :  { %2450 = vmatpush.msra.mxu0 %v10520_v23  ;;  %2490 = vmatpush.msrb.mxu2 %v10521_v28  ;;  %10535 = vst [vmem:[#allocation92_spill] sm:$0xff] %v7684_v31  ;;  %v10536_v23 = vld [vmem:[#allocation138_spill] sm:$0xff]  ;;  %v10537_v28 = vld [vmem:[#allocation139_spill] sm:$0xff] }
 0x370   :  { %2238 = vmatpush.msrb.mxu1 %v7657_v40  ;;  %2278 = vmatpush.msra.mxu3 %v7660_v12 }
 0x371   :  { %2451 = vmatpush.msra.mxu0 %v10524_v6  ;;  %2491 = vmatpush.msrb.mxu2 %v10525_v43  ;;  %v7689_v6 = vld [vmem:[#allocation9 + $0x5f0] sm:$0xff]  ;;  %v7692_v43 = vld [vmem:[#allocation9 + $0x5f8] sm:$0xff] }
 0x372   :  { %2239 = vmatpush.msrb.mxu1 %v7665_v41  ;;  %2279 = vmatpush.msra.mxu3 %v7668_v62  ;;  %10538 = vst [vmem:[#allocation93_spill] sm:$0xff] %v7689_v6  ;;  %v10650_v41 = vld [vmem:[#allocation19_spill] sm:$0xff] }
 0x373   :  { %2452 = vmatpush.msra.mxu0 %v10528_v38  ;;  %2492 = vmatpush.msrb.mxu2 %v10529_v33  ;;  %10539 = vst [vmem:[#allocation94_spill] sm:$0xff] %v7692_v43  ;;  %v10540_v38 = vld [vmem:[#allocation140_spill] sm:$0xff]  ;;  %v10541_v33 = vld [vmem:[#allocation141_spill] sm:$0xff] }
 0x374   :  { %2240 = vmatpush.msrb.mxu1 %v7673_v19  ;;  %2280 = vmatpush.msra.mxu3 %v7676_v8  ;;  %v10646_v19 = vld [vmem:[#allocation30_spill] sm:$0xff] }
 0x375   :  { %2453 = vmatpush.msra.mxu0 %v10532_v59  ;;  %2493 = vmatpush.msrb.mxu2 %v10533_v63  ;;  %v7697_v59 = vld [vmem:[#allocation9 + $0x5b0] sm:$0xff]  ;;  %v7700_v63 = vld [vmem:[#allocation9 + $0x5b8] sm:$0xff] }
 0x376   :  { %2241 = vmatpush.msrb.mxu1 %v7681_v13  ;;  %2281 = vmatpush.msra.mxu3 %v7684_v31  ;;  %10542 = vst [vmem:[#allocation95_spill] sm:$0xff] %v7697_v59  ;;  %v10577_v31 = vld [vmem:[#allocation163_spill] sm:$0xff]  ;;  %v10644_v13 = vld [vmem:[#allocation18_spill] sm:$0xff] }
 0x377   :  { %2518 = vmatpush.msrb.mxu0 %v10536_v23  ;;  %2558 = vmatpush.msra.mxu2 %v10537_v28  ;;  %10543 = vst [vmem:[#allocation96_spill] sm:$0xff] %v7700_v63  ;;  %v10544_v23 = vld [vmem:[#allocation142_spill] sm:$0xff]  ;;  %v10545_v28 = vld [vmem:[#allocation143_spill] sm:$0xff] }
 0x378   :  { %2242 = vmatpush.msrb.mxu1 %v7689_v6  ;;  %2282 = vmatpush.msra.mxu3 %v7692_v43  ;;  %v7708_v43 = vld [vmem:[#allocation9 + $0x578] sm:$0xff]  ;;  %v10575_v6 = vld [vmem:[#allocation161_spill] sm:$0xff] }
 0x379   :  { %2519 = vmatpush.msrb.mxu0 %v10540_v38  ;;  %2559 = vmatpush.msra.mxu2 %v10541_v33  ;;  %10547 = vst [vmem:[#allocation100_spill] sm:$0xff] %v7708_v43  ;;  %v10548_v38 = vld [vmem:[#allocation144_spill] sm:$0xff]  ;;  %v10549_v33 = vld [vmem:[#allocation145_spill] sm:$0xff] }
 0x37a   :  { %2243 = vmatpush.msrb.mxu1 %v7697_v59  ;;  %2283 = vmatpush.msra.mxu3 %v7700_v63  ;;  %v7713_v59 = vld [vmem:[#allocation9 + $0x530] sm:$0xff]  ;;  %v7716_v63 = vld [vmem:[#allocation9 + $0x538] sm:$0xff] }
 0x37b   :  { %2520 = vmatpush.msrb.mxu0 %v10544_v23  ;;  %2560 = vmatpush.msra.mxu2 %v10545_v28  ;;  %10550 = vst [vmem:[#allocation101_spill] sm:$0xff] %v7713_v59  ;;  %v10552_v23 = vld [vmem:[#allocation146_spill] sm:$0xff]  ;;  %v10553_v28 = vld [vmem:[#allocation147_spill] sm:$0xff] }
 0x37c   :  { %2244 = vmatpush.msrb.mxu1 %v7705_v46  ;;  %2284 = vmatpush.msra.mxu3 %v7708_v43  ;;  %10551 = vst [vmem:[#allocation26_spill] sm:$0xff] %v7716_v63  ;;  %v7721_v46 = vld [vmem:[#allocation9 + $0x4f0] sm:$0xff]  ;;  %v7724_v43 = vld [vmem:[#allocation9 + $0x4f8] sm:$0xff] }
 0x37d   :  { %2521 = vmatpush.msrb.mxu0 %v10548_v38  ;;  %2561 = vmatpush.msra.mxu2 %v10549_v33  ;;  %10554 = vst [vmem:[#allocation102_spill] sm:$0xff] %v7721_v46  ;;  %v10556_v38 = vld [vmem:[#allocation148_spill] sm:$0xff]  ;;  %v10557_v33 = vld [vmem:[#allocation149_spill] sm:$0xff] }
 0x37e   :  { %2245 = vmatpush.msrb.mxu1 %v7713_v59  ;;  %2285 = vmatpush.msra.mxu3 %v7716_v63  ;;  %10555 = vst [vmem:[#allocation103_spill] sm:$0xff] %v7724_v43  ;;  %v7729_v59 = vld [vmem:[#allocation9 + $0x4b0] sm:$0xff]  ;;  %v7732_v63 = vld [vmem:[#allocation9 + $0x4b8] sm:$0xff] }
 0x37f   :  { %2522 = vmatpush.msrb.mxu0 %v10552_v23  ;;  %2562 = vmatpush.msra.mxu2 %v10553_v28  ;;  %10558 = vst [vmem:[#allocation27_spill] sm:$0xff] %v7729_v59  ;;  %v10560_v23 = vld [vmem:[#allocation150_spill] sm:$0xff]  ;;  %v10561_v28 = vld [vmem:[#allocation151_spill] sm:$0xff] }
 0x380   :  { %2246 = vmatpush.msrb.mxu1 %v7721_v46  ;;  %2286 = vmatpush.msra.mxu3 %v7724_v43  ;;  %10559 = vst [vmem:[#allocation37_spill] sm:$0xff] %v7732_v63  ;;  %v7737_v46 = vld [vmem:[#allocation9 + $0x470] sm:$0xff]  ;;  %v7740_v43 = vld [vmem:[#allocation9 + $0x478] sm:$0xff] }
 0x381   :  { %2523 = vmatpush.msrb.mxu0 %v10556_v38  ;;  %2563 = vmatpush.msra.mxu2 %v10557_v33  ;;  %10562 = vst [vmem:[#allocation36_spill] sm:$0xff] %v7737_v46  ;;  %v10564_v38 = vld [vmem:[#allocation152_spill] sm:$0xff]  ;;  %v10565_v33 = vld [vmem:[#allocation153_spill] sm:$0xff] }
 0x382   :  { %2247 = vmatpush.msrb.mxu1 %v7729_v59  ;;  %2287 = vmatpush.msra.mxu3 %v7732_v63  ;;  %10563 = vst [vmem:[#allocation72_spill] sm:$0xff] %v7740_v43  ;;  %v7745_v59 = vld [vmem:[#allocation9 + $0x430] sm:$0xff]  ;;  %v7748_v63 = vld [vmem:[#allocation9 + $0x438] sm:$0xff] }
 0x383   :  { %2524 = vmatpush.msrb.mxu0 %v10560_v23  ;;  %2564 = vmatpush.msra.mxu2 %v10561_v28  ;;  %10566 = vst [vmem:[#allocation68_spill] sm:$0xff] %v7745_v59  ;;  %v10568_v23 = vld [vmem:[#allocation154_spill] sm:$0xff]  ;;  %v10569_v28 = vld [vmem:[#allocation155_spill] sm:$0xff] }
 0x384   :  { %2248 = vmatpush.msrb.mxu1 %v7737_v46  ;;  %2288 = vmatpush.msra.mxu3 %v7740_v43  ;;  %10567 = vst [vmem:[#allocation69_spill] sm:$0xff] %v7748_v63  ;;  %v10570_v43 = vld [vmem:[#allocation156_spill] sm:$0xff]  ;;  %v10573_v46 = vld [vmem:[#allocation159_spill] sm:$0xff] }
 0x385   :  { %2525 = vmatpush.msrb.mxu0 %v10564_v38  ;;  %2565 = vmatpush.msra.mxu2 %v10565_v33  ;;  %v10571_v38 = vld [vmem:[#allocation157_spill] sm:$0xff]  ;;  %v10572_v33 = vld [vmem:[#allocation158_spill] sm:$0xff] }
 0x386   :  { %2249 = vmatpush.msrb.mxu1 %v7745_v59  ;;  %2289 = vmatpush.msra.mxu3 %v7748_v63  ;;  %v10574_v59 = vld [vmem:[#allocation160_spill] sm:$0xff]  ;;  %v10576_v63 = vld [vmem:[#allocation162_spill] sm:$0xff] }
 0x387   :  { %2250 = vmatmul.f32.vlgmr.msrb.gmra.mxu1 %v7489_v48  ;;  %2290 = vmatmul.f32.vlgmr.msra.gmra.mxu3 %v7489_v48  ;;  %v10578_v48 = vld [vmem:[#allocation164_spill] sm:$0xff] }
 0x388   :  { %2526 = vmatpush.msrb.mxu0 %v10568_v23  ;;  %2566 = vmatpush.msra.mxu2 %v10569_v28  ;;  %v10579_v23 = vld [vmem:[#allocation165_spill] sm:$0xff]  ;;  %v10580_v28 = vld [vmem:[#allocation166_spill] sm:$0xff] }
 0x389   :  { %2458 = vmatpush.msra.mxu1 %v10570_v43  ;;  %2498 = vmatpush.msrb.mxu3 %v10571_v38  ;;  %v10581_v43 = vld [vmem:[#allocation167_spill] sm:$0xff]  ;;  %v10582_v38 = vld [vmem:[#allocation168_spill] sm:$0xff] }
 0x38a   :  { %2527 = vmatpush.msrb.mxu0 %v10572_v33  ;;  %2567 = vmatpush.msra.mxu2 %v10573_v46  ;;  %v10583_v33 = vld [vmem:[#allocation169_spill] sm:$0xff]  ;;  %v10584_v46 = vld [vmem:[#allocation170_spill] sm:$0xff] }
 0x38b   :  { %2459 = vmatpush.msra.mxu1 %v10574_v59  ;;  %2499 = vmatpush.msrb.mxu3 %v10575_v6  ;;  %v10585_v59 = vld [vmem:[#allocation171_spill] sm:$0xff]  ;;  %v10586_v6 = vld [vmem:[#allocation172_spill] sm:$0xff] }
 0x38c   :  { %2528 = vmatpush.msrb.mxu0 %v10576_v63  ;;  %2568 = vmatpush.msra.mxu2 %v10577_v31  ;;  %v10587_v63 = vld [vmem:[#allocation173_spill] sm:$0xff]  ;;  %v10588_v31 = vld [vmem:[#allocation174_spill] sm:$0xff] }
 0x38d   :  { %2460 = vmatpush.msra.mxu1 %v10578_v48  ;;  %2500 = vmatpush.msrb.mxu3 %v10579_v23  ;;  %v10589_v48 = vld [vmem:[#allocation175_spill] sm:$0xff]  ;;  %v10590_v23 = vld [vmem:[#allocation176_spill] sm:$0xff] }
 0x38e   :  { %2529 = vmatpush.msrb.mxu0 %v10580_v28  ;;  %2569 = vmatpush.msra.mxu2 %v10581_v43  ;;  %v10591_v28 = vld [vmem:[#allocation177_spill] sm:$0xff]  ;;  %v10592_v43 = vld [vmem:[#allocation178_spill] sm:$0xff] }
 0x38f   :  { %2461 = vmatpush.msra.mxu1 %v10582_v38  ;;  %2501 = vmatpush.msrb.mxu3 %v10583_v33  ;;  %v10593_v38 = vld [vmem:[#allocation179_spill] sm:$0xff]  ;;  %v10594_v33 = vld [vmem:[#allocation180_spill] sm:$0xff] }
 0x390   :  { %2530 = vmatpush.msrb.mxu0 %v10584_v46  ;;  %2570 = vmatpush.msra.mxu2 %v10585_v59  ;;  %v10595_v46 = vld [vmem:[#allocation181_spill] sm:$0xff]  ;;  %v10596_v59 = vld [vmem:[#allocation182_spill] sm:$0xff] }
 0x391   :  { %2462 = vmatpush.msra.mxu1 %v10586_v6  ;;  %2502 = vmatpush.msrb.mxu3 %v10587_v63  ;;  %v10597_v6 = vld [vmem:[#allocation183_spill] sm:$0xff]  ;;  %v10598_v63 = vld [vmem:[#allocation184_spill] sm:$0xff] }
 0x392   :  { %2531 = vmatpush.msrb.mxu0 %v10588_v31  ;;  %2571 = vmatpush.msra.mxu2 %v10589_v48  ;;  %v10599_v31 = vld [vmem:[#allocation185_spill] sm:$0xff]  ;;  %v10600_v48 = vld [vmem:[#allocation186_spill] sm:$0xff] }
 0x393   :  { %2463 = vmatpush.msra.mxu1 %v10590_v23  ;;  %2503 = vmatpush.msrb.mxu3 %v10591_v28  ;;  %v10601_v23 = vld [vmem:[#allocation187_spill] sm:$0xff]  ;;  %v10602_v28 = vld [vmem:[#allocation188_spill] sm:$0xff] }
 0x394   :  { %2532 = vmatpush.msrb.mxu0 %v10592_v43  ;;  %2572 = vmatpush.msra.mxu2 %v10593_v38  ;;  %v10603_v43 = vld [vmem:[#allocation189_spill] sm:$0xff]  ;;  %v10604_v38 = vld [vmem:[#allocation190_spill] sm:$0xff] }
 0x395   :  { %2464 = vmatpush.msra.mxu1 %v10594_v33  ;;  %2504 = vmatpush.msrb.mxu3 %v10595_v46  ;;  %v10605_v33 = vld [vmem:[#allocation191_spill] sm:$0xff]  ;;  %v10606_v46 = vld [vmem:[#allocation192_spill] sm:$0xff] }
 0x396   :  { %2533 = vmatpush.msrb.mxu0 %v10596_v59  ;;  %2573 = vmatpush.msra.mxu2 %v10597_v6  ;;  %v10607_v59 = vld [vmem:[#allocation193_spill] sm:$0xff]  ;;  %v10608_v6 = vld [vmem:[#allocation194_spill] sm:$0xff] }
 0x397   :  { %2465 = vmatpush.msra.mxu1 %v10598_v63  ;;  %2505 = vmatpush.msrb.mxu3 %v10599_v31  ;;  %v10609_v63 = vld [vmem:[#allocation195_spill] sm:$0xff]  ;;  %v10610_v31 = vld [vmem:[#allocation196_spill] sm:$0xff] }
 0x399   :  { %2466 = vmatpush.msra.mxu1 %v10600_v48  ;;  %2506 = vmatpush.msrb.mxu3 %v10601_v23  ;;  %v10611_v48 = vld [vmem:[#allocation197_spill] sm:$0xff]  ;;  %v10612_v23 = vld [vmem:[#allocation198_spill] sm:$0xff] }
 0x39b   :  { %2467 = vmatpush.msra.mxu1 %v10602_v28  ;;  %2507 = vmatpush.msrb.mxu3 %v10603_v43  ;;  %v10613_v28 = vld [vmem:[#allocation199_spill] sm:$0xff]  ;;  %v10614_v43 = vld [vmem:[#allocation200_spill] sm:$0xff] }
 0x39d   :  { %2468 = vmatpush.msra.mxu1 %v10604_v38  ;;  %2508 = vmatpush.msrb.mxu3 %v10605_v33  ;;  %v10615_v38 = vld [vmem:[#allocation201_spill] sm:$0xff]  ;;  %v10616_v33 = vld [vmem:[#allocation202_spill] sm:$0xff] }
 0x39f   :  { %2469 = vmatpush.msra.mxu1 %v10606_v46  ;;  %2509 = vmatpush.msrb.mxu3 %v10607_v59  ;;  %v10617_v46 = vld [vmem:[#allocation203_spill] sm:$0xff]  ;;  %v10618_v59 = vld [vmem:[#allocation204_spill] sm:$0xff] }
 0x3a1   :  { %2470 = vmatpush.msra.mxu1 %v10608_v6  ;;  %2510 = vmatpush.msrb.mxu3 %v10609_v63  ;;  %v10619_v6 = vld [vmem:[#allocation205_spill] sm:$0xff]  ;;  %v10620_v63 = vld [vmem:[#allocation206_spill] sm:$0xff] }
 0x3a3   :  { %2471 = vmatpush.msra.mxu1 %v10610_v31  ;;  %2511 = vmatpush.msrb.mxu3 %v10611_v48  ;;  %v10621_v31 = vld [vmem:[#allocation207_spill] sm:$0xff]  ;;  %v10622_v48 = vld [vmem:[#allocation208_spill] sm:$0xff] }
 0x3a5   :  { %2472 = vmatpush.msra.mxu1 %v10612_v23  ;;  %2512 = vmatpush.msrb.mxu3 %v10613_v28  ;;  %v10623_v23 = vld [vmem:[#allocation209_spill] sm:$0xff]  ;;  %v10624_v28 = vld [vmem:[#allocation210_spill] sm:$0xff] }
 0x3a7   :  { %2473 = vmatpush.msra.mxu1 %v10614_v43  ;;  %2513 = vmatpush.msrb.mxu3 %v10615_v38  ;;  %v10625_v43 = vld [vmem:[#allocation211_spill] sm:$0xff]  ;;  %v10626_v38 = vld [vmem:[#allocation212_spill] sm:$0xff] }
 0x3a9   :  { %2538 = vmatpush.msrb.mxu1 %v10616_v33  ;;  %2578 = vmatpush.msra.mxu3 %v10617_v46  ;;  %v10627_v33 = vld [vmem:[#allocation213_spill] sm:$0xff]  ;;  %v10628_v46 = vld [vmem:[#allocation214_spill] sm:$0xff] }
 0x3ab   :  { %2539 = vmatpush.msrb.mxu1 %v10618_v59  ;;  %2579 = vmatpush.msra.mxu3 %v10619_v6  ;;  %v10629_v59 = vld [vmem:[#allocation215_spill] sm:$0xff]  ;;  %v10630_v6 = vld [vmem:[#allocation216_spill] sm:$0xff] }
 0x3ad   :  { %2540 = vmatpush.msrb.mxu1 %v10620_v63  ;;  %2580 = vmatpush.msra.mxu3 %v10621_v31  ;;  %v10631_v63 = vld [vmem:[#allocation217_spill] sm:$0xff]  ;;  %v10632_v31 = vld [vmem:[#allocation218_spill] sm:$0xff] }
 0x3af   :  { %2541 = vmatpush.msrb.mxu1 %v10622_v48  ;;  %2581 = vmatpush.msra.mxu3 %v10623_v23  ;;  %v10633_v48 = vld [vmem:[#allocation219_spill] sm:$0xff]  ;;  %v10634_v23 = vld [vmem:[#allocation220_spill] sm:$0xff] }
 0x3b1   :  { %2542 = vmatpush.msrb.mxu1 %v10624_v28  ;;  %2582 = vmatpush.msra.mxu3 %v10625_v43  ;;  %v10635_v28 = vld [vmem:[#allocation221_spill] sm:$0xff]  ;;  %v10636_v43 = vld [vmem:[#allocation222_spill] sm:$0xff] }
 0x3b3   :  { %2543 = vmatpush.msrb.mxu1 %v10626_v38  ;;  %2583 = vmatpush.msra.mxu3 %v10627_v33  ;;  %v10637_v38 = vld [vmem:[#allocation223_spill] sm:$0xff]  ;;  %v10638_v33 = vld [vmem:[#allocation224_spill] sm:$0xff] }
 0x3b5   :  { %2544 = vmatpush.msrb.mxu1 %v10628_v46  ;;  %2584 = vmatpush.msra.mxu3 %v10629_v59  ;;  %v10639_v46 = vld [vmem:[#allocation225_spill] sm:$0xff]  ;;  %v10640_v59 = vld [vmem:[#allocation226_spill] sm:$0xff] }
 0x3b7   :  { %2545 = vmatpush.msrb.mxu1 %v10630_v6  ;;  %2585 = vmatpush.msra.mxu3 %v10631_v63  ;;  %v10641_v6 = vld [vmem:[#allocation227_spill] sm:$0xff]  ;;  %v10642_v63 = vld [vmem:[#allocation228_spill] sm:$0xff] }
 0x3b9   :  { %2546 = vmatpush.msrb.mxu1 %v10632_v31  ;;  %2586 = vmatpush.msra.mxu3 %v10633_v48  ;;  %v10643_v31 = vld [vmem:[#allocation229_spill] sm:$0xff]  ;;  %v1991_v48 = vpop.f32.mrf.mxu0 }
 0x3bb   :  { %2547 = vmatpush.msrb.mxu1 %v10634_v23  ;;  %2587 = vmatpush.msra.mxu3 %v10635_v28  ;;  %v10645_v28 = vld [vmem:[#allocation34_spill] sm:$0xff] }
 0x3bc   :  { %v281_v8 = vadd.f32 %v10645_v28, %v10644_v13 }
 0x3bd   :  { %2548 = vmatpush.msrb.mxu1 %v10636_v43  ;;  %2588 = vmatpush.msra.mxu3 %v10637_v38  ;;  %v10647_v38 = vld [vmem:[#allocation230_spill] sm:$0xff] }
 0x3bf   :  { %2549 = vmatpush.msrb.mxu1 %v10638_v33  ;;  %2589 = vmatpush.msra.mxu3 %v10639_v46  ;;  %v10648_v46 = vld [vmem:[#allocation231_spill] sm:$0xff] }
 0x3c0   :  { %v2011_v23 = vpop.f32.mrf.mxu1 }
 0x3c1   :  { %2550 = vmatpush.msrb.mxu1 %v10640_v59  ;;  %2590 = vmatpush.msra.mxu3 %v10641_v6  ;;  %v2012_v43 = vadd.f32 %v2011_v23, %v1991_v48  ;;  %v10649_v59 = vld [vmem:[#allocation232_spill] sm:$0xff]  ;;  %v2031_v6 = vpop.f32.mrf.mxu2 }
 0x3c3   :  { %2551 = vmatpush.msrb.mxu1 %v10642_v63  ;;  %2591 = vmatpush.msra.mxu3 %v10643_v31  ;;  %v2298_v33 = vadd.f32 %v2012_v43, %v281_v8  ;;  %v10651_v31 = vld [vmem:[#allocation35_spill] sm:$0xff]  ;;  %v10652_v8 = vld [vmem:[#allocation32_spill] sm:$0xff] }
 0x3c4   :  { %v322_v12 = vadd.f32 %v10651_v31, %v10650_v41  ;;  %v10653_v43 = vld [vmem:[#allocation44_spill] sm:$0xff] }
 0x3c5   :  { %2552 = vmatpush.msrb.mxu1 %v10646_v19  ;;  %2592 = vmatpush.msra.mxu3 %v10647_v38  ;;  %v4475_v62 = vmul.f32 -1.442695, %v2298_v33  ;;  %v2071_v33 = vpop.f32.mrf.mxu0 }
 0x3c6   :  { %v2051_v63 = vpop.f32.mrf.mxu3 }
 0x3c7   :  { %2553 = vmatpush.msrb.mxu1 %v10648_v46  ;;  %2593 = vmatpush.msra.mxu3 %v10649_v59  ;;  %4644 = vpow2.f32 %v4475_v62  ;;  %v2052_v40 = vadd.f32 %v2051_v63, %v2031_v6  ;;  %v404_v46 = vadd.f32 %v10653_v43, %v10652_v8  ;;  %v10654_v62 = vld [vmem:[#allocation33_spill] sm:$0xff]  ;;  %v10655_v6 = vld [vmem:[#allocation43_spill] sm:$0xff] }
 0x3c8   :  { %v2091_v13 = vpop.f32.mrf.mxu1 }
 0x3c9   :  { %v2299_v2 = vadd.f32 %v2052_v40, %v322_v12  ;;  %v2111_v19 = vpop.f32.mrf.mxu2  ;;  %v2092_v15 = vadd.f32 %v2091_v13, %v2071_v33  ;;  %v363_v40 = vadd.f32 %v10655_v6, %v10654_v62 }
 0x3cb   :  { %v4476_v28 = vmul.f32 -1.442695, %v2299_v2  ;;  %v2300_v63 = vadd.f32 %v2092_v15, %v363_v40 }
 0x3cd   :  { %v4645_v48 = vpop.eup %4644  ;;  %4646 = vpow2.f32 %v4476_v28 }
 0x3ce   :  { %v2313_v23 = vadd.f32 1.0, %v4645_v48 }
 0x3d0   :  { %v2131_v38 = vpop.f32.mrf.mxu3  ;;  %4648 = vrcp.f32 %v2313_v23  ;;  %v2325_v41 = vand.u32 2147483648, %v2313_v23  ;;  %vm2319_vm9 = vweird.f32 %v2313_v23 }
 0x3d1   :  { %v2132_v59 = vadd.f32 %v2131_v38, %v2111_v19  ;;  %v2323_v38 = vand.u32 2147483647, %v2313_v23 }
 0x3d2   :  { %v2326_v33 = vor.u32 1.1754944e-38, %v2325_v41 }
 0x3d3   :  { %v2301_v54 = vadd.f32 %v2132_v59, %v404_v46  ;;  %v4647_v42 = vpop.eup %4646  ;;  %vm2324_vm11 = vcmp.eq.f32.partialorder %v2323_v38, 8.507059e+37 }
 0x3d4   :  { %v2332_v2 = vadd.f32 1.0, %v4647_v42 }
 0x3d5   :  { %v4477_v31 = vmul.f32 -1.442695, %v2301_v54 }
 0x3d6   :  { %v4649_v12 = vpop.eup %4648  ;;  %v2344_v6 = vand.u32 2147483648, %v2332_v2  ;;  %vm2338_vm13 = vweird.f32 %v2332_v2 }
 0x3d7   :  { %4650 = vpow2.f32 %v4477_v31  ;;  %v2315_v28 = vmul.f32 %v4649_v12, %v2313_v23  ;;  %vm2320_vm8 = vweird.f32 %v4649_v12 }
 0x3d8   :  { %4652 = vrcp.f32 %v2332_v2  ;;  %vm2321_vm10 = vmor %vm2319_vm9, %vm2320_vm8 }
 0x3d9   :  { %v2316_v48 = vsub.f32 1.0, %v2315_v28  ;;  %4654 = vtanh.f32 %v2300_v63  ;;  %v2151_v28 = vpop.f32.mrf.mxu0 }
 0x3db   :  { %v2317_v19 = vmul.f32 %v4649_v12, %v2316_v48  ;;  %v2342_v48 = vand.u32 2147483647, %v2332_v2 }
 0x3dd   :  { %v4651_v43 = vpop.eup %4650  ;;  %v2318_v54 = vadd.f32 %v4649_v12, %v2317_v19  ;;  %vm2343_vm15 = vcmp.eq.f32.partialorder %v2342_v48, 8.507059e+37 }
 0x3de   :  { %v4653_v46 = vpop.eup %4652  ;;  %v2352_v13 = vadd.f32 1.0, %v4651_v43  ;;  %v10656_v43 = vld [vmem:[#allocation58_spill] sm:$0xff] }
 0x3df   :  { %v2334_v59 = vmul.f32 %v4653_v46, %v2332_v2  ;;  %v2322_v31 = vsel %vm2321_vm10, %v4649_v12, %v2318_v54  ;;  %v4655_v15 = vpop.eup %4654  ;;  %vm2339_vm12 = vweird.f32 %v4653_v46  ;;  %v448_v34 = vadd.f32 %v10656_v43, %v10227_v55 }
 0x3e0   :  { %4656 = vrcp.f32 %v2352_v13  ;;  %v2327_v40 = vsel %vm2324_vm11, %v2326_v33, %v2322_v31  ;;  %vm2340_vm14 = vmor %vm2338_vm13, %vm2339_vm12  ;;  %v489_v43 = vadd.f32 %v10657_v25, %v10229_v56  ;;  %vm2358_vm1 = vweird.f32 %v2352_v13 }
 0x3e1   :  { %v2335_v42 = vsub.f32 1.0, %v2334_v59  ;;  %v2427_v62 = vmul.f32 %v4655_v15, %v2327_v40  ;;  %v2345_v59 = vor.u32 1.1754944e-38, %v2344_v6  ;;  %v2364_v6 = vand.u32 2147483648, %v2352_v13 }
 0x3e3   :  { %v2336_v63 = vmul.f32 %v4653_v46, %v2335_v42  ;;  %v2191_v42 = vpop.f32.mrf.mxu2 }
 0x3e4   :  { %v2171_v8 = vpop.f32.mrf.mxu1 }
 0x3e5   :  { %v2172_v19 = vadd.f32 %v2171_v8, %v2151_v28  ;;  %v2337_v23 = vadd.f32 %v4653_v46, %v2336_v63  ;;  %v2362_v63 = vand.u32 2147483647, %v2352_v13 }
 0x3e6   :  { %v4657_v41 = vpop.eup %4656 }
 0x3e7   :  { %v2306_v12 = vadd.f32 %v2172_v19, %v448_v34  ;;  %v2341_v38 = vsel %vm2340_vm14, %v4653_v46, %v2337_v23  ;;  %v2354_v54 = vmul.f32 %v4657_v41, %v2352_v13  ;;  %vm2359_vm0 = vweird.f32 %v4657_v41 }
 0x3e8   :  { %v2346_v33 = vsel %vm2343_vm15, %v2345_v59, %v2341_v38  ;;  %vm2360_vm2 = vmor %vm2358_vm1, %vm2359_vm0  ;;  %v2365_v23 = vor.u32 1.1754944e-38, %v2364_v6  ;;  %vm2363_vm3 = vcmp.eq.f32.partialorder %v2362_v63, 8.507059e+37  ;;  %v7858_v38 = vld [vmem:[#allocation9 + $0x3e0] sm:$0xff]  ;;  %v7894_v6 = vld [vmem:[#allocation9 + $0x2e8] sm:$0xff] }
 0x3e9   :  { %v4478_v31 = vmul.f32 -1.442695, %v2306_v12  ;;  %v2426_v11 = vmul.f32 %v2346_v33, %v7398_v49  ;;  %v2355_v15 = vsub.f32 1.0, %v2354_v54  ;;  %v7867_v33 = vld [vmem:[#allocation9 + $0x3a0] sm:$0xff]  ;;  %10661 = vst [vmem:[#allocation105_spill] sm:$0xff] %v7894_v6 }
 0x3ea   :  { %v2211_v40 = vpop.f32.mrf.mxu3 }
 0x3eb   :  { %4658 = vpow2.f32 %v4478_v31  ;;  %v2212_v8 = vadd.f32 %v2211_v40, %v2191_v42  ;;  %v7846_v2 = vadd.f32 %v2427_v62, %v2426_v11  ;;  %v2356_v28 = vmul.f32 %v4657_v41, %v2355_v15  ;;  %v7870_v31 = vld [vmem:[#allocation9 + $0x3a8] sm:$0xff]  ;;  %v7875_v15 = vld [vmem:[#allocation9 + $0x360] sm:$0xff] }
 0x3ec   :  { %v7878_v40 = vld [vmem:[#allocation9 + $0x368] sm:$0xff] }
 0x3ed   :  { %v2307_v34 = vadd.f32 %v2212_v8, %v489_v43  ;;  %4660 = vtanh.f32 %v7846_v2  ;;  %v2357_v46 = vadd.f32 %v4657_v41, %v2356_v28  ;;  %v7881_v43 = vld [vmem:[#allocation9 + $0x320] sm:$0xff]  ;;  %v7884_v8 = vld [vmem:[#allocation9 + $0x328] sm:$0xff] }
 0x3ee   :  { %10659 = vst [vmem:[#allocation89_spill] sm:$0xff] %v7884_v8 }
 0x3ef   :  { %v4479_v48 = vmul.f32 -1.442695, %v2307_v34  ;;  %v2361_v19 = vsel %vm2360_vm2, %v4657_v41, %v2357_v46  ;;  %v7861_v41 = vld [vmem:[#allocation9 + $0x3e8] sm:$0xff]  ;;  %v7891_v46 = vld [vmem:[#allocation9 + $0x2e0] sm:$0xff] }
 0x3f0   :  { %v2366_v62 = vsel %vm2363_vm3, %v2365_v23, %v2361_v19  ;;  %10660 = vst [vmem:[#allocation90_spill] sm:$0xff] %v7891_v46  ;;  %v2231_v23 = vpop.f32.mrf.mxu0 }
 0x3f1   :  { %v4659_v49 = vpop.eup %4658  ;;  %4662 = vpow2.f32 %v4479_v48  ;;  %v7899_v48 = vld [vmem:[#allocation9 + $0x2a0] sm:$0xff] }
 0x3f2   :  { %v7849_v25 = vadd.f32 1.0, %v4659_v49  ;;  %10662 = vst [vmem:[#allocation106_spill] sm:$0xff] %v7899_v48  ;;  %v7902_v49 = vld [vmem:[#allocation9 + $0x2a8] sm:$0xff] }
 0x3f3   :  { %v4661_v11 = vpop.eup %4660  ;;  %10663 = vst [vmem:[#allocation107_spill] sm:$0xff] %v7902_v49 }
 0x3f4   :  { %4664 = vrcp.f32 %v7849_v25  ;;  %v7852_v59 = vmul.f32 %v4661_v11, %v2366_v62  ;;  %vm2377_vm8 = vweird.f32 %v7849_v25 }
 0x3f6   :  { %10658 = vst [vmem:[#allocation42_spill] sm:$0xff] %v7852_v59  ;;  %2454 = vmatmul.f32.vlgmr.msra.gmra.mxu0 %v7852_v59  ;;  %2494 = vmatmul.f32.vlgmr.msrb.gmra.mxu2 %v7852_v59 }
 0x3f7   :  { %v4663_v12 = vpop.eup %4662  ;;  %2598 = vmatpush.msra.mxu0 %v7858_v38  ;;  %2638 = vmatpush.msrb.mxu2 %v7861_v41 }
 0x3f8   :  { %v7856_v13 = vadd.f32 1.0, %v4663_v12  ;;  %v7906_v12 = vld [vmem:[#allocation9 + $0x260] sm:$0xff] }
 0x3f9   :  { %2599 = vmatpush.msra.mxu0 %v7867_v33  ;;  %2639 = vmatpush.msrb.mxu2 %v7870_v31  ;;  %10664 = vst [vmem:[#allocation108_spill] sm:$0xff] %v7906_v12 }
 0x3fa   :  { %v7864_v54 = vpop.eup %4664  ;;  %4666 = vrcp.f32 %v7856_v13  ;;  %vm2396_vm5 = vweird.f32 %v7856_v13 }
 0x3fb   :  { %v2373_v42 = vmul.f32 %v7864_v54, %v7849_v25  ;;  %2600 = vmatpush.msra.mxu0 %v7875_v15  ;;  %2640 = vmatpush.msrb.mxu2 %v7878_v40  ;;  %vm2378_vm6 = vweird.f32 %v7864_v54 }
 0x3fc   :  { %vm7956_vm9 = vmor %vm2377_vm8, %vm2378_vm6 }
 0x3fd   :  { %2601 = vmatpush.msra.mxu0 %v7881_v43  ;;  %2641 = vmatpush.msrb.mxu2 %v7884_v8  ;;  %v2374_v34 = vsub.f32 1.0, %v2373_v42  ;;  %v7909_v42 = vld [vmem:[#allocation9 + $0x268] sm:$0xff] }
 0x3fe   :  { %2534 = vmatmul.f32.vlgmr.msrb.gmra.mxu0 %v7852_v59  ;;  %2574 = vmatmul.f32.vlgmr.msra.gmra.mxu2 %v7852_v59  ;;  %10665 = vst [vmem:[#allocation109_spill] sm:$0xff] %v7909_v42 }
 0x3ff   :  { %2602 = vmatpush.msra.mxu0 %v7891_v46  ;;  %2642 = vmatpush.msrb.mxu2 %v7894_v6  ;;  %v2375_v62 = vmul.f32 %v7864_v54, %v2374_v34  ;;  %v10666_v6 = vld [vmem:[#allocation76_spill] sm:$0xff]  ;;  %v7919_v34 = vld [vmem:[#allocation9 + $0x228] sm:$0xff] }
 0x400   :  { %v7889_v28 = vpop.eup %4666  ;;  %10668 = vst [vmem:[#allocation111_spill] sm:$0xff] %v7919_v34 }
 0x401   :  { %v2392_v63 = vmul.f32 %v7889_v28, %v7856_v13  ;;  %2603 = vmatpush.msra.mxu0 %v7899_v48  ;;  %2643 = vmatpush.msrb.mxu2 %v7902_v49  ;;  %v530_v48 = vadd.f32 %v10666_v6, %v10233_v4  ;;  %vm2397_vm4 = vweird.f32 %v7889_v28  ;;  %v2400_v6 = vand.u32 2147483647, %v7856_v13 }
 0x402   :  { %vm7936_vm7 = vmor %vm2396_vm5, %vm2397_vm4 }
 0x403   :  { %v2393_v19 = vsub.f32 1.0, %v2392_v63  ;;  %2604 = vmatpush.msra.mxu0 %v7906_v12  ;;  %2644 = vmatpush.msrb.mxu2 %v7909_v42  ;;  %v7916_v63 = vld [vmem:[#allocation9 + $0x220] sm:$0xff]  ;;  %v2402_v42 = vand.u32 2147483648, %v7856_v13  ;;  %v2383_v13 = vand.u32 2147483648, %v7849_v25  ;;  %vm2401_vm10 = vcmp.eq.f32.partialorder %v2400_v6, 8.507059e+37  ;;  %v7972_v6 = vld [vmem:[#allocation9 + $0x128] sm:$0xff] }
 0x404   :  { %v2251_v11 = vpop.f32.mrf.mxu1  ;;  %10667 = vst [vmem:[#allocation110_spill] sm:$0xff] %v7916_v63 }
 0x405   :  { %v2394_v46 = vmul.f32 %v7889_v28, %v2393_v19  ;;  %v2252_v8 = vadd.f32 %v2251_v11, %v2231_v23  ;;  %2605 = vmatpush.msra.mxu0 %v7916_v63  ;;  %2645 = vmatpush.msrb.mxu2 %v7919_v34  ;;  %v2376_v19 = vadd.f32 %v7864_v54, %v2375_v62  ;;  %v7928_v23 = vld [vmem:[#allocation9 + $0x1e0] sm:$0xff]  ;;  %v7931_v11 = vld [vmem:[#allocation9 + $0x1e8] sm:$0xff]  ;;  %v2403_v4 = vor.u32 1.1754944e-38, %v2402_v42 }
 0x406   :  { %10669 = vst [vmem:[#allocation112_spill] sm:$0xff] %v7928_v23  ;;  %v7949_v34 = vld [vmem:[#allocation9 + $0x1a8] sm:$0xff]  ;;  %v2384_v42 = vor.u32 1.1754944e-38, %v2383_v13  ;;  %v7984_v13 = vld [vmem:[#allocation9 + $0xa0] sm:$0xff] }
 0x407   :  { %v2395_v12 = vadd.f32 %v7889_v28, %v2394_v46  ;;  %v2308_v49 = vadd.f32 %v2252_v8, %v530_v48  ;;  %2606 = vmatpush.msra.mxu0 %v7928_v23  ;;  %10670 = vst [vmem:[#allocation113_spill] sm:$0xff] %v7931_v11  ;;  %2646 = vmatpush.msrb.mxu2 %v7931_v11  ;;  %v2271_v46 = vpop.f32.mrf.mxu2  ;;  %v2381_v48 = vand.u32 2147483647, %v7849_v25  ;;  %v7946_v11 = vld [vmem:[#allocation9 + $0x1a0] sm:$0xff] }
 0x408   :  { %10673 = vst [vmem:[#allocation114_spill] sm:$0xff] %v7946_v11  ;;  %v7963_v8 = vld [vmem:[#allocation9 + $0x160] sm:$0xff] }
 0x409   :  { %4668 = vtanh.f32 %v2308_v49  ;;  %v2399_v62 = vsel %vm7936_vm7, %v7889_v28, %v2395_v12  ;;  %2607 = vmatpush.msra.mxu0 %v7946_v11  ;;  %10674 = vst [vmem:[#allocation115_spill] sm:$0xff] %v7949_v34  ;;  %2647 = vmatpush.msrb.mxu2 %v7949_v34  ;;  %v10675_v49 = vld [vmem:[#allocation77_spill] sm:$0xff]  ;;  %v2380_v12 = vsel %vm7956_vm9, %v7864_v54, %v2376_v19  ;;  %v7966_v34 = vld [vmem:[#allocation9 + $0x168] sm:$0xff]  ;;  %vm2382_vm11 = vcmp.eq.f32.partialorder %v2381_v48, 8.507059e+37 }
 0x40a   :  { %v2291_v23 = vpop.f32.mrf.mxu3  ;;  %v571_v63 = vadd.f32 %v10675_v49, %v10460_v53  ;;  %10678 = vst [vmem:[#allocation116_spill] sm:$0xff] %v7963_v8  ;;  %v2404_v49 = vsel %vm2401_vm10, %v2403_v4, %v2399_v62  ;;  %v7969_v11 = vld [vmem:[#allocation9 + $0x120] sm:$0xff]  ;;  %v2385_v19 = vsel %vm2382_vm11, %v2384_v42, %v2380_v12  ;;  %v7979_v4 = vld [vmem:[#allocation9 + $0xe8] sm:$0xff] }
 0x40b   :  { %v2292_v28 = vadd.f32 %v2291_v23, %v2271_v46  ;;  %2608 = vmatpush.msra.mxu0 %v7963_v8  ;;  %2648 = vmatpush.msrb.mxu2 %v7966_v34  ;;  %v2429_v46 = vmul.f32 %v2404_v49, %v7460_v10  ;;  %v7976_v8 = vld [vmem:[#allocation9 + $0xe0] sm:$0xff]  ;;  %10679 = vst [vmem:[#allocation117_spill] sm:$0xff] %v7984_v13  ;;  %v7987_v48 = vld [vmem:[#allocation9 + $0xa8] sm:$0xff]  ;;  %v8004_v49 = vld [vmem:[#allocation9 + $0x3f0] sm:$0xff] }
 0x40c   :  { %10680 = vst [vmem:[#allocation118_spill] sm:$0xff] %v7987_v48  ;;  %v7993_v10 = vld [vmem:[#allocation9 + $0x68] sm:$0xff]  ;;  %v7996_v62 = vld [vmem:[#allocation9 + $0x20] sm:$0xff] }
 0x40d   :  { %v2309_v53 = vadd.f32 %v2292_v28, %v571_v63  ;;  %2609 = vmatpush.msra.mxu0 %v7969_v11  ;;  %2649 = vmatpush.msrb.mxu2 %v7972_v6  ;;  %10682 = vst [vmem:[#allocation120_spill] sm:$0xff] %v7993_v10  ;;  %v7999_v28 = vld [vmem:[#allocation9 + $0x28] sm:$0xff] }
 0x40e   :  { %10683 = vst [vmem:[#allocation121_spill] sm:$0xff] %v7996_v62 }
 0x40f   :  { %v4669_v54 = vpop.eup %4668  ;;  %v4480_v23 = vmul.f32 -1.442695, %v2309_v53  ;;  %2610 = vmatpush.msra.mxu0 %v7976_v8  ;;  %2650 = vmatpush.msrb.mxu2 %v7979_v4  ;;  %v7990_v53 = vld [vmem:[#allocation9 + $0x60] sm:$0xff]  ;;  %10684 = vst [vmem:[#allocation122_spill] sm:$0xff] %v7999_v28 }
 0x410   :  { %v2430_v25 = vmul.f32 %v4669_v54, %v2385_v19  ;;  %10681 = vst [vmem:[#allocation119_spill] sm:$0xff] %v7990_v53  ;;  %v8007_v54 = vld [vmem:[#allocation9 + $0x3f8] sm:$0xff]  ;;  %v8010_v19 = vld [vmem:[#allocation9 + $0x3b0] sm:$0xff] }
 0x411   :  { %4670 = vpow2.f32 %v4480_v23  ;;  %2611 = vmatpush.msra.mxu0 %v7984_v13  ;;  %2651 = vmatpush.msrb.mxu2 %v7987_v48  ;;  %10685 = vst [vmem:[#allocation123_spill] sm:$0xff] %v8004_v49  ;;  %v8013_v23 = vld [vmem:[#allocation9 + $0x3b8] sm:$0xff]  ;;  %v8059_v13 = vld [vmem:[#allocation9 + $0x1b0] sm:$0xff] }
 0x412   :  { %v7982_v63 = vadd.f32 %v2430_v25, %v2429_v46  ;;  %10686 = vst [vmem:[#allocation124_spill] sm:$0xff] %v8007_v54  ;;  %v8016_v46 = vld [vmem:[#allocation9 + $0x370] sm:$0xff]  ;;  %v8019_v25 = vld [vmem:[#allocation9 + $0x378] sm:$0xff] }
 0x413   :  { %2612 = vmatpush.msra.mxu0 %v7990_v53  ;;  %2652 = vmatpush.msrb.mxu2 %v7993_v10  ;;  %10687 = vst [vmem:[#allocation125_spill] sm:$0xff] %v8010_v19 }
 0x414   :  { %10688 = vst [vmem:[#allocation126_spill] sm:$0xff] %v8013_v23 }
 0x415   :  { %2613 = vmatpush.msra.mxu0 %v7996_v62  ;;  %2653 = vmatpush.msrb.mxu2 %v7999_v28  ;;  %10689 = vst [vmem:[#allocation127_spill] sm:$0xff] %v8016_v46  ;;  %v8034_v28 = vld [vmem:[#allocation9 + $0x2b0] sm:$0xff] }
 0x416   :  { %2614 = vmatmul.f32.vlgmr.msra.gmra.mxu0 %v7852_v59  ;;  %2654 = vmatmul.f32.vlgmr.msrb.gmra.mxu2 %v7852_v59  ;;  %10690 = vst [vmem:[#allocation128_spill] sm:$0xff] %v8019_v25  ;;  %v8041_v62 = vld [vmem:[#allocation9 + $0x270] sm:$0xff] }
 0x417   :  { %v4671_v12 = vpop.eup %4670  ;;  %2678 = vmatpush.msrb.mxu0 %v8004_v49  ;;  %2718 = vmatpush.msra.mxu2 %v8007_v54  ;;  %v8025_v54 = vld [vmem:[#allocation9 + $0x338] sm:$0xff]  ;;  %v8028_v49 = vld [vmem:[#allocation9 + $0x2f0] sm:$0xff]  ;;  %10695 = vst [vmem:[#allocation133_spill] sm:$0xff] %v8034_v28 }
 0x418   :  { %v2410_v42 = vadd.f32 1.0, %v4671_v12  ;;  %v8022_v12 = vld [vmem:[#allocation9 + $0x330] sm:$0xff]  ;;  %10692 = vst [vmem:[#allocation130_spill] sm:$0xff] %v8025_v54 }
 0x419   :  { %2679 = vmatpush.msrb.mxu0 %v8010_v19  ;;  %2719 = vmatpush.msra.mxu2 %v8013_v23  ;;  %10691 = vst [vmem:[#allocation129_spill] sm:$0xff] %v8022_v12  ;;  %v8031_v23 = vld [vmem:[#allocation9 + $0x2f8] sm:$0xff] }
 0x41a   :  { %4672 = vrcp.f32 %v2410_v42  ;;  %10693 = vst [vmem:[#allocation131_spill] sm:$0xff] %v8028_v49  ;;  %v2420_v10 = vand.u32 2147483647, %v2410_v42  ;;  %vm2416_vm13 = vweird.f32 %v2410_v42 }
 0x41b   :  { %2680 = vmatpush.msrb.mxu0 %v8016_v46  ;;  %2720 = vmatpush.msra.mxu2 %v8019_v25  ;;  %10694 = vst [vmem:[#allocation132_spill] sm:$0xff] %v8031_v23  ;;  %v8037_v25 = vld [vmem:[#allocation9 + $0x2b8] sm:$0xff]  ;;  %4674 = vtanh.f32 %v7982_v63 }
 0x41c   :  { %10696 = vst [vmem:[#allocation134_spill] sm:$0xff] %v8037_v25  ;;  %vm2421_vm15 = vcmp.eq.f32.partialorder %v2420_v10, 8.507059e+37  ;;  %v8085_v10 = vld [vmem:[#allocation9 + $0xf0] sm:$0xff] }
 0x41d   :  { %2681 = vmatpush.msrb.mxu0 %v8022_v12  ;;  %2721 = vmatpush.msra.mxu2 %v8025_v54  ;;  %v2422_v54 = vand.u32 2147483648, %v2410_v42  ;;  %10697 = vst [vmem:[#allocation135_spill] sm:$0xff] %v8041_v62 }
 0x41f   :  { %2682 = vmatpush.msrb.mxu0 %v8028_v49  ;;  %2722 = vmatpush.msra.mxu2 %v8031_v23  ;;  %v8044_v49 = vld [vmem:[#allocation9 + $0x278] sm:$0xff]  ;;  %v2423_v53 = vor.u32 1.1754944e-38, %v2422_v54  ;;  %v8067_v54 = vld [vmem:[#allocation9 + $0x170] sm:$0xff] }
 0x420   :  { %v4673_v19 = vpop.eup %4672  ;;  %10698 = vst [vmem:[#allocation136_spill] sm:$0xff] %v8044_v49 }
 0x421   :  { %v2412_v46 = vmul.f32 %v4673_v19, %v2410_v42  ;;  %2683 = vmatpush.msrb.mxu0 %v8034_v28  ;;  %2723 = vmatpush.msra.mxu2 %v8037_v25  ;;  %vm2417_vm12 = vweird.f32 %v4673_v19  ;;  %v8047_v28 = vld [vmem:[#allocation9 + $0x230] sm:$0xff]  ;;  %v8050_v25 = vld [vmem:[#allocation9 + $0x238] sm:$0xff]  ;;  %v4675_v48 = vpop.eup %4674 }
 0x422   :  { %10699 = vst [vmem:[#allocation137_spill] sm:$0xff] %v8047_v28  ;;  %vm2418_vm14 = vmor %vm2416_vm13, %vm2417_vm12 }
 0x423   :  { %v2413_v12 = vsub.f32 1.0, %v2412_v46  ;;  %2684 = vmatpush.msrb.mxu0 %v8041_v62  ;;  %2724 = vmatpush.msra.mxu2 %v8044_v49  ;;  %v8053_v62 = vld [vmem:[#allocation9 + $0x1f0] sm:$0xff]  ;;  %v8056_v49 = vld [vmem:[#allocation9 + $0x1f8] sm:$0xff] }
 0x424   :  { %10700 = vst [vmem:[#allocation138_spill] sm:$0xff] %v8053_v62 }
 0x425   :  { %v2414_v23 = vmul.f32 %v4673_v19, %v2413_v12  ;;  %2685 = vmatpush.msrb.mxu0 %v8047_v28  ;;  %2725 = vmatpush.msra.mxu2 %v8050_v25 }
 0x427   :  { %v2415_v46 = vadd.f32 %v4673_v19, %v2414_v23  ;;  %2686 = vmatpush.msrb.mxu0 %v8053_v62  ;;  %2726 = vmatpush.msra.mxu2 %v8056_v49  ;;  %v8062_v23 = vld [vmem:[#allocation9 + $0x1b8] sm:$0xff] }
 0x428   :  { %v8070_v62 = vld [vmem:[#allocation9 + $0x178] sm:$0xff] }
 0x429   :  { %v2419_v12 = vsel %vm2418_vm14, %v4673_v19, %v2415_v46  ;;  %2687 = vmatpush.msrb.mxu0 %v8059_v13  ;;  %2727 = vmatpush.msra.mxu2 %v8062_v23  ;;  %v8215_v19 = vld [vmem:[#allocation9 + $0x100] sm:$0xff]  ;;  %v8218_v46 = vld [vmem:[#allocation9 + $0x108] sm:$0xff] }
 0x42a   :  { %v2424_v28 = vsel %vm2421_vm15, %v2423_v53, %v2419_v12  ;;  %v8077_v53 = vld [vmem:[#allocation9 + $0x130] sm:$0xff]  ;;  %10722 = vst [vmem:[#allocation155_spill] sm:$0xff] %v8215_v19  ;;  %v10724_v12 = vld [vmem:[#allocation82_spill] sm:$0xff] }
 0x42b   :  { %v8065_v42 = vmul.f32 %v4675_v48, %v2424_v28  ;;  %2688 = vmatpush.msrb.mxu0 %v8067_v54  ;;  %2728 = vmatpush.msra.mxu2 %v8070_v62  ;;  %v8080_v48 = vld [vmem:[#allocation9 + $0x138] sm:$0xff]  ;;  %10723 = vst [vmem:[#allocation156_spill] sm:$0xff] %v8218_v46 }
 0x42c   :  { %v8088_v28 = vld [vmem:[#allocation9 + $0xf8] sm:$0xff] }
 0x42d   :  { %10701 = vst [vmem:[#allocation139_spill] sm:$0xff] %v8065_v42  ;;  %2474 = vmatmul.f32.vlgmr.msra.gmra.mxu1 %v8065_v42  ;;  %2514 = vmatmul.f32.vlgmr.msrb.gmra.mxu3 %v8065_v42 }
 0x42e   :  { %2618 = vmatpush.msra.mxu1 %v7495_v47  ;;  %2658 = vmatpush.msrb.mxu3 %v7498_v5  ;;  %v8093_v47 = vld [vmem:[#allocation9 + $0xb0] sm:$0xff]  ;;  %v8096_v5 = vld [vmem:[#allocation9 + $0xb8] sm:$0xff] }
 0x42f   :  { %2689 = vmatpush.msrb.mxu0 %v8077_v53  ;;  %2729 = vmatpush.msra.mxu2 %v8080_v48 }
 0x430   :  { %2619 = vmatpush.msra.mxu1 %v7503_v0  ;;  %2659 = vmatpush.msrb.mxu3 %v7506_v39  ;;  %v8105_v0 = vld [vmem:[#allocation9 + $0x70] sm:$0xff]  ;;  %v8108_v39 = vld [vmem:[#allocation9 + $0x78] sm:$0xff] }
 0x431   :  { %2690 = vmatpush.msrb.mxu0 %v8085_v10  ;;  %2730 = vmatpush.msra.mxu2 %v8088_v28 }
 0x432   :  { %2620 = vmatpush.msra.mxu1 %v7511_v21  ;;  %2660 = vmatpush.msrb.mxu3 %v7514_v27  ;;  %v8113_v21 = vld [vmem:[#allocation9 + $0x30] sm:$0xff]  ;;  %v8116_v27 = vld [vmem:[#allocation9 + $0x38] sm:$0xff] }
 0x433   :  { %2691 = vmatpush.msrb.mxu0 %v8093_v47  ;;  %2731 = vmatpush.msra.mxu2 %v8096_v5 }
 0x434   :  { %2621 = vmatpush.msra.mxu1 %v7519_v1  ;;  %2661 = vmatpush.msrb.mxu3 %v7522_v60  ;;  %v8123_v1 = vld [vmem:[#allocation9 + $0x3c0] sm:$0xff]  ;;  %v8126_v60 = vld [vmem:[#allocation9 + $0x3c8] sm:$0xff] }
 0x435   :  { %2554 = vmatmul.f32.vlgmr.msrb.gmra.mxu1 %v8065_v42  ;;  %2594 = vmatmul.f32.vlgmr.msra.gmra.mxu3 %v8065_v42 }
 0x436   :  { %2622 = vmatpush.msra.mxu1 %v7527_v20  ;;  %2662 = vmatpush.msrb.mxu3 %v7530_v16  ;;  %v8131_v20 = vld [vmem:[#allocation9 + $0x380] sm:$0xff]  ;;  %v8134_v16 = vld [vmem:[#allocation9 + $0x388] sm:$0xff] }
 0x437   :  { %2692 = vmatpush.msrb.mxu0 %v8105_v0  ;;  %2732 = vmatpush.msra.mxu2 %v8108_v39 }
 0x438   :  { %2623 = vmatpush.msra.mxu1 %v7535_v45  ;;  %2663 = vmatpush.msrb.mxu3 %v7538_v29  ;;  %v8139_v45 = vld [vmem:[#allocation9 + $0x340] sm:$0xff]  ;;  %v8142_v29 = vld [vmem:[#allocation9 + $0x348] sm:$0xff] }
 0x439   :  { %2693 = vmatpush.msrb.mxu0 %v8113_v21  ;;  %2733 = vmatpush.msra.mxu2 %v8116_v27 }
 0x43a   :  { %2694 = vmatmul.f32.vlgmr.msrb.gmra.mxu0 %v7852_v59  ;;  %2734 = vmatmul.f32.vlgmr.msra.gmra.mxu2 %v7852_v59  ;;  %v8231_v59 = vld [vmem:[#allocation9 + $0x80] sm:$0xff] }
 0x43b   :  { %2624 = vmatpush.msra.mxu1 %v7545_v58  ;;  %2664 = vmatpush.msrb.mxu3 %v7548_v51  ;;  %v8147_v58 = vld [vmem:[#allocation9 + $0x300] sm:$0xff]  ;;  %v8150_v51 = vld [vmem:[#allocation9 + $0x308] sm:$0xff]  ;;  %10730 = vst [vmem:[#allocation159_spill] sm:$0xff] %v8231_v59 }
 0x43c   :  { %2902 = vmatpush.msra.mxu0 %v8123_v1  ;;  %2942 = vmatpush.msrb.mxu2 %v8126_v60  ;;  %10702 = vst [vmem:[#allocation140_spill] sm:$0xff] %v8150_v51 }
 0x43d   :  { %2625 = vmatpush.msra.mxu1 %v7553_v35  ;;  %2665 = vmatpush.msrb.mxu3 %v7556_v3  ;;  %v8155_v35 = vld [vmem:[#allocation9 + $0x2c0] sm:$0xff]  ;;  %v8158_v3 = vld [vmem:[#allocation9 + $0x2c8] sm:$0xff] }
 0x43e   :  { %2903 = vmatpush.msra.mxu0 %v8131_v20  ;;  %2943 = vmatpush.msrb.mxu2 %v8134_v16  ;;  %10703 = vst [vmem:[#allocation141_spill] sm:$0xff] %v8155_v35 }
 0x43f   :  { %2626 = vmatpush.msra.mxu1 %v7561_v26  ;;  %2666 = vmatpush.msrb.mxu3 %v7564_v24  ;;  %10704 = vst [vmem:[#allocation142_spill] sm:$0xff] %v8158_v3  ;;  %v8163_v26 = vld [vmem:[#allocation9 + $0x280] sm:$0xff]  ;;  %v8166_v24 = vld [vmem:[#allocation9 + $0x288] sm:$0xff] }
 0x440   :  { %2904 = vmatpush.msra.mxu0 %v8139_v45  ;;  %2944 = vmatpush.msrb.mxu2 %v8142_v29  ;;  %10705 = vst [vmem:[#allocation143_spill] sm:$0xff] %v8163_v26 }
 0x441   :  { %2627 = vmatpush.msra.mxu1 %v7569_v57  ;;  %2667 = vmatpush.msrb.mxu3 %v7572_v9  ;;  %10706 = vst [vmem:[#allocation144_spill] sm:$0xff] %v8166_v24  ;;  %v8171_v57 = vld [vmem:[#allocation9 + $0x240] sm:$0xff]  ;;  %v8174_v9 = vld [vmem:[#allocation9 + $0x248] sm:$0xff] }
 0x442   :  { %2905 = vmatpush.msra.mxu0 %v8147_v58  ;;  %2945 = vmatpush.msrb.mxu2 %v8150_v51  ;;  %10707 = vst [vmem:[#allocation145_spill] sm:$0xff] %v8171_v57  ;;  %v10863_v51 = vld [vmem:[#allocation55_spill] sm:$0xff] }
 0x443   :  { %2628 = vmatpush.msra.mxu1 %v7577_v50  ;;  %2668 = vmatpush.msrb.mxu3 %v7580_v37  ;;  %10708 = vst [vmem:[#allocation146_spill] sm:$0xff] %v8174_v9  ;;  %v8179_v50 = vld [vmem:[#allocation9 + $0x200] sm:$0xff]  ;;  %v8182_v37 = vld [vmem:[#allocation9 + $0x208] sm:$0xff] }
 0x444   :  { %2906 = vmatpush.msra.mxu0 %v8155_v35  ;;  %2946 = vmatpush.msrb.mxu2 %v8158_v3  ;;  %10709 = vst [vmem:[#allocation147_spill] sm:$0xff] %v8179_v50 }
 0x445   :  { %2629 = vmatpush.msra.mxu1 %v7585_v61  ;;  %2669 = vmatpush.msrb.mxu3 %v7588_v7  ;;  %10710 = vst [vmem:[#allocation148_spill] sm:$0xff] %v8182_v37  ;;  %v8187_v61 = vld [vmem:[#allocation9 + $0x1c0] sm:$0xff]  ;;  %v8190_v7 = vld [vmem:[#allocation9 + $0x1c8] sm:$0xff] }
 0x446   :  { %2907 = vmatpush.msra.mxu0 %v8163_v26  ;;  %2947 = vmatpush.msrb.mxu2 %v8166_v24  ;;  %10711 = vst [vmem:[#allocation149_spill] sm:$0xff] %v8187_v61 }
 0x447   :  { %2630 = vmatpush.msra.mxu1 %v7593_v32  ;;  %2670 = vmatpush.msrb.mxu3 %v7596_v17  ;;  %10712 = vst [vmem:[#allocation150_spill] sm:$0xff] %v8190_v7  ;;  %v10713_v32 = vld [vmem:[#allocation40_spill] sm:$0xff]  ;;  %v8199_v17 = vld [vmem:[#allocation9 + $0x180] sm:$0xff] }
 0x448   :  { %2908 = vmatpush.msra.mxu0 %v8171_v57  ;;  %2948 = vmatpush.msrb.mxu2 %v8174_v9  ;;  %10714 = vst [vmem:[#allocation151_spill] sm:$0xff] %v8199_v17 }
 0x449   :  { %2631 = vmatpush.msra.mxu1 %v7601_v36  ;;  %2671 = vmatpush.msrb.mxu3 %v7604_v30  ;;  %v8202_v36 = vld [vmem:[#allocation9 + $0x188] sm:$0xff] }
 0x44a   :  { %2909 = vmatpush.msra.mxu0 %v8179_v50  ;;  %2949 = vmatpush.msrb.mxu2 %v8182_v37  ;;  %10715 = vst [vmem:[#allocation152_spill] sm:$0xff] %v8202_v36  ;;  %v10716_v30 = vld [vmem:[#allocation62_spill] sm:$0xff]  ;;  %v10859_v37 = vld [vmem:[#allocation49_spill] sm:$0xff] }
 0x44b   :  { %2632 = vmatpush.msra.mxu1 %v7609_v22  ;;  %2672 = vmatpush.msrb.mxu3 %v7612_v14  ;;  %v10717_v22 = vld [vmem:[#allocation63_spill] sm:$0xff]  ;;  %v8207_v14 = vld [vmem:[#allocation9 + $0x140] sm:$0xff] }
 0x44c   :  { %2910 = vmatpush.msra.mxu0 %v8187_v61  ;;  %2950 = vmatpush.msrb.mxu2 %v8190_v7  ;;  %10718 = vst [vmem:[#allocation153_spill] sm:$0xff] %v8207_v14 }
 0x44d   :  { %2633 = vmatpush.msra.mxu1 %v7617_v18  ;;  %2673 = vmatpush.msrb.mxu3 %v7620_v44  ;;  %v8210_v18 = vld [vmem:[#allocation9 + $0x148] sm:$0xff]  ;;  %v10720_v44 = vld [vmem:[#allocation79_spill] sm:$0xff] }
 0x44e   :  { %2634 = vmatmul.f32.vlgmr.msra.gmra.mxu1 %v8065_v42  ;;  %2674 = vmatmul.f32.vlgmr.msrb.gmra.mxu3 %v8065_v42  ;;  %10719 = vst [vmem:[#allocation154_spill] sm:$0xff] %v8210_v18 }
 0x44f   :  { %2698 = vmatpush.msrb.mxu1 %v7625_v52  ;;  %2738 = vmatpush.msra.mxu3 %v10713_v32  ;;  %v10721_v52 = vld [vmem:[#allocation81_spill] sm:$0xff]  ;;  %v10725_v32 = vld [vmem:[#allocation83_spill] sm:$0xff] }
 0x450   :  { %2911 = vmatpush.msra.mxu0 %v8199_v17  ;;  %2951 = vmatpush.msrb.mxu2 %v8202_v36 }
 0x451   :  { %2699 = vmatpush.msrb.mxu1 %v10716_v30  ;;  %2739 = vmatpush.msra.mxu3 %v10717_v22  ;;  %v8223_v30 = vld [vmem:[#allocation9 + $0xc0] sm:$0xff]  ;;  %v8226_v22 = vld [vmem:[#allocation9 + $0xc8] sm:$0xff] }
 0x452   :  { %2912 = vmatpush.msra.mxu0 %v8207_v14  ;;  %2952 = vmatpush.msrb.mxu2 %v8210_v18  ;;  %10726 = vst [vmem:[#allocation157_spill] sm:$0xff] %v8223_v30  ;;  %v8551_v18 = vld [vmem:[#allocation9 + $0x450] sm:$0xff] }
 0x453   :  { %2700 = vmatpush.msrb.mxu1 %v10720_v44  ;;  %2740 = vmatpush.msra.mxu3 %v10721_v52  ;;  %10727 = vst [vmem:[#allocation158_spill] sm:$0xff] %v8226_v22  ;;  %v10728_v44 = vld [vmem:[#allocation84_spill] sm:$0xff] }
 0x454   :  { %2913 = vmatpush.msra.mxu0 %v8215_v19  ;;  %2953 = vmatpush.msrb.mxu2 %v8218_v46  ;;  %v10729_v52 = vld [vmem:[#allocation80_spill] sm:$0xff]  ;;  %v8234_v46 = vld [vmem:[#allocation9 + $0x88] sm:$0xff] }
 0x455   :  { %2701 = vmatpush.msrb.mxu1 %v10724_v12  ;;  %2741 = vmatpush.msra.mxu3 %v10725_v32  ;;  %10731 = vst [vmem:[#allocation160_spill] sm:$0xff] %v8234_v46  ;;  %v10732_v12 = vld [vmem:[#allocation85_spill] sm:$0xff]  ;;  %v10733_v32 = vld [vmem:[#allocation86_spill] sm:$0xff] }
 0x456   :  { %2914 = vmatpush.msra.mxu0 %v8223_v30  ;;  %2954 = vmatpush.msrb.mxu2 %v8226_v22  ;;  %v8239_v30 = vld [vmem:[#allocation9 + $0x40] sm:$0xff]  ;;  %v8242_v22 = vld [vmem:[#allocation9 + $0x48] sm:$0xff] }
 0x457   :  { %2702 = vmatpush.msrb.mxu1 %v10728_v44  ;;  %2742 = vmatpush.msra.mxu3 %v10729_v52  ;;  %10734 = vst [vmem:[#allocation161_spill] sm:$0xff] %v8239_v30  ;;  %v10736_v44 = vld [vmem:[#allocation87_spill] sm:$0xff]  ;;  %v10737_v52 = vld [vmem:[#allocation88_spill] sm:$0xff] }
 0x458   :  { %2915 = vmatpush.msra.mxu0 %v8231_v59  ;;  %2955 = vmatpush.msrb.mxu2 %v8234_v46  ;;  %10735 = vst [vmem:[#allocation162_spill] sm:$0xff] %v8242_v22  ;;  %v8247_v59 = vld [vmem:[#allocation9] sm:$0xff]  ;;  %v8250_v46 = vld [vmem:[#allocation9 + $0x8] sm:$0xff] }
 0x459   :  { %2703 = vmatpush.msrb.mxu1 %v10732_v12  ;;  %2743 = vmatpush.msra.mxu3 %v10733_v32  ;;  %10738 = vst [vmem:[#allocation163_spill] sm:$0xff] %v8247_v59  ;;  %v10740_v12 = vld [vmem:[#allocation91_spill] sm:$0xff]  ;;  %v10741_v32 = vld [vmem:[#allocation92_spill] sm:$0xff] }
 0x45a   :  { %2916 = vmatpush.msra.mxu0 %v8239_v30  ;;  %2956 = vmatpush.msrb.mxu2 %v8242_v22  ;;  %10739 = vst [vmem:[#allocation164_spill] sm:$0xff] %v8250_v46  ;;  %v8255_v30 = vld [vmem:[#allocation9 + $0x3d0] sm:$0xff]  ;;  %v8258_v22 = vld [vmem:[#allocation9 + $0x3d8] sm:$0xff] }
 0x45b   :  { %2704 = vmatpush.msrb.mxu1 %v10736_v44  ;;  %2744 = vmatpush.msra.mxu3 %v10737_v52  ;;  %10742 = vst [vmem:[#allocation165_spill] sm:$0xff] %v8255_v30  ;;  %v10744_v44 = vld [vmem:[#allocation93_spill] sm:$0xff]  ;;  %v10745_v52 = vld [vmem:[#allocation94_spill] sm:$0xff] }
 0x45c   :  { %2917 = vmatpush.msra.mxu0 %v8247_v59  ;;  %2957 = vmatpush.msrb.mxu2 %v8250_v46  ;;  %10743 = vst [vmem:[#allocation166_spill] sm:$0xff] %v8258_v22  ;;  %v8263_v59 = vld [vmem:[#allocation9 + $0x390] sm:$0xff]  ;;  %v8266_v46 = vld [vmem:[#allocation9 + $0x398] sm:$0xff] }
 0x45d   :  { %2705 = vmatpush.msrb.mxu1 %v10740_v12  ;;  %2745 = vmatpush.msra.mxu3 %v10741_v32  ;;  %10746 = vst [vmem:[#allocation167_spill] sm:$0xff] %v8263_v59  ;;  %v10748_v12 = vld [vmem:[#allocation95_spill] sm:$0xff]  ;;  %v10749_v32 = vld [vmem:[#allocation96_spill] sm:$0xff] }
 0x45e   :  { %2982 = vmatpush.msrb.mxu0 %v8255_v30  ;;  %3022 = vmatpush.msra.mxu2 %v8258_v22  ;;  %10747 = vst [vmem:[#allocation168_spill] sm:$0xff] %v8266_v46  ;;  %v8271_v30 = vld [vmem:[#allocation9 + $0x350] sm:$0xff]  ;;  %v8274_v22 = vld [vmem:[#allocation9 + $0x358] sm:$0xff] }
 0x45f   :  { %2706 = vmatpush.msrb.mxu1 %v10744_v44  ;;  %2746 = vmatpush.msra.mxu3 %v10745_v52  ;;  %10750 = vst [vmem:[#allocation169_spill] sm:$0xff] %v8271_v30  ;;  %v10752_v44 = vld [vmem:[#allocation97_spill] sm:$0xff]  ;;  %v10753_v52 = vld [vmem:[#allocation100_spill] sm:$0xff] }
 0x460   :  { %2983 = vmatpush.msrb.mxu0 %v8263_v59  ;;  %3023 = vmatpush.msra.mxu2 %v8266_v46  ;;  %10751 = vst [vmem:[#allocation170_spill] sm:$0xff] %v8274_v22  ;;  %v8279_v59 = vld [vmem:[#allocation9 + $0x310] sm:$0xff]  ;;  %v8282_v46 = vld [vmem:[#allocation9 + $0x318] sm:$0xff] }
 0x461   :  { %2707 = vmatpush.msrb.mxu1 %v10748_v12  ;;  %2747 = vmatpush.msra.mxu3 %v10749_v32  ;;  %10754 = vst [vmem:[#allocation171_spill] sm:$0xff] %v8279_v59  ;;  %v10756_v12 = vld [vmem:[#allocation101_spill] sm:$0xff]  ;;  %v10757_v32 = vld [vmem:[#allocation26_spill] sm:$0xff] }
 0x462   :  { %2984 = vmatpush.msrb.mxu0 %v8271_v30  ;;  %3024 = vmatpush.msra.mxu2 %v8274_v22  ;;  %10755 = vst [vmem:[#allocation172_spill] sm:$0xff] %v8282_v46  ;;  %v8287_v30 = vld [vmem:[#allocation9 + $0x2d0] sm:$0xff]  ;;  %v8290_v22 = vld [vmem:[#allocation9 + $0x2d8] sm:$0xff] }
 0x463   :  { %2708 = vmatpush.msrb.mxu1 %v10752_v44  ;;  %2748 = vmatpush.msra.mxu3 %v10753_v52  ;;  %10758 = vst [vmem:[#allocation173_spill] sm:$0xff] %v8287_v30  ;;  %v10760_v44 = vld [vmem:[#allocation102_spill] sm:$0xff]  ;;  %v10761_v52 = vld [vmem:[#allocation103_spill] sm:$0xff] }
 0x464   :  { %2985 = vmatpush.msrb.mxu0 %v8279_v59  ;;  %3025 = vmatpush.msra.mxu2 %v8282_v46  ;;  %10759 = vst [vmem:[#allocation174_spill] sm:$0xff] %v8290_v22  ;;  %v8295_v59 = vld [vmem:[#allocation9 + $0x290] sm:$0xff]  ;;  %v8298_v46 = vld [vmem:[#allocation9 + $0x298] sm:$0xff] }
 0x465   :  { %2709 = vmatpush.msrb.mxu1 %v10756_v12  ;;  %2749 = vmatpush.msra.mxu3 %v10757_v32  ;;  %10762 = vst [vmem:[#allocation175_spill] sm:$0xff] %v8295_v59  ;;  %v10764_v12 = vld [vmem:[#allocation27_spill] sm:$0xff]  ;;  %v10765_v32 = vld [vmem:[#allocation37_spill] sm:$0xff] }
 0x466   :  { %2986 = vmatpush.msrb.mxu0 %v8287_v30  ;;  %3026 = vmatpush.msra.mxu2 %v8290_v22  ;;  %10763 = vst [vmem:[#allocation176_spill] sm:$0xff] %v8298_v46  ;;  %v8303_v30 = vld [vmem:[#allocation9 + $0x250] sm:$0xff]  ;;  %v8306_v22 = vld [vmem:[#allocation9 + $0x258] sm:$0xff] }
 0x467   :  { %2710 = vmatpush.msrb.mxu1 %v10760_v44  ;;  %2750 = vmatpush.msra.mxu3 %v10761_v52  ;;  %10766 = vst [vmem:[#allocation177_spill] sm:$0xff] %v8303_v30  ;;  %v10768_v44 = vld [vmem:[#allocation36_spill] sm:$0xff] }
 0x468   :  { %2987 = vmatpush.msrb.mxu0 %v8295_v59  ;;  %3027 = vmatpush.msra.mxu2 %v8298_v46  ;;  %10767 = vst [vmem:[#allocation178_spill] sm:$0xff] %v8306_v22  ;;  %v10769_v52 = vld [vmem:[#allocation72_spill] sm:$0xff]  ;;  %v8311_v59 = vld [vmem:[#allocation9 + $0x210] sm:$0xff] }
 0x469   :  { %2711 = vmatpush.msrb.mxu1 %v10764_v12  ;;  %2751 = vmatpush.msra.mxu3 %v10765_v32  ;;  %10770 = vst [vmem:[#allocation179_spill] sm:$0xff] %v8311_v59  ;;  %v8314_v46 = vld [vmem:[#allocation9 + $0x218] sm:$0xff]  ;;  %v10773_v32 = vld [vmem:[#allocation69_spill] sm:$0xff] }
 0x46a   :  { %2988 = vmatpush.msrb.mxu0 %v8303_v30  ;;  %3028 = vmatpush.msra.mxu2 %v8306_v22  ;;  %10771 = vst [vmem:[#allocation180_spill] sm:$0xff] %v8314_v46  ;;  %v10772_v12 = vld [vmem:[#allocation68_spill] sm:$0xff]  ;;  %v8321_v22 = vld [vmem:[#allocation9 + $0x1d0] sm:$0xff] }
 0x46b   :  { %2712 = vmatpush.msrb.mxu1 %v10768_v44  ;;  %2752 = vmatpush.msra.mxu3 %v10769_v52  ;;  %10774 = vst [vmem:[#allocation181_spill] sm:$0xff] %v8321_v22  ;;  %v8324_v44 = vld [vmem:[#allocation9 + $0x1d8] sm:$0xff]  ;;  %v8327_v52 = vld [vmem:[#allocation9 + $0x7c0] sm:$0xff] }
 0x46c   :  { %2989 = vmatpush.msrb.mxu0 %v8311_v59  ;;  %3029 = vmatpush.msra.mxu2 %v8314_v46  ;;  %10775 = vst [vmem:[#allocation182_spill] sm:$0xff] %v8324_v44  ;;  %v8330_v46 = vld [vmem:[#allocation9 + $0x7c8] sm:$0xff] }
 0x46d   :  { %2713 = vmatpush.msrb.mxu1 %v10772_v12  ;;  %2753 = vmatpush.msra.mxu3 %v10773_v32  ;;  %10776 = vst [vmem:[#allocation183_spill] sm:$0xff] %v8327_v52  ;;  %v8333_v12 = vld [vmem:[#allocation9 + $0x190] sm:$0xff]  ;;  %v8336_v32 = vld [vmem:[#allocation9 + $0x198] sm:$0xff]  ;;  %v10850_v59 = vld [vmem:[#allocation18_spill] sm:$0xff] }
 0x46e   :  { %2714 = vmatmul.f32.vlgmr.msrb.gmra.mxu1 %v8065_v42  ;;  %2754 = vmatmul.f32.vlgmr.msra.gmra.mxu3 %v8065_v42  ;;  %10777 = vst [vmem:[#allocation184_spill] sm:$0xff] %v8330_v46  ;;  %v8339_v42 = vld [vmem:[#allocation9 + $0x780] sm:$0xff] }
 0x46f   :  { %2990 = vmatpush.msrb.mxu0 %v8321_v22  ;;  %3030 = vmatpush.msra.mxu2 %v8324_v44  ;;  %10778 = vst [vmem:[#allocation185_spill] sm:$0xff] %v8333_v12  ;;  %v8342_v44 = vld [vmem:[#allocation9 + $0x788] sm:$0xff] }
 0x470   :  { %2922 = vmatpush.msra.mxu1 %v8327_v52  ;;  %2962 = vmatpush.msrb.mxu3 %v8330_v46  ;;  %10779 = vst [vmem:[#allocation186_spill] sm:$0xff] %v8336_v32  ;;  %v8345_v52 = vld [vmem:[#allocation9 + $0x150] sm:$0xff]  ;;  %v8348_v46 = vld [vmem:[#allocation9 + $0x158] sm:$0xff] }
 0x471   :  { %2991 = vmatpush.msrb.mxu0 %v8333_v12  ;;  %3031 = vmatpush.msra.mxu2 %v8336_v32  ;;  %10780 = vst [vmem:[#allocation187_spill] sm:$0xff] %v8339_v42  ;;  %v8351_v12 = vld [vmem:[#allocation9 + $0x740] sm:$0xff]  ;;  %v8354_v32 = vld [vmem:[#allocation9 + $0x748] sm:$0xff] }
 0x472   :  { %2923 = vmatpush.msra.mxu1 %v8339_v42  ;;  %10781 = vst [vmem:[#allocation188_spill] sm:$0xff] %v8342_v44  ;;  %2963 = vmatpush.msrb.mxu3 %v8342_v44  ;;  %v8357_v42 = vld [vmem:[#allocation9 + $0x110] sm:$0xff]  ;;  %v8360_v44 = vld [vmem:[#allocation9 + $0x118] sm:$0xff] }
 0x473   :  { %10782 = vst [vmem:[#allocation189_spill] sm:$0xff] %v8345_v52  ;;  %2992 = vmatpush.msrb.mxu0 %v8345_v52  ;;  %3032 = vmatpush.msra.mxu2 %v8348_v46  ;;  %v8363_v52 = vld [vmem:[#allocation9 + $0x700] sm:$0xff] }
 0x474   :  { %10783 = vst [vmem:[#allocation190_spill] sm:$0xff] %v8348_v46  ;;  %2924 = vmatpush.msra.mxu1 %v8351_v12  ;;  %2964 = vmatpush.msrb.mxu3 %v8354_v32  ;;  %v8366_v46 = vld [vmem:[#allocation9 + $0x708] sm:$0xff] }
 0x475   :  { %10784 = vst [vmem:[#allocation191_spill] sm:$0xff] %v8351_v12  ;;  %2993 = vmatpush.msrb.mxu0 %v8357_v42  ;;  %3033 = vmatpush.msra.mxu2 %v8360_v44  ;;  %v8369_v12 = vld [vmem:[#allocation9 + $0xd0] sm:$0xff] }
 0x476   :  { %10785 = vst [vmem:[#allocation192_spill] sm:$0xff] %v8354_v32  ;;  %2925 = vmatpush.msra.mxu1 %v8363_v52  ;;  %2965 = vmatpush.msrb.mxu3 %v8366_v46  ;;  %v8372_v32 = vld [vmem:[#allocation9 + $0xd8] sm:$0xff] }
 0x477   :  { %10786 = vst [vmem:[#allocation193_spill] sm:$0xff] %v8357_v42  ;;  %2994 = vmatpush.msrb.mxu0 %v8369_v12  ;;  %3034 = vmatpush.msra.mxu2 %v8372_v32  ;;  %v8375_v42 = vld [vmem:[#allocation9 + $0x6c0] sm:$0xff] }
 0x478   :  { %10787 = vst [vmem:[#allocation194_spill] sm:$0xff] %v8360_v44  ;;  %2926 = vmatpush.msra.mxu1 %v8375_v42  ;;  %v8378_v44 = vld [vmem:[#allocation9 + $0x6c8] sm:$0xff] }
 0x479   :  { %10788 = vst [vmem:[#allocation195_spill] sm:$0xff] %v8363_v52  ;;  %2966 = vmatpush.msrb.mxu3 %v8378_v44  ;;  %v8381_v52 = vld [vmem:[#allocation9 + $0x90] sm:$0xff]  ;;  %v2495_v14 = vpop.f32.mrf.mxu2 }
 0x47a   :  { %10789 = vst [vmem:[#allocation196_spill] sm:$0xff] %v8366_v46  ;;  %2995 = vmatpush.msrb.mxu0 %v8381_v52  ;;  %v8384_v46 = vld [vmem:[#allocation9 + $0x98] sm:$0xff] }
 0x47b   :  { %10790 = vst [vmem:[#allocation197_spill] sm:$0xff] %v8369_v12  ;;  %3035 = vmatpush.msra.mxu2 %v8384_v46  ;;  %v8387_v12 = vld [vmem:[#allocation9 + $0x680] sm:$0xff] }
 0x47c   :  { %10791 = vst [vmem:[#allocation198_spill] sm:$0xff] %v8372_v32  ;;  %2927 = vmatpush.msra.mxu1 %v8387_v12  ;;  %v8390_v32 = vld [vmem:[#allocation9 + $0x688] sm:$0xff] }
 0x47d   :  { %10792 = vst [vmem:[#allocation199_spill] sm:$0xff] %v8375_v42  ;;  %2967 = vmatpush.msrb.mxu3 %v8390_v32  ;;  %v8393_v42 = vld [vmem:[#allocation9 + $0x50] sm:$0xff] }
 0x47e   :  { %10793 = vst [vmem:[#allocation200_spill] sm:$0xff] %v8378_v44  ;;  %2996 = vmatpush.msrb.mxu0 %v8393_v42  ;;  %v8396_v44 = vld [vmem:[#allocation9 + $0x58] sm:$0xff] }
 0x47f   :  { %10794 = vst [vmem:[#allocation201_spill] sm:$0xff] %v8381_v52  ;;  %3036 = vmatpush.msra.mxu2 %v8396_v44  ;;  %v8399_v52 = vld [vmem:[#allocation9 + $0x640] sm:$0xff] }
 0x480   :  { %10795 = vst [vmem:[#allocation202_spill] sm:$0xff] %v8384_v46  ;;  %2928 = vmatpush.msra.mxu1 %v8399_v52  ;;  %v8402_v46 = vld [vmem:[#allocation9 + $0x648] sm:$0xff] }
 0x481   :  { %10796 = vst [vmem:[#allocation203_spill] sm:$0xff] %v8387_v12  ;;  %2968 = vmatpush.msrb.mxu3 %v8402_v46  ;;  %v8405_v12 = vld [vmem:[#allocation9 + $0x10] sm:$0xff] }
 0x482   :  { %10797 = vst [vmem:[#allocation204_spill] sm:$0xff] %v8390_v32  ;;  %2997 = vmatpush.msrb.mxu0 %v8405_v12  ;;  %v8408_v32 = vld [vmem:[#allocation9 + $0x18] sm:$0xff] }
 0x483   :  { %10798 = vst [vmem:[#allocation205_spill] sm:$0xff] %v8393_v42  ;;  %3037 = vmatpush.msra.mxu2 %v8408_v32  ;;  %v8411_v42 = vld [vmem:[#allocation9 + $0x600] sm:$0xff] }
 0x484   :  { %10799 = vst [vmem:[#allocation206_spill] sm:$0xff] %v8396_v44  ;;  %2929 = vmatpush.msra.mxu1 %v8411_v42  ;;  %v8414_v44 = vld [vmem:[#allocation9 + $0x608] sm:$0xff] }
 0x485   :  { %10800 = vst [vmem:[#allocation207_spill] sm:$0xff] %v8399_v52  ;;  %2969 = vmatpush.msrb.mxu3 %v8414_v44  ;;  %v8417_v52 = vld [vmem:[#allocation9 + $0x5c0] sm:$0xff] }
 0x486   :  { %10801 = vst [vmem:[#allocation208_spill] sm:$0xff] %v8402_v46  ;;  %2930 = vmatpush.msra.mxu1 %v8417_v52  ;;  %v8420_v46 = vld [vmem:[#allocation9 + $0x5c8] sm:$0xff] }
 0x487   :  { %10802 = vst [vmem:[#allocation209_spill] sm:$0xff] %v8405_v12  ;;  %2970 = vmatpush.msrb.mxu3 %v8420_v46  ;;  %v8423_v12 = vld [vmem:[#allocation9 + $0x580] sm:$0xff] }
 0x488   :  { %10803 = vst [vmem:[#allocation210_spill] sm:$0xff] %v8408_v32  ;;  %2931 = vmatpush.msra.mxu1 %v8423_v12  ;;  %v8426_v32 = vld [vmem:[#allocation9 + $0x588] sm:$0xff] }
 0x489   :  { %10804 = vst [vmem:[#allocation211_spill] sm:$0xff] %v8411_v42  ;;  %2971 = vmatpush.msrb.mxu3 %v8426_v32  ;;  %v8429_v42 = vld [vmem:[#allocation9 + $0x540] sm:$0xff] }
 0x48a   :  { %10805 = vst [vmem:[#allocation212_spill] sm:$0xff] %v8414_v44  ;;  %2932 = vmatpush.msra.mxu1 %v8429_v42  ;;  %v8432_v44 = vld [vmem:[#allocation9 + $0x548] sm:$0xff] }
 0x48b   :  { %10806 = vst [vmem:[#allocation213_spill] sm:$0xff] %v8417_v52  ;;  %2972 = vmatpush.msrb.mxu3 %v8432_v44  ;;  %v8435_v52 = vld [vmem:[#allocation9 + $0x500] sm:$0xff] }
 0x48c   :  { %10807 = vst [vmem:[#allocation214_spill] sm:$0xff] %v8420_v46  ;;  %2933 = vmatpush.msra.mxu1 %v8435_v52  ;;  %v8438_v46 = vld [vmem:[#allocation9 + $0x508] sm:$0xff] }
 0x48d   :  { %10808 = vst [vmem:[#allocation215_spill] sm:$0xff] %v8423_v12  ;;  %2973 = vmatpush.msrb.mxu3 %v8438_v46  ;;  %v8441_v12 = vld [vmem:[#allocation9 + $0x4c0] sm:$0xff] }
 0x48e   :  { %10809 = vst [vmem:[#allocation216_spill] sm:$0xff] %v8426_v32  ;;  %2934 = vmatpush.msra.mxu1 %v8441_v12  ;;  %v8444_v32 = vld [vmem:[#allocation9 + $0x4c8] sm:$0xff] }
 0x48f   :  { %10810 = vst [vmem:[#allocation217_spill] sm:$0xff] %v8429_v42  ;;  %2974 = vmatpush.msrb.mxu3 %v8444_v32  ;;  %v8447_v42 = vld [vmem:[#allocation9 + $0x480] sm:$0xff] }
 0x490   :  { %10811 = vst [vmem:[#allocation218_spill] sm:$0xff] %v8432_v44  ;;  %2935 = vmatpush.msra.mxu1 %v8447_v42  ;;  %v8450_v44 = vld [vmem:[#allocation9 + $0x488] sm:$0xff] }
 0x491   :  { %10812 = vst [vmem:[#allocation219_spill] sm:$0xff] %v8435_v52  ;;  %2975 = vmatpush.msrb.mxu3 %v8450_v44  ;;  %v8453_v52 = vld [vmem:[#allocation9 + $0x440] sm:$0xff] }
 0x492   :  { %10813 = vst [vmem:[#allocation220_spill] sm:$0xff] %v8438_v46  ;;  %2936 = vmatpush.msra.mxu1 %v8453_v52  ;;  %v8456_v46 = vld [vmem:[#allocation9 + $0x448] sm:$0xff] }
 0x493   :  { %10814 = vst [vmem:[#allocation221_spill] sm:$0xff] %v8441_v12  ;;  %2976 = vmatpush.msrb.mxu3 %v8456_v46  ;;  %v8459_v12 = vld [vmem:[#allocation9 + $0x400] sm:$0xff] }
 0x494   :  { %10815 = vst [vmem:[#allocation222_spill] sm:$0xff] %v8444_v32  ;;  %2937 = vmatpush.msra.mxu1 %v8459_v12  ;;  %v8462_v32 = vld [vmem:[#allocation9 + $0x408] sm:$0xff] }
 0x495   :  { %10816 = vst [vmem:[#allocation223_spill] sm:$0xff] %v8447_v42  ;;  %2977 = vmatpush.msrb.mxu3 %v8462_v32  ;;  %v8465_v42 = vld [vmem:[#allocation9 + $0x7d0] sm:$0xff] }
 0x496   :  { %10817 = vst [vmem:[#allocation224_spill] sm:$0xff] %v8450_v44  ;;  %3002 = vmatpush.msrb.mxu1 %v8465_v42  ;;  %v8468_v44 = vld [vmem:[#allocation9 + $0x7d8] sm:$0xff] }
 0x497   :  { %10818 = vst [vmem:[#allocation225_spill] sm:$0xff] %v8453_v52  ;;  %3042 = vmatpush.msra.mxu3 %v8468_v44  ;;  %v8471_v52 = vld [vmem:[#allocation9 + $0x790] sm:$0xff] }
 0x498   :  { %10819 = vst [vmem:[#allocation226_spill] sm:$0xff] %v8456_v46  ;;  %3003 = vmatpush.msrb.mxu1 %v8471_v52  ;;  %v8474_v46 = vld [vmem:[#allocation9 + $0x798] sm:$0xff] }
 0x499   :  { %10820 = vst [vmem:[#allocation227_spill] sm:$0xff] %v8459_v12  ;;  %3043 = vmatpush.msra.mxu3 %v8474_v46  ;;  %v8477_v12 = vld [vmem:[#allocation9 + $0x750] sm:$0xff] }
 0x49a   :  { %10821 = vst [vmem:[#allocation228_spill] sm:$0xff] %v8462_v32  ;;  %3004 = vmatpush.msrb.mxu1 %v8477_v12  ;;  %v8480_v32 = vld [vmem:[#allocation9 + $0x758] sm:$0xff] }
 0x49b   :  { %10822 = vst [vmem:[#allocation229_spill] sm:$0xff] %v8465_v42  ;;  %3044 = vmatpush.msra.mxu3 %v8480_v32  ;;  %v8483_v42 = vld [vmem:[#allocation9 + $0x710] sm:$0xff] }
 0x49c   :  { %10823 = vst [vmem:[#allocation34_spill] sm:$0xff] %v8468_v44  ;;  %3005 = vmatpush.msrb.mxu1 %v8483_v42  ;;  %v8486_v44 = vld [vmem:[#allocation9 + $0x718] sm:$0xff] }
 0x49d   :  { %10824 = vst [vmem:[#allocation30_spill] sm:$0xff] %v8471_v52  ;;  %3045 = vmatpush.msra.mxu3 %v8486_v44  ;;  %v8489_v52 = vld [vmem:[#allocation9 + $0x6d0] sm:$0xff] }
 0x49e   :  { %10825 = vst [vmem:[#allocation230_spill] sm:$0xff] %v8474_v46  ;;  %3006 = vmatpush.msrb.mxu1 %v8489_v52  ;;  %v8492_v46 = vld [vmem:[#allocation9 + $0x6d8] sm:$0xff] }
 0x49f   :  { %10826 = vst [vmem:[#allocation231_spill] sm:$0xff] %v8477_v12  ;;  %3046 = vmatpush.msra.mxu3 %v8492_v46  ;;  %v8495_v12 = vld [vmem:[#allocation9 + $0x690] sm:$0xff] }
 0x4a0   :  { %10827 = vst [vmem:[#allocation232_spill] sm:$0xff] %v8480_v32  ;;  %3007 = vmatpush.msrb.mxu1 %v8495_v12  ;;  %v8498_v32 = vld [vmem:[#allocation9 + $0x698] sm:$0xff] }
 0x4a1   :  { %10828 = vst [vmem:[#allocation35_spill] sm:$0xff] %v8483_v42  ;;  %3047 = vmatpush.msra.mxu3 %v8498_v32  ;;  %v8501_v42 = vld [vmem:[#allocation9 + $0x650] sm:$0xff] }
 0x4a2   :  { %10829 = vst [vmem:[#allocation44_spill] sm:$0xff] %v8486_v44  ;;  %3008 = vmatpush.msrb.mxu1 %v8501_v42  ;;  %v8504_v44 = vld [vmem:[#allocation9 + $0x658] sm:$0xff] }
 0x4a3   :  { %10830 = vst [vmem:[#allocation43_spill] sm:$0xff] %v8489_v52  ;;  %3048 = vmatpush.msra.mxu3 %v8504_v44  ;;  %v8507_v52 = vld [vmem:[#allocation9 + $0x610] sm:$0xff] }
 0x4a4   :  { %10831 = vst [vmem:[#allocation58_spill] sm:$0xff] %v8492_v46  ;;  %3009 = vmatpush.msrb.mxu1 %v8507_v52  ;;  %v8510_v46 = vld [vmem:[#allocation9 + $0x618] sm:$0xff] }
 0x4a5   :  { %10832 = vst [vmem:[#allocation59_spill] sm:$0xff] %v8495_v12  ;;  %3049 = vmatpush.msra.mxu3 %v8510_v46  ;;  %v8513_v12 = vld [vmem:[#allocation9 + $0x5d0] sm:$0xff] }
 0x4a6   :  { %10833 = vst [vmem:[#allocation76_spill] sm:$0xff] %v8498_v32  ;;  %3010 = vmatpush.msrb.mxu1 %v8513_v12  ;;  %v8516_v32 = vld [vmem:[#allocation9 + $0x5d8] sm:$0xff] }
 0x4a7   :  { %10834 = vst [vmem:[#allocation77_spill] sm:$0xff] %v8501_v42  ;;  %3050 = vmatpush.msra.mxu3 %v8516_v32  ;;  %v8519_v42 = vld [vmem:[#allocation9 + $0x590] sm:$0xff] }
 0x4a8   :  { %10835 = vst [vmem:[#allocation40_spill] sm:$0xff] %v8504_v44  ;;  %3011 = vmatpush.msrb.mxu1 %v8519_v42  ;;  %v8522_v44 = vld [vmem:[#allocation9 + $0x598] sm:$0xff] }
 0x4a9   :  { %10836 = vst [vmem:[#allocation62_spill] sm:$0xff] %v8507_v52  ;;  %3051 = vmatpush.msra.mxu3 %v8522_v44  ;;  %v8525_v52 = vld [vmem:[#allocation9 + $0x550] sm:$0xff] }
 0x4aa   :  { %10837 = vst [vmem:[#allocation63_spill] sm:$0xff] %v8510_v46  ;;  %3012 = vmatpush.msrb.mxu1 %v8525_v52  ;;  %v8528_v46 = vld [vmem:[#allocation9 + $0x558] sm:$0xff]  ;;  %v2475_v22 = vpop.f32.mrf.mxu1 }
 0x4ab   :  { %10838 = vst [vmem:[#allocation79_spill] sm:$0xff] %v8513_v12  ;;  %3052 = vmatpush.msra.mxu3 %v8528_v46  ;;  %v8531_v12 = vld [vmem:[#allocation9 + $0x510] sm:$0xff] }
 0x4ac   :  { %10839 = vst [vmem:[#allocation81_spill] sm:$0xff] %v8516_v32  ;;  %3013 = vmatpush.msrb.mxu1 %v8531_v12  ;;  %v8534_v32 = vld [vmem:[#allocation9 + $0x518] sm:$0xff] }
 0x4ad   :  { %10840 = vst [vmem:[#allocation82_spill] sm:$0xff] %v8519_v42  ;;  %3053 = vmatpush.msra.mxu3 %v8534_v32  ;;  %v8537_v42 = vld [vmem:[#allocation9 + $0x4d0] sm:$0xff] }
 0x4ae   :  { %10841 = vst [vmem:[#allocation83_spill] sm:$0xff] %v8522_v44  ;;  %3014 = vmatpush.msrb.mxu1 %v8537_v42  ;;  %v8540_v44 = vld [vmem:[#allocation9 + $0x4d8] sm:$0xff] }
 0x4af   :  { %10842 = vst [vmem:[#allocation84_spill] sm:$0xff] %v8525_v52  ;;  %3054 = vmatpush.msra.mxu3 %v8540_v44  ;;  %v8543_v52 = vld [vmem:[#allocation9 + $0x490] sm:$0xff] }
 0x4b0   :  { %10843 = vst [vmem:[#allocation80_spill] sm:$0xff] %v8528_v46  ;;  %3015 = vmatpush.msrb.mxu1 %v8543_v52  ;;  %v8546_v46 = vld [vmem:[#allocation9 + $0x498] sm:$0xff] }
 0x4b1   :  { %10844 = vst [vmem:[#allocation85_spill] sm:$0xff] %v8531_v12  ;;  %3055 = vmatpush.msra.mxu3 %v8546_v46  ;;  %v2455_v12 = vpop.f32.mrf.mxu0 }
 0x4b2   :  { %10845 = vst [vmem:[#allocation86_spill] sm:$0xff] %v8534_v32  ;;  %v10851_v32 = vld [vmem:[#allocation20_spill] sm:$0xff]  ;;  %v2476_v19 = vadd.f32 %v2475_v22, %v2455_v12  ;;  %3016 = vmatpush.msrb.mxu1 %v8551_v18  ;;  %v2515_v22 = vpop.f32.mrf.mxu3  ;;  %v10856_v12 = vld [vmem:[#allocation19_spill] sm:$0xff]  ;;  %v2555_v9 = vpop.f32.mrf.mxu1 }
 0x4b3   :  { %10846 = vst [vmem:[#allocation87_spill] sm:$0xff] %v8537_v42  ;;  %v284_v30 = vadd.f32 %v10851_v32, %v10850_v59  ;;  %v8554_v42 = vld [vmem:[#allocation9 + $0x458] sm:$0xff]  ;;  %v10857_v59 = vld [vmem:[#allocation21_spill] sm:$0xff] }
 0x4b4   :  { %10847 = vst [vmem:[#allocation88_spill] sm:$0xff] %v8540_v44  ;;  %3056 = vmatpush.msra.mxu3 %v8554_v42  ;;  %v325_v36 = vadd.f32 %v10857_v59, %v10856_v12 }
 0x4b5   :  { %10848 = vst [vmem:[#allocation91_spill] sm:$0xff] %v8543_v52  ;;  %v2762_v44 = vadd.f32 %v2476_v19, %v284_v30  ;;  %v8557_v52 = vld [vmem:[#allocation9 + $0x410] sm:$0xff]  ;;  %v2575_v19 = vpop.f32.mrf.mxu2 }
 0x4b6   :  { %10849 = vst [vmem:[#allocation92_spill] sm:$0xff] %v8546_v46  ;;  %3017 = vmatpush.msrb.mxu1 %v8557_v52  ;;  %v8560_v46 = vld [vmem:[#allocation9 + $0x418] sm:$0xff] }
 0x4b7   :  { %10852 = vst [vmem:[#allocation93_spill] sm:$0xff] %v8551_v18  ;;  %3057 = vmatpush.msra.mxu3 %v8560_v46  ;;  %v4481_v32 = vmul.f32 -1.442695, %v2762_v44  ;;  %v2516_v18 = vadd.f32 %v2515_v22, %v2495_v14  ;;  %v10861_v14 = vld [vmem:[#allocation48_spill] sm:$0xff] }
 0x4b8   :  { %10853 = vst [vmem:[#allocation94_spill] sm:$0xff] %v8554_v42 }
 0x4b9   :  { %10854 = vst [vmem:[#allocation95_spill] sm:$0xff] %v8557_v52  ;;  %4676 = vpow2.f32 %v4481_v32  ;;  %v2763_v17 = vadd.f32 %v2516_v18, %v325_v36  ;;  %v10858_v52 = vld [vmem:[#allocation32_spill] sm:$0xff]  ;;  %v2535_v44 = vpop.f32.mrf.mxu0  ;;  %v10860_v32 = vld [vmem:[#allocation33_spill] sm:$0xff] }
 0x4ba   :  { %10855 = vst [vmem:[#allocation96_spill] sm:$0xff] %v8560_v46  ;;  %v2595_v61 = vpop.f32.mrf.mxu3  ;;  %v407_v50 = vadd.f32 %v10859_v37, %v10858_v52  ;;  %v2556_v24 = vadd.f32 %v2555_v9, %v2535_v44  ;;  %v366_v36 = vadd.f32 %v10861_v14, %v10860_v32 }
 0x4bb   :  { %v4482_v7 = vmul.f32 -1.442695, %v2763_v17  ;;  %v2596_v46 = vadd.f32 %v2595_v61, %v2575_v19 }
 0x4bd   :  { %4678 = vpow2.f32 %v4482_v7  ;;  %v2765_v57 = vadd.f32 %v2596_v46, %v407_v50 }
 0x4bf   :  { %v4677_v42 = vpop.eup %4676  ;;  %v4483_v59 = vmul.f32 -1.442695, %v2765_v57 }
 0x4c0   :  { %v2777_v30 = vadd.f32 1.0, %v4677_v42  ;;  %v2764_v42 = vadd.f32 %v2556_v24, %v366_v36 }
 0x4c2   :  { %4680 = vrcp.f32 %v2777_v30  ;;  %v2789_v12 = vand.u32 2147483648, %v2777_v30  ;;  %v2787_v19 = vand.u32 2147483647, %v2777_v30  ;;  %vm2783_vm1 = vweird.f32 %v2777_v30 }
 0x4c3   :  { %v4679_v26 = vpop.eup %4678  ;;  %4682 = vpow2.f32 %v4483_v59 }
 0x4c4   :  { %v2796_v17 = vadd.f32 1.0, %v4679_v26  ;;  %v2790_v44 = vor.u32 1.1754944e-38, %v2789_v12  ;;  %vm2788_vm3 = vcmp.eq.f32.partialorder %v2787_v19, 8.507059e+37 }
 0x4c6   :  { %4684 = vrcp.f32 %v2796_v17  ;;  %v2808_v14 = vand.u32 2147483648, %v2796_v17  ;;  %vm2802_vm5 = vweird.f32 %v2796_v17 }
 0x4c7   :  { %4686 = vtanh.f32 %v2764_v42 }
 0x4c8   :  { %v4681_v7 = vpop.eup %4680 }
 0x4c9   :  { %v2779_v18 = vmul.f32 %v4681_v7, %v2777_v30  ;;  %v4683_v37 = vpop.eup %4682  ;;  %vm2784_vm0 = vweird.f32 %v4681_v7 }
 0x4ca   :  { %v2816_v9 = vadd.f32 1.0, %v4683_v37  ;;  %vm2785_vm2 = vmor %vm2783_vm1, %vm2784_vm0  ;;  %v10862_v37 = vld [vmem:[#allocation54_spill] sm:$0xff] }
 0x4cb   :  { %v2780_v22 = vsub.f32 1.0, %v2779_v18  ;;  %v2615_v18 = vpop.f32.mrf.mxu0  ;;  %v2635_v52 = vpop.f32.mrf.mxu1  ;;  %v445_v3 = vadd.f32 %v10862_v37, %v10227_v55  ;;  %v486_v37 = vadd.f32 %v10863_v51, %v10229_v56 }
 0x4cc   :  { %v4685_v50 = vpop.eup %4684  ;;  %4688 = vrcp.f32 %v2816_v9  ;;  %vm2822_vm9 = vweird.f32 %v2816_v9 }
 0x4cd   :  { %v2781_v61 = vmul.f32 %v4681_v7, %v2780_v22  ;;  %v2798_v46 = vmul.f32 %v4685_v50, %v2796_v17  ;;  %v4687_v24 = vpop.eup %4686  ;;  %vm2803_vm4 = vweird.f32 %v4685_v50  ;;  %v2806_v22 = vand.u32 2147483647, %v2796_v17 }
 0x4ce   :  { %vm2804_vm6 = vmor %vm2802_vm5, %vm2803_vm4 }
 0x4cf   :  { %v2782_v57 = vadd.f32 %v4681_v7, %v2781_v61  ;;  %v2799_v26 = vsub.f32 1.0, %v2798_v46  ;;  %v2636_v61 = vadd.f32 %v2635_v52, %v2615_v18  ;;  %v2809_v46 = vor.u32 1.1754944e-38, %v2808_v14 }
 0x4d0   :  { %vm2807_vm7 = vcmp.eq.f32.partialorder %v2806_v22, 8.507059e+37  ;;  %v2828_v14 = vand.u32 2147483648, %v2816_v9 }
 0x4d1   :  { %v2786_v59 = vsel %vm2785_vm2, %v4681_v7, %v2782_v57  ;;  %v2800_v42 = vmul.f32 %v4685_v50, %v2799_v26  ;;  %v2770_v7 = vadd.f32 %v2636_v61, %v445_v3  ;;  %v2655_v26 = vpop.f32.mrf.mxu2 }
 0x4d2   :  { %v2791_v36 = vsel %vm2788_vm3, %v2790_v44, %v2786_v59  ;;  %v4689_v12 = vpop.eup %4688 }
 0x4d3   :  { %v2891_v32 = vmul.f32 %v4687_v24, %v2791_v36  ;;  %v2801_v30 = vadd.f32 %v4685_v50, %v2800_v42  ;;  %v2818_v57 = vmul.f32 %v4689_v12, %v2816_v9  ;;  %v4484_v59 = vmul.f32 -1.442695, %v2770_v7  ;;  %v2675_v36 = vpop.f32.mrf.mxu3 }
 0x4d4   :  { %v2676_v52 = vadd.f32 %v2675_v36, %v2655_v26  ;;  %vm2823_vm8 = vweird.f32 %v4689_v12  ;;  %v2826_v42 = vand.u32 2147483647, %v2816_v9  ;;  %v2695_v26 = vpop.f32.mrf.mxu0  ;;  %v10870_v36 = vld [vmem:[#allocation108_spill] sm:$0xff] }
 0x4d5   :  { %v2805_v19 = vsel %vm2804_vm6, %v4685_v50, %v2801_v30  ;;  %v2819_v24 = vsub.f32 1.0, %v2818_v57  ;;  %4690 = vpow2.f32 %v4484_v59  ;;  %vm2824_vm10 = vmor %vm2822_vm9, %vm2823_vm8  ;;  %v2829_v30 = vor.u32 1.1754944e-38, %v2828_v14  ;;  %v10865_v57 = vld [vmem:[#allocation89_spill] sm:$0xff]  ;;  %v10868_v59 = vld [vmem:[#allocation106_spill] sm:$0xff] }
 0x4d6   :  { %v2810_v44 = vsel %vm2807_vm7, %v2809_v46, %v2805_v19  ;;  %v2771_v3 = vadd.f32 %v2676_v52, %v486_v37  ;;  %vm2827_vm11 = vcmp.eq.f32.partialorder %v2826_v42, 8.507059e+37  ;;  %v10871_v37 = vld [vmem:[#allocation109_spill] sm:$0xff]  ;;  %v10872_v52 = vld [vmem:[#allocation99_spill] sm:$0xff]  ;;  %v10874_v42 = vld [vmem:[#allocation110_spill] sm:$0xff] }
 0x4d7   :  { %v2890_v35 = vmul.f32 %v2810_v44, %v7846_v2  ;;  %v2820_v18 = vmul.f32 %v4689_v12, %v2819_v24 }
 0x4d8   :  { %v4485_v22 = vmul.f32 -1.442695, %v2771_v3 }
 0x4d9   :  { %v8574_v17 = vadd.f32 %v2891_v32, %v2890_v35  ;;  %v2821_v50 = vadd.f32 %v4689_v12, %v2820_v18  ;;  %v10873_v18 = vld [vmem:[#allocation74_spill] sm:$0xff] }
 0x4da   :  { %v527_v3 = vadd.f32 %v10873_v18, %v10872_v52 }
 0x4db   :  { %4692 = vtanh.f32 %v8574_v17  ;;  %v4691_v2 = vpop.eup %4690  ;;  %v2825_v61 = vsel %vm2824_vm10, %v4689_v12, %v2821_v50 }
 0x4dc   :  { %4694 = vpow2.f32 %v4485_v22  ;;  %v8577_v51 = vadd.f32 1.0, %v4691_v2  ;;  %v2830_v32 = vsel %vm2827_vm11, %v2829_v30, %v2825_v61  ;;  %v10875_v22 = vld [vmem:[#allocation111_spill] sm:$0xff] }
 0x4de   :  { %4696 = vrcp.f32 %v8577_v51  ;;  %vm2841_vm0 = vweird.f32 %v8577_v51 }
 0x4e1   :  { %v4693_v35 = vpop.eup %4692 }
 0x4e2   :  { %v8580_v46 = vmul.f32 %v4693_v35, %v2830_v32  ;;  %v4695_v7 = vpop.eup %4694 }
 0x4e3   :  { %v2854_v9 = vadd.f32 1.0, %v4695_v7  ;;  %v10876_v7 = vld [vmem:[#allocation112_spill] sm:$0xff] }
 0x4e4   :  { %10864 = vst [vmem:[#allocation97_spill] sm:$0xff] %v8580_v46  ;;  %2918 = vmatmul.f32.vlgmr.msra.gmra.mxu0 %v8580_v46  ;;  %2958 = vmatmul.f32.vlgmr.msrb.gmra.mxu2 %v8580_v46  ;;  %v8586_v12 = vpop.eup %4696 }
 0x4e5   :  { %3062 = vmatpush.msra.mxu0 %v7858_v38  ;;  %3102 = vmatpush.msrb.mxu2 %v7861_v41  ;;  %4698 = vrcp.f32 %v2854_v9  ;;  %v2837_v19 = vmul.f32 %v8586_v12, %v8577_v51  ;;  %v2866_v2 = vand.u32 2147483648, %v2854_v9  ;;  %vm2860_vm13 = vweird.f32 %v2854_v9 }
 0x4e6   :  { %vm2842_vm14 = vweird.f32 %v8586_v12  ;;  %v2864_v32 = vand.u32 2147483647, %v2854_v9 }
 0x4e7   :  { %3063 = vmatpush.msra.mxu0 %v7867_v33  ;;  %3103 = vmatpush.msrb.mxu2 %v7870_v31  ;;  %v2838_v41 = vsub.f32 1.0, %v2837_v19  ;;  %v10866_v33 = vld [vmem:[#allocation90_spill] sm:$0xff]  ;;  %v10867_v31 = vld [vmem:[#allocation105_spill] sm:$0xff]  ;;  %vm2843_vm1 = vmor %vm2841_vm0, %vm2842_vm14 }
 0x4e8   :  { %v10877_v19 = vld [vmem:[#allocation113_spill] sm:$0xff]  ;;  %vm2865_vm2 = vcmp.eq.f32.partialorder %v2864_v32, 8.507059e+37  ;;  %v10892_v32 = vld [vmem:[#allocation124_spill] sm:$0xff] }
 0x4e9   :  { %3064 = vmatpush.msra.mxu0 %v7875_v15  ;;  %3104 = vmatpush.msrb.mxu2 %v7878_v40  ;;  %v10869_v15 = vld [vmem:[#allocation107_spill] sm:$0xff]  ;;  %v2839_v24 = vmul.f32 %v8586_v12, %v2838_v41  ;;  %v2847_v41 = vand.u32 2147483648, %v8577_v51 }
 0x4eb   :  { %3065 = vmatpush.msra.mxu0 %v7881_v43  ;;  %3105 = vmatpush.msrb.mxu2 %v10865_v57  ;;  %v4699_v38 = vpop.eup %4698  ;;  %v2715_v43 = vpop.f32.mrf.mxu1  ;;  %v2840_v35 = vadd.f32 %v8586_v12, %v2839_v24  ;;  %v2867_v24 = vor.u32 1.1754944e-38, %v2866_v2  ;;  %v10895_v57 = vld [vmem:[#allocation127_spill] sm:$0xff] }
 0x4ec   :  { %2998 = vmatmul.f32.vlgmr.msrb.gmra.mxu0 %v8580_v46  ;;  %3038 = vmatmul.f32.vlgmr.msra.gmra.mxu2 %v8580_v46  ;;  %v2856_v44 = vmul.f32 %v4699_v38, %v2854_v9  ;;  %v2716_v14 = vadd.f32 %v2715_v43, %v2695_v26  ;;  %vm2861_vm12 = vweird.f32 %v4699_v38  ;;  %v10883_v26 = vld [vmem:[#allocation75_spill] sm:$0xff] }
 0x4ed   :  { %3066 = vmatpush.msra.mxu0 %v10866_v33  ;;  %3106 = vmatpush.msrb.mxu2 %v10867_v31  ;;  %vm8613_vm15 = vmor %vm2860_vm13, %vm2861_vm12  ;;  %v2735_v33 = vpop.f32.mrf.mxu2  ;;  %v2845_v31 = vand.u32 2147483647, %v8577_v51  ;;  %v10884_v51 = vld [vmem:[#allocation116_spill] sm:$0xff] }
 0x4ee   :  { %v2857_v40 = vsub.f32 1.0, %v2856_v44  ;;  %v2772_v61 = vadd.f32 %v2716_v14, %v527_v3 }
 0x4ef   :  { %3067 = vmatpush.msra.mxu0 %v10868_v59  ;;  %3107 = vmatpush.msrb.mxu2 %v10869_v15  ;;  %v10880_v59 = vld [vmem:[#allocation114_spill] sm:$0xff]  ;;  %v10881_v15 = vld [vmem:[#allocation115_spill] sm:$0xff]  ;;  %vm2846_vm3 = vcmp.eq.f32.partialorder %v2845_v31, 8.507059e+37 }
 0x4f0   :  { %v2858_v50 = vmul.f32 %v4699_v38, %v2857_v40  ;;  %4700 = vtanh.f32 %v2772_v61  ;;  %v10882_v40 = vld [vmem:[#allocation98_spill] sm:$0xff] }
 0x4f1   :  { %3068 = vmatpush.msra.mxu0 %v10870_v36  ;;  %3108 = vmatpush.msrb.mxu2 %v10871_v37  ;;  %v2755_v9 = vpop.f32.mrf.mxu3  ;;  %v568_v43 = vadd.f32 %v10883_v26, %v10882_v40  ;;  %v2844_v37 = vsel %vm2843_vm1, %v8586_v12, %v2840_v35  ;;  %v10885_v12 = vld [vmem:[#allocation117_spill] sm:$0xff]  ;;  %v10886_v61 = vld [vmem:[#allocation118_spill] sm:$0xff] }
 0x4f2   :  { %v2859_v30 = vadd.f32 %v4699_v38, %v2858_v50  ;;  %v2756_v36 = vadd.f32 %v2755_v9, %v2735_v33  ;;  %v10890_v35 = vld [vmem:[#allocation122_spill] sm:$0xff]  ;;  %v10897_v33 = vld [vmem:[#allocation129_spill] sm:$0xff]  ;;  %v10899_v9 = vld [vmem:[#allocation131_spill] sm:$0xff] }
 0x4f3   :  { %3069 = vmatpush.msra.mxu0 %v10874_v42  ;;  %3109 = vmatpush.msrb.mxu2 %v10875_v22  ;;  %v10898_v31 = vld [vmem:[#allocation130_spill] sm:$0xff]  ;;  %v10901_v26 = vld [vmem:[#allocation133_spill] sm:$0xff] }
 0x4f4   :  { %v2863_v44 = vsel %vm8613_vm15, %v4699_v38, %v2859_v30  ;;  %v2848_v38 = vor.u32 1.1754944e-38, %v2847_v41  ;;  %v2773_v3 = vadd.f32 %v2756_v36, %v568_v43  ;;  %v10889_v30 = vld [vmem:[#allocation121_spill] sm:$0xff]  ;;  %v10896_v41 = vld [vmem:[#allocation128_spill] sm:$0xff]  ;;  %v10902_v43 = vld [vmem:[#allocation134_spill] sm:$0xff] }
 0x4f5   :  { %3070 = vmatpush.msra.mxu0 %v10876_v7  ;;  %3110 = vmatpush.msrb.mxu2 %v10877_v19  ;;  %v2868_v18 = vsel %vm2865_vm2, %v2867_v24, %v2863_v44  ;;  %v10893_v7 = vld [vmem:[#allocation125_spill] sm:$0xff]  ;;  %v10894_v19 = vld [vmem:[#allocation126_spill] sm:$0xff] }
 0x4f6   :  { %v4701_v50 = vpop.eup %4700  ;;  %v2849_v14 = vsel %vm2846_vm3, %v2848_v38, %v2844_v37  ;;  %v4486_v42 = vmul.f32 -1.442695, %v2773_v3  ;;  %v2893_v22 = vmul.f32 %v2868_v18, %v7982_v63  ;;  %v10903_v37 = vld [vmem:[#allocation135_spill] sm:$0xff]  ;;  %v10905_v3 = vld [vmem:[#allocation137_spill] sm:$0xff] }
 0x4f7   :  { %3071 = vmatpush.msra.mxu0 %v10880_v59  ;;  %3111 = vmatpush.msrb.mxu2 %v10881_v15  ;;  %v2894_v2 = vmul.f32 %v4701_v50, %v2849_v14  ;;  %v10900_v59 = vld [vmem:[#allocation132_spill] sm:$0xff] }
 0x4f8   :  { %4702 = vpow2.f32 %v4486_v42  ;;  %v10906_v42 = vld [vmem:[#allocation138_spill] sm:$0xff] }
 0x4f9   :  { %3072 = vmatpush.msra.mxu0 %v10884_v51  ;;  %3112 = vmatpush.msrb.mxu2 %v7966_v34  ;;  %v8636_v34 = vadd.f32 %v2894_v2, %v2893_v22  ;;  %v10904_v51 = vld [vmem:[#allocation136_spill] sm:$0xff] }
 0x4fb   :  { %3073 = vmatpush.msra.mxu0 %v7969_v11  ;;  %3113 = vmatpush.msrb.mxu2 %v7972_v6  ;;  %v10887_v11 = vld [vmem:[#allocation119_spill] sm:$0xff]  ;;  %v10888_v6 = vld [vmem:[#allocation120_spill] sm:$0xff] }
 0x4fd   :  { %3074 = vmatpush.msra.mxu0 %v7976_v8  ;;  %3114 = vmatpush.msrb.mxu2 %v7979_v4  ;;  %v10891_v4 = vld [vmem:[#allocation123_spill] sm:$0xff] }
 0x4fe   :  { %v4703_v63 = vpop.eup %4702 }
 0x4ff   :  { %3075 = vmatpush.msra.mxu0 %v10885_v12  ;;  %3115 = vmatpush.msrb.mxu2 %v10886_v61  ;;  %v2874_v8 = vadd.f32 1.0, %v4703_v63  ;;  %v8766_v63 = vld [vmem:[#allocation9 + $0x528] sm:$0xff] }
 0x501   :  { %3076 = vmatpush.msra.mxu0 %v10887_v11  ;;  %3116 = vmatpush.msrb.mxu2 %v10888_v6  ;;  %4704 = vrcp.f32 %v2874_v8  ;;  %v2886_v36 = vand.u32 2147483648, %v2874_v8  ;;  %v2884_v18 = vand.u32 2147483647, %v2874_v8  ;;  %vm2880_vm5 = vweird.f32 %v2874_v8  ;;  %v8723_v11 = vld [vmem:[#allocation9 + $0x660] sm:$0xff]  ;;  %v8742_v6 = vld [vmem:[#allocation9 + $0x5e8] sm:$0xff] }
 0x502   :  { %4706 = vtanh.f32 %v8636_v34 }
 0x503   :  { %3077 = vmatpush.msra.mxu0 %v10889_v30  ;;  %3117 = vmatpush.msrb.mxu2 %v10890_v35  ;;  %v2887_v14 = vor.u32 1.1754944e-38, %v2886_v36  ;;  %vm2885_vm7 = vcmp.eq.f32.partialorder %v2884_v18, 8.507059e+37  ;;  %v8758_v30 = vld [vmem:[#allocation9 + $0x568] sm:$0xff]  ;;  %v8763_v35 = vld [vmem:[#allocation9 + $0x520] sm:$0xff]  ;;  %v8806_v36 = vld [vmem:[#allocation9 + $0x7f8] sm:$0xff] }
 0x504   :  { %3078 = vmatmul.f32.vlgmr.msra.gmra.mxu0 %v8580_v46  ;;  %3118 = vmatmul.f32.vlgmr.msrb.gmra.mxu2 %v8580_v46  ;;  %10919 = vst [vmem:[#allocation101_spill] sm:$0xff] %v8806_v36  ;;  %v8814_v18 = vld [vmem:[#allocation9 + $0x7b8] sm:$0xff] }
 0x505   :  { %3142 = vmatpush.msrb.mxu0 %v10891_v4  ;;  %3182 = vmatpush.msra.mxu2 %v10892_v32  ;;  %v8771_v4 = vld [vmem:[#allocation9 + $0x4e0] sm:$0xff]  ;;  %v8774_v32 = vld [vmem:[#allocation9 + $0x4e8] sm:$0xff]  ;;  %10923 = vst [vmem:[#allocation102_spill] sm:$0xff] %v8814_v18 }
 0x507   :  { %3143 = vmatpush.msrb.mxu0 %v10893_v7  ;;  %3183 = vmatpush.msra.mxu2 %v10894_v19  ;;  %v4705_v44 = vpop.eup %4704  ;;  %v10913_v7 = vld [vmem:[#allocation145_spill] sm:$0xff]  ;;  %v10914_v19 = vld [vmem:[#allocation146_spill] sm:$0xff] }
 0x508   :  { %v2876_v15 = vmul.f32 %v4705_v44, %v2874_v8  ;;  %vm2881_vm4 = vweird.f32 %v4705_v44  ;;  %v4707_v2 = vpop.eup %4706  ;;  %v10912_v8 = vld [vmem:[#allocation144_spill] sm:$0xff] }
 0x509   :  { %3144 = vmatpush.msrb.mxu0 %v10895_v57  ;;  %3184 = vmatpush.msra.mxu2 %v10896_v41  ;;  %vm2882_vm6 = vmor %vm2880_vm5, %vm2881_vm4  ;;  %v8779_v57 = vld [vmem:[#allocation9 + $0x4a0] sm:$0xff]  ;;  %v8782_v41 = vld [vmem:[#allocation9 + $0x4a8] sm:$0xff] }
 0x50a   :  { %v2877_v24 = vsub.f32 1.0, %v2876_v15  ;;  %v10918_v15 = vld [vmem:[#allocation150_spill] sm:$0xff] }
 0x50b   :  { %3145 = vmatpush.msrb.mxu0 %v10897_v33  ;;  %3185 = vmatpush.msra.mxu2 %v10898_v31  ;;  %v10915_v33 = vld [vmem:[#allocation147_spill] sm:$0xff]  ;;  %v10916_v31 = vld [vmem:[#allocation148_spill] sm:$0xff] }
 0x50c   :  { %v2878_v38 = vmul.f32 %v4705_v44, %v2877_v24  ;;  %v8803_v24 = vld [vmem:[#allocation9 + $0x7f0] sm:$0xff] }
 0x50d   :  { %3146 = vmatpush.msrb.mxu0 %v10899_v9  ;;  %3186 = vmatpush.msra.mxu2 %v10900_v59  ;;  %v8790_v9 = vld [vmem:[#allocation9 + $0x468] sm:$0xff]  ;;  %v10917_v59 = vld [vmem:[#allocation149_spill] sm:$0xff] }
 0x50e   :  { %v2879_v50 = vadd.f32 %v4705_v44, %v2878_v38  ;;  %v8811_v38 = vld [vmem:[#allocation9 + $0x7b0] sm:$0xff] }
 0x50f   :  { %3147 = vmatpush.msrb.mxu0 %v10901_v26  ;;  %3187 = vmatpush.msra.mxu2 %v10902_v43  ;;  %v8795_v26 = vld [vmem:[#allocation9 + $0x420] sm:$0xff]  ;;  %v8798_v43 = vld [vmem:[#allocation9 + $0x428] sm:$0xff]  ;;  %10922 = vst [vmem:[#allocation26_spill] sm:$0xff] %v8811_v38 }
 0x510   :  { %v2883_v22 = vsel %vm2882_vm6, %v4705_v44, %v2879_v50  ;;  %v8787_v44 = vld [vmem:[#allocation9 + $0x460] sm:$0xff]  ;;  %v10925_v50 = vld [vmem:[#allocation154_spill] sm:$0xff] }
 0x511   :  { %3148 = vmatpush.msrb.mxu0 %v10903_v37  ;;  %3188 = vmatpush.msra.mxu2 %v10904_v51  ;;  %v2888_v12 = vsel %vm2885_vm7, %v2887_v14, %v2883_v22  ;;  %v10920_v37 = vld [vmem:[#allocation151_spill] sm:$0xff]  ;;  %v10921_v51 = vld [vmem:[#allocation152_spill] sm:$0xff] }
 0x512   :  { %v8667_v61 = vmul.f32 %v4707_v2, %v2888_v12  ;;  %v8819_v14 = vld [vmem:[#allocation9 + $0x770] sm:$0xff]  ;;  %v10929_v2 = vld [vmem:[#allocation156_spill] sm:$0xff] }
 0x513   :  { %3149 = vmatpush.msrb.mxu0 %v10905_v3  ;;  %3189 = vmatpush.msra.mxu2 %v8050_v25  ;;  %v8673_v25 = vld [vmem:[#allocation9 + $0x7e0] sm:$0xff]  ;;  %10926 = vst [vmem:[#allocation103_spill] sm:$0xff] %v8819_v14  ;;  %v10928_v22 = vld [vmem:[#allocation155_spill] sm:$0xff] }
 0x514   :  { %10907 = vst [vmem:[#allocation100_spill] sm:$0xff] %v8667_v61  ;;  %2938 = vmatmul.f32.vlgmr.msra.gmra.mxu1 %v8667_v61  ;;  %2978 = vmatmul.f32.vlgmr.msrb.gmra.mxu3 %v8667_v61  ;;  %v10924_v3 = vld [vmem:[#allocation153_spill] sm:$0xff]  ;;  %v8827_v12 = vld [vmem:[#allocation9 + $0x730] sm:$0xff] }
 0x515   :  { %3150 = vmatpush.msrb.mxu0 %v10906_v42  ;;  %3190 = vmatpush.msra.mxu2 %v8056_v49  ;;  %v8676_v49 = vld [vmem:[#allocation9 + $0x7e8] sm:$0xff]  ;;  %v8822_v42 = vld [vmem:[#allocation9 + $0x778] sm:$0xff]  ;;  %10930 = vst [vmem:[#allocation37_spill] sm:$0xff] %v8827_v12 }
 0x516   :  { %3082 = vmatpush.msra.mxu1 %v8673_v25  ;;  %3122 = vmatpush.msrb.mxu3 %v8676_v49  ;;  %10927 = vst [vmem:[#allocation27_spill] sm:$0xff] %v8822_v42 }
 0x517   :  { %3151 = vmatpush.msrb.mxu0 %v8059_v13  ;;  %3191 = vmatpush.msra.mxu2 %v8062_v23  ;;  %v8681_v13 = vld [vmem:[#allocation9 + $0x7a0] sm:$0xff] }
 0x518   :  { %3083 = vmatpush.msra.mxu1 %v8681_v13  ;;  %v8689_v23 = vld [vmem:[#allocation9 + $0x760] sm:$0xff] }
 0x519   :  { %3152 = vmatpush.msrb.mxu0 %v8067_v54  ;;  %3192 = vmatpush.msra.mxu2 %v8070_v62  ;;  %v8684_v62 = vld [vmem:[#allocation9 + $0x7a8] sm:$0xff] }
 0x51a   :  { %3123 = vmatpush.msrb.mxu3 %v8684_v62  ;;  %3084 = vmatpush.msra.mxu1 %v8689_v23  ;;  %v8692_v54 = vld [vmem:[#allocation9 + $0x768] sm:$0xff] }
 0x51b   :  { %3153 = vmatpush.msrb.mxu0 %v8077_v53  ;;  %3193 = vmatpush.msra.mxu2 %v8080_v48  ;;  %v8697_v53 = vld [vmem:[#allocation9 + $0x720] sm:$0xff]  ;;  %v8700_v48 = vld [vmem:[#allocation9 + $0x728] sm:$0xff] }
 0x51c   :  { %3124 = vmatpush.msrb.mxu3 %v8692_v54  ;;  %3085 = vmatpush.msra.mxu1 %v8697_v53 }
 0x51d   :  { %3154 = vmatpush.msrb.mxu0 %v8085_v10  ;;  %3194 = vmatpush.msra.mxu2 %v8088_v28  ;;  %v8705_v10 = vld [vmem:[#allocation9 + $0x6e0] sm:$0xff]  ;;  %v8708_v28 = vld [vmem:[#allocation9 + $0x6e8] sm:$0xff] }
 0x51e   :  { %3125 = vmatpush.msrb.mxu3 %v8700_v48  ;;  %3018 = vmatmul.f32.vlgmr.msrb.gmra.mxu1 %v8667_v61 }
 0x51f   :  { %3155 = vmatpush.msrb.mxu0 %v8093_v47  ;;  %3195 = vmatpush.msra.mxu2 %v8096_v5  ;;  %v8713_v47 = vld [vmem:[#allocation9 + $0x6a0] sm:$0xff]  ;;  %v8716_v5 = vld [vmem:[#allocation9 + $0x6a8] sm:$0xff] }
 0x520   :  { %3058 = vmatmul.f32.vlgmr.msra.gmra.mxu3 %v8667_v61  ;;  %3086 = vmatpush.msra.mxu1 %v8705_v10 }
 0x521   :  { %3126 = vmatpush.msrb.mxu3 %v8708_v28  ;;  %3156 = vmatpush.msrb.mxu0 %v8105_v0  ;;  %v8726_v0 = vld [vmem:[#allocation9 + $0x668] sm:$0xff] }
 0x522   :  { %3196 = vmatpush.msra.mxu2 %v8108_v39  ;;  %3087 = vmatpush.msra.mxu1 %v8713_v47  ;;  %v8731_v39 = vld [vmem:[#allocation9 + $0x620] sm:$0xff] }
 0x523   :  { %3127 = vmatpush.msrb.mxu3 %v8716_v5  ;;  %3157 = vmatpush.msrb.mxu0 %v8113_v21  ;;  %v8734_v21 = vld [vmem:[#allocation9 + $0x628] sm:$0xff] }
 0x524   :  { %3197 = vmatpush.msra.mxu2 %v8116_v27  ;;  %3158 = vmatmul.f32.vlgmr.msrb.gmra.mxu0 %v8580_v46  ;;  %v8739_v27 = vld [vmem:[#allocation9 + $0x5e0] sm:$0xff] }
 0x525   :  { %3198 = vmatmul.f32.vlgmr.msra.gmra.mxu2 %v8580_v46  ;;  %3088 = vmatpush.msra.mxu1 %v8723_v11  ;;  %v8883_v46 = vld [vmem:[#allocation9 + $0x570] sm:$0xff] }
 0x526   :  { %3128 = vmatpush.msrb.mxu3 %v8726_v0  ;;  %3366 = vmatpush.msra.mxu0 %v8123_v1  ;;  %v8747_v1 = vld [vmem:[#allocation9 + $0x5a0] sm:$0xff]  ;;  %10958 = vst [vmem:[#allocation106_spill] sm:$0xff] %v8883_v46 }
 0x527   :  { %3406 = vmatpush.msrb.mxu2 %v8126_v60  ;;  %3089 = vmatpush.msra.mxu1 %v8731_v39  ;;  %v8750_v60 = vld [vmem:[#allocation9 + $0x5a8] sm:$0xff] }
 0x528   :  { %3129 = vmatpush.msrb.mxu3 %v8734_v21  ;;  %3367 = vmatpush.msra.mxu0 %v8131_v20  ;;  %v10908_v20 = vld [vmem:[#allocation140_spill] sm:$0xff] }
 0x529   :  { %3407 = vmatpush.msrb.mxu2 %v8134_v16  ;;  %3090 = vmatpush.msra.mxu1 %v8739_v27  ;;  %v8755_v16 = vld [vmem:[#allocation9 + $0x560] sm:$0xff] }
 0x52a   :  { %3130 = vmatpush.msrb.mxu3 %v8742_v6  ;;  %3368 = vmatpush.msra.mxu0 %v8139_v45  ;;  %v10909_v45 = vld [vmem:[#allocation141_spill] sm:$0xff] }
 0x52b   :  { %3408 = vmatpush.msrb.mxu2 %v8142_v29  ;;  %3091 = vmatpush.msra.mxu1 %v8747_v1  ;;  %v10910_v29 = vld [vmem:[#allocation142_spill] sm:$0xff] }
 0x52c   :  { %3131 = vmatpush.msrb.mxu3 %v8750_v60  ;;  %3369 = vmatpush.msra.mxu0 %v8147_v58  ;;  %v10911_v58 = vld [vmem:[#allocation143_spill] sm:$0xff] }
 0x52d   :  { %3409 = vmatpush.msrb.mxu2 %v10908_v20  ;;  %3092 = vmatpush.msra.mxu1 %v8755_v16  ;;  %v8830_v20 = vld [vmem:[#allocation9 + $0x738] sm:$0xff] }
 0x52e   :  { %3132 = vmatpush.msrb.mxu3 %v8758_v30  ;;  %3370 = vmatpush.msra.mxu0 %v10909_v45  ;;  %10931 = vst [vmem:[#allocation36_spill] sm:$0xff] %v8830_v20  ;;  %v10932_v45 = vld [vmem:[#allocation157_spill] sm:$0xff] }
 0x52f   :  { %3410 = vmatpush.msrb.mxu2 %v10910_v29  ;;  %3093 = vmatpush.msra.mxu1 %v8763_v35  ;;  %v10933_v29 = vld [vmem:[#allocation158_spill] sm:$0xff] }
 0x530   :  { %3133 = vmatpush.msrb.mxu3 %v8766_v63  ;;  %3371 = vmatpush.msra.mxu0 %v10911_v58  ;;  %v8835_v58 = vld [vmem:[#allocation9 + $0x6f0] sm:$0xff] }
 0x531   :  { %3411 = vmatpush.msrb.mxu2 %v10912_v8  ;;  %3094 = vmatpush.msra.mxu1 %v8771_v4  ;;  %10934 = vst [vmem:[#allocation72_spill] sm:$0xff] %v8835_v58  ;;  %v8838_v8 = vld [vmem:[#allocation9 + $0x6f8] sm:$0xff] }
 0x532   :  { %3134 = vmatpush.msrb.mxu3 %v8774_v32  ;;  %3372 = vmatpush.msra.mxu0 %v10913_v7  ;;  %10935 = vst [vmem:[#allocation68_spill] sm:$0xff] %v8838_v8  ;;  %v10936_v7 = vld [vmem:[#allocation159_spill] sm:$0xff] }
 0x533   :  { %3412 = vmatpush.msrb.mxu2 %v10914_v19  ;;  %3095 = vmatpush.msra.mxu1 %v8779_v57  ;;  %v10937_v19 = vld [vmem:[#allocation160_spill] sm:$0xff] }
 0x534   :  { %3135 = vmatpush.msrb.mxu3 %v8782_v41  ;;  %3373 = vmatpush.msra.mxu0 %v10915_v33  ;;  %v8843_v33 = vld [vmem:[#allocation9 + $0x6b0] sm:$0xff] }
 0x535   :  { %3413 = vmatpush.msrb.mxu2 %v10916_v31  ;;  %3096 = vmatpush.msra.mxu1 %v8787_v44  ;;  %10938 = vst [vmem:[#allocation69_spill] sm:$0xff] %v8843_v33  ;;  %v8846_v31 = vld [vmem:[#allocation9 + $0x6b8] sm:$0xff] }
 0x536   :  { %3136 = vmatpush.msrb.mxu3 %v8790_v9  ;;  %3374 = vmatpush.msra.mxu0 %v10917_v59  ;;  %10939 = vst [vmem:[#allocation20_spill] sm:$0xff] %v8846_v31  ;;  %v10940_v59 = vld [vmem:[#allocation161_spill] sm:$0xff] }
 0x537   :  { %3414 = vmatpush.msrb.mxu2 %v10918_v15  ;;  %3097 = vmatpush.msra.mxu1 %v8795_v26  ;;  %v10941_v15 = vld [vmem:[#allocation162_spill] sm:$0xff] }
 0x538   :  { %3137 = vmatpush.msrb.mxu3 %v8798_v43  ;;  %3098 = vmatmul.f32.vlgmr.msra.gmra.mxu1 %v8667_v61 }
 0x539   :  { %3138 = vmatmul.f32.vlgmr.msrb.gmra.mxu3 %v8667_v61  ;;  %3162 = vmatpush.msrb.mxu1 %v8803_v24 }
 0x53a   :  { %3202 = vmatpush.msra.mxu3 %v8806_v36  ;;  %3375 = vmatpush.msra.mxu0 %v10920_v37  ;;  %v8851_v37 = vld [vmem:[#allocation9 + $0x670] sm:$0xff] }
 0x53b   :  { %3415 = vmatpush.msrb.mxu2 %v10921_v51  ;;  %3163 = vmatpush.msrb.mxu1 %v8811_v38  ;;  %10942 = vst [vmem:[#allocation21_spill] sm:$0xff] %v8851_v37  ;;  %v8854_v51 = vld [vmem:[#allocation9 + $0x678] sm:$0xff]  ;;  %v11069_v36 = vld [vmem:[#allocation51_spill] sm:$0xff] }
 0x53c   :  { %3203 = vmatpush.msra.mxu3 %v8814_v18  ;;  %3376 = vmatpush.msra.mxu0 %v10924_v3  ;;  %10943 = vst [vmem:[#allocation49_spill] sm:$0xff] %v8854_v51  ;;  %v10944_v3 = vld [vmem:[#allocation163_spill] sm:$0xff] }
 0x53d   :  { %3416 = vmatpush.msrb.mxu2 %v10925_v50  ;;  %3164 = vmatpush.msrb.mxu1 %v8819_v14  ;;  %v10945_v50 = vld [vmem:[#allocation164_spill] sm:$0xff] }
 0x53e   :  { %3204 = vmatpush.msra.mxu3 %v8822_v42  ;;  %3377 = vmatpush.msra.mxu0 %v10928_v22  ;;  %v8859_v22 = vld [vmem:[#allocation9 + $0x630] sm:$0xff] }
 0x53f   :  { %3417 = vmatpush.msrb.mxu2 %v10929_v2  ;;  %3165 = vmatpush.msrb.mxu1 %v8827_v12  ;;  %10946 = vst [vmem:[#allocation48_spill] sm:$0xff] %v8859_v22  ;;  %v8862_v2 = vld [vmem:[#allocation9 + $0x638] sm:$0xff] }
 0x540   :  { %3205 = vmatpush.msra.mxu3 %v8830_v20  ;;  %3378 = vmatpush.msra.mxu0 %v10932_v45  ;;  %10947 = vst [vmem:[#allocation54_spill] sm:$0xff] %v8862_v2  ;;  %v10948_v45 = vld [vmem:[#allocation165_spill] sm:$0xff] }
 0x541   :  { %3418 = vmatpush.msrb.mxu2 %v10933_v29  ;;  %3166 = vmatpush.msrb.mxu1 %v8835_v58  ;;  %v10949_v29 = vld [vmem:[#allocation166_spill] sm:$0xff] }
 0x542   :  { %3206 = vmatpush.msra.mxu3 %v8838_v8  ;;  %3379 = vmatpush.msra.mxu0 %v10936_v7  ;;  %v8867_v7 = vld [vmem:[#allocation9 + $0x5f0] sm:$0xff] }
 0x543   :  { %3419 = vmatpush.msrb.mxu2 %v10937_v19  ;;  %3167 = vmatpush.msrb.mxu1 %v8843_v33  ;;  %10950 = vst [vmem:[#allocation55_spill] sm:$0xff] %v8867_v7  ;;  %v8870_v19 = vld [vmem:[#allocation9 + $0x5f8] sm:$0xff]  ;;  %v11062_v33 = vld [vmem:[#allocation19_spill] sm:$0xff] }
 0x544   :  { %3207 = vmatpush.msra.mxu3 %v8846_v31  ;;  %3380 = vmatpush.msra.mxu0 %v10940_v59  ;;  %10951 = vst [vmem:[#allocation89_spill] sm:$0xff] %v8870_v19  ;;  %v10952_v59 = vld [vmem:[#allocation167_spill] sm:$0xff] }
 0x545   :  { %3420 = vmatpush.msrb.mxu2 %v10941_v15  ;;  %3168 = vmatpush.msrb.mxu1 %v8851_v37  ;;  %v10953_v15 = vld [vmem:[#allocation168_spill] sm:$0xff]  ;;  %v11058_v37 = vld [vmem:[#allocation93_spill] sm:$0xff] }
 0x546   :  { %3208 = vmatpush.msra.mxu3 %v8854_v51  ;;  %3381 = vmatpush.msra.mxu0 %v10944_v3  ;;  %v8875_v3 = vld [vmem:[#allocation9 + $0x5b0] sm:$0xff] }
 0x547   :  { %3421 = vmatpush.msrb.mxu2 %v10945_v50  ;;  %3169 = vmatpush.msrb.mxu1 %v8859_v22  ;;  %10954 = vst [vmem:[#allocation90_spill] sm:$0xff] %v8875_v3  ;;  %v8878_v50 = vld [vmem:[#allocation9 + $0x5b8] sm:$0xff]  ;;  %v11056_v22 = vld [vmem:[#allocation18_spill] sm:$0xff] }
 0x548   :  { %3209 = vmatpush.msra.mxu3 %v8862_v2  ;;  %3446 = vmatpush.msrb.mxu0 %v10948_v45  ;;  %10955 = vst [vmem:[#allocation105_spill] sm:$0xff] %v8878_v50  ;;  %v10956_v45 = vld [vmem:[#allocation169_spill] sm:$0xff]  ;;  %v10989_v2 = vld [vmem:[#allocation190_spill] sm:$0xff] }
 0x549   :  { %3486 = vmatpush.msra.mxu2 %v10949_v29  ;;  %3170 = vmatpush.msrb.mxu1 %v8867_v7  ;;  %v10957_v29 = vld [vmem:[#allocation170_spill] sm:$0xff]  ;;  %v10987_v7 = vld [vmem:[#allocation188_spill] sm:$0xff] }
 0x54a   :  { %3210 = vmatpush.msra.mxu3 %v8870_v19  ;;  %3447 = vmatpush.msrb.mxu0 %v10952_v59  ;;  %v8886_v19 = vld [vmem:[#allocation9 + $0x578] sm:$0xff]  ;;  %v10960_v59 = vld [vmem:[#allocation171_spill] sm:$0xff] }
 0x54b   :  { %3487 = vmatpush.msra.mxu2 %v10953_v15  ;;  %3171 = vmatpush.msrb.mxu1 %v8875_v3  ;;  %10959 = vst [vmem:[#allocation107_spill] sm:$0xff] %v8886_v19  ;;  %v10961_v15 = vld [vmem:[#allocation172_spill] sm:$0xff]  ;;  %v8891_v3 = vld [vmem:[#allocation9 + $0x530] sm:$0xff] }
 0x54c   :  { %3211 = vmatpush.msra.mxu3 %v8878_v50  ;;  %3448 = vmatpush.msrb.mxu0 %v10956_v45  ;;  %10962 = vst [vmem:[#allocation108_spill] sm:$0xff] %v8891_v3  ;;  %v8894_v50 = vld [vmem:[#allocation9 + $0x538] sm:$0xff]  ;;  %v10964_v45 = vld [vmem:[#allocation173_spill] sm:$0xff] }
 0x54d   :  { %3488 = vmatpush.msra.mxu2 %v10957_v29  ;;  %3172 = vmatpush.msrb.mxu1 %v8883_v46  ;;  %10963 = vst [vmem:[#allocation109_spill] sm:$0xff] %v8894_v50  ;;  %v10965_v29 = vld [vmem:[#allocation174_spill] sm:$0xff]  ;;  %v8899_v46 = vld [vmem:[#allocation9 + $0x4f0] sm:$0xff] }
 0x54e   :  { %3212 = vmatpush.msra.mxu3 %v8886_v19  ;;  %3449 = vmatpush.msrb.mxu0 %v10960_v59  ;;  %10966 = vst [vmem:[#allocation74_spill] sm:$0xff] %v8899_v46  ;;  %v8902_v19 = vld [vmem:[#allocation9 + $0x4f8] sm:$0xff]  ;;  %v10968_v59 = vld [vmem:[#allocation175_spill] sm:$0xff] }
 0x54f   :  { %3489 = vmatpush.msra.mxu2 %v10961_v15  ;;  %3173 = vmatpush.msrb.mxu1 %v8891_v3  ;;  %10967 = vst [vmem:[#allocation110_spill] sm:$0xff] %v8902_v19  ;;  %v10969_v15 = vld [vmem:[#allocation176_spill] sm:$0xff]  ;;  %v8907_v3 = vld [vmem:[#allocation9 + $0x4b0] sm:$0xff] }
 0x550   :  { %3213 = vmatpush.msra.mxu3 %v8894_v50  ;;  %3450 = vmatpush.msrb.mxu0 %v10964_v45  ;;  %10970 = vst [vmem:[#allocation111_spill] sm:$0xff] %v8907_v3  ;;  %v8910_v50 = vld [vmem:[#allocation9 + $0x4b8] sm:$0xff]  ;;  %v10972_v45 = vld [vmem:[#allocation177_spill] sm:$0xff] }
 0x551   :  { %3490 = vmatpush.msra.mxu2 %v10965_v29  ;;  %3174 = vmatpush.msrb.mxu1 %v8899_v46  ;;  %10971 = vst [vmem:[#allocation112_spill] sm:$0xff] %v8910_v50  ;;  %v10973_v29 = vld [vmem:[#allocation178_spill] sm:$0xff]  ;;  %v8915_v46 = vld [vmem:[#allocation9 + $0x470] sm:$0xff] }
 0x552   :  { %3214 = vmatpush.msra.mxu3 %v8902_v19  ;;  %3451 = vmatpush.msrb.mxu0 %v10968_v59  ;;  %10974 = vst [vmem:[#allocation113_spill] sm:$0xff] %v8915_v46  ;;  %v8918_v19 = vld [vmem:[#allocation9 + $0x478] sm:$0xff]  ;;  %v10976_v59 = vld [vmem:[#allocation179_spill] sm:$0xff] }
 0x553   :  { %3491 = vmatpush.msra.mxu2 %v10969_v15  ;;  %3175 = vmatpush.msrb.mxu1 %v8907_v3  ;;  %10975 = vst [vmem:[#allocation114_spill] sm:$0xff] %v8918_v19  ;;  %v10977_v15 = vld [vmem:[#allocation180_spill] sm:$0xff]  ;;  %v8923_v3 = vld [vmem:[#allocation9 + $0x430] sm:$0xff] }
 0x554   :  { %3215 = vmatpush.msra.mxu3 %v8910_v50  ;;  %3452 = vmatpush.msrb.mxu0 %v10972_v45  ;;  %10978 = vst [vmem:[#allocation115_spill] sm:$0xff] %v8923_v3  ;;  %v8926_v50 = vld [vmem:[#allocation9 + $0x438] sm:$0xff]  ;;  %v10980_v45 = vld [vmem:[#allocation181_spill] sm:$0xff] }
 0x555   :  { %3492 = vmatpush.msra.mxu2 %v10973_v29  ;;  %3176 = vmatpush.msrb.mxu1 %v8915_v46  ;;  %10979 = vst [vmem:[#allocation75_spill] sm:$0xff] %v8926_v50  ;;  %v10981_v29 = vld [vmem:[#allocation182_spill] sm:$0xff] }
 0x556   :  { %3216 = vmatpush.msra.mxu3 %v8918_v19  ;;  %3453 = vmatpush.msrb.mxu0 %v10976_v59  ;;  %v10982_v19 = vld [vmem:[#allocation183_spill] sm:$0xff]  ;;  %v10983_v59 = vld [vmem:[#allocation184_spill] sm:$0xff]  ;;  %v10985_v46 = vld [vmem:[#allocation186_spill] sm:$0xff] }
 0x557   :  { %3493 = vmatpush.msra.mxu2 %v10977_v15  ;;  %3177 = vmatpush.msrb.mxu1 %v8923_v3  ;;  %v10984_v15 = vld [vmem:[#allocation185_spill] sm:$0xff]  ;;  %v10986_v3 = vld [vmem:[#allocation187_spill] sm:$0xff] }
 0x558   :  { %3217 = vmatpush.msra.mxu3 %v8926_v50  ;;  %3178 = vmatmul.f32.vlgmr.msrb.gmra.mxu1 %v8667_v61  ;;  %v10988_v50 = vld [vmem:[#allocation189_spill] sm:$0xff] }
 0x559   :  { %3218 = vmatmul.f32.vlgmr.msra.gmra.mxu3 %v8667_v61  ;;  %3454 = vmatpush.msrb.mxu0 %v10980_v45  ;;  %v10990_v61 = vld [vmem:[#allocation191_spill] sm:$0xff]  ;;  %v10991_v45 = vld [vmem:[#allocation192_spill] sm:$0xff] }
 0x55a   :  { %3494 = vmatpush.msra.mxu2 %v10981_v29  ;;  %3386 = vmatpush.msra.mxu1 %v10982_v19  ;;  %v10992_v29 = vld [vmem:[#allocation193_spill] sm:$0xff]  ;;  %v10993_v19 = vld [vmem:[#allocation194_spill] sm:$0xff] }
 0x55b   :  { %3426 = vmatpush.msrb.mxu3 %v10983_v59  ;;  %3455 = vmatpush.msrb.mxu0 %v10984_v15  ;;  %v10994_v59 = vld [vmem:[#allocation195_spill] sm:$0xff]  ;;  %v10995_v15 = vld [vmem:[#allocation196_spill] sm:$0xff] }
 0x55c   :  { %3495 = vmatpush.msra.mxu2 %v10985_v46  ;;  %3387 = vmatpush.msra.mxu1 %v10986_v3  ;;  %v10996_v46 = vld [vmem:[#allocation197_spill] sm:$0xff]  ;;  %v10997_v3 = vld [vmem:[#allocation198_spill] sm:$0xff] }
 0x55d   :  { %3427 = vmatpush.msrb.mxu3 %v10987_v7  ;;  %3456 = vmatpush.msrb.mxu0 %v10988_v50  ;;  %v10998_v7 = vld [vmem:[#allocation199_spill] sm:$0xff]  ;;  %v10999_v50 = vld [vmem:[#allocation200_spill] sm:$0xff] }
 0x55e   :  { %3496 = vmatpush.msra.mxu2 %v10989_v2  ;;  %3388 = vmatpush.msra.mxu1 %v10990_v61  ;;  %v11000_v2 = vld [vmem:[#allocation201_spill] sm:$0xff]  ;;  %v11001_v61 = vld [vmem:[#allocation202_spill] sm:$0xff] }
 0x55f   :  { %3428 = vmatpush.msrb.mxu3 %v10991_v45  ;;  %3457 = vmatpush.msrb.mxu0 %v10992_v29  ;;  %v11002_v45 = vld [vmem:[#allocation203_spill] sm:$0xff]  ;;  %v11003_v29 = vld [vmem:[#allocation204_spill] sm:$0xff] }
 0x560   :  { %3497 = vmatpush.msra.mxu2 %v10993_v19  ;;  %3389 = vmatpush.msra.mxu1 %v10994_v59  ;;  %v11004_v19 = vld [vmem:[#allocation205_spill] sm:$0xff]  ;;  %v11005_v59 = vld [vmem:[#allocation206_spill] sm:$0xff] }
 0x561   :  { %3429 = vmatpush.msrb.mxu3 %v10995_v15  ;;  %3458 = vmatpush.msrb.mxu0 %v10996_v46  ;;  %v11006_v15 = vld [vmem:[#allocation207_spill] sm:$0xff]  ;;  %v11007_v46 = vld [vmem:[#allocation208_spill] sm:$0xff] }
 0x562   :  { %3498 = vmatpush.msra.mxu2 %v10997_v3  ;;  %3390 = vmatpush.msra.mxu1 %v10998_v7  ;;  %v11008_v3 = vld [vmem:[#allocation209_spill] sm:$0xff]  ;;  %v11009_v7 = vld [vmem:[#allocation210_spill] sm:$0xff] }
 0x563   :  { %3430 = vmatpush.msrb.mxu3 %v10999_v50  ;;  %3459 = vmatpush.msrb.mxu0 %v11000_v2  ;;  %v11010_v50 = vld [vmem:[#allocation211_spill] sm:$0xff]  ;;  %v11011_v2 = vld [vmem:[#allocation212_spill] sm:$0xff] }
 0x564   :  { %3499 = vmatpush.msra.mxu2 %v11001_v61  ;;  %3391 = vmatpush.msra.mxu1 %v11002_v45  ;;  %v11012_v61 = vld [vmem:[#allocation213_spill] sm:$0xff]  ;;  %v11013_v45 = vld [vmem:[#allocation214_spill] sm:$0xff] }
 0x565   :  { %3431 = vmatpush.msrb.mxu3 %v11003_v29  ;;  %3460 = vmatpush.msrb.mxu0 %v11004_v19  ;;  %v11014_v29 = vld [vmem:[#allocation215_spill] sm:$0xff]  ;;  %v11015_v19 = vld [vmem:[#allocation216_spill] sm:$0xff] }
 0x566   :  { %3500 = vmatpush.msra.mxu2 %v11005_v59  ;;  %3392 = vmatpush.msra.mxu1 %v11006_v15  ;;  %v11016_v59 = vld [vmem:[#allocation217_spill] sm:$0xff]  ;;  %v11017_v15 = vld [vmem:[#allocation218_spill] sm:$0xff] }
 0x567   :  { %3432 = vmatpush.msrb.mxu3 %v11007_v46  ;;  %3461 = vmatpush.msrb.mxu0 %v11008_v3  ;;  %v11018_v46 = vld [vmem:[#allocation219_spill] sm:$0xff]  ;;  %v11019_v3 = vld [vmem:[#allocation220_spill] sm:$0xff] }
 0x568   :  { %3501 = vmatpush.msra.mxu2 %v11009_v7  ;;  %3393 = vmatpush.msra.mxu1 %v11010_v50  ;;  %v11020_v7 = vld [vmem:[#allocation221_spill] sm:$0xff]  ;;  %v11021_v50 = vld [vmem:[#allocation222_spill] sm:$0xff] }
 0x569   :  { %3433 = vmatpush.msrb.mxu3 %v11011_v2  ;;  %v11022_v2 = vld [vmem:[#allocation223_spill] sm:$0xff] }
 0x56a   :  { %3394 = vmatpush.msra.mxu1 %v11012_v61  ;;  %v11023_v61 = vld [vmem:[#allocation224_spill] sm:$0xff] }
 0x56b   :  { %3434 = vmatpush.msrb.mxu3 %v11013_v45  ;;  %v11024_v45 = vld [vmem:[#allocation225_spill] sm:$0xff] }
 0x56c   :  { %3395 = vmatpush.msra.mxu1 %v11014_v29  ;;  %v11025_v29 = vld [vmem:[#allocation226_spill] sm:$0xff] }
 0x56d   :  { %3435 = vmatpush.msrb.mxu3 %v11015_v19  ;;  %v11026_v19 = vld [vmem:[#allocation227_spill] sm:$0xff] }
 0x56e   :  { %3396 = vmatpush.msra.mxu1 %v11016_v59  ;;  %v11027_v59 = vld [vmem:[#allocation228_spill] sm:$0xff] }
 0x56f   :  { %3436 = vmatpush.msrb.mxu3 %v11017_v15  ;;  %v11028_v15 = vld [vmem:[#allocation229_spill] sm:$0xff] }
 0x570   :  { %3397 = vmatpush.msra.mxu1 %v11018_v46  ;;  %v11029_v46 = vld [vmem:[#allocation34_spill] sm:$0xff] }
 0x571   :  { %3437 = vmatpush.msrb.mxu3 %v11019_v3  ;;  %v11030_v3 = vld [vmem:[#allocation30_spill] sm:$0xff] }
 0x572   :  { %3398 = vmatpush.msra.mxu1 %v11020_v7  ;;  %v11031_v7 = vld [vmem:[#allocation230_spill] sm:$0xff] }
 0x573   :  { %3438 = vmatpush.msrb.mxu3 %v11021_v50  ;;  %v11032_v50 = vld [vmem:[#allocation231_spill] sm:$0xff] }
 0x574   :  { %3399 = vmatpush.msra.mxu1 %v11022_v2  ;;  %v11033_v2 = vld [vmem:[#allocation232_spill] sm:$0xff] }
 0x575   :  { %3439 = vmatpush.msrb.mxu3 %v11023_v61  ;;  %v11034_v61 = vld [vmem:[#allocation35_spill] sm:$0xff] }
 0x576   :  { %3400 = vmatpush.msra.mxu1 %v11024_v45  ;;  %v11035_v45 = vld [vmem:[#allocation44_spill] sm:$0xff] }
 0x577   :  { %3440 = vmatpush.msrb.mxu3 %v11025_v29  ;;  %v11036_v29 = vld [vmem:[#allocation43_spill] sm:$0xff] }
 0x578   :  { %3401 = vmatpush.msra.mxu1 %v11026_v19  ;;  %v11037_v19 = vld [vmem:[#allocation58_spill] sm:$0xff] }
 0x579   :  { %3441 = vmatpush.msrb.mxu3 %v11027_v59  ;;  %v11038_v59 = vld [vmem:[#allocation59_spill] sm:$0xff] }
 0x57a   :  { %3466 = vmatpush.msrb.mxu1 %v11028_v15  ;;  %v11039_v15 = vld [vmem:[#allocation76_spill] sm:$0xff] }
 0x57b   :  { %3506 = vmatpush.msra.mxu3 %v11029_v46  ;;  %v11040_v46 = vld [vmem:[#allocation77_spill] sm:$0xff] }
 0x57c   :  { %3467 = vmatpush.msrb.mxu1 %v11030_v3  ;;  %v11041_v3 = vld [vmem:[#allocation40_spill] sm:$0xff] }
 0x57d   :  { %3507 = vmatpush.msra.mxu3 %v11031_v7  ;;  %v11042_v7 = vld [vmem:[#allocation62_spill] sm:$0xff] }
 0x57e   :  { %3468 = vmatpush.msrb.mxu1 %v11032_v50  ;;  %v11043_v50 = vld [vmem:[#allocation63_spill] sm:$0xff] }
 0x57f   :  { %3508 = vmatpush.msra.mxu3 %v11033_v2  ;;  %v11044_v2 = vld [vmem:[#allocation79_spill] sm:$0xff] }
 0x580   :  { %3469 = vmatpush.msrb.mxu1 %v11034_v61  ;;  %v11045_v61 = vld [vmem:[#allocation81_spill] sm:$0xff] }
 0x581   :  { %3509 = vmatpush.msra.mxu3 %v11035_v45  ;;  %v11046_v45 = vld [vmem:[#allocation82_spill] sm:$0xff] }
 0x582   :  { %3470 = vmatpush.msrb.mxu1 %v11036_v29  ;;  %v11047_v29 = vld [vmem:[#allocation83_spill] sm:$0xff] }
 0x583   :  { %3510 = vmatpush.msra.mxu3 %v11037_v19  ;;  %v11048_v19 = vld [vmem:[#allocation84_spill] sm:$0xff] }
 0x584   :  { %3471 = vmatpush.msrb.mxu1 %v11038_v59  ;;  %v11049_v59 = vld [vmem:[#allocation80_spill] sm:$0xff] }
 0x585   :  { %3511 = vmatpush.msra.mxu3 %v11039_v15  ;;  %v11050_v15 = vld [vmem:[#allocation85_spill] sm:$0xff] }
 0x586   :  { %3472 = vmatpush.msrb.mxu1 %v11040_v46  ;;  %v11051_v46 = vld [vmem:[#allocation86_spill] sm:$0xff] }
 0x587   :  { %3512 = vmatpush.msra.mxu3 %v11041_v3  ;;  %v11052_v3 = vld [vmem:[#allocation87_spill] sm:$0xff] }
 0x588   :  { %3473 = vmatpush.msrb.mxu1 %v11042_v7  ;;  %v11053_v7 = vld [vmem:[#allocation88_spill] sm:$0xff] }
 0x589   :  { %3513 = vmatpush.msra.mxu3 %v11043_v50  ;;  %v11054_v50 = vld [vmem:[#allocation91_spill] sm:$0xff] }
 0x58a   :  { %3474 = vmatpush.msrb.mxu1 %v11044_v2  ;;  %v11055_v2 = vld [vmem:[#allocation92_spill] sm:$0xff] }
 0x58b   :  { %3514 = vmatpush.msra.mxu3 %v11045_v61  ;;  %v2919_v61 = vpop.f32.mrf.mxu0 }
 0x58c   :  { %3475 = vmatpush.msrb.mxu1 %v11046_v45 }
 0x58d   :  { %3515 = vmatpush.msra.mxu3 %v11047_v29  ;;  %v11057_v29 = vld [vmem:[#allocation22_spill] sm:$0xff] }
 0x58e   :  { %3476 = vmatpush.msrb.mxu1 %v11048_v19  ;;  %v287_v51 = vadd.f32 %v11057_v29, %v11056_v22 }
 0x58f   :  { %3516 = vmatpush.msra.mxu3 %v11049_v59  ;;  %v11059_v59 = vld [vmem:[#allocation94_spill] sm:$0xff] }
 0x590   :  { %3477 = vmatpush.msrb.mxu1 %v11050_v15 }
 0x591   :  { %3517 = vmatpush.msra.mxu3 %v11051_v46  ;;  %v2939_v45 = vpop.f32.mrf.mxu1  ;;  %v11060_v46 = vld [vmem:[#allocation95_spill] sm:$0xff] }
 0x592   :  { %3478 = vmatpush.msrb.mxu1 %v11052_v3  ;;  %v2940_v19 = vadd.f32 %v2939_v45, %v2919_v61  ;;  %v11061_v3 = vld [vmem:[#allocation96_spill] sm:$0xff] }
 0x593   :  { %3518 = vmatpush.msra.mxu3 %v11053_v7  ;;  %v2959_v7 = vpop.f32.mrf.mxu2 }
 0x594   :  { %3479 = vmatpush.msrb.mxu1 %v11054_v50  ;;  %v3226_v15 = vadd.f32 %v2940_v19, %v287_v51  ;;  %v11064_v51 = vld [vmem:[#allocation32_spill] sm:$0xff]  ;;  %v11065_v19 = vld [vmem:[#allocation53_spill] sm:$0xff] }
 0x595   :  { %3519 = vmatpush.msra.mxu3 %v11055_v2  ;;  %v11063_v2 = vld [vmem:[#allocation23_spill] sm:$0xff] }
 0x596   :  { %3480 = vmatpush.msrb.mxu1 %v11058_v37  ;;  %v4487_v31 = vmul.f32 -1.442695, %v3226_v15  ;;  %v328_v8 = vadd.f32 %v11063_v2, %v11062_v33  ;;  %v2999_v15 = vpop.f32.mrf.mxu0 }
 0x597   :  { %3520 = vmatpush.msra.mxu3 %v11059_v59  ;;  %v2979_v50 = vpop.f32.mrf.mxu3 }
 0x598   :  { %3481 = vmatpush.msrb.mxu1 %v11060_v46  ;;  %4708 = vpow2.f32 %v4487_v31  ;;  %v2980_v58 = vadd.f32 %v2979_v50, %v2959_v7  ;;  %v410_v46 = vadd.f32 %v11065_v19, %v11064_v51  ;;  %v11066_v31 = vld [vmem:[#allocation33_spill] sm:$0xff]  ;;  %v11067_v7 = vld [vmem:[#allocation52_spill] sm:$0xff] }
 0x599   :  { %3521 = vmatpush.msra.mxu3 %v11061_v3 }
 0x59a   :  { %v3227_v20 = vadd.f32 %v2980_v58, %v328_v8  ;;  %v369_v58 = vadd.f32 %v11067_v7, %v11066_v31 }
 0x59b   :  { %v3039_v37 = vpop.f32.mrf.mxu2  ;;  %v3019_v22 = vpop.f32.mrf.mxu1 }
 0x59c   :  { %v4488_v29 = vmul.f32 -1.442695, %v3227_v20  ;;  %v3020_v42 = vadd.f32 %v3019_v22, %v2999_v15 }
 0x59e   :  { %v4709_v61 = vpop.eup %4708  ;;  %4710 = vpow2.f32 %v4488_v29  ;;  %v3228_v50 = vadd.f32 %v3020_v42, %v369_v58 }
 0x59f   :  { %v3241_v45 = vadd.f32 1.0, %v4709_v61 }
 0x5a1   :  { %4712 = vrcp.f32 %v3241_v45  ;;  %v3253_v33 = vand.u32 2147483648, %v3241_v45  ;;  %vm3247_vm9 = vweird.f32 %v3241_v45 }
 0x5a3   :  { %v3059_v59 = vpop.f32.mrf.mxu3  ;;  %v3254_v15 = vor.u32 1.1754944e-38, %v3253_v33 }
 0x5a4   :  { %v3060_v3 = vadd.f32 %v3059_v59, %v3039_v37  ;;  %v4711_v14 = vpop.eup %4710  ;;  %v3251_v59 = vand.u32 2147483647, %v3241_v45 }
 0x5a5   :  { %v3260_v20 = vadd.f32 1.0, %v4711_v14 }
 0x5a6   :  { %v3229_v12 = vadd.f32 %v3060_v3, %v410_v46  ;;  %vm3252_vm11 = vcmp.eq.f32.partialorder %v3251_v59, 8.507059e+37 }
 0x5a7   :  { %v4713_v8 = vpop.eup %4712  ;;  %v3272_v7 = vand.u32 2147483648, %v3260_v20  ;;  %vm3266_vm13 = vweird.f32 %v3260_v20 }
 0x5a8   :  { %v4489_v2 = vmul.f32 -1.442695, %v3229_v12  ;;  %v3243_v29 = vmul.f32 %v4713_v8, %v3241_v45  ;;  %vm3248_vm8 = vweird.f32 %v4713_v8 }
 0x5a9   :  { %vm3249_vm10 = vmor %vm3247_vm9, %vm3248_vm8 }
 0x5aa   :  { %4714 = vpow2.f32 %v4489_v2  ;;  %v3244_v61 = vsub.f32 1.0, %v3243_v29  ;;  %v3079_v29 = vpop.f32.mrf.mxu0 }
 0x5ab   :  { %4716 = vrcp.f32 %v3260_v20 }
 0x5ac   :  { %4718 = vtanh.f32 %v3228_v50  ;;  %v3245_v37 = vmul.f32 %v4713_v8, %v3244_v61  ;;  %v3270_v61 = vand.u32 2147483647, %v3260_v20 }
 0x5ae   :  { %v3246_v12 = vadd.f32 %v4713_v8, %v3245_v37  ;;  %vm3271_vm15 = vcmp.eq.f32.partialorder %v3270_v61, 8.507059e+37 }
 0x5b0   :  { %v4715_v19 = vpop.eup %4714  ;;  %v3250_v2 = vsel %vm3249_vm10, %v4713_v8, %v3246_v12 }
 0x5b1   :  { %v4717_v46 = vpop.eup %4716  ;;  %v3280_v22 = vadd.f32 1.0, %v4715_v19  ;;  %v3255_v58 = vsel %vm3252_vm11, %v3254_v15, %v3250_v2  ;;  %v11068_v19 = vld [vmem:[#allocation50_spill] sm:$0xff] }
 0x5b2   :  { %v3262_v3 = vmul.f32 %v4717_v46, %v3260_v20  ;;  %v4719_v42 = vpop.eup %4718  ;;  %vm3267_vm12 = vweird.f32 %v4717_v46  ;;  %v442_v18 = vadd.f32 %v11068_v19, %v10227_v55  ;;  %v483_v19 = vadd.f32 %v11069_v36, %v10229_v56 }
 0x5b3   :  { %4720 = vrcp.f32 %v3280_v22  ;;  %v3355_v31 = vmul.f32 %v4719_v42, %v3255_v58  ;;  %vm3268_vm14 = vmor %vm3266_vm13, %vm3267_vm12  ;;  %vm3286_vm1 = vweird.f32 %v3280_v22 }
 0x5b4   :  { %v3263_v14 = vsub.f32 1.0, %v3262_v3  ;;  %v3273_v3 = vor.u32 1.1754944e-38, %v3272_v7  ;;  %v3292_v7 = vand.u32 2147483648, %v3280_v22 }
 0x5b5   :  { %v3099_v51 = vpop.f32.mrf.mxu1 }
 0x5b6   :  { %v3264_v50 = vmul.f32 %v4717_v46, %v3263_v14  ;;  %v3100_v37 = vadd.f32 %v3099_v51, %v3079_v29  ;;  %v3119_v14 = vpop.f32.mrf.mxu2 }
 0x5b8   :  { %v3265_v45 = vadd.f32 %v4717_v46, %v3264_v50  ;;  %v3234_v8 = vadd.f32 %v3100_v37, %v442_v18  ;;  %v3290_v50 = vand.u32 2147483647, %v3280_v22 }
 0x5b9   :  { %v4721_v33 = vpop.eup %4720 }
 0x5ba   :  { %v3269_v59 = vsel %vm3268_vm14, %v4717_v46, %v3265_v45  ;;  %v3282_v12 = vmul.f32 %v4721_v33, %v3280_v22  ;;  %v4490_v2 = vmul.f32 -1.442695, %v3234_v8  ;;  %vm3287_vm0 = vweird.f32 %v4721_v33 }
 0x5bb   :  { %v3274_v15 = vsel %vm3271_vm15, %v3273_v3, %v3269_v59  ;;  %vm3288_vm2 = vmor %vm3286_vm1, %vm3287_vm0  ;;  %v3293_v45 = vor.u32 1.1754944e-38, %v3292_v7  ;;  %vm3291_vm3 = vcmp.eq.f32.partialorder %v3290_v50, 8.507059e+37  ;;  %v9036_v59 = vld [vmem:[#allocation9 + $0x3e0] sm:$0xff]  ;;  %v9072_v7 = vld [vmem:[#allocation9 + $0x2e8] sm:$0xff] }
 0x5bc   :  { %v3354_v38 = vmul.f32 %v3274_v15, %v8574_v17  ;;  %v3283_v42 = vsub.f32 1.0, %v3282_v12  ;;  %v3139_v58 = vpop.f32.mrf.mxu3  ;;  %4722 = vpow2.f32 %v4490_v2  ;;  %v9045_v15 = vld [vmem:[#allocation9 + $0x3a0] sm:$0xff]  ;;  %v9048_v2 = vld [vmem:[#allocation9 + $0x3a8] sm:$0xff]  ;;  %11072 = vst [vmem:[#allocation118_spill] sm:$0xff] %v9072_v7 }
 0x5bd   :  { %v3140_v51 = vadd.f32 %v3139_v58, %v3119_v14  ;;  %v9056_v58 = vld [vmem:[#allocation9 + $0x368] sm:$0xff] }
 0x5be   :  { %v9024_v20 = vadd.f32 %v3355_v31, %v3354_v38  ;;  %v3284_v29 = vmul.f32 %v4721_v33, %v3283_v42  ;;  %v9053_v42 = vld [vmem:[#allocation9 + $0x360] sm:$0xff] }
 0x5bf   :  { %v3235_v18 = vadd.f32 %v3140_v51, %v483_v19  ;;  %v9059_v19 = vld [vmem:[#allocation9 + $0x320] sm:$0xff]  ;;  %v9062_v51 = vld [vmem:[#allocation9 + $0x328] sm:$0xff] }
 0x5c0   :  { %4724 = vtanh.f32 %v9024_v20  ;;  %v3285_v46 = vadd.f32 %v4721_v33, %v3284_v29  ;;  %11070 = vst [vmem:[#allocation116_spill] sm:$0xff] %v9062_v51 }
 0x5c1   :  { %v4491_v61 = vmul.f32 -1.442695, %v3235_v18 }
 0x5c2   :  { %v4723_v17 = vpop.eup %4722  ;;  %v3289_v37 = vsel %vm3288_vm2, %v4721_v33, %v3285_v46  ;;  %v9039_v33 = vld [vmem:[#allocation9 + $0x3e8] sm:$0xff]  ;;  %v9069_v46 = vld [vmem:[#allocation9 + $0x2e0] sm:$0xff] }
 0x5c3   :  { %4726 = vpow2.f32 %v4491_v61  ;;  %v9027_v36 = vadd.f32 1.0, %v4723_v17  ;;  %v3294_v31 = vsel %vm3291_vm3, %v3293_v45, %v3289_v37  ;;  %11071 = vst [vmem:[#allocation117_spill] sm:$0xff] %v9069_v46  ;;  %v9077_v61 = vld [vmem:[#allocation9 + $0x2a0] sm:$0xff]  ;;  %v9080_v17 = vld [vmem:[#allocation9 + $0x2a8] sm:$0xff]  ;;  %v3159_v45 = vpop.f32.mrf.mxu0 }
 0x5c4   :  { %11073 = vst [vmem:[#allocation119_spill] sm:$0xff] %v9077_v61 }
 0x5c5   :  { %4728 = vrcp.f32 %v9027_v36  ;;  %11074 = vst [vmem:[#allocation120_spill] sm:$0xff] %v9080_v17  ;;  %vm3305_vm8 = vweird.f32 %v9027_v36 }
 0x5c6   :  { %v4725_v38 = vpop.eup %4724 }
 0x5c7   :  { %v9030_v3 = vmul.f32 %v4725_v38, %v3294_v31 }
 0x5c9   :  { %v4727_v8 = vpop.eup %4726  ;;  %3382 = vmatmul.f32.vlgmr.msra.gmra.mxu0 %v9030_v3  ;;  %3422 = vmatmul.f32.vlgmr.msrb.gmra.mxu2 %v9030_v3 }
 0x5ca   :  { %v9034_v22 = vadd.f32 1.0, %v4727_v8  ;;  %3526 = vmatpush.msra.mxu0 %v9036_v59  ;;  %3566 = vmatpush.msrb.mxu2 %v9039_v33  ;;  %v9084_v8 = vld [vmem:[#allocation9 + $0x260] sm:$0xff] }
 0x5cb   :  { %v9042_v12 = vpop.eup %4728  ;;  %11075 = vst [vmem:[#allocation121_spill] sm:$0xff] %v9084_v8 }
 0x5cc   :  { %4730 = vrcp.f32 %v9034_v22  ;;  %3527 = vmatpush.msra.mxu0 %v9045_v15  ;;  %3567 = vmatpush.msrb.mxu2 %v9048_v2  ;;  %v3301_v14 = vmul.f32 %v9042_v12, %v9027_v36  ;;  %vm3324_vm5 = vweird.f32 %v9034_v22  ;;  %vm3306_vm6 = vweird.f32 %v9042_v12 }
 0x5cd   :  { %vm9134_vm9 = vmor %vm3305_vm8, %vm3306_vm6 }
 0x5ce   :  { %3528 = vmatpush.msra.mxu0 %v9053_v42  ;;  %3568 = vmatpush.msrb.mxu2 %v9056_v58  ;;  %v3302_v18 = vsub.f32 1.0, %v3301_v14  ;;  %v9087_v14 = vld [vmem:[#allocation9 + $0x268] sm:$0xff] }
 0x5cf   :  { %11076 = vst [vmem:[#allocation122_spill] sm:$0xff] %v9087_v14 }
 0x5d0   :  { %3529 = vmatpush.msra.mxu0 %v9059_v19  ;;  %3569 = vmatpush.msrb.mxu2 %v9062_v51  ;;  %v3303_v31 = vmul.f32 %v9042_v12, %v3302_v18  ;;  %v9097_v18 = vld [vmem:[#allocation9 + $0x228] sm:$0xff] }
 0x5d1   :  { %3462 = vmatmul.f32.vlgmr.msrb.gmra.mxu0 %v9030_v3  ;;  %3502 = vmatmul.f32.vlgmr.msra.gmra.mxu2 %v9030_v3  ;;  %11079 = vst [vmem:[#allocation124_spill] sm:$0xff] %v9097_v18 }
 0x5d2   :  { %v9067_v29 = vpop.eup %4730  ;;  %3530 = vmatpush.msra.mxu0 %v9069_v46  ;;  %3570 = vmatpush.msrb.mxu2 %v9072_v7  ;;  %v11077_v7 = vld [vmem:[#allocation70_spill] sm:$0xff] }
 0x5d3   :  { %v3320_v50 = vmul.f32 %v9067_v29, %v9034_v22  ;;  %vm3325_vm4 = vweird.f32 %v9067_v29 }
 0x5d4   :  { %3531 = vmatpush.msra.mxu0 %v9077_v61  ;;  %3571 = vmatpush.msrb.mxu2 %v9080_v17  ;;  %v524_v61 = vadd.f32 %v11077_v7, %v10872_v52  ;;  %v3304_v7 = vadd.f32 %v9042_v12, %v3303_v31  ;;  %vm9114_vm7 = vmor %vm3324_vm5, %vm3325_vm4 }
 0x5d5   :  { %v3321_v37 = vsub.f32 1.0, %v3320_v50  ;;  %v3179_v38 = vpop.f32.mrf.mxu1  ;;  %v9094_v50 = vld [vmem:[#allocation9 + $0x220] sm:$0xff] }
 0x5d6   :  { %3532 = vmatpush.msra.mxu0 %v9084_v8  ;;  %3572 = vmatpush.msrb.mxu2 %v9087_v14  ;;  %v3180_v51 = vadd.f32 %v3179_v38, %v3159_v45  ;;  %11078 = vst [vmem:[#allocation123_spill] sm:$0xff] %v9094_v50  ;;  %v3330_v8 = vand.u32 2147483648, %v9034_v22  ;;  %v9106_v45 = vld [vmem:[#allocation9 + $0x1e0] sm:$0xff]  ;;  %v9109_v38 = vld [vmem:[#allocation9 + $0x1e8] sm:$0xff] }
 0x5d7   :  { %v3322_v46 = vmul.f32 %v9067_v29, %v3321_v37  ;;  %v3328_v37 = vand.u32 2147483647, %v9034_v22  ;;  %11080 = vst [vmem:[#allocation125_spill] sm:$0xff] %v9106_v45  ;;  %v3309_v22 = vand.u32 2147483647, %v9027_v36 }
 0x5d8   :  { %3533 = vmatpush.msra.mxu0 %v9094_v50  ;;  %3573 = vmatpush.msrb.mxu2 %v9097_v18  ;;  %v3236_v17 = vadd.f32 %v3180_v51, %v524_v61  ;;  %11081 = vst [vmem:[#allocation126_spill] sm:$0xff] %v9109_v38  ;;  %v3199_v61 = vpop.f32.mrf.mxu2  ;;  %v9127_v18 = vld [vmem:[#allocation9 + $0x1a8] sm:$0xff]  ;;  %v3331_v52 = vor.u32 1.1754944e-38, %v3330_v8  ;;  %v9141_v51 = vld [vmem:[#allocation9 + $0x160] sm:$0xff] }
 0x5d9   :  { %v3323_v14 = vadd.f32 %v9067_v29, %v3322_v46  ;;  %v3311_v46 = vand.u32 2147483648, %v9027_v36  ;;  %11085 = vst [vmem:[#allocation128_spill] sm:$0xff] %v9127_v18  ;;  %vm3329_vm10 = vcmp.eq.f32.partialorder %v3328_v37, 8.507059e+37  ;;  %vm3310_vm11 = vcmp.eq.f32.partialorder %v3309_v22, 8.507059e+37  ;;  %v9165_v22 = vld [vmem:[#allocation9 + $0xa8] sm:$0xff] }
 0x5da   :  { %3534 = vmatpush.msra.mxu0 %v9106_v45  ;;  %3574 = vmatpush.msrb.mxu2 %v9109_v38  ;;  %4732 = vtanh.f32 %v3236_v17  ;;  %v9124_v38 = vld [vmem:[#allocation9 + $0x1a0] sm:$0xff]  ;;  %v11086_v17 = vld [vmem:[#allocation71_spill] sm:$0xff]  ;;  %11089 = vst [vmem:[#allocation129_spill] sm:$0xff] %v9141_v51 }
 0x5db   :  { %v3327_v31 = vsel %vm9114_vm7, %v9067_v29, %v3323_v14  ;;  %11084 = vst [vmem:[#allocation127_spill] sm:$0xff] %v9124_v38  ;;  %v565_v50 = vadd.f32 %v11086_v17, %v10882_v40  ;;  %v3308_v14 = vsel %vm9134_vm9, %v9042_v12, %v3304_v7  ;;  %v3312_v8 = vor.u32 1.1754944e-38, %v3311_v46  ;;  %v9162_v46 = vld [vmem:[#allocation9 + $0xa0] sm:$0xff] }
 0x5dc   :  { %v3219_v45 = vpop.f32.mrf.mxu3  ;;  %3535 = vmatpush.msra.mxu0 %v9124_v38  ;;  %3575 = vmatpush.msrb.mxu2 %v9127_v18  ;;  %v9144_v18 = vld [vmem:[#allocation9 + $0x168] sm:$0xff]  ;;  %v3332_v17 = vsel %vm3329_vm10, %v3331_v52, %v3327_v31  ;;  %v9147_v38 = vld [vmem:[#allocation9 + $0x120] sm:$0xff]  ;;  %11090 = vst [vmem:[#allocation130_spill] sm:$0xff] %v9162_v46 }
 0x5dd   :  { %v3220_v29 = vadd.f32 %v3219_v45, %v3199_v61  ;;  %v9150_v45 = vld [vmem:[#allocation9 + $0x128] sm:$0xff]  ;;  %v3313_v7 = vsel %vm3310_vm11, %v3312_v8, %v3308_v14  ;;  %v3357_v61 = vmul.f32 %v3332_v17, %v8636_v34  ;;  %11091 = vst [vmem:[#allocation131_spill] sm:$0xff] %v9165_v22  ;;  %v9174_v31 = vld [vmem:[#allocation9 + $0x20] sm:$0xff]  ;;  %v9182_v17 = vld [vmem:[#allocation9 + $0x3f0] sm:$0xff] }
 0x5de   :  { %3536 = vmatpush.msra.mxu0 %v9141_v51  ;;  %3576 = vmatpush.msrb.mxu2 %v9144_v18  ;;  %v9154_v51 = vld [vmem:[#allocation9 + $0xe0] sm:$0xff]  ;;  %v9157_v52 = vld [vmem:[#allocation9 + $0xe8] sm:$0xff]  ;;  %11094 = vst [vmem:[#allocation134_spill] sm:$0xff] %v9174_v31 }
 0x5df   :  { %v3237_v40 = vadd.f32 %v3220_v29, %v565_v50  ;;  %v9171_v34 = vld [vmem:[#allocation9 + $0x68] sm:$0xff]  ;;  %11096 = vst [vmem:[#allocation136_spill] sm:$0xff] %v9182_v17 }
 0x5e0   :  { %3537 = vmatpush.msra.mxu0 %v9147_v38  ;;  %3577 = vmatpush.msrb.mxu2 %v9150_v45  ;;  %v4733_v12 = vpop.eup %4732  ;;  %11093 = vst [vmem:[#allocation133_spill] sm:$0xff] %v9171_v34  ;;  %v9177_v29 = vld [vmem:[#allocation9 + $0x28] sm:$0xff] }
 0x5e1   :  { %v4492_v37 = vmul.f32 -1.442695, %v3237_v40  ;;  %v3358_v36 = vmul.f32 %v4733_v12, %v3313_v7  ;;  %v9168_v40 = vld [vmem:[#allocation9 + $0x60] sm:$0xff]  ;;  %11095 = vst [vmem:[#allocation135_spill] sm:$0xff] %v9177_v29  ;;  %v9185_v12 = vld [vmem:[#allocation9 + $0x3f8] sm:$0xff]  ;;  %v9188_v7 = vld [vmem:[#allocation9 + $0x3b0] sm:$0xff] }
 0x5e2   :  { %3538 = vmatpush.msra.mxu0 %v9154_v51  ;;  %3578 = vmatpush.msrb.mxu2 %v9157_v52  ;;  %11092 = vst [vmem:[#allocation132_spill] sm:$0xff] %v9168_v40 }
 0x5e3   :  { %4734 = vpow2.f32 %v4492_v37  ;;  %v9160_v50 = vadd.f32 %v3358_v36, %v3357_v61  ;;  %11097 = vst [vmem:[#allocation137_spill] sm:$0xff] %v9185_v12  ;;  %v9191_v37 = vld [vmem:[#allocation9 + $0x3b8] sm:$0xff]  ;;  %v9194_v61 = vld [vmem:[#allocation9 + $0x370] sm:$0xff] }
 0x5e4   :  { %3539 = vmatpush.msra.mxu0 %v9162_v46  ;;  %3579 = vmatpush.msrb.mxu2 %v9165_v22  ;;  %11098 = vst [vmem:[#allocation138_spill] sm:$0xff] %v9188_v7  ;;  %v9197_v36 = vld [vmem:[#allocation9 + $0x378] sm:$0xff]  ;;  %v9237_v46 = vld [vmem:[#allocation9 + $0x1b0] sm:$0xff] }
 0x5e5   :  { %11099 = vst [vmem:[#allocation140_spill] sm:$0xff] %v9191_v37 }
 0x5e6   :  { %3540 = vmatpush.msra.mxu0 %v9168_v40  ;;  %3580 = vmatpush.msrb.mxu2 %v9171_v34  ;;  %11100 = vst [vmem:[#allocation141_spill] sm:$0xff] %v9194_v61 }
 0x5e7   :  { %11101 = vst [vmem:[#allocation142_spill] sm:$0xff] %v9197_v36 }
 0x5e8   :  { %3541 = vmatpush.msra.mxu0 %v9174_v31  ;;  %3581 = vmatpush.msrb.mxu2 %v9177_v29  ;;  %v9212_v29 = vld [vmem:[#allocation9 + $0x2b0] sm:$0xff] }
 0x5e9   :  { %v4735_v14 = vpop.eup %4734  ;;  %3542 = vmatmul.f32.vlgmr.msra.gmra.mxu0 %v9030_v3  ;;  %3582 = vmatmul.f32.vlgmr.msrb.gmra.mxu2 %v9030_v3  ;;  %11106 = vst [vmem:[#allocation147_spill] sm:$0xff] %v9212_v29  ;;  %v9219_v31 = vld [vmem:[#allocation9 + $0x270] sm:$0xff] }
 0x5ea   :  { %v3338_v8 = vadd.f32 1.0, %v4735_v14  ;;  %3606 = vmatpush.msrb.mxu0 %v9182_v17  ;;  %3646 = vmatpush.msra.mxu2 %v9185_v12  ;;  %v9200_v14 = vld [vmem:[#allocation9 + $0x330] sm:$0xff]  ;;  %v9203_v12 = vld [vmem:[#allocation9 + $0x338] sm:$0xff]  ;;  %11108 = vst [vmem:[#allocation149_spill] sm:$0xff] %v9219_v31 }
 0x5eb   :  { %11102 = vst [vmem:[#allocation143_spill] sm:$0xff] %v9200_v14  ;;  %v9206_v17 = vld [vmem:[#allocation9 + $0x2f0] sm:$0xff] }
 0x5ec   :  { %4736 = vrcp.f32 %v3338_v8  ;;  %3607 = vmatpush.msrb.mxu0 %v9188_v7  ;;  %3647 = vmatpush.msra.mxu2 %v9191_v37  ;;  %11103 = vst [vmem:[#allocation144_spill] sm:$0xff] %v9203_v12  ;;  %v9209_v37 = vld [vmem:[#allocation9 + $0x2f8] sm:$0xff]  ;;  %v3348_v34 = vand.u32 2147483647, %v3338_v8  ;;  %vm3344_vm13 = vweird.f32 %v3338_v8 }
 0x5ed   :  { %11104 = vst [vmem:[#allocation145_spill] sm:$0xff] %v9206_v17  ;;  %4738 = vtanh.f32 %v9160_v50 }
 0x5ee   :  { %3608 = vmatpush.msrb.mxu0 %v9194_v61  ;;  %3648 = vmatpush.msra.mxu2 %v9197_v36  ;;  %11105 = vst [vmem:[#allocation146_spill] sm:$0xff] %v9209_v37  ;;  %v9215_v36 = vld [vmem:[#allocation9 + $0x2b8] sm:$0xff]  ;;  %vm3349_vm15 = vcmp.eq.f32.partialorder %v3348_v34, 8.507059e+37  ;;  %v9263_v34 = vld [vmem:[#allocation9 + $0xf0] sm:$0xff] }
 0x5ef   :  { %11107 = vst [vmem:[#allocation148_spill] sm:$0xff] %v9215_v36 }
 0x5f0   :  { %3609 = vmatpush.msrb.mxu0 %v9200_v14  ;;  %3649 = vmatpush.msra.mxu2 %v9203_v12  ;;  %v3350_v12 = vand.u32 2147483648, %v3338_v8 }
 0x5f2   :  { %v4737_v7 = vpop.eup %4736  ;;  %3610 = vmatpush.msrb.mxu0 %v9206_v17  ;;  %3650 = vmatpush.msra.mxu2 %v9209_v37  ;;  %v9222_v17 = vld [vmem:[#allocation9 + $0x278] sm:$0xff]  ;;  %v3351_v40 = vor.u32 1.1754944e-38, %v3350_v12  ;;  %v9245_v12 = vld [vmem:[#allocation9 + $0x170] sm:$0xff] }
 0x5f3   :  { %v3340_v61 = vmul.f32 %v4737_v7, %v3338_v8  ;;  %11109 = vst [vmem:[#allocation150_spill] sm:$0xff] %v9222_v17  ;;  %vm3345_vm12 = vweird.f32 %v4737_v7  ;;  %v4739_v22 = vpop.eup %4738 }
 0x5f4   :  { %3611 = vmatpush.msrb.mxu0 %v9212_v29  ;;  %3651 = vmatpush.msra.mxu2 %v9215_v36  ;;  %v9225_v29 = vld [vmem:[#allocation9 + $0x230] sm:$0xff]  ;;  %v9228_v36 = vld [vmem:[#allocation9 + $0x238] sm:$0xff]  ;;  %vm3346_vm14 = vmor %vm3344_vm13, %vm3345_vm12 }
 0x5f5   :  { %v3341_v14 = vsub.f32 1.0, %v3340_v61  ;;  %11110 = vst [vmem:[#allocation151_spill] sm:$0xff] %v9225_v29 }
 0x5f6   :  { %3612 = vmatpush.msrb.mxu0 %v9219_v31  ;;  %3652 = vmatpush.msra.mxu2 %v9222_v17  ;;  %v9231_v31 = vld [vmem:[#allocation9 + $0x1f0] sm:$0xff]  ;;  %v9234_v17 = vld [vmem:[#allocation9 + $0x1f8] sm:$0xff] }
 0x5f7   :  { %v3342_v37 = vmul.f32 %v4737_v7, %v3341_v14  ;;  %11111 = vst [vmem:[#allocation152_spill] sm:$0xff] %v9231_v31 }
 0x5f8   :  { %3613 = vmatpush.msrb.mxu0 %v9225_v29  ;;  %3653 = vmatpush.msra.mxu2 %v9228_v36 }
 0x5f9   :  { %v3343_v61 = vadd.f32 %v4737_v7, %v3342_v37  ;;  %v9240_v37 = vld [vmem:[#allocation9 + $0x1b8] sm:$0xff] }
 0x5fa   :  { %3614 = vmatpush.msrb.mxu0 %v9231_v31  ;;  %3654 = vmatpush.msra.mxu2 %v9234_v17  ;;  %v9248_v31 = vld [vmem:[#allocation9 + $0x178] sm:$0xff] }
 0x5fb   :  { %v3347_v14 = vsel %vm3346_vm14, %v4737_v7, %v3343_v61  ;;  %v11116_v7 = vld [vmem:[#allocation27_spill] sm:$0xff]  ;;  %v5457_v61 = vld [vmem:[#allocation9 + $0x100] sm:$0xff] }
 0x5fc   :  { %v3352_v29 = vsel %vm3349_vm15, %v3351_v40, %v3347_v14  ;;  %3615 = vmatpush.msrb.mxu0 %v9237_v46  ;;  %3655 = vmatpush.msra.mxu2 %v9240_v37  ;;  %v9255_v40 = vld [vmem:[#allocation9 + $0x130] sm:$0xff]  ;;  %v11117_v14 = vld [vmem:[#allocation37_spill] sm:$0xff] }
 0x5fd   :  { %v9243_v8 = vmul.f32 %v4739_v22, %v3352_v29  ;;  %v9258_v22 = vld [vmem:[#allocation9 + $0x138] sm:$0xff] }
 0x5fe   :  { %3616 = vmatpush.msrb.mxu0 %v9245_v12  ;;  %3656 = vmatpush.msra.mxu2 %v9248_v31  ;;  %v9266_v29 = vld [vmem:[#allocation9 + $0xf8] sm:$0xff] }
 0x5ff   :  { %3402 = vmatmul.f32.vlgmr.msra.gmra.mxu1 %v9243_v8  ;;  %3442 = vmatmul.f32.vlgmr.msrb.gmra.mxu3 %v9243_v8 }
 0x600   :  { %3546 = vmatpush.msra.mxu1 %v8673_v25  ;;  %3586 = vmatpush.msrb.mxu3 %v8676_v49  ;;  %v9271_v25 = vld [vmem:[#allocation9 + $0xb0] sm:$0xff]  ;;  %v9274_v49 = vld [vmem:[#allocation9 + $0xb8] sm:$0xff] }
 0x601   :  { %3617 = vmatpush.msrb.mxu0 %v9255_v40  ;;  %3657 = vmatpush.msra.mxu2 %v9258_v22 }
 0x602   :  { %3547 = vmatpush.msra.mxu1 %v8681_v13  ;;  %3587 = vmatpush.msrb.mxu3 %v8684_v62  ;;  %v9283_v13 = vld [vmem:[#allocation9 + $0x70] sm:$0xff]  ;;  %v9286_v62 = vld [vmem:[#allocation9 + $0x78] sm:$0xff] }
 0x603   :  { %3618 = vmatpush.msrb.mxu0 %v9263_v34  ;;  %3658 = vmatpush.msra.mxu2 %v9266_v29 }
 0x604   :  { %3548 = vmatpush.msra.mxu1 %v8689_v23  ;;  %3588 = vmatpush.msrb.mxu3 %v8692_v54  ;;  %v9291_v23 = vld [vmem:[#allocation9 + $0x30] sm:$0xff]  ;;  %v9294_v54 = vld [vmem:[#allocation9 + $0x38] sm:$0xff] }
 0x605   :  { %3619 = vmatpush.msrb.mxu0 %v9271_v25  ;;  %3659 = vmatpush.msra.mxu2 %v9274_v49 }
 0x606   :  { %3549 = vmatpush.msra.mxu1 %v8697_v53  ;;  %3589 = vmatpush.msrb.mxu3 %v8700_v48  ;;  %v5435_v53 = vld [vmem:[#allocation9 + $0x3c0] sm:$0xff]  ;;  %v5436_v48 = vld [vmem:[#allocation9 + $0x3c8] sm:$0xff] }
 0x607   :  { %3482 = vmatmul.f32.vlgmr.msrb.gmra.mxu1 %v9243_v8  ;;  %3522 = vmatmul.f32.vlgmr.msra.gmra.mxu3 %v9243_v8 }
 0x608   :  { %3550 = vmatpush.msra.mxu1 %v8705_v10  ;;  %3590 = vmatpush.msrb.mxu3 %v8708_v28  ;;  %v5437_v10 = vld [vmem:[#allocation9 + $0x380] sm:$0xff]  ;;  %v5438_v28 = vld [vmem:[#allocation9 + $0x388] sm:$0xff] }
 0x609   :  { %3620 = vmatpush.msrb.mxu0 %v9283_v13  ;;  %3660 = vmatpush.msra.mxu2 %v9286_v62 }
 0x60a   :  { %3551 = vmatpush.msra.mxu1 %v8713_v47  ;;  %3591 = vmatpush.msrb.mxu3 %v8716_v5  ;;  %v5439_v47 = vld [vmem:[#allocation9 + $0x340] sm:$0xff]  ;;  %v5440_v5 = vld [vmem:[#allocation9 + $0x348] sm:$0xff] }
 0x60b   :  { %3621 = vmatpush.msrb.mxu0 %v9291_v23  ;;  %3661 = vmatpush.msra.mxu2 %v9294_v54 }
 0x60c   :  { %3622 = vmatmul.f32.vlgmr.msrb.gmra.mxu0 %v9030_v3  ;;  %3662 = vmatmul.f32.vlgmr.msra.gmra.mxu2 %v9030_v3 }
 0x60d   :  { %3552 = vmatpush.msra.mxu1 %v8723_v11  ;;  %3592 = vmatpush.msrb.mxu3 %v8726_v0  ;;  %v5441_v11 = vld [vmem:[#allocation9 + $0x300] sm:$0xff]  ;;  %v5442_v0 = vld [vmem:[#allocation9 + $0x308] sm:$0xff] }
 0x60e   :  { %3830 = vmatpush.msra.mxu0 %v5435_v53  ;;  %3870 = vmatpush.msrb.mxu2 %v5436_v48  ;;  %v11118_v53 = vld [vmem:[#allocation36_spill] sm:$0xff]  ;;  %v5459_v48 = vld [vmem:[#allocation9 + $0xc0] sm:$0xff] }
 0x60f   :  { %3553 = vmatpush.msra.mxu1 %v8731_v39  ;;  %3593 = vmatpush.msrb.mxu3 %v8734_v21  ;;  %v5443_v39 = vld [vmem:[#allocation9 + $0x2c0] sm:$0xff]  ;;  %v5444_v21 = vld [vmem:[#allocation9 + $0x2c8] sm:$0xff] }
 0x610   :  { %3831 = vmatpush.msra.mxu0 %v5437_v10  ;;  %3871 = vmatpush.msrb.mxu2 %v5438_v28  ;;  %v5460_v10 = vld [vmem:[#allocation9 + $0xc8] sm:$0xff]  ;;  %v11119_v28 = vld [vmem:[#allocation72_spill] sm:$0xff] }
 0x611   :  { %3554 = vmatpush.msra.mxu1 %v8739_v27  ;;  %3594 = vmatpush.msrb.mxu3 %v8742_v6  ;;  %v5445_v27 = vld [vmem:[#allocation9 + $0x280] sm:$0xff]  ;;  %v5446_v6 = vld [vmem:[#allocation9 + $0x288] sm:$0xff] }
 0x612   :  { %3832 = vmatpush.msra.mxu0 %v5439_v47  ;;  %3872 = vmatpush.msrb.mxu2 %v5440_v5  ;;  %v11120_v47 = vld [vmem:[#allocation68_spill] sm:$0xff]  ;;  %v5461_v5 = vld [vmem:[#allocation9 + $0x80] sm:$0xff] }
 0x613   :  { %3555 = vmatpush.msra.mxu1 %v8747_v1  ;;  %3595 = vmatpush.msrb.mxu3 %v8750_v60  ;;  %v5447_v1 = vld [vmem:[#allocation9 + $0x240] sm:$0xff]  ;;  %v5448_v60 = vld [vmem:[#allocation9 + $0x248] sm:$0xff] }
 0x614   :  { %3833 = vmatpush.msra.mxu0 %v5441_v11  ;;  %3873 = vmatpush.msrb.mxu2 %v5442_v0  ;;  %v5462_v11 = vld [vmem:[#allocation9 + $0x88] sm:$0xff]  ;;  %v11121_v0 = vld [vmem:[#allocation69_spill] sm:$0xff] }
 0x615   :  { %3556 = vmatpush.msra.mxu1 %v8755_v16  ;;  %3596 = vmatpush.msrb.mxu3 %v8758_v30  ;;  %v5449_v16 = vld [vmem:[#allocation9 + $0x200] sm:$0xff]  ;;  %v5450_v30 = vld [vmem:[#allocation9 + $0x208] sm:$0xff] }
 0x616   :  { %3834 = vmatpush.msra.mxu0 %v5443_v39  ;;  %3874 = vmatpush.msrb.mxu2 %v5444_v21  ;;  %v11122_v39 = vld [vmem:[#allocation20_spill] sm:$0xff]  ;;  %v5463_v21 = vld [vmem:[#allocation9 + $0x40] sm:$0xff] }
 0x617   :  { %3557 = vmatpush.msra.mxu1 %v8763_v35  ;;  %3597 = vmatpush.msrb.mxu3 %v8766_v63  ;;  %v5451_v35 = vld [vmem:[#allocation9 + $0x1c0] sm:$0xff]  ;;  %v5452_v63 = vld [vmem:[#allocation9 + $0x1c8] sm:$0xff] }
 0x618   :  { %3835 = vmatpush.msra.mxu0 %v5445_v27  ;;  %3875 = vmatpush.msrb.mxu2 %v5446_v6  ;;  %v5464_v27 = vld [vmem:[#allocation9 + $0x48] sm:$0xff]  ;;  %v11123_v6 = vld [vmem:[#allocation21_spill] sm:$0xff] }
 0x619   :  { %3558 = vmatpush.msra.mxu1 %v8771_v4  ;;  %3598 = vmatpush.msrb.mxu3 %v8774_v32  ;;  %v11112_v4 = vld [vmem:[#allocation101_spill] sm:$0xff] }
 0x61a   :  { %3836 = vmatpush.msra.mxu0 %v5447_v1  ;;  %3876 = vmatpush.msrb.mxu2 %v5448_v60  ;;  %v5453_v32 = vld [vmem:[#allocation9 + $0x180] sm:$0xff] }
 0x61b   :  { %3559 = vmatpush.msra.mxu1 %v8779_v57  ;;  %3599 = vmatpush.msrb.mxu3 %v8782_v41  ;;  %v5454_v57 = vld [vmem:[#allocation9 + $0x188] sm:$0xff]  ;;  %v11124_v1 = vld [vmem:[#allocation49_spill] sm:$0xff] }
 0x61c   :  { %3837 = vmatpush.msra.mxu0 %v5449_v16  ;;  %3877 = vmatpush.msrb.mxu2 %v5450_v30  ;;  %v11113_v41 = vld [vmem:[#allocation26_spill] sm:$0xff]  ;;  %v5465_v60 = vld [vmem:[#allocation9] sm:$0xff]  ;;  %v11125_v30 = vld [vmem:[#allocation48_spill] sm:$0xff] }
 0x61d   :  { %3560 = vmatpush.msra.mxu1 %v8787_v44  ;;  %3600 = vmatpush.msrb.mxu3 %v8790_v9  ;;  %v11114_v44 = vld [vmem:[#allocation102_spill] sm:$0xff]  ;;  %v5455_v9 = vld [vmem:[#allocation9 + $0x140] sm:$0xff] }
 0x61e   :  { %3838 = vmatpush.msra.mxu0 %v5451_v35  ;;  %3878 = vmatpush.msrb.mxu2 %v5452_v63  ;;  %v5466_v16 = vld [vmem:[#allocation9 + $0x8] sm:$0xff]  ;;  %v5467_v63 = vld [vmem:[#allocation9 + $0x3d0] sm:$0xff] }
 0x61f   :  { %3561 = vmatpush.msra.mxu1 %v8795_v26  ;;  %3601 = vmatpush.msrb.mxu3 %v8798_v43  ;;  %v5456_v26 = vld [vmem:[#allocation9 + $0x148] sm:$0xff]  ;;  %v11115_v43 = vld [vmem:[#allocation103_spill] sm:$0xff] }
 0x620   :  { %3562 = vmatmul.f32.vlgmr.msra.gmra.mxu1 %v9243_v8  ;;  %3602 = vmatmul.f32.vlgmr.msrb.gmra.mxu3 %v9243_v8  ;;  %v11126_v35 = vld [vmem:[#allocation54_spill] sm:$0xff] }
 0x621   :  { %3626 = vmatpush.msrb.mxu1 %v8803_v24  ;;  %3666 = vmatpush.msra.mxu3 %v11112_v4  ;;  %v5458_v24 = vld [vmem:[#allocation9 + $0x108] sm:$0xff]  ;;  %v5468_v4 = vld [vmem:[#allocation9 + $0x3d8] sm:$0xff] }
 0x622   :  { %3839 = vmatpush.msra.mxu0 %v5453_v32  ;;  %3879 = vmatpush.msrb.mxu2 %v5454_v57  ;;  %v11127_v32 = vld [vmem:[#allocation55_spill] sm:$0xff]  ;;  %v11128_v57 = vld [vmem:[#allocation89_spill] sm:$0xff] }
 0x623   :  { %3627 = vmatpush.msrb.mxu1 %v11113_v41  ;;  %3667 = vmatpush.msra.mxu3 %v11114_v44  ;;  %v5469_v41 = vld [vmem:[#allocation9 + $0x390] sm:$0xff]  ;;  %v5470_v44 = vld [vmem:[#allocation9 + $0x398] sm:$0xff] }
 0x624   :  { %3840 = vmatpush.msra.mxu0 %v5455_v9  ;;  %3880 = vmatpush.msrb.mxu2 %v5456_v26  ;;  %v11129_v9 = vld [vmem:[#allocation90_spill] sm:$0xff]  ;;  %v11130_v26 = vld [vmem:[#allocation105_spill] sm:$0xff] }
 0x625   :  { %3628 = vmatpush.msrb.mxu1 %v11115_v43  ;;  %3668 = vmatpush.msra.mxu3 %v11116_v7  ;;  %v5471_v43 = vld [vmem:[#allocation9 + $0x350] sm:$0xff]  ;;  %v5472_v7 = vld [vmem:[#allocation9 + $0x358] sm:$0xff] }
 0x626   :  { %3841 = vmatpush.msra.mxu0 %v5457_v61  ;;  %3881 = vmatpush.msrb.mxu2 %v5458_v24  ;;  %v11131_v61 = vld [vmem:[#allocation106_spill] sm:$0xff]  ;;  %v11132_v24 = vld [vmem:[#allocation107_spill] sm:$0xff] }
 0x627   :  { %3629 = vmatpush.msrb.mxu1 %v11117_v14  ;;  %3669 = vmatpush.msra.mxu3 %v11118_v53  ;;  %v5473_v14 = vld [vmem:[#allocation9 + $0x310] sm:$0xff]  ;;  %v5474_v53 = vld [vmem:[#allocation9 + $0x318] sm:$0xff] }
 0x628   :  { %3842 = vmatpush.msra.mxu0 %v5459_v48  ;;  %3882 = vmatpush.msrb.mxu2 %v5460_v10  ;;  %v11133_v48 = vld [vmem:[#allocation108_spill] sm:$0xff]  ;;  %v11134_v10 = vld [vmem:[#allocation109_spill] sm:$0xff] }
 0x629   :  { %3630 = vmatpush.msrb.mxu1 %v11119_v28  ;;  %3670 = vmatpush.msra.mxu3 %v11120_v47  ;;  %v5475_v28 = vld [vmem:[#allocation9 + $0x2d0] sm:$0xff]  ;;  %v5476_v47 = vld [vmem:[#allocation9 + $0x2d8] sm:$0xff] }
 0x62a   :  { %3843 = vmatpush.msra.mxu0 %v5461_v5  ;;  %3883 = vmatpush.msrb.mxu2 %v5462_v11  ;;  %v11135_v5 = vld [vmem:[#allocation74_spill] sm:$0xff] }
 0x62b   :  { %3631 = vmatpush.msrb.mxu1 %v11121_v0  ;;  %3671 = vmatpush.msra.mxu3 %v11122_v39  ;;  %v11136_v11 = vld [vmem:[#allocation110_spill] sm:$0xff]  ;;  %v5477_v0 = vld [vmem:[#allocation9 + $0x290] sm:$0xff]  ;;  %v5478_v39 = vld [vmem:[#allocation9 + $0x298] sm:$0xff] }
 0x62c   :  { %3844 = vmatpush.msra.mxu0 %v5463_v21  ;;  %3884 = vmatpush.msrb.mxu2 %v5464_v27  ;;  %v11137_v21 = vld [vmem:[#allocation111_spill] sm:$0xff]  ;;  %v11138_v27 = vld [vmem:[#allocation112_spill] sm:$0xff] }
 0x62d   :  { %3632 = vmatpush.msrb.mxu1 %v11123_v6  ;;  %3672 = vmatpush.msra.mxu3 %v11124_v1  ;;  %v5479_v6 = vld [vmem:[#allocation9 + $0x250] sm:$0xff]  ;;  %v5480_v1 = vld [vmem:[#allocation9 + $0x258] sm:$0xff] }
 0x62e   :  { %3845 = vmatpush.msra.mxu0 %v5465_v60  ;;  %3885 = vmatpush.msrb.mxu2 %v5466_v16  ;;  %v11139_v60 = vld [vmem:[#allocation113_spill] sm:$0xff]  ;;  %v11140_v16 = vld [vmem:[#allocation114_spill] sm:$0xff] }
 0x62f   :  { %3633 = vmatpush.msrb.mxu1 %v11125_v30  ;;  %3673 = vmatpush.msra.mxu3 %v11126_v35  ;;  %v5481_v30 = vld [vmem:[#allocation9 + $0x210] sm:$0xff]  ;;  %v5482_v35 = vld [vmem:[#allocation9 + $0x218] sm:$0xff] }
 0x630   :  { %3910 = vmatpush.msrb.mxu0 %v5467_v63  ;;  %3950 = vmatpush.msra.mxu2 %v5468_v4  ;;  %v11141_v63 = vld [vmem:[#allocation115_spill] sm:$0xff] }
 0x631   :  { %3634 = vmatpush.msrb.mxu1 %v11127_v32  ;;  %3674 = vmatpush.msra.mxu3 %v11128_v57  ;;  %v11142_v4 = vld [vmem:[#allocation75_spill] sm:$0xff]  ;;  %v5484_v57 = vld [vmem:[#allocation9 + $0x1d8] sm:$0xff] }
 0x632   :  { %3911 = vmatpush.msrb.mxu0 %v5469_v41  ;;  %3951 = vmatpush.msra.mxu2 %v5470_v44  ;;  %v5483_v32 = vld [vmem:[#allocation9 + $0x1d0] sm:$0xff]  ;;  %v5485_v41 = vld [vmem:[#allocation9 + $0x7c0] sm:$0xff]  ;;  %v5486_v44 = vld [vmem:[#allocation9 + $0x7c8] sm:$0xff] }
 0x633   :  { %3635 = vmatpush.msrb.mxu1 %v11129_v9  ;;  %3675 = vmatpush.msra.mxu3 %v11130_v26  ;;  %v5487_v9 = vld [vmem:[#allocation9 + $0x190] sm:$0xff]  ;;  %v5488_v26 = vld [vmem:[#allocation9 + $0x198] sm:$0xff] }
 0x634   :  { %3912 = vmatpush.msrb.mxu0 %v5471_v43  ;;  %3952 = vmatpush.msra.mxu2 %v5472_v7  ;;  %v5489_v43 = vld [vmem:[#allocation9 + $0x780] sm:$0xff]  ;;  %v5490_v7 = vld [vmem:[#allocation9 + $0x788] sm:$0xff] }
 0x635   :  { %3636 = vmatpush.msrb.mxu1 %v11131_v61  ;;  %3676 = vmatpush.msra.mxu3 %v11132_v24  ;;  %v5491_v61 = vld [vmem:[#allocation9 + $0x150] sm:$0xff]  ;;  %v5492_v24 = vld [vmem:[#allocation9 + $0x158] sm:$0xff] }
 0x636   :  { %3913 = vmatpush.msrb.mxu0 %v5473_v14  ;;  %3953 = vmatpush.msra.mxu2 %v5474_v53  ;;  %v5493_v14 = vld [vmem:[#allocation9 + $0x740] sm:$0xff]  ;;  %v5494_v53 = vld [vmem:[#allocation9 + $0x748] sm:$0xff] }
 0x637   :  { %3637 = vmatpush.msrb.mxu1 %v11133_v48  ;;  %3677 = vmatpush.msra.mxu3 %v11134_v10  ;;  %v5495_v48 = vld [vmem:[#allocation9 + $0x110] sm:$0xff]  ;;  %v5496_v10 = vld [vmem:[#allocation9 + $0x118] sm:$0xff] }
 0x638   :  { %3914 = vmatpush.msrb.mxu0 %v5475_v28  ;;  %3954 = vmatpush.msra.mxu2 %v5476_v47  ;;  %v5497_v28 = vld [vmem:[#allocation9 + $0x700] sm:$0xff]  ;;  %v5498_v47 = vld [vmem:[#allocation9 + $0x708] sm:$0xff] }
 0x639   :  { %3638 = vmatpush.msrb.mxu1 %v11135_v5  ;;  %3678 = vmatpush.msra.mxu3 %v11136_v11  ;;  %v5499_v5 = vld [vmem:[#allocation9 + $0xd0] sm:$0xff]  ;;  %v5500_v11 = vld [vmem:[#allocation9 + $0xd8] sm:$0xff] }
 0x63a   :  { %3915 = vmatpush.msrb.mxu0 %v5477_v0  ;;  %3955 = vmatpush.msra.mxu2 %v5478_v39  ;;  %v5501_v0 = vld [vmem:[#allocation9 + $0x6c0] sm:$0xff]  ;;  %v5502_v39 = vld [vmem:[#allocation9 + $0x6c8] sm:$0xff] }
 0x63b   :  { %3639 = vmatpush.msrb.mxu1 %v11137_v21  ;;  %3679 = vmatpush.msra.mxu3 %v11138_v27  ;;  %v5503_v21 = vld [vmem:[#allocation9 + $0x90] sm:$0xff]  ;;  %v5504_v27 = vld [vmem:[#allocation9 + $0x98] sm:$0xff] }
 0x63c   :  { %3916 = vmatpush.msrb.mxu0 %v5479_v6  ;;  %3956 = vmatpush.msra.mxu2 %v5480_v1  ;;  %v5505_v6 = vld [vmem:[#allocation9 + $0x680] sm:$0xff]  ;;  %v5506_v1 = vld [vmem:[#allocation9 + $0x688] sm:$0xff] }
 0x63d   :  { %3640 = vmatpush.msrb.mxu1 %v11139_v60  ;;  %3680 = vmatpush.msra.mxu3 %v11140_v16  ;;  %v5507_v60 = vld [vmem:[#allocation9 + $0x50] sm:$0xff]  ;;  %v5508_v16 = vld [vmem:[#allocation9 + $0x58] sm:$0xff] }
 0x63e   :  { %3917 = vmatpush.msrb.mxu0 %v5481_v30  ;;  %3957 = vmatpush.msra.mxu2 %v5482_v35  ;;  %v5509_v30 = vld [vmem:[#allocation9 + $0x640] sm:$0xff]  ;;  %v5510_v35 = vld [vmem:[#allocation9 + $0x648] sm:$0xff] }
 0x63f   :  { %3641 = vmatpush.msrb.mxu1 %v11141_v63  ;;  %3681 = vmatpush.msra.mxu3 %v11142_v4  ;;  %v5511_v63 = vld [vmem:[#allocation9 + $0x10] sm:$0xff]  ;;  %v5512_v4 = vld [vmem:[#allocation9 + $0x18] sm:$0xff] }
 0x640   :  { %3642 = vmatmul.f32.vlgmr.msrb.gmra.mxu1 %v9243_v8  ;;  %3682 = vmatmul.f32.vlgmr.msra.gmra.mxu3 %v9243_v8 }
 0x641   :  { %3918 = vmatpush.msrb.mxu0 %v5483_v32  ;;  %3958 = vmatpush.msra.mxu2 %v5484_v57  ;;  %v5513_v32 = vld [vmem:[#allocation9 + $0x600] sm:$0xff]  ;;  %v5514_v57 = vld [vmem:[#allocation9 + $0x608] sm:$0xff] }
 0x642   :  { %3850 = vmatpush.msra.mxu1 %v5485_v41  ;;  %3890 = vmatpush.msrb.mxu3 %v5486_v44  ;;  %v5515_v41 = vld [vmem:[#allocation9 + $0x5c0] sm:$0xff]  ;;  %v5516_v44 = vld [vmem:[#allocation9 + $0x5c8] sm:$0xff] }
 0x643   :  { %3919 = vmatpush.msrb.mxu0 %v5487_v9  ;;  %3959 = vmatpush.msra.mxu2 %v5488_v26  ;;  %v5517_v9 = vld [vmem:[#allocation9 + $0x580] sm:$0xff]  ;;  %v5518_v26 = vld [vmem:[#allocation9 + $0x588] sm:$0xff] }
 0x644   :  { %3851 = vmatpush.msra.mxu1 %v5489_v43  ;;  %3891 = vmatpush.msrb.mxu3 %v5490_v7  ;;  %v5519_v43 = vld [vmem:[#allocation9 + $0x540] sm:$0xff]  ;;  %v5520_v7 = vld [vmem:[#allocation9 + $0x548] sm:$0xff] }
 0x645   :  { %3920 = vmatpush.msrb.mxu0 %v5491_v61  ;;  %3960 = vmatpush.msra.mxu2 %v5492_v24  ;;  %v5521_v61 = vld [vmem:[#allocation9 + $0x500] sm:$0xff]  ;;  %v5522_v24 = vld [vmem:[#allocation9 + $0x508] sm:$0xff] }
 0x646   :  { %3852 = vmatpush.msra.mxu1 %v5493_v14  ;;  %3892 = vmatpush.msrb.mxu3 %v5494_v53  ;;  %v5523_v14 = vld [vmem:[#allocation9 + $0x4c0] sm:$0xff]  ;;  %v5524_v53 = vld [vmem:[#allocation9 + $0x4c8] sm:$0xff] }
 0x647   :  { %3921 = vmatpush.msrb.mxu0 %v5495_v48  ;;  %3961 = vmatpush.msra.mxu2 %v5496_v10  ;;  %v5525_v48 = vld [vmem:[#allocation9 + $0x480] sm:$0xff]  ;;  %v5526_v10 = vld [vmem:[#allocation9 + $0x488] sm:$0xff] }
 0x648   :  { %3853 = vmatpush.msra.mxu1 %v5497_v28  ;;  %3893 = vmatpush.msrb.mxu3 %v5498_v47  ;;  %v5527_v28 = vld [vmem:[#allocation9 + $0x440] sm:$0xff]  ;;  %v5528_v47 = vld [vmem:[#allocation9 + $0x448] sm:$0xff] }
 0x649   :  { %3922 = vmatpush.msrb.mxu0 %v5499_v5  ;;  %3962 = vmatpush.msra.mxu2 %v5500_v11  ;;  %v5529_v5 = vld [vmem:[#allocation9 + $0x400] sm:$0xff]  ;;  %v5530_v11 = vld [vmem:[#allocation9 + $0x408] sm:$0xff] }
 0x64a   :  { %3854 = vmatpush.msra.mxu1 %v5501_v0  ;;  %3894 = vmatpush.msrb.mxu3 %v5502_v39  ;;  %v5531_v0 = vld [vmem:[#allocation9 + $0x7d0] sm:$0xff]  ;;  %v5532_v39 = vld [vmem:[#allocation9 + $0x7d8] sm:$0xff] }
 0x64b   :  { %3923 = vmatpush.msrb.mxu0 %v5503_v21  ;;  %3963 = vmatpush.msra.mxu2 %v5504_v27  ;;  %v5533_v21 = vld [vmem:[#allocation9 + $0x790] sm:$0xff]  ;;  %v5534_v27 = vld [vmem:[#allocation9 + $0x798] sm:$0xff] }
 0x64c   :  { %3855 = vmatpush.msra.mxu1 %v5505_v6  ;;  %3895 = vmatpush.msrb.mxu3 %v5506_v1  ;;  %v5535_v6 = vld [vmem:[#allocation9 + $0x750] sm:$0xff]  ;;  %v5536_v1 = vld [vmem:[#allocation9 + $0x758] sm:$0xff] }
 0x64d   :  { %3924 = vmatpush.msrb.mxu0 %v5507_v60  ;;  %3964 = vmatpush.msra.mxu2 %v5508_v16  ;;  %v5537_v60 = vld [vmem:[#allocation9 + $0x710] sm:$0xff]  ;;  %v5538_v16 = vld [vmem:[#allocation9 + $0x718] sm:$0xff] }
 0x64e   :  { %3856 = vmatpush.msra.mxu1 %v5509_v30  ;;  %3896 = vmatpush.msrb.mxu3 %v5510_v35  ;;  %v5539_v30 = vld [vmem:[#allocation9 + $0x6d0] sm:$0xff]  ;;  %v5540_v35 = vld [vmem:[#allocation9 + $0x6d8] sm:$0xff] }
 0x64f   :  { %3925 = vmatpush.msrb.mxu0 %v5511_v63  ;;  %3965 = vmatpush.msra.mxu2 %v5512_v4  ;;  %v5541_v63 = vld [vmem:[#allocation9 + $0x690] sm:$0xff]  ;;  %v5542_v4 = vld [vmem:[#allocation9 + $0x698] sm:$0xff] }
 0x650   :  { %3857 = vmatpush.msra.mxu1 %v5513_v32  ;;  %3897 = vmatpush.msrb.mxu3 %v5514_v57  ;;  %v5543_v32 = vld [vmem:[#allocation9 + $0x650] sm:$0xff]  ;;  %v5544_v57 = vld [vmem:[#allocation9 + $0x658] sm:$0xff] }
 0x652   :  { %3858 = vmatpush.msra.mxu1 %v5515_v41  ;;  %3898 = vmatpush.msrb.mxu3 %v5516_v44  ;;  %v5545_v41 = vld [vmem:[#allocation9 + $0x610] sm:$0xff]  ;;  %v5546_v44 = vld [vmem:[#allocation9 + $0x618] sm:$0xff] }
 0x654   :  { %3859 = vmatpush.msra.mxu1 %v5517_v9  ;;  %3899 = vmatpush.msrb.mxu3 %v5518_v26  ;;  %v5547_v9 = vld [vmem:[#allocation9 + $0x5d0] sm:$0xff]  ;;  %v5548_v26 = vld [vmem:[#allocation9 + $0x5d8] sm:$0xff] }
 0x656   :  { %3860 = vmatpush.msra.mxu1 %v5519_v43  ;;  %3900 = vmatpush.msrb.mxu3 %v5520_v7  ;;  %v5549_v43 = vld [vmem:[#allocation9 + $0x590] sm:$0xff]  ;;  %v5550_v7 = vld [vmem:[#allocation9 + $0x598] sm:$0xff] }
 0x658   :  { %3861 = vmatpush.msra.mxu1 %v5521_v61  ;;  %3901 = vmatpush.msrb.mxu3 %v5522_v24  ;;  %v5551_v61 = vld [vmem:[#allocation9 + $0x550] sm:$0xff]  ;;  %v5552_v24 = vld [vmem:[#allocation9 + $0x558] sm:$0xff] }
 0x65a   :  { %3862 = vmatpush.msra.mxu1 %v5523_v14  ;;  %3902 = vmatpush.msrb.mxu3 %v5524_v53  ;;  %v5553_v14 = vld [vmem:[#allocation9 + $0x510] sm:$0xff]  ;;  %v5554_v53 = vld [vmem:[#allocation9 + $0x518] sm:$0xff] }
 0x65c   :  { %3863 = vmatpush.msra.mxu1 %v5525_v48  ;;  %3903 = vmatpush.msrb.mxu3 %v5526_v10  ;;  %v5555_v48 = vld [vmem:[#allocation9 + $0x4d0] sm:$0xff]  ;;  %v5556_v10 = vld [vmem:[#allocation9 + $0x4d8] sm:$0xff] }
 0x65e   :  { %3864 = vmatpush.msra.mxu1 %v5527_v28  ;;  %3904 = vmatpush.msrb.mxu3 %v5528_v47  ;;  %v5557_v28 = vld [vmem:[#allocation9 + $0x490] sm:$0xff]  ;;  %v5558_v47 = vld [vmem:[#allocation9 + $0x498] sm:$0xff] }
 0x660   :  { %3865 = vmatpush.msra.mxu1 %v5529_v5  ;;  %3905 = vmatpush.msrb.mxu3 %v5530_v11  ;;  %v3383_v5 = vpop.f32.mrf.mxu0 }
 0x662   :  { %3930 = vmatpush.msrb.mxu1 %v5531_v0  ;;  %3970 = vmatpush.msra.mxu3 %v5532_v39  ;;  %v11143_v0 = vld [vmem:[#allocation18_spill] sm:$0xff]  ;;  %v11144_v39 = vld [vmem:[#allocation24_spill] sm:$0xff] }
 0x664   :  { %3931 = vmatpush.msrb.mxu1 %v5533_v21  ;;  %3971 = vmatpush.msra.mxu3 %v5534_v27  ;;  %v290_v21 = vadd.f32 %v11144_v39, %v11143_v0 }
 0x666   :  { %3932 = vmatpush.msrb.mxu1 %v5535_v6  ;;  %3972 = vmatpush.msra.mxu3 %v5536_v1  ;;  %v5559_v6 = vld [vmem:[#allocation9 + $0x450] sm:$0xff]  ;;  %v5560_v1 = vld [vmem:[#allocation9 + $0x458] sm:$0xff] }
 0x668   :  { %3933 = vmatpush.msrb.mxu1 %v5537_v60  ;;  %3973 = vmatpush.msra.mxu3 %v5538_v16  ;;  %v5561_v16 = vld [vmem:[#allocation9 + $0x410] sm:$0xff] }
 0x66a   :  { %3934 = vmatpush.msrb.mxu1 %v5539_v30  ;;  %3974 = vmatpush.msra.mxu3 %v5540_v35  ;;  %v5562_v30 = vld [vmem:[#allocation9 + $0x418] sm:$0xff]  ;;  %v3423_v35 = vpop.f32.mrf.mxu2 }
 0x66c   :  { %3935 = vmatpush.msrb.mxu1 %v5541_v63  ;;  %3975 = vmatpush.msra.mxu3 %v5542_v4 }
 0x66e   :  { %3936 = vmatpush.msrb.mxu1 %v5543_v32  ;;  %3976 = vmatpush.msra.mxu3 %v5544_v57  ;;  %v11145_v32 = vld [vmem:[#allocation19_spill] sm:$0xff]  ;;  %v11146_v57 = vld [vmem:[#allocation25_spill] sm:$0xff] }
 0x670   :  { %3937 = vmatpush.msrb.mxu1 %v5545_v41  ;;  %3977 = vmatpush.msra.mxu3 %v5546_v44  ;;  %v331_v41 = vadd.f32 %v11146_v57, %v11145_v32 }
 0x672   :  { %3938 = vmatpush.msrb.mxu1 %v5547_v9  ;;  %3978 = vmatpush.msra.mxu3 %v5548_v26 }
 0x674   :  { %3939 = vmatpush.msrb.mxu1 %v5549_v43  ;;  %3979 = vmatpush.msra.mxu3 %v5550_v7  ;;  %v3503_v7 = vpop.f32.mrf.mxu2 }
 0x676   :  { %3940 = vmatpush.msrb.mxu1 %v5551_v61  ;;  %3980 = vmatpush.msra.mxu3 %v5552_v24 }
 0x678   :  { %3941 = vmatpush.msrb.mxu1 %v5553_v14  ;;  %3981 = vmatpush.msra.mxu3 %v5554_v53  ;;  %v11147_v14 = vld [vmem:[#allocation32_spill] sm:$0xff]  ;;  %v11148_v53 = vld [vmem:[#allocation57_spill] sm:$0xff] }
 0x67a   :  { %3942 = vmatpush.msrb.mxu1 %v5555_v48  ;;  %3982 = vmatpush.msra.mxu3 %v5556_v10  ;;  %v413_v48 = vadd.f32 %v11148_v53, %v11147_v14 }
 0x67c   :  { %3943 = vmatpush.msrb.mxu1 %v5557_v28  ;;  %3983 = vmatpush.msra.mxu3 %v5558_v47  ;;  %v3403_v11 = vpop.f32.mrf.mxu1  ;;  %v3463_v47 = vpop.f32.mrf.mxu0 }
 0x67d   :  { %v3404_v27 = vadd.f32 %v3403_v11, %v3383_v5 }
 0x67e   :  { %3944 = vmatpush.msrb.mxu1 %v5559_v6  ;;  %3984 = vmatpush.msra.mxu3 %v5560_v1  ;;  %v11150_v6 = vld [vmem:[#allocation56_spill] sm:$0xff] }
 0x67f   :  { %v3690_v60 = vadd.f32 %v3404_v27, %v290_v21  ;;  %v11149_v27 = vld [vmem:[#allocation33_spill] sm:$0xff] }
 0x680   :  { %3945 = vmatpush.msrb.mxu1 %v5561_v16  ;;  %3985 = vmatpush.msra.mxu3 %v5562_v30  ;;  %v372_v1 = vadd.f32 %v11150_v6, %v11149_v27 }
 0x681   :  { %v4493_v63 = vmul.f32 -1.442695, %v3690_v60 }
 0x682   :  { %v3443_v4 = vpop.f32.mrf.mxu3 }
 0x683   :  { %4740 = vpow2.f32 %v4493_v63  ;;  %v3444_v44 = vadd.f32 %v3443_v4, %v3423_v35 }
 0x684   :  { %v3483_v10 = vpop.f32.mrf.mxu1 }
 0x685   :  { %v3691_v9 = vadd.f32 %v3444_v44, %v331_v41  ;;  %v3484_v11 = vadd.f32 %v3483_v10, %v3463_v47 }
 0x687   :  { %v4494_v26 = vmul.f32 -1.442695, %v3691_v9  ;;  %v3692_v30 = vadd.f32 %v3484_v11, %v372_v1  ;;  %v11151_v1 = vld [vmem:[#allocation45_spill] sm:$0xff] }
 0x689   :  { %v4741_v43 = vpop.eup %4740  ;;  %4742 = vpow2.f32 %v4494_v26 }
 0x68a   :  { %v3705_v61 = vadd.f32 1.0, %v4741_v43  ;;  %v3523_v24 = vpop.f32.mrf.mxu3 }
 0x68b   :  { %v3524_v28 = vadd.f32 %v3523_v24, %v3503_v7 }
 0x68c   :  { %4744 = vrcp.f32 %v3705_v61  ;;  %v3717_v4 = vand.u32 2147483648, %v3705_v61  ;;  %v3715_v44 = vand.u32 2147483647, %v3705_v61  ;;  %vm3711_vm1 = vweird.f32 %v3705_v61 }
 0x68d   :  { %v3693_v5 = vadd.f32 %v3524_v28, %v413_v48 }
 0x68e   :  { %v3718_v24 = vor.u32 1.1754944e-38, %v3717_v4  ;;  %vm3716_vm3 = vcmp.eq.f32.partialorder %v3715_v44, 8.507059e+37 }
 0x68f   :  { %v4743_v39 = vpop.eup %4742  ;;  %v4495_v21 = vmul.f32 -1.442695, %v3693_v5  ;;  %v3543_v5 = vpop.f32.mrf.mxu0 }
 0x690   :  { %v3724_v60 = vadd.f32 1.0, %v4743_v39 }
 0x691   :  { %4746 = vpow2.f32 %v4495_v21 }
 0x692   :  { %v4745_v16 = vpop.eup %4744  ;;  %4748 = vrcp.f32 %v3724_v60  ;;  %v3736_v28 = vand.u32 2147483648, %v3724_v60  ;;  %v3734_v39 = vand.u32 2147483647, %v3724_v60  ;;  %vm3730_vm5 = vweird.f32 %v3724_v60 }
 0x693   :  { %v3707_v35 = vmul.f32 %v4745_v16, %v3705_v61  ;;  %4750 = vtanh.f32 %v3692_v30  ;;  %vm3712_vm0 = vweird.f32 %v4745_v16  ;;  %v439_v30 = vadd.f32 %v11151_v1, %v10227_v55 }
 0x694   :  { %vm3713_vm2 = vmor %vm3711_vm1, %vm3712_vm0  ;;  %v3737_v4 = vor.u32 1.1754944e-38, %v3736_v28  ;;  %vm3735_vm7 = vcmp.eq.f32.partialorder %v3734_v39, 8.507059e+37 }
 0x695   :  { %v3708_v63 = vsub.f32 1.0, %v3707_v35 }
 0x697   :  { %v4747_v57 = vpop.eup %4746  ;;  %v3709_v41 = vmul.f32 %v4745_v16, %v3708_v63 }
 0x698   :  { %v4749_v9 = vpop.eup %4748  ;;  %v3744_v26 = vadd.f32 1.0, %v4747_v57 }
 0x699   :  { %v3726_v43 = vmul.f32 %v4749_v9, %v3724_v60  ;;  %v3710_v7 = vadd.f32 %v4745_v16, %v3709_v41  ;;  %v4751_v10 = vpop.eup %4750  ;;  %vm3731_vm4 = vweird.f32 %v4749_v9 }
 0x69a   :  { %4752 = vrcp.f32 %v3744_v26  ;;  %vm3732_vm6 = vmor %vm3730_vm5, %vm3731_vm4  ;;  %v3756_v39 = vand.u32 2147483648, %v3744_v26  ;;  %vm3750_vm9 = vweird.f32 %v3744_v26 }
 0x69b   :  { %v3727_v53 = vsub.f32 1.0, %v3726_v43  ;;  %v3714_v48 = vsel %vm3713_vm2, %v4745_v16, %v3710_v7  ;;  %v3583_v7 = vpop.f32.mrf.mxu2 }
 0x69c   :  { %v3719_v47 = vsel %vm3716_vm3, %v3718_v24, %v3714_v48 }
 0x69d   :  { %v3728_v11 = vmul.f32 %v4749_v9, %v3727_v53  ;;  %v3819_v21 = vmul.f32 %v4751_v10, %v3719_v47  ;;  %v3563_v6 = vpop.f32.mrf.mxu1  ;;  %v11152_v10 = vld [vmem:[#allocation46_spill] sm:$0xff] }
 0x69e   :  { %v3564_v35 = vadd.f32 %v3563_v6, %v3543_v5  ;;  %v480_v47 = vadd.f32 %v11152_v10, %v10229_v56  ;;  %v3754_v6 = vand.u32 2147483647, %v3744_v26  ;;  %v11159_v10 = vld [vmem:[#allocation122_spill] sm:$0xff] }
 0x69f   :  { %v3729_v61 = vadd.f32 %v4749_v9, %v3728_v11 }
 0x6a0   :  { %v4753_v63 = vpop.eup %4752  ;;  %v3698_v16 = vadd.f32 %v3564_v35, %v439_v30  ;;  %v3757_v35 = vor.u32 1.1754944e-38, %v3756_v39  ;;  %vm3755_vm11 = vcmp.eq.f32.partialorder %v3754_v6, 8.507059e+37  ;;  %v11162_v39 = vld [vmem:[#allocation123_spill] sm:$0xff]  ;;  %v11163_v6 = vld [vmem:[#allocation124_spill] sm:$0xff] }
 0x6a1   :  { %v3733_v57 = vsel %vm3732_vm6, %v4749_v9, %v3729_v61  ;;  %v3746_v41 = vmul.f32 %v4753_v63, %v3744_v26  ;;  %vm3751_vm8 = vweird.f32 %v4753_v63 }
 0x6a2   :  { %v3738_v44 = vsel %vm3735_vm7, %v3737_v4, %v3733_v57  ;;  %v4496_v43 = vmul.f32 -1.442695, %v3698_v16  ;;  %vm3752_vm10 = vmor %vm3750_vm9, %vm3751_vm8 }
 0x6a3   :  { %v3818_v24 = vmul.f32 %v3738_v44, %v9024_v20  ;;  %v3747_v53 = vsub.f32 1.0, %v3746_v41  ;;  %v3603_v48 = vpop.f32.mrf.mxu3  ;;  %v11153_v44 = vld [vmem:[#allocation116_spill] sm:$0xff] }
 0x6a4   :  { %4754 = vpow2.f32 %v4496_v43  ;;  %v3604_v60 = vadd.f32 %v3603_v48, %v3583_v7  ;;  %v11156_v7 = vld [vmem:[#allocation119_spill] sm:$0xff]  ;;  %v11158_v48 = vld [vmem:[#allocation121_spill] sm:$0xff] }
 0x6a5   :  { %v9368_v5 = vadd.f32 %v3819_v21, %v3818_v24  ;;  %v3748_v11 = vmul.f32 %v4753_v63, %v3747_v53  ;;  %v3623_v24 = vpop.f32.mrf.mxu0 }
 0x6a6   :  { %v3699_v28 = vadd.f32 %v3604_v60, %v480_v47  ;;  %v11160_v47 = vld [vmem:[#allocation99_spill] sm:$0xff]  ;;  %v11161_v60 = vld [vmem:[#allocation66_spill] sm:$0xff] }
 0x6a7   :  { %4756 = vtanh.f32 %v9368_v5  ;;  %v3749_v9 = vadd.f32 %v4753_v63, %v3748_v11  ;;  %v521_v11 = vadd.f32 %v11161_v60, %v11160_v47 }
 0x6a8   :  { %v4497_v1 = vmul.f32 -1.442695, %v3699_v28 }
 0x6a9   :  { %v3753_v30 = vsel %vm3752_vm10, %v4753_v63, %v3749_v9 }
 0x6aa   :  { %v4755_v20 = vpop.eup %4754  ;;  %4758 = vpow2.f32 %v4497_v1  ;;  %v3758_v4 = vsel %vm3755_vm11, %v3757_v35, %v3753_v30 }
 0x6ab   :  { %v9371_v61 = vadd.f32 1.0, %v4755_v20 }
 0x6ad   :  { %v4757_v21 = vpop.eup %4756  ;;  %4760 = vrcp.f32 %v9371_v61  ;;  %vm3769_vm0 = vweird.f32 %v9371_v61 }
 0x6ae   :  { %v9374_v16 = vmul.f32 %v4757_v21, %v3758_v4  ;;  %v11164_v4 = vld [vmem:[#allocation125_spill] sm:$0xff] }
 0x6b0   :  { %v4759_v57 = vpop.eup %4758  ;;  %3846 = vmatmul.f32.vlgmr.msra.gmra.mxu0 %v9374_v16  ;;  %3886 = vmatmul.f32.vlgmr.msrb.gmra.mxu2 %v9374_v16 }
 0x6b1   :  { %v3782_v26 = vadd.f32 1.0, %v4759_v57  ;;  %3990 = vmatpush.msra.mxu0 %v9036_v59  ;;  %4030 = vmatpush.msrb.mxu2 %v9039_v33  ;;  %v11165_v57 = vld [vmem:[#allocation126_spill] sm:$0xff] }
 0x6b3   :  { %v9380_v63 = vpop.eup %4760  ;;  %4762 = vrcp.f32 %v3782_v26  ;;  %3991 = vmatpush.msra.mxu0 %v9045_v15  ;;  %4031 = vmatpush.msrb.mxu2 %v9048_v2  ;;  %v11154_v15 = vld [vmem:[#allocation117_spill] sm:$0xff]  ;;  %v11155_v2 = vld [vmem:[#allocation118_spill] sm:$0xff]  ;;  %v3794_v1 = vand.u32 2147483648, %v3782_v26  ;;  %vm3788_vm13 = vweird.f32 %v3782_v26  ;;  %v3792_v21 = vand.u32 2147483647, %v3782_v26 }
 0x6b4   :  { %v3765_v41 = vmul.f32 %v9380_v63, %v9371_v61  ;;  %vm3770_vm14 = vweird.f32 %v9380_v63 }
 0x6b5   :  { %3992 = vmatpush.msra.mxu0 %v9053_v42  ;;  %4032 = vmatpush.msrb.mxu2 %v9056_v58  ;;  %v11157_v42 = vld [vmem:[#allocation120_spill] sm:$0xff]  ;;  %vm3771_vm1 = vmor %vm3769_vm0, %vm3770_vm14  ;;  %vm3793_vm2 = vcmp.eq.f32.partialorder %v3792_v21, 8.507059e+37  ;;  %v11181_v21 = vld [vmem:[#allocation138_spill] sm:$0xff] }
 0x6b6   :  { %v3766_v33 = vsub.f32 1.0, %v3765_v41  ;;  %v11184_v41 = vld [vmem:[#allocation142_spill] sm:$0xff] }
 0x6b7   :  { %3993 = vmatpush.msra.mxu0 %v9059_v19  ;;  %4033 = vmatpush.msrb.mxu2 %v11153_v44  ;;  %v3775_v44 = vand.u32 2147483648, %v9371_v61 }
 0x6b8   :  { %3926 = vmatmul.f32.vlgmr.msrb.gmra.mxu0 %v9374_v16  ;;  %3966 = vmatmul.f32.vlgmr.msra.gmra.mxu2 %v9374_v16  ;;  %v3767_v53 = vmul.f32 %v9380_v63, %v3766_v33  ;;  %v3663_v33 = vpop.f32.mrf.mxu2 }
 0x6b9   :  { %v4763_v59 = vpop.eup %4762  ;;  %3994 = vmatpush.msra.mxu0 %v11154_v15  ;;  %4034 = vmatpush.msrb.mxu2 %v11155_v2  ;;  %v3773_v15 = vand.u32 2147483647, %v9371_v61  ;;  %v11172_v61 = vld [vmem:[#allocation129_spill] sm:$0xff] }
 0x6ba   :  { %v3784_v43 = vmul.f32 %v4763_v59, %v3782_v26  ;;  %vm3789_vm12 = vweird.f32 %v4763_v59  ;;  %v3768_v35 = vadd.f32 %v9380_v63, %v3767_v53 }
 0x6bb   :  { %3995 = vmatpush.msra.mxu0 %v11156_v7  ;;  %4035 = vmatpush.msrb.mxu2 %v11157_v42  ;;  %vm9407_vm15 = vmor %vm3788_vm13, %vm3789_vm12  ;;  %v11169_v7 = vld [vmem:[#allocation128_spill] sm:$0xff]  ;;  %v11170_v42 = vld [vmem:[#allocation98_spill] sm:$0xff]  ;;  %vm3774_vm3 = vcmp.eq.f32.partialorder %v3773_v15, 8.507059e+37 }
 0x6bc   :  { %v3785_v58 = vsub.f32 1.0, %v3784_v43  ;;  %v11168_v43 = vld [vmem:[#allocation127_spill] sm:$0xff] }
 0x6bd   :  { %v3643_v19 = vpop.f32.mrf.mxu1  ;;  %3996 = vmatpush.msra.mxu0 %v11158_v48  ;;  %4036 = vmatpush.msrb.mxu2 %v11159_v10  ;;  %v3772_v48 = vsel %vm3771_vm1, %v9380_v63, %v3768_v35  ;;  %v11173_v63 = vld [vmem:[#allocation130_spill] sm:$0xff]  ;;  %v11180_v35 = vld [vmem:[#allocation137_spill] sm:$0xff] }
 0x6be   :  { %v3786_v28 = vmul.f32 %v4763_v59, %v3785_v58  ;;  %v3644_v9 = vadd.f32 %v3643_v19, %v3623_v24  ;;  %v11171_v58 = vld [vmem:[#allocation67_spill] sm:$0xff]  ;;  %v3795_v19 = vor.u32 1.1754944e-38, %v3794_v1 }
 0x6bf   :  { %3997 = vmatpush.msra.mxu0 %v11162_v39  ;;  %4037 = vmatpush.msrb.mxu2 %v11163_v6  ;;  %v562_v24 = vadd.f32 %v11171_v58, %v11170_v42  ;;  %v11174_v1 = vld [vmem:[#allocation131_spill] sm:$0xff]  ;;  %v11190_v58 = vld [vmem:[#allocation148_spill] sm:$0xff] }
 0x6c0   :  { %v3700_v20 = vadd.f32 %v3644_v9, %v521_v11  ;;  %v3787_v30 = vadd.f32 %v4763_v59, %v3786_v28 }
 0x6c1   :  { %3998 = vmatpush.msra.mxu0 %v11164_v4  ;;  %4038 = vmatpush.msrb.mxu2 %v11165_v57  ;;  %v11182_v4 = vld [vmem:[#allocation140_spill] sm:$0xff]  ;;  %v11183_v57 = vld [vmem:[#allocation141_spill] sm:$0xff] }
 0x6c2   :  { %4764 = vtanh.f32 %v3700_v20  ;;  %v3791_v2 = vsel %vm9407_vm15, %v4763_v59, %v3787_v30  ;;  %v3776_v59 = vor.u32 1.1754944e-38, %v3775_v44  ;;  %v11177_v20 = vld [vmem:[#allocation134_spill] sm:$0xff]  ;;  %v11178_v30 = vld [vmem:[#allocation135_spill] sm:$0xff] }
 0x6c3   :  { %v3683_v26 = vpop.f32.mrf.mxu3  ;;  %3999 = vmatpush.msra.mxu0 %v11168_v43  ;;  %4039 = vmatpush.msrb.mxu2 %v11169_v7  ;;  %v3796_v10 = vsel %vm3793_vm2, %v3795_v19, %v3791_v2  ;;  %v11185_v44 = vld [vmem:[#allocation143_spill] sm:$0xff]  ;;  %v11187_v2 = vld [vmem:[#allocation145_spill] sm:$0xff] }
 0x6c4   :  { %v3684_v53 = vadd.f32 %v3683_v26, %v3663_v33  ;;  %v3777_v28 = vsel %vm3774_vm3, %v3776_v59, %v3772_v48  ;;  %v3821_v39 = vmul.f32 %v3796_v10, %v9160_v50  ;;  %v11186_v33 = vld [vmem:[#allocation144_spill] sm:$0xff]  ;;  %v11188_v26 = vld [vmem:[#allocation146_spill] sm:$0xff]  ;;  %v11189_v7 = vld [vmem:[#allocation147_spill] sm:$0xff] }
 0x6c5   :  { %4000 = vmatpush.msra.mxu0 %v11172_v61  ;;  %4040 = vmatpush.msrb.mxu2 %v9144_v18  ;;  %v11192_v48 = vld [vmem:[#allocation150_spill] sm:$0xff]  ;;  %v11193_v10 = vld [vmem:[#allocation151_spill] sm:$0xff] }
 0x6c6   :  { %v3701_v60 = vadd.f32 %v3684_v53, %v562_v24  ;;  %v11191_v53 = vld [vmem:[#allocation149_spill] sm:$0xff] }
 0x6c7   :  { %4001 = vmatpush.msra.mxu0 %v9147_v38  ;;  %4041 = vmatpush.msrb.mxu2 %v9150_v45  ;;  %v11175_v38 = vld [vmem:[#allocation132_spill] sm:$0xff]  ;;  %v11176_v45 = vld [vmem:[#allocation133_spill] sm:$0xff] }
 0x6c8   :  { %v4765_v11 = vpop.eup %4764  ;;  %v4498_v9 = vmul.f32 -1.442695, %v3701_v60 }
 0x6c9   :  { %v3822_v6 = vmul.f32 %v4765_v11, %v3777_v28  ;;  %4002 = vmatpush.msra.mxu0 %v9154_v51  ;;  %4042 = vmatpush.msrb.mxu2 %v9157_v52  ;;  %v11179_v52 = vld [vmem:[#allocation136_spill] sm:$0xff] }
 0x6ca   :  { %4766 = vpow2.f32 %v4498_v9  ;;  %v11194_v28 = vld [vmem:[#allocation152_spill] sm:$0xff] }
 0x6cb   :  { %v9430_v18 = vadd.f32 %v3822_v6, %v3821_v39  ;;  %4003 = vmatpush.msra.mxu0 %v11173_v63  ;;  %4043 = vmatpush.msrb.mxu2 %v11174_v1  ;;  %v5569_v1 = vld [vmem:[#allocation9 + $0x720] sm:$0xff] }
 0x6cd   :  { %4004 = vmatpush.msra.mxu0 %v11175_v38  ;;  %4044 = vmatpush.msrb.mxu2 %v11176_v45  ;;  %v4324_v38 = vld [vmem:[#allocation12 + $0x70] sm:$0xff]  ;;  %v5575_v45 = vld [vmem:[#allocation9 + $0x660] sm:$0xff] }
 0x6cf   :  { %4005 = vmatpush.msra.mxu0 %v11177_v20  ;;  %4045 = vmatpush.msrb.mxu2 %v11178_v30  ;;  %v5577_v20 = vld [vmem:[#allocation9 + $0x620] sm:$0xff]  ;;  %v5578_v30 = vld [vmem:[#allocation9 + $0x628] sm:$0xff] }
 0x6d0   :  { %v4767_v50 = vpop.eup %4766  ;;  %4006 = vmatmul.f32.vlgmr.msra.gmra.mxu0 %v9374_v16  ;;  %4046 = vmatmul.f32.vlgmr.msrb.gmra.mxu2 %v9374_v16 }
 0x6d1   :  { %v3802_v51 = vadd.f32 1.0, %v4767_v50  ;;  %4070 = vmatpush.msrb.mxu0 %v11179_v52  ;;  %4110 = vmatpush.msra.mxu2 %v11180_v35  ;;  %v4322_v50 = vld [vmem:[#allocation12 + $0x60] sm:$0xff]  ;;  %v5581_v52 = vld [vmem:[#allocation9 + $0x5a0] sm:$0xff] }
 0x6d2   :  { %v5582_v35 = vld [vmem:[#allocation9 + $0x5a8] sm:$0xff] }
 0x6d3   :  { %4768 = vrcp.f32 %v3802_v51  ;;  %4071 = vmatpush.msrb.mxu0 %v11181_v21  ;;  %4111 = vmatpush.msra.mxu2 %v11182_v4  ;;  %v3814_v19 = vand.u32 2147483648, %v3802_v51  ;;  %v3812_v59 = vand.u32 2147483647, %v3802_v51  ;;  %vm3808_vm5 = vweird.f32 %v3802_v51  ;;  %v4320_v21 = vld [vmem:[#allocation12 + $0x50] sm:$0xff]  ;;  %v5583_v4 = vld [vmem:[#allocation9 + $0x560] sm:$0xff] }
 0x6d4   :  { %4770 = vtanh.f32 %v9430_v18 }
 0x6d5   :  { %4072 = vmatpush.msrb.mxu0 %v11183_v57  ;;  %4112 = vmatpush.msra.mxu2 %v11184_v41  ;;  %v3815_v11 = vor.u32 1.1754944e-38, %v3814_v19  ;;  %vm3813_vm7 = vcmp.eq.f32.partialorder %v3812_v59, 8.507059e+37  ;;  %v5584_v57 = vld [vmem:[#allocation9 + $0x568] sm:$0xff]  ;;  %v4319_v41 = vld [vmem:[#allocation12 + $0x48] sm:$0xff]  ;;  %v5591_v19 = vld [vmem:[#allocation9 + $0x460] sm:$0xff] }
 0x6d6   :  { %v5594_v59 = vld [vmem:[#allocation9 + $0x428] sm:$0xff] }
 0x6d7   :  { %4073 = vmatpush.msrb.mxu0 %v11185_v44  ;;  %4113 = vmatpush.msra.mxu2 %v11186_v33  ;;  %v5585_v44 = vld [vmem:[#allocation9 + $0x520] sm:$0xff]  ;;  %v5586_v33 = vld [vmem:[#allocation9 + $0x528] sm:$0xff] }
 0x6d9   :  { %v4769_v15 = vpop.eup %4768  ;;  %4074 = vmatpush.msrb.mxu0 %v11187_v2  ;;  %4114 = vmatpush.msra.mxu2 %v11188_v26  ;;  %v5587_v2 = vld [vmem:[#allocation9 + $0x4e0] sm:$0xff]  ;;  %v5588_v26 = vld [vmem:[#allocation9 + $0x4e8] sm:$0xff] }
 0x6da   :  { %v3804_v43 = vmul.f32 %v4769_v15, %v3802_v51  ;;  %vm3809_vm4 = vweird.f32 %v4769_v15  ;;  %v4771_v39 = vpop.eup %4770  ;;  %v4321_v51 = vld [vmem:[#allocation12 + $0x58] sm:$0xff] }
 0x6db   :  { %4075 = vmatpush.msrb.mxu0 %v11189_v7  ;;  %4115 = vmatpush.msra.mxu2 %v11190_v58  ;;  %vm3810_vm6 = vmor %vm3808_vm5, %vm3809_vm4  ;;  %v5589_v7 = vld [vmem:[#allocation9 + $0x4a0] sm:$0xff]  ;;  %v5590_v58 = vld [vmem:[#allocation9 + $0x4a8] sm:$0xff] }
 0x6dc   :  { %v3805_v24 = vsub.f32 1.0, %v3804_v43  ;;  %v4317_v43 = vld [vmem:[#allocation12 + $0x38] sm:$0xff] }
 0x6dd   :  { %4076 = vmatpush.msrb.mxu0 %v11191_v53  ;;  %4116 = vmatpush.msra.mxu2 %v11192_v48  ;;  %v5592_v53 = vld [vmem:[#allocation9 + $0x468] sm:$0xff]  ;;  %v5593_v48 = vld [vmem:[#allocation9 + $0x420] sm:$0xff] }
 0x6de   :  { %v3806_v61 = vmul.f32 %v4769_v15, %v3805_v24  ;;  %v4316_v24 = vld [vmem:[#allocation12 + $0x30] sm:$0xff] }
 0x6df   :  { %4077 = vmatpush.msrb.mxu0 %v11193_v10  ;;  %4117 = vmatpush.msra.mxu2 %v9228_v36  ;;  %v5563_v36 = vld [vmem:[#allocation9 + $0x7e0] sm:$0xff]  ;;  %v5595_v10 = vld [vmem:[#allocation9 + $0x7f0] sm:$0xff] }
 0x6e0   :  { %v3807_v60 = vadd.f32 %v4769_v15, %v3806_v61  ;;  %v4315_v61 = vld [vmem:[#allocation12 + $0x28] sm:$0xff] }
 0x6e1   :  { %4078 = vmatpush.msrb.mxu0 %v11194_v28  ;;  %4118 = vmatpush.msra.mxu2 %v9234_v17  ;;  %v5564_v17 = vld [vmem:[#allocation9 + $0x7e8] sm:$0xff]  ;;  %v5597_v28 = vld [vmem:[#allocation9 + $0x7b0] sm:$0xff] }
 0x6e2   :  { %v3811_v9 = vsel %vm3810_vm6, %v4769_v15, %v3807_v60  ;;  %v4318_v15 = vld [vmem:[#allocation12 + $0x40] sm:$0xff] }
 0x6e3   :  { %v3816_v6 = vsel %vm3813_vm7, %v3815_v11, %v3811_v9  ;;  %4079 = vmatpush.msrb.mxu0 %v9237_v46  ;;  %4119 = vmatpush.msra.mxu2 %v9240_v37  ;;  %v5565_v46 = vld [vmem:[#allocation9 + $0x7a0] sm:$0xff]  ;;  %v5566_v37 = vld [vmem:[#allocation9 + $0x7a8] sm:$0xff]  ;;  %v5596_v11 = vld [vmem:[#allocation9 + $0x7f8] sm:$0xff] }
 0x6e4   :  { %v9461_v63 = vmul.f32 %v4771_v39, %v3816_v6  ;;  %v4314_v60 = vld [vmem:[#allocation12 + $0x20] sm:$0xff]  ;;  %v4313_v9 = vld [vmem:[#allocation12 + $0x18] sm:$0xff]  ;;  %v5598_v39 = vld [vmem:[#allocation9 + $0x7b8] sm:$0xff] }
 0x6e5   :  { %4080 = vmatpush.msrb.mxu0 %v9245_v12  ;;  %4120 = vmatpush.msra.mxu2 %v9248_v31  ;;  %v5567_v31 = vld [vmem:[#allocation9 + $0x760] sm:$0xff]  ;;  %v5568_v12 = vld [vmem:[#allocation9 + $0x768] sm:$0xff]  ;;  %v5599_v6 = vld [vmem:[#allocation9 + $0x770] sm:$0xff] }
 0x6e6   :  { %3866 = vmatmul.f32.vlgmr.msra.gmra.mxu1 %v9461_v63  ;;  %3906 = vmatmul.f32.vlgmr.msrb.gmra.mxu3 %v9461_v63 }
 0x6e7   :  { %4010 = vmatpush.msra.mxu1 %v5563_v36  ;;  %4050 = vmatpush.msrb.mxu3 %v5564_v17  ;;  %v4312_v36 = vld [vmem:[#allocation12 + $0x10] sm:$0xff] }
 0x6e8   :  { %4081 = vmatpush.msrb.mxu0 %v9255_v40  ;;  %4121 = vmatpush.msra.mxu2 %v9258_v22  ;;  %v5570_v40 = vld [vmem:[#allocation9 + $0x728] sm:$0xff]  ;;  %v5571_v22 = vld [vmem:[#allocation9 + $0x6e0] sm:$0xff]  ;;  %v5600_v17 = vld [vmem:[#allocation9 + $0x778] sm:$0xff] }
 0x6e9   :  { %4011 = vmatpush.msra.mxu1 %v5565_v46  ;;  %4051 = vmatpush.msrb.mxu3 %v5566_v37  ;;  %v5601_v46 = vld [vmem:[#allocation9 + $0x730] sm:$0xff] }
 0x6ea   :  { %4082 = vmatpush.msrb.mxu0 %v9263_v34  ;;  %4122 = vmatpush.msra.mxu2 %v9266_v29  ;;  %v5572_v34 = vld [vmem:[#allocation9 + $0x6e8] sm:$0xff]  ;;  %v5573_v29 = vld [vmem:[#allocation9 + $0x6a0] sm:$0xff]  ;;  %v4311_v37 = vld [vmem:[#allocation12 + $0x8] sm:$0xff] }
 0x6eb   :  { %4012 = vmatpush.msra.mxu1 %v5567_v31  ;;  %4052 = vmatpush.msrb.mxu3 %v5568_v12  ;;  %v5602_v31 = vld [vmem:[#allocation9 + $0x738] sm:$0xff]  ;;  %v5603_v12 = vld [vmem:[#allocation9 + $0x6f0] sm:$0xff] }
 0x6ec   :  { %4083 = vmatpush.msrb.mxu0 %v9271_v25  ;;  %4123 = vmatpush.msra.mxu2 %v9274_v49  ;;  %v5574_v25 = vld [vmem:[#allocation9 + $0x6a8] sm:$0xff]  ;;  %v4325_v49 = vld [vmem:[#allocation12 + $0x78] sm:$0xff] }
 0x6ed   :  { %4013 = vmatpush.msra.mxu1 %v5569_v1  ;;  %4053 = vmatpush.msrb.mxu3 %v5570_v40  ;;  %v4310_v1 = vld [vmem:[#allocation12] sm:$0xff]  ;;  %v5604_v40 = vld [vmem:[#allocation9 + $0x6f8] sm:$0xff] }
 0x6ee   :  { %3946 = vmatmul.f32.vlgmr.msrb.gmra.mxu1 %v9461_v63  ;;  %3986 = vmatmul.f32.vlgmr.msra.gmra.mxu3 %v9461_v63 }
 0x6ef   :  { %4014 = vmatpush.msra.mxu1 %v5571_v22  ;;  %4054 = vmatpush.msrb.mxu3 %v5572_v34  ;;  %v5605_v22 = vld [vmem:[#allocation9 + $0x6b0] sm:$0xff]  ;;  %v5606_v34 = vld [vmem:[#allocation9 + $0x6b8] sm:$0xff] }
 0x6f0   :  { %4084 = vmatpush.msrb.mxu0 %v9283_v13  ;;  %4124 = vmatpush.msra.mxu2 %v9286_v62  ;;  %v5576_v13 = vld [vmem:[#allocation9 + $0x668] sm:$0xff]  ;;  %v4323_v62 = vld [vmem:[#allocation12 + $0x68] sm:$0xff] }
 0x6f1   :  { %4015 = vmatpush.msra.mxu1 %v5573_v29  ;;  %4055 = vmatpush.msrb.mxu3 %v5574_v25  ;;  %v11195_v29 = vld [vmem:[#allocation47_spill] sm:$0xff] }
 0x6f2   :  { %4085 = vmatpush.msrb.mxu0 %v9291_v23  ;;  %4125 = vmatpush.msra.mxu2 %v9294_v54  ;;  %v5579_v23 = vld [vmem:[#allocation9 + $0x5e0] sm:$0xff]  ;;  %v5580_v54 = vld [vmem:[#allocation9 + $0x5e8] sm:$0xff]  ;;  %v5607_v25 = vld [vmem:[#allocation9 + $0x670] sm:$0xff] }
 0x6f3   :  { %4086 = vmatmul.f32.vlgmr.msrb.gmra.mxu0 %v9374_v16  ;;  %4126 = vmatmul.f32.vlgmr.msra.gmra.mxu2 %v9374_v16 }
 0x6f4   :  { %4346 = vmatpush.msra.mxu0 %v4325_v49  ;;  %4016 = vmatpush.msra.mxu1 %v5575_v45  ;;  %v5608_v49 = vld [vmem:[#allocation9 + $0x678] sm:$0xff] }
 0x6f5   :  { %4056 = vmatpush.msrb.mxu3 %v5576_v13  ;;  %v5610_v45 = vld [vmem:[#allocation9 + $0x638] sm:$0xff]  ;;  %v5611_v13 = vld [vmem:[#allocation9 + $0x5f0] sm:$0xff] }
 0x6f6   :  { %4347 = vmatpush.msra.mxu0 %v4324_v38  ;;  %4017 = vmatpush.msra.mxu1 %v5577_v20  ;;  %v5609_v38 = vld [vmem:[#allocation9 + $0x630] sm:$0xff] }
 0x6f7   :  { %4057 = vmatpush.msrb.mxu3 %v5578_v30  ;;  %v5613_v20 = vld [vmem:[#allocation9 + $0x5b0] sm:$0xff]  ;;  %v5614_v30 = vld [vmem:[#allocation9 + $0x5b8] sm:$0xff] }
 0x6f8   :  { %4348 = vmatpush.msra.mxu0 %v4323_v62  ;;  %4018 = vmatpush.msra.mxu1 %v5579_v23  ;;  %v5612_v62 = vld [vmem:[#allocation9 + $0x5f8] sm:$0xff]  ;;  %v5615_v23 = vld [vmem:[#allocation9 + $0x570] sm:$0xff] }
 0x6f9   :  { %4058 = vmatpush.msrb.mxu3 %v5580_v54  ;;  %v5616_v54 = vld [vmem:[#allocation9 + $0x578] sm:$0xff] }
 0x6fa   :  { %4349 = vmatpush.msra.mxu0 %v4322_v50  ;;  %4019 = vmatpush.msra.mxu1 %v5581_v52  ;;  %v11196_v50 = vld [vmem:[#allocation78_spill] sm:$0xff]  ;;  %v5618_v52 = vld [vmem:[#allocation9 + $0x538] sm:$0xff] }
 0x6fb   :  { %4059 = vmatpush.msrb.mxu3 %v5582_v35  ;;  %v5619_v35 = vld [vmem:[#allocation9 + $0x4f0] sm:$0xff] }
 0x6fc   :  { %4350 = vmatpush.msra.mxu0 %v4321_v51  ;;  %4020 = vmatpush.msra.mxu1 %v5583_v4  ;;  %v5617_v51 = vld [vmem:[#allocation9 + $0x530] sm:$0xff] }
 0x6fd   :  { %4060 = vmatpush.msrb.mxu3 %v5584_v57  ;;  %v5621_v4 = vld [vmem:[#allocation9 + $0x4b0] sm:$0xff]  ;;  %v5622_v57 = vld [vmem:[#allocation9 + $0x4b8] sm:$0xff] }
 0x6fe   :  { %4351 = vmatpush.msra.mxu0 %v4320_v21  ;;  %4021 = vmatpush.msra.mxu1 %v5585_v44  ;;  %v5620_v21 = vld [vmem:[#allocation9 + $0x4f8] sm:$0xff]  ;;  %v5623_v44 = vld [vmem:[#allocation9 + $0x470] sm:$0xff] }
 0x6ff   :  { %4061 = vmatpush.msrb.mxu3 %v5586_v33  ;;  %v5624_v33 = vld [vmem:[#allocation9 + $0x478] sm:$0xff] }
 0x700   :  { %4352 = vmatpush.msra.mxu0 %v4319_v41  ;;  %4022 = vmatpush.msra.mxu1 %v5587_v2  ;;  %v11197_v41 = vld [vmem:[#allocation31_spill] sm:$0xff]  ;;  %v5626_v2 = vld [vmem:[#allocation9 + $0x438] sm:$0xff] }
 0x701   :  { %4062 = vmatpush.msrb.mxu3 %v5588_v26  ;;  %v11198_v26 = vld [vmem:[#allocation42_spill] sm:$0xff] }
 0x702   :  { %4353 = vmatpush.msra.mxu0 %v4318_v15  ;;  %4023 = vmatpush.msra.mxu1 %v5589_v7  ;;  %v5625_v15 = vld [vmem:[#allocation9 + $0x430] sm:$0xff] }
 0x703   :  { %4063 = vmatpush.msrb.mxu3 %v5590_v58 }
 0x704   :  { %4354 = vmatpush.msra.mxu0 %v4317_v43  ;;  %4024 = vmatpush.msra.mxu1 %v5591_v19  ;;  %v11199_v43 = vld [vmem:[#allocation97_spill] sm:$0xff] }
 0x705   :  { %4064 = vmatpush.msrb.mxu3 %v5592_v53 }
 0x706   :  { %4355 = vmatpush.msra.mxu0 %v4316_v24  ;;  %4025 = vmatpush.msra.mxu1 %v5593_v48  ;;  %v11200_v24 = vld [vmem:[#allocation28_spill] sm:$0xff] }
 0x707   :  { %4065 = vmatpush.msrb.mxu3 %v5594_v59  ;;  %4026 = vmatmul.f32.vlgmr.msra.gmra.mxu1 %v9461_v63  ;;  %v293_v19 = vadd.f32 %v11200_v24, %v11143_v0 }
 0x708   :  { %4066 = vmatmul.f32.vlgmr.msrb.gmra.mxu3 %v9461_v63  ;;  %4090 = vmatpush.msrb.mxu1 %v5595_v10 }
 0x709   :  { %4130 = vmatpush.msra.mxu3 %v5596_v11  ;;  %4356 = vmatpush.msra.mxu0 %v4315_v61 }
 0x70a   :  { %4091 = vmatpush.msrb.mxu1 %v5597_v28 }
 0x70b   :  { %4131 = vmatpush.msra.mxu3 %v5598_v39  ;;  %4357 = vmatpush.msra.mxu0 %v4314_v60  ;;  %v11201_v60 = vld [vmem:[#allocation29_spill] sm:$0xff] }
 0x70c   :  { %4092 = vmatpush.msrb.mxu1 %v5599_v6  ;;  %v334_v11 = vadd.f32 %v11201_v60, %v11145_v32 }
 0x70d   :  { %4132 = vmatpush.msra.mxu3 %v5600_v17  ;;  %4358 = vmatpush.msra.mxu0 %v4313_v9  ;;  %v11202_v17 = vld [vmem:[#allocation61_spill] sm:$0xff] }
 0x70e   :  { %4093 = vmatpush.msrb.mxu1 %v5601_v46  ;;  %v416_v0 = vadd.f32 %v11202_v17, %v11147_v14 }
 0x70f   :  { %4133 = vmatpush.msra.mxu3 %v5602_v31  ;;  %4359 = vmatpush.msra.mxu0 %v4312_v36 }
 0x710   :  { %4094 = vmatpush.msrb.mxu1 %v5603_v12 }
 0x711   :  { %4134 = vmatpush.msra.mxu3 %v5604_v40  ;;  %4360 = vmatpush.msra.mxu0 %v4311_v37 }
 0x712   :  { %4095 = vmatpush.msrb.mxu1 %v5605_v22  ;;  %v11203_v22 = vld [vmem:[#allocation60_spill] sm:$0xff] }
 0x713   :  { %4135 = vmatpush.msra.mxu3 %v5606_v34  ;;  %4361 = vmatpush.msra.mxu0 %v4310_v1  ;;  %v375_v34 = vadd.f32 %v11203_v22, %v11149_v27 }
 0x714   :  { %4362 = vmatmul.f32.vlgmr.msra.gmra.mxu0 %v11195_v29  ;;  %4096 = vmatpush.msrb.mxu1 %v5607_v25 }
 0x715   :  { %4136 = vmatpush.msra.mxu3 %v5608_v49 }
 0x716   :  { %4097 = vmatpush.msrb.mxu1 %v5609_v38 }
 0x717   :  { %4137 = vmatpush.msra.mxu3 %v5610_v45 }
 0x718   :  { %4098 = vmatpush.msrb.mxu1 %v5611_v13 }
 0x719   :  { %4138 = vmatpush.msra.mxu3 %v5612_v62 }
 0x71a   :  { %4099 = vmatpush.msrb.mxu1 %v5613_v20 }
 0x71b   :  { %4139 = vmatpush.msra.mxu3 %v5614_v30 }
 0x71c   :  { %4365 = vmatmul.f32.gmra.mxu0 %v11196_v50  ;;  %4100 = vmatpush.msrb.mxu1 %v5615_v23 }
 0x71d   :  { %4140 = vmatpush.msra.mxu3 %v5616_v54 }
 0x71e   :  { %4101 = vmatpush.msrb.mxu1 %v5617_v51 }
 0x71f   :  { %4141 = vmatpush.msra.mxu3 %v5618_v52 }
 0x720   :  { %4102 = vmatpush.msrb.mxu1 %v5619_v35 }
 0x721   :  { %4142 = vmatpush.msra.mxu3 %v5620_v21 }
 0x722   :  { %4103 = vmatpush.msrb.mxu1 %v5621_v4 }
 0x723   :  { %4143 = vmatpush.msra.mxu3 %v5622_v57 }
 0x724   :  { %4368 = vmatmul.f32.gmra.mxu0 %v11197_v41  ;;  %4104 = vmatpush.msrb.mxu1 %v5623_v44 }
 0x725   :  { %4144 = vmatpush.msra.mxu3 %v5624_v33 }
 0x726   :  { %4105 = vmatpush.msrb.mxu1 %v5625_v15 }
 0x727   :  { %4145 = vmatpush.msra.mxu3 %v5626_v2  ;;  %4106 = vmatmul.f32.vlgmr.msrb.gmra.mxu1 %v9461_v63  ;;  %v11204_v2 = vld [vmem:[#allocation38_spill] sm:$0xff] }
 0x728   :  { %4146 = vmatmul.f32.vlgmr.msra.gmra.mxu3 %v9461_v63 }
 0x72c   :  { %4371 = vmatmul.f32.gmra.mxu0 %v11198_v26  ;;  %v436_v26 = vadd.f32 %v11204_v2, %v10227_v55  ;;  %v11205_v55 = vld [vmem:[#allocation39_spill] sm:$0xff]  ;;  %v4329_v2 = vld [vmem:[#allocation12 + $0x98] sm:$0xff] }
 0x72d   :  { %v3847_v7 = vpop.f32.mrf.mxu0 }
 0x733   :  { %v3887_v61 = vpop.f32.mrf.mxu2 }
 0x734   :  { %4374 = vmatmul.f32.gmra.mxu0 %v11199_v43 }
 0x735   :  { %v3927_v31 = vpop.f32.mrf.mxu0 }
 0x73c   :  { %4377 = vmatmul.f32.gmra.mxu0 %v9030_v3 }
 0x744   :  { %4380 = vmatmul.f32.gmra.mxu0 %v9374_v16  ;;  %v3967_v16 = vpop.f32.mrf.mxu2 }
 0x74d   :  { %v4007_v57 = vpop.f32.mrf.mxu0 }
 0x763   :  { %v3867_v58 = vpop.f32.mrf.mxu1 }
 0x764   :  { %v3868_v53 = vadd.f32 %v3867_v58, %v3847_v7 }
 0x766   :  { %v4154_v48 = vadd.f32 %v3868_v53, %v293_v19 }
 0x768   :  { %v4499_v59 = vmul.f32 -1.442695, %v4154_v48 }
 0x769   :  { %v3907_v10 = vpop.f32.mrf.mxu3 }
 0x76a   :  { %4772 = vpow2.f32 %v4499_v59  ;;  %v3908_v28 = vadd.f32 %v3907_v10, %v3887_v61 }
 0x76b   :  { %v3947_v46 = vpop.f32.mrf.mxu1 }
 0x76c   :  { %v4155_v9 = vadd.f32 %v3908_v28, %v334_v11  ;;  %v3948_v1 = vadd.f32 %v3947_v46, %v3927_v31  ;;  %v4047_v11 = vpop.f32.mrf.mxu2 }
 0x76e   :  { %v4500_v39 = vmul.f32 -1.442695, %v4155_v9  ;;  %v4156_v49 = vadd.f32 %v3948_v1, %v375_v34  ;;  %v477_v9 = vadd.f32 %v11205_v55, %v10229_v56  ;;  %v4338_v34 = vld [vmem:[#allocation12 + $0xe0] sm:$0xff]  ;;  %v11209_v55 = vld [vmem:[#allocation65_spill] sm:$0xff] }
 0x770   :  { %v4773_v3 = vpop.eup %4772  ;;  %4774 = vpow2.f32 %v4500_v39 }
 0x771   :  { %v4169_v6 = vadd.f32 1.0, %v4773_v3  ;;  %v3987_v36 = vpop.f32.mrf.mxu3 }
 0x772   :  { %v3988_v37 = vadd.f32 %v3987_v36, %v3967_v16 }
 0x773   :  { %4776 = vrcp.f32 %v4169_v6  ;;  %v4181_v13 = vand.u32 2147483648, %v4169_v6  ;;  %v4179_v20 = vand.u32 2147483647, %v4169_v6  ;;  %vm4175_vm9 = vweird.f32 %v4169_v6 }
 0x774   :  { %v4157_v12 = vadd.f32 %v3988_v37, %v416_v0  ;;  %v4341_v0 = vld [vmem:[#allocation12 + $0xf8] sm:$0xff] }
 0x775   :  { %v4182_v27 = vor.u32 1.1754944e-38, %v4181_v13  ;;  %vm4180_vm11 = vcmp.eq.f32.partialorder %v4179_v20, 8.507059e+37  ;;  %4387 = vmatpush.msra.mxu1 %v4341_v0  ;;  %v4334_v20 = vld [vmem:[#allocation12 + $0xc0] sm:$0xff] }
 0x776   :  { %v4775_v40 = vpop.eup %4774  ;;  %v4501_v32 = vmul.f32 -1.442695, %v4157_v12 }
 0x777   :  { %v4188_v29 = vadd.f32 1.0, %v4775_v40  ;;  %v4339_v40 = vld [vmem:[#allocation12 + $0xe8] sm:$0xff] }
 0x778   :  { %4778 = vpow2.f32 %v4501_v32 }
 0x779   :  { %v4777_v25 = vpop.eup %4776  ;;  %4780 = vrcp.f32 %v4188_v29  ;;  %v4200_v21 = vand.u32 2147483648, %v4188_v29  ;;  %v4198_v15 = vand.u32 2147483647, %v4188_v29  ;;  %vm4194_vm13 = vweird.f32 %v4188_v29 }
 0x77a   :  { %v4171_v38 = vmul.f32 %v4777_v25, %v4169_v6  ;;  %4782 = vtanh.f32 %v4156_v49  ;;  %vm4176_vm8 = vweird.f32 %v4777_v25 }
 0x77b   :  { %vm4177_vm10 = vmor %vm4175_vm9, %vm4176_vm8  ;;  %v4201_v24 = vor.u32 1.1754944e-38, %v4200_v21  ;;  %vm4199_vm15 = vcmp.eq.f32.partialorder %v4198_v15, 8.507059e+37 }
 0x77c   :  { %v4172_v45 = vsub.f32 1.0, %v4171_v38  ;;  %v4336_v38 = vld [vmem:[#allocation12 + $0xd0] sm:$0xff] }
 0x77e   :  { %v4779_v14 = vpop.eup %4778  ;;  %v4173_v62 = vmul.f32 %v4777_v25, %v4172_v45 }
 0x77f   :  { %v4781_v30 = vpop.eup %4780  ;;  %v4208_v50 = vadd.f32 1.0, %v4779_v14  ;;  %v4335_v14 = vld [vmem:[#allocation12 + $0xc8] sm:$0xff] }
 0x780   :  { %v4190_v23 = vmul.f32 %v4781_v30, %v4188_v29  ;;  %v4174_v54 = vadd.f32 %v4777_v25, %v4173_v62  ;;  %v4783_v35 = vpop.eup %4782  ;;  %vm4195_vm12 = vweird.f32 %v4781_v30 }
 0x781   :  { %4784 = vrcp.f32 %v4208_v50  ;;  %vm4196_vm14 = vmor %vm4194_vm13, %vm4195_vm12  ;;  %v4220_v17 = vand.u32 2147483648, %v4208_v50  ;;  %vm4214_vm1 = vweird.f32 %v4208_v50  ;;  %v4218_v46 = vand.u32 2147483647, %v4208_v50 }
 0x782   :  { %v4191_v51 = vsub.f32 1.0, %v4190_v23  ;;  %v4178_v52 = vsel %vm4177_vm10, %v4777_v25, %v4174_v54  ;;  %v4337_v25 = vld [vmem:[#allocation12 + $0xd8] sm:$0xff]  ;;  %v4332_v23 = vld [vmem:[#allocation12 + $0xb0] sm:$0xff] }
 0x783   :  { %v4183_v4 = vsel %vm4180_vm11, %v4182_v27, %v4178_v52  ;;  %v4221_v56 = vor.u32 1.1754944e-38, %v4220_v17  ;;  %vm4219_vm3 = vcmp.eq.f32.partialorder %v4218_v46, 8.507059e+37  ;;  %v4087_v52 = vpop.f32.mrf.mxu0 }
 0x784   :  { %v4192_v41 = vmul.f32 %v4781_v30, %v4191_v51  ;;  %v4283_v44 = vmul.f32 %v4783_v35, %v4183_v4  ;;  %v4027_v33 = vpop.f32.mrf.mxu1  ;;  %v4331_v51 = vld [vmem:[#allocation12 + $0xa8] sm:$0xff] }
 0x785   :  { %v4028_v43 = vadd.f32 %v4027_v33, %v4007_v57  ;;  %v4330_v57 = vld [vmem:[#allocation12 + $0xa0] sm:$0xff] }
 0x786   :  { %v4193_v7 = vadd.f32 %v4781_v30, %v4192_v41  ;;  %v11206_v41 = vld [vmem:[#allocation64_spill] sm:$0xff] }
 0x787   :  { %v4785_v58 = vpop.eup %4784  ;;  %v4162_v19 = vadd.f32 %v4028_v43, %v436_v26  ;;  %v4328_v26 = vld [vmem:[#allocation12 + $0x90] sm:$0xff] }
 0x788   :  { %v4197_v53 = vsel %vm4196_vm14, %v4781_v30, %v4193_v7  ;;  %v4210_v48 = vmul.f32 %v4785_v58, %v4208_v50  ;;  %vm4215_vm0 = vweird.f32 %v4785_v58  ;;  %v4333_v30 = vld [vmem:[#allocation12 + $0xb8] sm:$0xff] }
 0x789   :  { %v4502_v61 = vmul.f32 -1.442695, %v4162_v19  ;;  %v4202_v59 = vsel %vm4199_vm15, %v4201_v24, %v4197_v53  ;;  %vm4216_vm2 = vmor %vm4214_vm1, %vm4215_vm0  ;;  %v4327_v53 = vld [vmem:[#allocation12 + $0x88] sm:$0xff] }
 0x78a   :  { %v4211_v10 = vsub.f32 1.0, %v4210_v48  ;;  %v4282_v60 = vmul.f32 %v4202_v59, %v9368_v5  ;;  %v4340_v5 = vld [vmem:[#allocation12 + $0xf0] sm:$0xff] }
 0x78b   :  { %4786 = vpow2.f32 %v4502_v61  ;;  %v4067_v28 = vpop.f32.mrf.mxu3  ;;  %4388 = vmatpush.msra.mxu1 %v4340_v5 }
 0x78c   :  { %v4068_v39 = vadd.f32 %v4067_v28, %v4047_v11  ;;  %v4212_v3 = vmul.f32 %v4785_v58, %v4211_v10  ;;  %v4284_v16 = vadd.f32 %v4283_v44, %v4282_v60  ;;  %v518_v44 = vadd.f32 %v11206_v41, %v11160_v47  ;;  %v4326_v10 = vld [vmem:[#allocation12 + $0x80] sm:$0xff]  ;;  %v4127_v60 = vpop.f32.mrf.mxu2 }
 0x78d   :  { %4389 = vmatpush.msra.mxu1 %v4339_v40 }
 0x78e   :  { %v4163_v6 = vadd.f32 %v4068_v39, %v477_v9  ;;  %v4213_v36 = vadd.f32 %v4785_v58, %v4212_v3  ;;  %4788 = vtanh.f32 %v4284_v16  ;;  %v559_v9 = vadd.f32 %v11209_v55, %v11170_v42 }
 0x78f   :  { %4390 = vmatpush.msra.mxu1 %v4338_v34 }
 0x790   :  { %v4503_v37 = vmul.f32 -1.442695, %v4163_v6  ;;  %v4217_v12 = vsel %vm4216_vm2, %v4785_v58, %v4213_v36 }
 0x791   :  { %v4787_v31 = vpop.eup %4786  ;;  %v4222_v22 = vsel %vm4219_vm3, %v4221_v56, %v4217_v12  ;;  %4391 = vmatpush.msra.mxu1 %v4337_v25 }
 0x792   :  { %v9505_v1 = vadd.f32 1.0, %v4787_v31  ;;  %4790 = vpow2.f32 %v4503_v37 }
 0x793   :  { %4392 = vmatpush.msra.mxu1 %v4336_v38 }
 0x794   :  { %v4789_v32 = vpop.eup %4788  ;;  %4792 = vrcp.f32 %v9505_v1  ;;  %v4239_v47 = vand.u32 2147483648, %v9505_v1  ;;  %vm4233_vm8 = vweird.f32 %v9505_v1  ;;  %v4237_v61 = vand.u32 2147483647, %v9505_v1 }
 0x795   :  { %v4289_v29 = vmul.f32 %v4789_v32, %v4222_v22  ;;  %4393 = vmatpush.msra.mxu1 %v4335_v14  ;;  %v11211_v14 = vld [vmem:[#allocation139_spill] sm:$0xff] }
 0x796   :  { %v4240_v16 = vor.u32 1.1754944e-38, %v4239_v47  ;;  %vm4238_vm11 = vcmp.eq.f32.partialorder %v4237_v61, 8.507059e+37 }
 0x797   :  { %4383 = vmatmul.f32.gmra.mxu0 %v4289_v29  ;;  %4394 = vmatpush.msra.mxu1 %v4334_v20  ;;  %v11213_v20 = vld [vmem:[#allocation73_spill] sm:$0xff] }
 0x798   :  { %v4791_v49 = vpop.eup %4790 }
 0x799   :  { %v4246_v45 = vadd.f32 1.0, %v4791_v49  ;;  %4395 = vmatpush.msra.mxu1 %v4333_v30  ;;  %v11214_v30 = vld [vmem:[#allocation104_spill] sm:$0xff] }
 0x79a   :  { %v4793_v13 = vpop.eup %4792 }
 0x79b   :  { %4794 = vrcp.f32 %v4246_v45  ;;  %v4229_v62 = vmul.f32 %v4793_v13, %v9505_v1  ;;  %4396 = vmatpush.msra.mxu1 %v4332_v23  ;;  %vm4252_vm5 = vweird.f32 %v4246_v45  ;;  %v4258_v43 = vand.u32 2147483648, %v4246_v45 }
 0x79c   :  { %vm4234_vm6 = vweird.f32 %v4793_v13  ;;  %v4256_v19 = vand.u32 2147483647, %v4246_v45 }
 0x79d   :  { %v4230_v50 = vsub.f32 1.0, %v4229_v62  ;;  %4397 = vmatpush.msra.mxu1 %v4331_v51  ;;  %v4259_v11 = vor.u32 1.1754944e-38, %v4258_v43  ;;  %vm4235_vm9 = vmor %vm4233_vm8, %vm4234_vm6  ;;  %v11212_v62 = vld [vmem:[#allocation41_spill] sm:$0xff] }
 0x79e   :  { %vm4257_vm10 = vcmp.eq.f32.partialorder %v4256_v19, 8.507059e+37 }
 0x79f   :  { %v4231_v4 = vmul.f32 %v4793_v13, %v4230_v50  ;;  %4398 = vmatpush.msra.mxu1 %v4330_v57  ;;  %v4363_v50 = vpop.f32.mrf.mxu0 }
 0x7a1   :  { %v4795_v54 = vpop.eup %4794  ;;  %4399 = vmatpush.msra.mxu1 %v4329_v2  ;;  %v4232_v58 = vadd.f32 %v4793_v13, %v4231_v4 }
 0x7a2   :  { %v4248_v27 = vmul.f32 %v4795_v54, %v4246_v45  ;;  %vm4253_vm4 = vweird.f32 %v4795_v54 }
 0x7a3   :  { %vm9511_vm7 = vmor %vm4252_vm5, %vm4253_vm4  ;;  %4400 = vmatpush.msra.mxu1 %v4328_v26  ;;  %v4236_v39 = vsel %vm4235_vm9, %v4793_v13, %v4232_v58  ;;  %v11210_v13 = vld [vmem:[#allocation100_spill] sm:$0xff] }
 0x7a4   :  { %v4249_v35 = vsub.f32 1.0, %v4248_v27  ;;  %v4107_v21 = vpop.f32.mrf.mxu1  ;;  %v4241_v0 = vsel %vm4238_vm11, %v4240_v16, %v4236_v39 }
 0x7a5   :  { %v4108_v33 = vadd.f32 %v4107_v21, %v4087_v52  ;;  %4401 = vmatpush.msra.mxu1 %v4327_v53 }
 0x7a6   :  { %v4250_v15 = vmul.f32 %v4795_v54, %v4249_v35 }
 0x7a7   :  { %v4164_v7 = vadd.f32 %v4108_v33, %v518_v44  ;;  %4402 = vmatpush.msra.mxu1 %v4326_v10  ;;  %v4366_v23 = vpop.f32.mrf.mxu0 }
 0x7a8   :  { %v4251_v24 = vadd.f32 %v4795_v54, %v4250_v15 }
 0x7a9   :  { %4796 = vtanh.f32 %v4164_v7 }
 0x7aa   :  { %v4255_v59 = vsel %vm9511_vm7, %v4795_v54, %v4251_v24  ;;  %v4547_v54 = vld [vmem:[%s9544_s5] ss:$0 sm:$0xff]  ;;  %s5788_s5 = smov [#allocation13]  }
 0x7ab   :  { %v4147_v28 = vpop.f32.mrf.mxu3  ;;  %v4260_v6 = vsel %vm4257_vm10, %v4259_v11, %v4255_v59  ;;  %v4364_v27 = vadd.f32 %v4547_v54, %v4363_v50  ;;  %v4367_v52 = vadd.f32 %v4547_v54, %v4366_v23  ;;  %s4440_s23 = sshll.u32 %s5788_s5, 4  ;;  %s4441_s23 = int_to_ptr.vmem [resolvable:$true] %s4440_s23 }
 0x7ac   :  { %v4148_v3 = vadd.f32 %v4147_v28, %v4127_v60  ;;  %v4285_v46 = vmul.f32 %v4260_v6, %v9430_v18 }
 0x7ae   :  { %v4165_v36 = vadd.f32 %v4148_v3, %v559_v9 }
 0x7af   :  { %v4797_v17 = vpop.eup %4796 }
 0x7b0   :  { %v4286_v37 = vmul.f32 %v4797_v17, %v4241_v0  ;;  %v4504_v5 = vmul.f32 -1.442695, %v4165_v36 }
 0x7b2   :  { %v4287_v31 = vadd.f32 %v4286_v37, %v4285_v46  ;;  %4798 = vpow2.f32 %v4504_v5 }
 0x7b8   :  { %v4799_v12 = vpop.eup %4798 }
 0x7b9   :  { %v4266_v1 = vadd.f32 1.0, %v4799_v12 }
 0x7bb   :  { %4800 = vrcp.f32 %v4266_v1  ;;  %v4278_v32 = vand.u32 2147483648, %v4266_v1  ;;  %v4276_v34 = vand.u32 2147483647, %v4266_v1  ;;  %vm4272_vm13 = vweird.f32 %v4266_v1 }
 0x7bc   :  { %4802 = vtanh.f32 %v4287_v31 }
 0x7bd   :  { %v4279_v25 = vor.u32 1.1754944e-38, %v4278_v32  ;;  %vm4277_vm15 = vcmp.eq.f32.partialorder %v4276_v34, 8.507059e+37 }
 0x7c1   :  { %v4801_v42 = vpop.eup %4800 }
 0x7c2   :  { %v4268_v56 = vmul.f32 %v4801_v42, %v4266_v1  ;;  %vm4273_vm12 = vweird.f32 %v4801_v42  ;;  %v4803_v49 = vpop.eup %4802 }
 0x7c3   :  { %vm4274_vm14 = vmor %vm4272_vm13, %vm4273_vm12 }
 0x7c4   :  { %v4269_v40 = vsub.f32 1.0, %v4268_v56 }
 0x7c6   :  { %v4270_v22 = vmul.f32 %v4801_v42, %v4269_v40 }
 0x7c8   :  { %v4271_v29 = vadd.f32 %v4801_v42, %v4270_v22 }
 0x7ca   :  { %v4275_v18 = vsel %vm4274_vm14, %v4801_v42, %v4271_v29 }
 0x7cb   :  { %v4280_v38 = vsel %vm4277_vm15, %v4279_v25, %v4275_v18 }
 0x7cc   :  { %v4291_v45 = vmul.f32 %v4803_v49, %v4280_v38 }
 0x7ce   :  { %4403 = vmatmul.f32.vlgmr.msra.gmra.mxu1 %v4291_v45 }
 0x7d6   :  { %4406 = vmatmul.f32.gmra.mxu1 %v9461_v63 }
 0x7de   :  { %4409 = vmatmul.f32.gmra.mxu1 %v9243_v8  ;;  %v4369_v8 = vpop.f32.mrf.mxu0 }
 0x7df   :  { %v4370_v57 = vadd.f32 %v4547_v54, %v4369_v8 }
 0x7e6   :  { %4412 = vmatmul.f32.gmra.mxu1 %v11210_v13  ;;  %v4372_v4 = vpop.f32.mrf.mxu0 }
 0x7e7   :  { %v4373_v33 = vadd.f32 %v4547_v54, %v4372_v4 }
 0x7ee   :  { %4415 = vmatmul.f32.gmra.mxu1 %v11211_v14  ;;  %v4375_v15 = vpop.f32.mrf.mxu0 }
 0x7ef   :  { %v4376_v43 = vadd.f32 %v4547_v54, %v4375_v15 }
 0x7f6   :  { %4418 = vmatmul.f32.gmra.mxu1 %v11212_v62  ;;  %v4378_v24 = vpop.f32.mrf.mxu0 }
 0x7f7   :  { %v4379_v19 = vadd.f32 %v4547_v54, %v4378_v24 }
 0x7fe   :  { %4421 = vmatmul.f32.gmra.mxu1 %v11213_v20  ;;  %v4381_v47 = vpop.f32.mrf.mxu0 }
 0x7ff   :  { %v4382_v61 = vadd.f32 %v4547_v54, %v4381_v47 }
 0x806   :  { %4424 = vmatmul.f32.gmra.mxu1 %v11214_v30 }
 0x814   :  { %v4384_v60 = vpop.f32.mrf.mxu0 }
 0x815   :  { %v4385_v11 = vadd.f32 %v4547_v54, %v4384_v60 }
 0x84b   :  { %v4404_v63 = vpop.f32.mrf.mxu1 }
 0x84c   :  { %v4405_v51 = vadd.f32 %v4404_v63, %v4364_v27 }
 0x84e   :  { %4428 = vst [vmem:[#allocation13] sm:$0xff] %v4405_v51 }
 0x853   :  { %v4407_v35 = vpop.f32.mrf.mxu1 }
 0x854   :  { %v4408_v21 = vadd.f32 %v4407_v35, %v4367_v52 }
 0x856   :  { %4429 = vst [vmem:[#allocation13 + $0x8] sm:$0xff] %v4408_v21 }
 0x85b   :  { %v4410_v41 = vpop.f32.mrf.mxu1 }
 0x85c   :  { %v4411_v44 = vadd.f32 %v4410_v41, %v4370_v57 }
 0x85e   :  { %4430 = vst [vmem:[#allocation13 + $0x10] sm:$0xff] %v4411_v44 }
 0x863   :  { %v4413_v2 = vpop.f32.mrf.mxu1 }
 0x864   :  { %v4414_v26 = vadd.f32 %v4413_v2, %v4373_v33 }
 0x866   :  { %4431 = vst [vmem:[#allocation13 + $0x18] sm:$0xff] %v4414_v26 }
 0x86b   :  { %v4416_v7 = vpop.f32.mrf.mxu1 }
 0x86c   :  { %v4417_v58 = vadd.f32 %v4416_v7, %v4376_v43 }
 0x86e   :  { %4432 = vst [vmem:[#allocation13 + $0x20] sm:$0xff] %v4417_v58 }
 0x873   :  { %v4419_v53 = vpop.f32.mrf.mxu1 }
 0x874   :  { %v4420_v48 = vadd.f32 %v4419_v53, %v4379_v19 }
 0x876   :  { %4433 = vst [vmem:[#allocation13 + $0x28] sm:$0xff] %v4420_v48 }
 0x87b   :  { %v4422_v59 = vpop.f32.mrf.mxu1 }
 0x87c   :  { %v4423_v10 = vadd.f32 %v4422_v59, %v4382_v61 }
 0x87e   :  { %4434 = vst [vmem:[#allocation13 + $0x30] sm:$0xff] %v4423_v10 }
 0x883   :  { %v4425_v28 = vpop.f32.mrf.mxu1 }
 0x884   :  { %v4426_v55 = vadd.f32 %v4425_v28, %v4385_v11 }
 0x886   :  { %4435 = vst [vmem:[#allocation13 + $0x38] sm:$0xff] %v4426_v55 }
 0x887   :  { %4448 = dma.vmem_to_hbm [thread:$0]  %s4441_s23, 1024, %s4443_s26, [#allocation6], %s5784_s15, %s5784_s15, %s5785_s16  }
 0x888   :  { %5777 = dma.done.wait [#allocation6], 1024  }
 0x889   :  { %5778 = vsyncadd [#allocation6], 4294966272 }
 0x88a   :  { %4453 = vsyncpa [#allocation5], 1 }
 0x88b   :  { %4454 = vsyncpa [#allocation8], 1 }
 0x88c   :  { %4455 = vsyncpa [#allocation11], 1 }
 0x88d   :  { %4456 = vsyncpa [#allocation6], 1 }

</bundles_post_ra>
